<compile_context>
chip_gen: v5e
topology: v5e:2x2
jax: 0.10.0
libtpu: 0.0.40
codegen_flags: <defaults>
</compile_context>

<pallas_src>
import functools
import math

import numpy as np
import jax
import jax.numpy as jnp
from jax.experimental import pallas as pl
from jax.experimental.pallas import tpu as pltpu


# ------------------------------ matmul helpers ------------------------------

def _mm_nt(a, b):
  # a[m, k] @ b[n, k]^T -> [m, n]   (PyTorch Linear: x @ W^T), f32 accumulate
  return jax.lax.dot_general(a, b, (((1,), (1,)), ((), ())),
                             preferred_element_type=jnp.float32)


def _mm_nn(a, b):
  # a[m, k] @ b[k, n] -> [m, n], f32 accumulate
  return jax.lax.dot_general(a, b, (((1,), (0,)), ((), ())),
                             preferred_element_type=jnp.float32)


# --------------------------------- kernel -----------------------------------

def dnri_decoder_kernel(
    x_ref, h_ref, hs_ref, es_ref,                       # data blocks
    w1r_ref, w1s_ref, b1_ref, w2bd_ref, b2_ref, exp_ref,  # fused message MLP
    winp_ref, binp_ref, whid_ref,                       # packed GRU weights
    wo1_ref, bo1_ref, wo2_ref, bo2_ref, wo3_ref, bo3_ref,  # output MLP
    pred_ref, hnew_ref,
    *, hidden_size, num_slots, rows):
  H = hidden_size
  S = num_slots          # = num_vars - 1 sender slots per receiver
  R = rows               # = TB * num_vars node rows per grid step
  mmdt = w1r_ref.dtype   # matmul operand dtype (bf16)

  x = x_ref[...]                                   # [R, D] f32
  h = h_ref[...]                                   # [R, H] f32
  xb = x.astype(mmdt)
  hb = h.astype(mmdt)

  # Receiver-side msg_fc1 projection (all not-skipped edge types fused), done
  # ONCE per node; in the slot-major edge layout the receiver of slot j at
  # node row r is exactly node r, so no gather is needed for this half.
  hr = _mm_nt(hb, w1r_ref[...]) + b1_ref[...]      # [R, Kn*H] f32

  # Sender-side msg_fc1 on wrapper-pre-gathered hidden states (no block-
  # diagonal one-hot gather matmuls).
  hs2d = jnp.concatenate([hs_ref[j] for j in range(S)], axis=0)   # [S*R, H] bf16
  hs_proj = _mm_nt(hs2d, w1s_ref[...])             # [S*R, Kn*H] f32

  # Edge probabilities arrive as [S, R, Kn]; expand to one multiplier per
  # message lane with a tiny exact f32 one-hot matmul (in-kernel, so the
  # H-inflated tensor is never streamed from HBM).
  es2d = jnp.concatenate([es_ref[j] for j in range(S)], axis=0)   # [S*R, Kn] f32
  ee = _mm_nn(es2d, exp_ref[...])                  # [S*R, Kn*H] f32

  # Fused message MLP over all sender slots / edge types.
  hr_t = jnp.concatenate([hr] * S, axis=0)         # [S*R, Kn*H]
  msg1 = jnp.tanh(hs_proj + hr_t)
  # TODO(synk): F.dropout omitted -- eval mode (p = 0.0) reproduced exactly.
  msg2 = jnp.tanh(_mm_nn(msg1.astype(mmdt), w2bd_ref[...]) + b2_ref[...])
  scaled = msg2 * ee                               # [S*R, Kn*H]

  # Edge -> node aggregation: slot-major layout makes this a plain sum over
  # the S row-slabs (tile-aligned sublane slices, VPU adds).  Type-sum, 1/norm
  # and 1/(num_vars-1) are folded into whid_ref (type-tiled hidden->gate W).
  typed = scaled[0:R, :]
  for j in range(1, S):
    typed = typed + scaled[j * R:(j + 1) * R, :]   # [R, Kn*H]

  # GRU cell with packed gate weights (row blocks: r | i | n).
  inp = _mm_nt(xb, winp_ref[...]) + binp_ref[...]        # [R, 3H]
  hproj = _mm_nt(typed.astype(mmdt), whid_ref[...])      # [R, 3H]
  r = jax.nn.sigmoid(inp[:, :H] + hproj[:, :H])
  ig = jax.nn.sigmoid(inp[:, H:2 * H] + hproj[:, H:2 * H])
  ng = jnp.tanh(inp[:, 2 * H:] + r * hproj[:, 2 * H:])
  h_new = (1.0 - ig) * ng + ig * h                       # f32

  # Output MLP + residual.
  p = jax.nn.relu(_mm_nt(h_new.astype(mmdt), wo1_ref[...]) + bo1_ref[...])
  p = jax.nn.relu(_mm_nt(p.astype(mmdt), wo2_ref[...]) + bo2_ref[...])
  p = _mm_nt(p.astype(mmdt), wo3_ref[...]) + bo3_ref[...]

  pred_ref[...] = (x + p).astype(pred_ref.dtype)
  hnew_ref[...] = h_new.astype(hnew_ref.dtype)


# ------------------------------ host wrapper ---------------------------------

def encode_onehot(labels, num_classes):
  out = np.zeros((len(labels), num_classes), dtype=np.float32)
  out[np.arange(len(labels)), labels] = 1.0
  return out


def _default_target_rows():
  """MXU row target per step: 256 for v6e/v7x (256-wide MXU), 128 for <=v5."""
  try:
    kind = jax.devices()[0].device_kind.lower()
  except Exception:
    return 256
  if any(t in kind for t in ('v2', 'v3', 'v4', 'v5')):
    return 128
  return 256


def _choose_batch_block(B, N, target_rows):
  """Pick TB batch elems/step so TB*N ~ target_rows and (TB*N) % 8 == 0.

  Awkward batch sizes are handled by padding B up to nblk*TB in the wrapper
  (never a pathological whole-batch block).  When blocked, nblk >= 2, so the
  'parallel' batch axis gives both v7x TensorCores work.
  Returns (TB, nblk, padded_B).
  """
  if B * N <= max(target_rows, 8):
    return B, 1, B
  step = 8 // math.gcd(N, 8)                 # smallest TB with TB*N % 8 == 0
  tb = max(step, (target_rows // N) // step * step)
  if tb >= B:
    return B, 1, B
  nblk = -(-B // tb)
  return tb, nblk, nblk * tb


def make_dnri_decoder(params, *, num_vars, input_size, n_hid, num_edge_types,
                      skip_first=True, model_type='dnri',
                      mm_dtype=jnp.bfloat16, target_rows=None):
  """Packs weights host-side and returns a jitted forward(x, hidden, edges)."""
  if skip_first and model_type == 'dnri':
    ns = list(range(1, num_edge_types))
  else:
    ns = list(range(num_edge_types))
  Kn = len(ns)
  H, D, N = n_hid, input_size, num_vars
  S = N - 1                                   # sender slots per receiver
  norm = float(Kn)
  if target_rows is None:
    target_rows = _default_target_rows()

  # ---- graph connectivity (same np.where order as the PyTorch module) ----
  adj = np.ones((N, N), np.float32) - np.eye(N, dtype=np.float32)
  send_edges = np.where(adj)[0]
  recv_edges = np.where(adj)[1]
  E = len(send_edges)

  # Slot-major re-indexing: (slot j, receiver r) <-> j-th sender of node r.
  eid = np.full((N, N), -1, np.int64)
  eid[send_edges, recv_edges] = np.arange(E)
  senders_per_recv = np.stack(
      [np.array([s for s in range(N) if s != r]) for r in range(N)], axis=1)  # [S, N]
  orig_edge_idx = eid[senders_per_recv, np.arange(N)[None, :]]                # [S, N]
  assert (orig_edge_idx >= 0).all()
  send_idx = jnp.asarray(senders_per_recv.reshape(-1), jnp.int32)   # [S*N]
  edge_idx = jnp.asarray(orig_edge_idx.reshape(-1), jnp.int32)      # [S*N]
  ns_idx = jnp.asarray(ns, jnp.int32)

  # ---- host-side weight packing ----
  # NOTE: every edge-type-fused tensor uses the SAME type-major contiguous
  # H-block column layout in the order `ns` (w1r/w1s, b1, w2bd, b2, expand,
  # w_hid_kn) -- keep them in sync.
  w1 = params['w1']                                        # [K, H, 2H]
  w1r = jnp.concatenate([w1[i, :, :H] for i in ns], axis=0).astype(mm_dtype)  # [Kn*H, H]
  w1s = jnp.concatenate([w1[i, :, H:] for i in ns], axis=0).astype(mm_dtype)  # [Kn*H, H]
  b1 = jnp.concatenate([params['b1'][i].reshape(1, H) for i in ns], axis=1)
  w2_np = np.asarray(params['w2'], np.float32)             # [K, H, H]
  w2bd_np = np.zeros((Kn * H, Kn * H), np.float32)
  for j, t in enumerate(ns):
    w2bd_np[j * H:(j + 1) * H, j * H:(j + 1) * H] = w2_np[t].T
  w2bd = jnp.asarray(w2bd_np).astype(mm_dtype)             # msg1 @ w2bd == per-type fc2
  b2 = jnp.concatenate([params['b2'][i].reshape(1, H) for i in ns], axis=1)
  # One-hot type expansion (kept f32 => exact): prob[:, k] -> H lanes of type k.
  expand = jnp.asarray(np.kron(np.eye(Kn, dtype=np.float32),
                               np.ones((1, H), np.float32)))          # [Kn, Kn*H]

  w_inp = jnp.concatenate([params['wir'], params['wii'], params['win']],
                          axis=0).astype(mm_dtype)                    # [3H, D]
  b_inp = jnp.concatenate([params['bir'], params['bii'], params['bin']],
                          axis=1)                                     # [1, 3H]
  # Type-sum, 1/norm and 1/(num_vars-1) all folded into hidden->gate weights.
  w_hid = jnp.concatenate([params['wr'], params['wi'], params['wh']], axis=0)
  w_hid_kn = (jnp.tile(w_hid, (1, Kn))
              * (1.0 / (norm * (N - 1)))).astype(mm_dtype)            # [3H, Kn*H]

  wo1 = params['wo1'].astype(mm_dtype); bo1 = params['bo1']
  wo2 = params['wo2'].astype(mm_dtype); bo2 = params['bo2']
  wo3 = params['wo3'].astype(mm_dtype); bo3 = params['bo3']

  weights = (w1r, w1s, b1, w2bd, b2, expand, w_inp, b_inp, w_hid_kn,
             wo1, bo1, wo2, bo2, wo3, bo3)

  @jax.jit
  def forward(x, hidden, edges):
    B = x.shape[0]
    TB, nblk, Bp = _choose_batch_block(B, N, target_rows)
    R = TB * N

    xp, hp, ep = x, hidden, edges
    if Bp != B:        # pad awkward batch sizes instead of a whole-batch block
      pad = Bp - B
      xp = jnp.pad(x, ((0, pad), (0, 0), (0, 0)))
      hp = jnp.pad(hidden, ((0, pad), (0, 0), (0, 0)))
      ep = jnp.pad(edges, ((0, pad), (0, 0), (0, 0)))

    # Node-row data (free row-major reshapes).
    x2d = xp.reshape(Bp * N, D)
    h2d = hp.reshape(Bp * N, H)
    # Sender-gathered hidden states + selected edge probabilities, slot-major
    # [S, Bp*N, *]: row (j, b*N + r) is the edge sender(j, r) -> r.
    hs = jnp.take(hp, send_idx, axis=1).reshape(Bp, S, N, H)
    hs = jnp.transpose(hs, (1, 0, 2, 3)).reshape(S, Bp * N, H).astype(mm_dtype)
    es = jnp.take(jnp.take(ep, edge_idx, axis=1), ns_idx, axis=2)
    es = es.reshape(Bp, S, N, Kn)
    es = jnp.transpose(es, (1, 0, 2, 3)).reshape(S, Bp * N, Kn)

    data_specs = [
        pl.BlockSpec((R, D), lambda b: (b, 0)),
        pl.BlockSpec((R, H), lambda b: (b, 0)),
        pl.BlockSpec((S, R, H), lambda b: (0, b, 0)),
        pl.BlockSpec((S, R, Kn), lambda b: (0, b, 0)),
    ]
    # Grid-invariant weights: constant index map => DMA'd once across the grid.
    weight_specs = [pl.BlockSpec(w.shape, lambda b: (0, 0)) for w in weights]

    kernel = functools.partial(dnri_decoder_kernel, hidden_size=H,
                               num_slots=S, rows=R)

    pred2d, hnew2d = pl.pallas_call(
        kernel,
        out_shape=(jax.ShapeDtypeStruct((Bp * N, D), jnp.float32),
                   jax.ShapeDtypeStruct((Bp * N, H), jnp.float32)),
        grid=(nblk,),
        in_specs=data_specs + weight_specs,
        out_specs=(pl.BlockSpec((R, D), lambda b: (b, 0)),
                   pl.BlockSpec((R, H), lambda b: (b, 0))),
        compiler_params=pltpu.CompilerParams(
            dimension_semantics=("parallel",),       # batch blocks independent
            vmem_limit_bytes=32 * 1024 * 1024),      # above v5e's 16 MiB default
    )(x2d, h2d, hs, es, *weights)

    return (pred2d[:B * N].reshape(B, N, D),
            hnew2d[:B * N].reshape(B, N, H))

  return forward


# ------------- parameter construction & pure-JAX f32 reference ---------------

def xavier_normal(key, out_f, in_f):
  std = math.sqrt(2.0 / (in_f + out_f))
  return (std * jax.random.normal(key, (out_f, in_f))).astype(jnp.float32)


def make_params(key, num_vars, input_size, n_hid, num_edge_types):
  ks = iter(jax.random.split(key, 64))
  K, H, D = num_edge_types, n_hid, input_size
  w1 = jnp.stack([xavier_normal(next(ks), H, 2 * H) for _ in range(K)])  # [K,H,2H]
  w2 = jnp.stack([xavier_normal(next(ks), H, H) for _ in range(K)])      # [K,H,H]
  return {
      'w1': w1,
      'b1': jnp.full((K, 1, H), 0.1, jnp.float32),
      'w2': w2,
      'b2': jnp.full((K, 1, H), 0.1, jnp.float32),
      'wr': xavier_normal(next(ks), H, H),
      'wi': xavier_normal(next(ks), H, H),
      'wh': xavier_normal(next(ks), H, H),
      'wir': xavier_normal(next(ks), H, D), 'bir': jnp.full((1, H), 0.1, jnp.float32),
      'wii': xavier_normal(next(ks), H, D), 'bii': jnp.full((1, H), 0.1, jnp.float32),
      'win': xavier_normal(next(ks), H, D), 'bin': jnp.full((1, H), 0.1, jnp.float32),
      'wo1': xavier_normal(next(ks), H, H), 'bo1': jnp.full((1, H), 0.1, jnp.float32),
      'wo2': xavier_normal(next(ks), H, H), 'bo2': jnp.full((1, H), 0.1, jnp.float32),
      'wo3': xavier_normal(next(ks), D, H), 'bo3': jnp.full((1, D), 0.1, jnp.float32),
  }


def reference_forward(x, h, e, params, send_edges, recv_edges, e2n,
                      not_skipped, num_vars):
  receivers = h[:, recv_edges, :]
  senders = h[:, send_edges, :]
  pre_msg = jnp.concatenate([receivers, senders], axis=-1)
  norm = float(len(not_skipped))
  all_msgs = jnp.zeros(receivers.shape, jnp.float32)
  for i in not_skipped:
    m = jnp.tanh(jnp.einsum('bef,of->beo', pre_msg, params['w1'][i]) + params['b1'][i])
    m = jnp.tanh(jnp.einsum('bef,of->beo', m, params['w2'][i]) + params['b2'][i])
    m = m * e[:, :, i:i + 1]
    all_msgs = all_msgs + m / norm
  agg = jnp.einsum('beh,en->bnh', all_msgs, e2n) / (num_vars - 1)
  inp_r = jnp.einsum('bnd,hd->bnh', x, params['wir']) + params['bir']
  inp_i = jnp.einsum('bnd,hd->bnh', x, params['wii']) + params['bii']
  inp_n = jnp.einsum('bnd,hd->bnh', x, params['win']) + params['bin']
  r = jax.nn.sigmoid(inp_r + jnp.einsum('bnh,oh->bno', agg, params['wr']))
  i_g = jax.nn.sigmoid(inp_i + jnp.einsum('bnh,oh->bno', agg, params['wi']))
  n_g = jnp.tanh(inp_n + r * jnp.einsum('bnh,oh->bno', agg, params['wh']))
  h_new = (1.0 - i_g) * n_g + i_g * h
  p = jax.nn.relu(jnp.einsum('bnh,oh->bno', h_new, params['wo1']) + params['bo1'])
  p = jax.nn.relu(jnp.einsum('bnh,oh->bno', p, params['wo2']) + params['bo2'])
  p = jnp.einsum('bnh,dh->bnd', p, params['wo3']) + params['bo3']
  return x + p, h_new


if __name__ == "__main__":
  # Module config (synthetic, deterministic).  B chosen so the batch-blocked
  # kernel runs a multi-step "parallel" grid on every generation
  # (TB=64 / 2 steps on v6e/v7x, TB=32 / 4 steps on v5e).
  num_vars, input_size, n_hid, num_edge_types = 4, 4, 32, 3
  skip_first, model_type = True, 'dnri'
  B = 128
  E = num_vars * (num_vars - 1)

  key = jax.random.PRNGKey(0)
  kp, kx, kh, ke = jax.random.split(key, 4)
  params = make_params(kp, num_vars, input_size, n_hid, num_edge_types)

  forward = make_dnri_decoder(
      params, num_vars=num_vars, input_size=input_size, n_hid=n_hid,
      num_edge_types=num_edge_types, skip_first=skip_first,
      model_type=model_type, mm_dtype=jnp.bfloat16)

  x = jax.random.normal(kx, (B, num_vars, input_size), jnp.float32)
  hidden = jax.random.normal(kh, (B, num_vars, n_hid), jnp.float32)
  edge_logits = jax.random.uniform(ke, (B, E, num_edge_types), jnp.float32)
  edge_probs = jax.nn.softmax(edge_logits, axis=-1)

  pred, h_new = jax.block_until_ready(forward(x, hidden, edge_probs))

  # Pure-JAX f32 reference (mirrors the PyTorch forward).
  adj = np.ones((num_vars, num_vars)) - np.eye(num_vars)
  send_edges = np.where(adj)[0]
  recv_edges = np.where(adj)[1]
  e2n = jnp.asarray(encode_onehot(recv_edges, num_vars))
  if skip_first and model_type == 'dnri':
    not_skipped = list(range(1, num_edge_types))
  else:
    not_skipped = list(range(num_edge_types))
  pred_ref, h_ref = reference_forward(x, hidden, edge_probs, params,
                                      send_edges, recv_edges, e2n,
                                      not_skipped, num_vars)

  # bf16 matmul operands with f32 accumulation -> slightly looser tolerance.
  np.testing.assert_allclose(np.asarray(pred), np.asarray(pred_ref),
                             rtol=2e-2, atol=2e-2)
  np.testing.assert_allclose(np.asarray(h_new), np.asarray(h_ref),
                             rtol=2e-2, atol=2e-2)
  print("KERNEL_OK")
</pallas_src>

<mosaic_0001>
module attributes {stable_mosaic.version = 11 : i64} {
  func.func @dnri_decoder_kernel(%arg0: i32, %arg1: memref<256x4xf32, #tpu.memory_space<vmem>>, %arg2: memref<256x32xf32, #tpu.memory_space<vmem>>, %arg3: memref<3x256x32xbf16, #tpu.memory_space<vmem>>, %arg4: memref<3x256x2xf32, #tpu.memory_space<vmem>>, %arg5: memref<64x32xbf16, #tpu.memory_space<vmem>>, %arg6: memref<64x32xbf16, #tpu.memory_space<vmem>>, %arg7: memref<1x64xf32, #tpu.memory_space<vmem>>, %arg8: memref<64x64xbf16, #tpu.memory_space<vmem>>, %arg9: memref<1x64xf32, #tpu.memory_space<vmem>>, %arg10: memref<2x64xf32, #tpu.memory_space<vmem>>, %arg11: memref<96x4xbf16, #tpu.memory_space<vmem>>, %arg12: memref<1x96xf32, #tpu.memory_space<vmem>>, %arg13: memref<96x64xbf16, #tpu.memory_space<vmem>>, %arg14: memref<32x32xbf16, #tpu.memory_space<vmem>>, %arg15: memref<1x32xf32, #tpu.memory_space<vmem>>, %arg16: memref<32x32xbf16, #tpu.memory_space<vmem>>, %arg17: memref<1x32xf32, #tpu.memory_space<vmem>>, %arg18: memref<4x32xbf16, #tpu.memory_space<vmem>>, %arg19: memref<1x4xf32, #tpu.memory_space<vmem>>, %arg20: memref<256x4xf32, #tpu.memory_space<vmem>>, %arg21: memref<256x32xf32, #tpu.memory_space<vmem>>) attributes {dimension_semantics = [#tpu.dimension_semantics<parallel>], iteration_bounds = array<i64: 2>, scalar_prefetch = 0 : i64, scratch_operands = 0 : i64, tpu.core_type = #tpu.core_type<tc>, window_params = [{transform_indices = @transform_0, window_bounds = array<i64: 256, 4>}, {transform_indices = @transform_1, window_bounds = array<i64: 256, 32>}, {transform_indices = @transform_2, window_bounds = array<i64: 3, 256, 32>}, {transform_indices = @transform_3, window_bounds = array<i64: 3, 256, 2>}, {pipeline_mode = #tpu.pipeline_mode<synchronous>, transform_indices = @transform_4, window_bounds = array<i64: 64, 32>}, {pipeline_mode = #tpu.pipeline_mode<synchronous>, transform_indices = @transform_5, window_bounds = array<i64: 64, 32>}, {pipeline_mode = #tpu.pipeline_mode<synchronous>, transform_indices = @transform_6, window_bounds = array<i64: 1, 64>}, {pipeline_mode = #tpu.pipeline_mode<synchronous>, transform_indices = @transform_7, window_bounds = array<i64: 64, 64>}, {pipeline_mode = #tpu.pipeline_mode<synchronous>, transform_indices = @transform_8, window_bounds = array<i64: 1, 64>}, {pipeline_mode = #tpu.pipeline_mode<synchronous>, transform_indices = @transform_9, window_bounds = array<i64: 2, 64>}, {pipeline_mode = #tpu.pipeline_mode<synchronous>, transform_indices = @transform_10, window_bounds = array<i64: 96, 4>}, {pipeline_mode = #tpu.pipeline_mode<synchronous>, transform_indices = @transform_11, window_bounds = array<i64: 1, 96>}, {pipeline_mode = #tpu.pipeline_mode<synchronous>, transform_indices = @transform_12, window_bounds = array<i64: 96, 64>}, {pipeline_mode = #tpu.pipeline_mode<synchronous>, transform_indices = @transform_13, window_bounds = array<i64: 32, 32>}, {pipeline_mode = #tpu.pipeline_mode<synchronous>, transform_indices = @transform_14, window_bounds = array<i64: 1, 32>}, {pipeline_mode = #tpu.pipeline_mode<synchronous>, transform_indices = @transform_15, window_bounds = array<i64: 32, 32>}, {pipeline_mode = #tpu.pipeline_mode<synchronous>, transform_indices = @transform_16, window_bounds = array<i64: 1, 32>}, {pipeline_mode = #tpu.pipeline_mode<synchronous>, transform_indices = @transform_17, window_bounds = array<i64: 4, 32>}, {pipeline_mode = #tpu.pipeline_mode<synchronous>, transform_indices = @transform_18, window_bounds = array<i64: 1, 4>}, {transform_indices = @transform_19, window_bounds = array<i64: 256, 4>}, {transform_indices = @transform_20, window_bounds = array<i64: 256, 32>}]} {
    %c0 = arith.constant 0 : index
    %c0_0 = arith.constant 0 : index
    %0 = vector.load %arg1[%c0, %c0_0] : memref<256x4xf32, #tpu.memory_space<vmem>>, vector<256x4xf32>
    %c0_1 = arith.constant 0 : index
    %c0_2 = arith.constant 0 : index
    %1 = vector.load %arg2[%c0_1, %c0_2] : memref<256x32xf32, #tpu.memory_space<vmem>>, vector<256x32xf32>
    %2 = arith.truncf %0 : vector<256x4xf32> to vector<256x4xbf16>
    %3 = arith.truncf %1 : vector<256x32xf32> to vector<256x32xbf16>
    %c0_3 = arith.constant 0 : index
    %c0_4 = arith.constant 0 : index
    %4 = vector.load %arg5[%c0_3, %c0_4] : memref<64x32xbf16, #tpu.memory_space<vmem>>, vector<64x32xbf16>
    %cst = arith.constant dense<0.000000e+00> : vector<256x64xf32>
    %5 = tpu.matmul %3, %4, %cst {dimension_numbers = #tpu.dot_dimension_numbers<[1], [1], [0], [0], [0, 0, 1, 0], [], []>} : vector<256x32xbf16>, vector<64x32xbf16>, vector<256x64xf32> -> vector<256x64xf32>
    %c0_5 = arith.constant 0 : index
    %c0_6 = arith.constant 0 : index
    %6 = vector.load %arg7[%c0_5, %c0_6] : memref<1x64xf32, #tpu.memory_space<vmem>>, vector<1x64xf32>
    %7 = vector.broadcast %6 : vector<1x64xf32> to vector<256x64xf32>
    %8 = arith.addf %5, %7 : vector<256x64xf32>
    %c0_7 = arith.constant 0 : index
    %c0_8 = arith.constant 0 : index
    %c0_9 = arith.constant 0 : index
    %9 = vector.load %arg3[%c0_7, %c0_8, %c0_9] : memref<3x256x32xbf16, #tpu.memory_space<vmem>>, vector<1x256x32xbf16>
    %10 = vector.shape_cast %9 : vector<1x256x32xbf16> to vector<256x32xbf16>
    %c1 = arith.constant 1 : index
    %c0_10 = arith.constant 0 : index
    %c0_11 = arith.constant 0 : index
    %11 = vector.load %arg3[%c1, %c0_10, %c0_11] : memref<3x256x32xbf16, #tpu.memory_space<vmem>>, vector<1x256x32xbf16>
    %12 = vector.shape_cast %11 : vector<1x256x32xbf16> to vector<256x32xbf16>
    %c2 = arith.constant 2 : index
    %c0_12 = arith.constant 0 : index
    %c0_13 = arith.constant 0 : index
    %13 = vector.load %arg3[%c2, %c0_12, %c0_13] : memref<3x256x32xbf16, #tpu.memory_space<vmem>>, vector<1x256x32xbf16>
    %14 = vector.shape_cast %13 : vector<1x256x32xbf16> to vector<256x32xbf16>
    %15 = tpu.concatenate %10, %12, %14 in 0 : vector<256x32xbf16>, vector<256x32xbf16>, vector<256x32xbf16> -> vector<768x32xbf16>
    %c0_14 = arith.constant 0 : index
    %c0_15 = arith.constant 0 : index
    %16 = vector.load %arg6[%c0_14, %c0_15] : memref<64x32xbf16, #tpu.memory_space<vmem>>, vector<64x32xbf16>
    %cst_16 = arith.constant dense<0.000000e+00> : vector<768x64xf32>
    %17 = tpu.matmul %15, %16, %cst_16 {dimension_numbers = #tpu.dot_dimension_numbers<[1], [1], [0], [0], [0, 0, 1, 0], [], []>} : vector<768x32xbf16>, vector<64x32xbf16>, vector<768x64xf32> -> vector<768x64xf32>
    %c0_17 = arith.constant 0 : index
    %c0_18 = arith.constant 0 : index
    %c0_19 = arith.constant 0 : index
    %18 = vector.load %arg4[%c0_17, %c0_18, %c0_19] : memref<3x256x2xf32, #tpu.memory_space<vmem>>, vector<1x256x2xf32>
    %19 = vector.shape_cast %18 : vector<1x256x2xf32> to vector<256x2xf32>
    %c1_20 = arith.constant 1 : index
    %c0_21 = arith.constant 0 : index
    %c0_22 = arith.constant 0 : index
    %20 = vector.load %arg4[%c1_20, %c0_21, %c0_22] : memref<3x256x2xf32, #tpu.memory_space<vmem>>, vector<1x256x2xf32>
    %21 = vector.shape_cast %20 : vector<1x256x2xf32> to vector<256x2xf32>
    %c2_23 = arith.constant 2 : index
    %c0_24 = arith.constant 0 : index
    %c0_25 = arith.constant 0 : index
    %22 = vector.load %arg4[%c2_23, %c0_24, %c0_25] : memref<3x256x2xf32, #tpu.memory_space<vmem>>, vector<1x256x2xf32>
    %23 = vector.shape_cast %22 : vector<1x256x2xf32> to vector<256x2xf32>
    %24 = tpu.concatenate %19, %21, %23 in 0 : vector<256x2xf32>, vector<256x2xf32>, vector<256x2xf32> -> vector<768x2xf32>
    %c0_26 = arith.constant 0 : index
    %c0_27 = arith.constant 0 : index
    %25 = vector.load %arg10[%c0_26, %c0_27] : memref<2x64xf32, #tpu.memory_space<vmem>>, vector<2x64xf32>
    %cst_28 = arith.constant dense<0.000000e+00> : vector<768x64xf32>
    %26 = tpu.matmul %24, %25, %cst_28 {dimension_numbers = #tpu.dot_dimension_numbers<[1], [0], [0], [1], [0, 0, 1, 1], [], []>} : vector<768x2xf32>, vector<2x64xf32>, vector<768x64xf32> -> vector<768x64xf32>
    %27 = tpu.concatenate %8, %8, %8 in 0 : vector<256x64xf32>, vector<256x64xf32>, vector<256x64xf32> -> vector<768x64xf32>
    %28 = arith.addf %17, %27 : vector<768x64xf32>
    %29 = math.tanh %28 : vector<768x64xf32>
    %30 = arith.truncf %29 : vector<768x64xf32> to vector<768x64xbf16>
    %c0_29 = arith.constant 0 : index
    %c0_30 = arith.constant 0 : index
    %31 = vector.load %arg8[%c0_29, %c0_30] : memref<64x64xbf16, #tpu.memory_space<vmem>>, vector<64x64xbf16>
    %cst_31 = arith.constant dense<0.000000e+00> : vector<768x64xf32>
    %32 = tpu.matmul %30, %31, %cst_31 {dimension_numbers = #tpu.dot_dimension_numbers<[1], [0], [0], [1], [0, 0, 1, 1], [], []>} : vector<768x64xbf16>, vector<64x64xbf16>, vector<768x64xf32> -> vector<768x64xf32>
    %c0_32 = arith.constant 0 : index
    %c0_33 = arith.constant 0 : index
    %33 = vector.load %arg9[%c0_32, %c0_33] : memref<1x64xf32, #tpu.memory_space<vmem>>, vector<1x64xf32>
    %34 = vector.broadcast %33 : vector<1x64xf32> to vector<768x64xf32>
    %35 = arith.addf %32, %34 : vector<768x64xf32>
    %36 = math.tanh %35 : vector<768x64xf32>
    %37 = arith.mulf %36, %26 : vector<768x64xf32>
    %38 = vector.extract_strided_slice %37 {offsets = [0, 0], sizes = [256, 64], strides = [1, 1]} : vector<768x64xf32> to vector<256x64xf32>
    %39 = vector.extract_strided_slice %37 {offsets = [256, 0], sizes = [256, 64], strides = [1, 1]} : vector<768x64xf32> to vector<256x64xf32>
    %40 = arith.addf %38, %39 : vector<256x64xf32>
    %41 = vector.extract_strided_slice %37 {offsets = [512, 0], sizes = [256, 64], strides = [1, 1]} : vector<768x64xf32> to vector<256x64xf32>
    %42 = arith.addf %40, %41 : vector<256x64xf32>
    %c0_34 = arith.constant 0 : index
    %c0_35 = arith.constant 0 : index
    %43 = vector.load %arg11[%c0_34, %c0_35] : memref<96x4xbf16, #tpu.memory_space<vmem>>, vector<96x4xbf16>
    %cst_36 = arith.constant dense<0.000000e+00> : vector<256x96xf32>
    %44 = tpu.matmul %2, %43, %cst_36 {dimension_numbers = #tpu.dot_dimension_numbers<[1], [1], [0], [0], [0, 0, 1, 0], [], []>} : vector<256x4xbf16>, vector<96x4xbf16>, vector<256x96xf32> -> vector<256x96xf32>
    %c0_37 = arith.constant 0 : index
    %c0_38 = arith.constant 0 : index
    %45 = vector.load %arg12[%c0_37, %c0_38] : memref<1x96xf32, #tpu.memory_space<vmem>>, vector<1x96xf32>
    %46 = vector.broadcast %45 : vector<1x96xf32> to vector<256x96xf32>
    %47 = arith.addf %44, %46 : vector<256x96xf32>
    %48 = arith.truncf %42 : vector<256x64xf32> to vector<256x64xbf16>
    %c0_39 = arith.constant 0 : index
    %c0_40 = arith.constant 0 : index
    %49 = vector.load %arg13[%c0_39, %c0_40] : memref<96x64xbf16, #tpu.memory_space<vmem>>, vector<96x64xbf16>
    %cst_41 = arith.constant dense<0.000000e+00> : vector<256x96xf32>
    %50 = tpu.matmul %48, %49, %cst_41 {dimension_numbers = #tpu.dot_dimension_numbers<[1], [1], [0], [0], [0, 0, 1, 0], [], []>} : vector<256x64xbf16>, vector<96x64xbf16>, vector<256x96xf32> -> vector<256x96xf32>
    %51 = vector.extract_strided_slice %47 {offsets = [0, 0], sizes = [256, 32], strides = [1, 1]} : vector<256x96xf32> to vector<256x32xf32>
    %52 = vector.extract_strided_slice %50 {offsets = [0, 0], sizes = [256, 32], strides = [1, 1]} : vector<256x96xf32> to vector<256x32xf32>
    %53 = arith.addf %51, %52 : vector<256x32xf32>
    %54 = arith.negf %53 : vector<256x32xf32>
    %55 = math.exp %54 : vector<256x32xf32>
    %cst_42 = arith.constant 1.000000e+00 : f32
    %56 = vector.broadcast %cst_42 : f32 to vector<256x32xf32>
    %57 = arith.addf %56, %55 : vector<256x32xf32>
    %58 = arith.divf %56, %57 : vector<256x32xf32>
    %59 = vector.extract_strided_slice %47 {offsets = [0, 32], sizes = [256, 32], strides = [1, 1]} : vector<256x96xf32> to vector<256x32xf32>
    %60 = vector.extract_strided_slice %50 {offsets = [0, 32], sizes = [256, 32], strides = [1, 1]} : vector<256x96xf32> to vector<256x32xf32>
    %61 = arith.addf %59, %60 : vector<256x32xf32>
    %62 = arith.negf %61 : vector<256x32xf32>
    %63 = math.exp %62 : vector<256x32xf32>
    %cst_43 = arith.constant 1.000000e+00 : f32
    %64 = vector.broadcast %cst_43 : f32 to vector<256x32xf32>
    %65 = arith.addf %64, %63 : vector<256x32xf32>
    %66 = arith.divf %64, %65 : vector<256x32xf32>
    %67 = vector.extract_strided_slice %47 {offsets = [0, 64], sizes = [256, 32], strides = [1, 1]} : vector<256x96xf32> to vector<256x32xf32>
    %68 = vector.extract_strided_slice %50 {offsets = [0, 64], sizes = [256, 32], strides = [1, 1]} : vector<256x96xf32> to vector<256x32xf32>
    %69 = arith.mulf %58, %68 : vector<256x32xf32>
    %70 = arith.addf %67, %69 : vector<256x32xf32>
    %71 = math.tanh %70 : vector<256x32xf32>
    %cst_44 = arith.constant 1.000000e+00 : f32
    %72 = vector.broadcast %cst_44 : f32 to vector<256x32xf32>
    %73 = arith.subf %72, %66 : vector<256x32xf32>
    %74 = arith.mulf %73, %71 : vector<256x32xf32>
    %75 = arith.mulf %66, %1 : vector<256x32xf32>
    %76 = arith.addf %74, %75 : vector<256x32xf32>
    %77 = arith.truncf %76 : vector<256x32xf32> to vector<256x32xbf16>
    %c0_45 = arith.constant 0 : index
    %c0_46 = arith.constant 0 : index
    %78 = vector.load %arg14[%c0_45, %c0_46] : memref<32x32xbf16, #tpu.memory_space<vmem>>, vector<32x32xbf16>
    %cst_47 = arith.constant dense<0.000000e+00> : vector<256x32xf32>
    %79 = tpu.matmul %77, %78, %cst_47 {dimension_numbers = #tpu.dot_dimension_numbers<[1], [1], [0], [0], [0, 0, 1, 0], [], []>} : vector<256x32xbf16>, vector<32x32xbf16>, vector<256x32xf32> -> vector<256x32xf32>
    %c0_48 = arith.constant 0 : index
    %c0_49 = arith.constant 0 : index
    %80 = vector.load %arg15[%c0_48, %c0_49] : memref<1x32xf32, #tpu.memory_space<vmem>>, vector<1x32xf32>
    %81 = vector.broadcast %80 : vector<1x32xf32> to vector<256x32xf32>
    %82 = arith.addf %79, %81 : vector<256x32xf32>
    %cst_50 = arith.constant 0.000000e+00 : f32
    %83 = vector.broadcast %cst_50 : f32 to vector<256x32xf32>
    %84 = arith.maximumf %82, %83 : vector<256x32xf32>
    %85 = arith.truncf %84 : vector<256x32xf32> to vector<256x32xbf16>
    %c0_51 = arith.constant 0 : index
    %c0_52 = arith.constant 0 : index
    %86 = vector.load %arg16[%c0_51, %c0_52] : memref<32x32xbf16, #tpu.memory_space<vmem>>, vector<32x32xbf16>
    %cst_53 = arith.constant dense<0.000000e+00> : vector<256x32xf32>
    %87 = tpu.matmul %85, %86, %cst_53 {dimension_numbers = #tpu.dot_dimension_numbers<[1], [1], [0], [0], [0, 0, 1, 0], [], []>} : vector<256x32xbf16>, vector<32x32xbf16>, vector<256x32xf32> -> vector<256x32xf32>
    %c0_54 = arith.constant 0 : index
    %c0_55 = arith.constant 0 : index
    %88 = vector.load %arg17[%c0_54, %c0_55] : memref<1x32xf32, #tpu.memory_space<vmem>>, vector<1x32xf32>
    %89 = vector.broadcast %88 : vector<1x32xf32> to vector<256x32xf32>
    %90 = arith.addf %87, %89 : vector<256x32xf32>
    %cst_56 = arith.constant 0.000000e+00 : f32
    %91 = vector.broadcast %cst_56 : f32 to vector<256x32xf32>
    %92 = arith.maximumf %90, %91 : vector<256x32xf32>
    %93 = arith.truncf %92 : vector<256x32xf32> to vector<256x32xbf16>
    %c0_57 = arith.constant 0 : index
    %c0_58 = arith.constant 0 : index
    %94 = vector.load %arg18[%c0_57, %c0_58] : memref<4x32xbf16, #tpu.memory_space<vmem>>, vector<4x32xbf16>
    %cst_59 = arith.constant dense<0.000000e+00> : vector<256x4xf32>
    %95 = tpu.matmul %93, %94, %cst_59 {dimension_numbers = #tpu.dot_dimension_numbers<[1], [1], [0], [0], [0, 0, 1, 0], [], []>} : vector<256x32xbf16>, vector<4x32xbf16>, vector<256x4xf32> -> vector<256x4xf32>
    %c0_60 = arith.constant 0 : index
    %c0_61 = arith.constant 0 : index
    %96 = vector.load %arg19[%c0_60, %c0_61] : memref<1x4xf32, #tpu.memory_space<vmem>>, vector<1x4xf32>
    %97 = vector.broadcast %96 : vector<1x4xf32> to vector<256x4xf32>
    %98 = arith.addf %95, %97 : vector<256x4xf32>
    %99 = arith.addf %0, %98 : vector<256x4xf32>
    %c0_62 = arith.constant 0 : index
    %c0_63 = arith.constant 0 : index
    %100 = vector.load %arg20[%c0_62, %c0_63] : memref<256x4xf32, #tpu.memory_space<vmem>>, vector<256x4xf32>
    tpu.vector_store %arg20[%c0_62, %c0_63], %99 {strides = array<i32>} : memref<256x4xf32, #tpu.memory_space<vmem>>, vector<256x4xf32>,
    %c0_64 = arith.constant 0 : index
    %c0_65 = arith.constant 0 : index
    %101 = vector.load %arg21[%c0_64, %c0_65] : memref<256x32xf32, #tpu.memory_space<vmem>>, vector<256x32xf32>
    tpu.vector_store %arg21[%c0_64, %c0_65], %76 {strides = array<i32>} : memref<256x32xf32, #tpu.memory_space<vmem>>, vector<256x32xf32>,
    return
  }
  func.func @transform_0(%arg0: i32) -> (i32, i32) {
    %c0_i32 = arith.constant 0 : i32
    %c0_i32_0 = arith.constant 0 : i32
    return %arg0, %c0_i32 : i32, i32
  }
  func.func @transform_1(%arg0: i32) -> (i32, i32) {
    %c0_i32 = arith.constant 0 : i32
    %c0_i32_0 = arith.constant 0 : i32
    return %arg0, %c0_i32 : i32, i32
  }
  func.func @transform_2(%arg0: i32) -> (i32, i32, i32) {
    %c0_i32 = arith.constant 0 : i32
    %c0_i32_0 = arith.constant 0 : i32
    %c0_i32_1 = arith.constant 0 : i32
    return %c0_i32, %arg0, %c0_i32_0 : i32, i32, i32
  }
  func.func @transform_3(%arg0: i32) -> (i32, i32, i32) {
    %c0_i32 = arith.constant 0 : i32
    %c0_i32_0 = arith.constant 0 : i32
    %c0_i32_1 = arith.constant 0 : i32
    return %c0_i32, %arg0, %c0_i32_0 : i32, i32, i32
  }
  func.func @transform_4(%arg0: i32) -> (i32, i32) {
    %c0_i32 = arith.constant 0 : i32
    %c0_i32_0 = arith.constant 0 : i32
    %c0_i32_1 = arith.constant 0 : i32
    return %c0_i32, %c0_i32_0 : i32, i32
  }
  func.func @transform_5(%arg0: i32) -> (i32, i32) {
    %c0_i32 = arith.constant 0 : i32
    %c0_i32_0 = arith.constant 0 : i32
    %c0_i32_1 = arith.constant 0 : i32
    return %c0_i32, %c0_i32_0 : i32, i32
  }
  func.func @transform_6(%arg0: i32) -> (i32, i32) {
    %c0_i32 = arith.constant 0 : i32
    %c0_i32_0 = arith.constant 0 : i32
    %c0_i32_1 = arith.constant 0 : i32
    return %c0_i32, %c0_i32_0 : i32, i32
  }
  func.func @transform_7(%arg0: i32) -> (i32, i32) {
    %c0_i32 = arith.constant 0 : i32
    %c0_i32_0 = arith.constant 0 : i32
    %c0_i32_1 = arith.constant 0 : i32
    return %c0_i32, %c0_i32_0 : i32, i32
  }
  func.func @transform_8(%arg0: i32) -> (i32, i32) {
    %c0_i32 = arith.constant 0 : i32
    %c0_i32_0 = arith.constant 0 : i32
    %c0_i32_1 = arith.constant 0 : i32
    return %c0_i32, %c0_i32_0 : i32, i32
  }
  func.func @transform_9(%arg0: i32) -> (i32, i32) {
    %c0_i32 = arith.constant 0 : i32
    %c0_i32_0 = arith.constant 0 : i32
    %c0_i32_1 = arith.constant 0 : i32
    return %c0_i32, %c0_i32_0 : i32, i32
  }
  func.func @transform_10(%arg0: i32) -> (i32, i32) {
    %c0_i32 = arith.constant 0 : i32
    %c0_i32_0 = arith.constant 0 : i32
    %c0_i32_1 = arith.constant 0 : i32
    return %c0_i32, %c0_i32_0 : i32, i32
  }
  func.func @transform_11(%arg0: i32) -> (i32, i32) {
    %c0_i32 = arith.constant 0 : i32
    %c0_i32_0 = arith.constant 0 : i32
    %c0_i32_1 = arith.constant 0 : i32
    return %c0_i32, %c0_i32_0 : i32, i32
  }
  func.func @transform_12(%arg0: i32) -> (i32, i32) {
    %c0_i32 = arith.constant 0 : i32
    %c0_i32_0 = arith.constant 0 : i32
    %c0_i32_1 = arith.constant 0 : i32
    return %c0_i32, %c0_i32_0 : i32, i32
  }
  func.func @transform_13(%arg0: i32) -> (i32, i32) {
    %c0_i32 = arith.constant 0 : i32
    %c0_i32_0 = arith.constant 0 : i32
    %c0_i32_1 = arith.constant 0 : i32
    return %c0_i32, %c0_i32_0 : i32, i32
  }
  func.func @transform_14(%arg0: i32) -> (i32, i32) {
    %c0_i32 = arith.constant 0 : i32
    %c0_i32_0 = arith.constant 0 : i32
    %c0_i32_1 = arith.constant 0 : i32
    return %c0_i32, %c0_i32_0 : i32, i32
  }
  func.func @transform_15(%arg0: i32) -> (i32, i32) {
    %c0_i32 = arith.constant 0 : i32
    %c0_i32_0 = arith.constant 0 : i32
    %c0_i32_1 = arith.constant 0 : i32
    return %c0_i32, %c0_i32_0 : i32, i32
  }
  func.func @transform_16(%arg0: i32) -> (i32, i32) {
    %c0_i32 = arith.constant 0 : i32
    %c0_i32_0 = arith.constant 0 : i32
    %c0_i32_1 = arith.constant 0 : i32
    return %c0_i32, %c0_i32_0 : i32, i32
  }
  func.func @transform_17(%arg0: i32) -> (i32, i32) {
    %c0_i32 = arith.constant 0 : i32
    %c0_i32_0 = arith.constant 0 : i32
    %c0_i32_1 = arith.constant 0 : i32
    return %c0_i32, %c0_i32_0 : i32, i32
  }
  func.func @transform_18(%arg0: i32) -> (i32, i32) {
    %c0_i32 = arith.constant 0 : i32
    %c0_i32_0 = arith.constant 0 : i32
    %c0_i32_1 = arith.constant 0 : i32
    return %c0_i32, %c0_i32_0 : i32, i32
  }
  func.func @transform_19(%arg0: i32) -> (i32, i32) {
    %c0_i32 = arith.constant 0 : i32
    %c0_i32_0 = arith.constant 0 : i32
    return %arg0, %c0_i32 : i32, i32
  }
  func.func @transform_20(%arg0: i32) -> (i32, i32) {
    %c0_i32 = arith.constant 0 : i32
    %c0_i32_0 = arith.constant 0 : i32
    return %arg0, %c0_i32 : i32, i32
  }
}

</mosaic_0001>

<bundles_post_ra>
// kernel: forward.1
= control target key start
LH: loop header
LB: loop body
LE: loop exit
PB: predicated region body
PF: predicated region fallthrough
CT: control target
= control target key end

     0   :  { %s11927_s0 = inlined_call_operand.vmem [shape: f32[512,4], index: 0, kind: input, shape index: {}]   ;;  %s11928_s1 = inlined_call_operand.vmem [shape: f32[512,32], index: 1, kind: input, shape index: {}]   ;;  %s11929_s2 = inlined_call_operand.vmem [shape: bf16[3,512,32], index: 2, kind: input, shape index: {}]   ;;  %s11930_s3 = inlined_call_operand.vmem [shape: f32[3,512,2], index: 3, kind: input, shape index: {}]   ;;  %s11931_s4 = inlined_call_operand.vmem [shape: bf16[64,32], index: 4, kind: input, shape index: {}]   ;;  %s11932_s5 = inlined_call_operand.vmem [shape: bf16[64,32], index: 5, kind: input, shape index: {}]   ;;  %s11933_s6 = inlined_call_operand.vmem [shape: f32[1,64], index: 6, kind: input, shape index: {}, may-alias: {6,8}]   ;;  %s11934_s7 = inlined_call_operand.vmem [shape: bf16[64,64], index: 7, kind: input, shape index: {}]   ;;  %s11935_s8 = inlined_call_operand.vmem [shape: f32[1,64], index: 8, kind: input, shape index: {}, may-alias: {6,8}]   ;;  %s11936_s9 = inlined_call_operand.vmem [shape: f32[2,64], index: 9, kind: input, shape index: {}]   ;;  %s11937_s10 = inlined_call_operand.vmem [shape: bf16[96,4], index: 10, kind: input, shape index: {}]   ;;  %s11938_s11 = inlined_call_operand.vmem [shape: f32[1,96], index: 11, kind: input, shape index: {}]   ;;  %s11939_s12 = inlined_call_operand.vmem [shape: bf16[96,64], index: 12, kind: input, shape index: {}]   ;;  %s11940_s13 = inlined_call_operand.vmem [shape: bf16[32,32], index: 13, kind: input, shape index: {}]   ;;  %s11941_s14 = inlined_call_operand.vmem [shape: f32[1,32], index: 14, kind: input, shape index: {}, may-alias: {14,16}]   ;;  %s11942_s15 = inlined_call_operand.vmem [shape: bf16[32,32], index: 15, kind: input, shape index: {}]   ;;  %s11943_s16 = inlined_call_operand.vmem [shape: f32[1,32], index: 16, kind: input, shape index: {}, may-alias: {14,16}]   ;;  %s11944_s17 = inlined_call_operand.vmem [shape: bf16[4,32], index: 17, kind: input, shape index: {}]   ;;  %s11945_s18 = inlined_call_operand.vmem [shape: f32[1,4], index: 18, kind: input, shape index: {}]   ;;  %s11946_s19 = inlined_call_operand.vmem [shape: f32[512,4], index: 19, kind: output, shape index: {0}]   ;;  %s11947_s20 = inlined_call_operand.vmem [shape: f32[512,32], index: 20, kind: output, shape index: {1}]  }
   0x1   :  { %11978 = sst [smem:[#allocation41_spill]] %s11927_s0 }
   0x2   :  { %11979 = sst [smem:[#allocation42_spill]] %s11928_s1 }
   0x3   :  { %11980 = sst [smem:[#allocation43_spill]] %s11929_s2 }
   0x4   :  { %11981 = sst [smem:[#allocation44_spill]] %s11930_s3 }
   0x5   :  { %11982 = sst [smem:[#allocation45_spill]] %s11931_s4 }
   0x6   :  { %s8579_s1 = smov 0   ;;  %s8581_s22 = smov 0  }
   0x7   :  { %s8583_s23 = smov 0  }
   0x8 LB: > { %s8596_s2 = sadd.s32 1, %s8469_s23   ;;  %s90_s3 = sadd.s32 1, %s8465_s22  ;;  %s8469_s23 = sphi %s8583_s23, %s12162_s23   ;;  %s8465_s22 = sphi %s8581_s22, %s12161_s22   ;;  %s8461_s1 = sphi %s8579_s1, %s12160_s1  }
   0x9   : > { %s87_s25 = ssub.s32 %s8469_s23, %s8596_s2  ;;  %p97_p1 = scmp.ne.s32.totalorder %s8465_s22, %s8461_s1 }
   0xa   : > { %p88_p0 = scmp.eq.s32.totalorder %s87_s25, 0  ;;  %p98_p2 = scmp.eq.s32.totalorder %s8469_s23, 0 }
   0xb   : > { %p6911_p4 = scmp.ge.s32.totalorder %s8469_s23, 2 }
   0xc   : > { %s8605_s26 = scalar_select %p88_p0, %s8465_s22, %s90_s3  }
   0xd   : > { %p8607_p3 = por %p98_p2, %p97_p1  ;;  %561 = sbr.rel (%p6911_p4) target bundleno = 182 (0xb6), region = 76 }
  0x12   : > { %582 = sbr.rel (!%p8607_p3) target bundleno = 76 (0x4c), region = 88  ;;  %s584_s28 = sand.u32 (%p8607_p3), 1, %s8465_s22  }
  0x13   : > { %s7680_s4 = sshll.u32 (%p8607_p3), %s8469_s23, 7  ;;  %s7767_s29 = smul.u32 (%p8607_p3), 384, %s584_s28 }
  0x14   : > { %s11984_s21 = sld [smem:[#allocation43_spill]] (%p8607_p3) }
  0x15   : > { %s8624_s3 = scalar_lea.vmem (%p8607_p3), [#allocation2], %s7767_s29 }
  0x1a   : > { %s8619_s25 = scalar_lea.vmem %s11984_s21, %s7680_s4 }
  0x1b   : > { %v606_v0 = vld [vmem:[%s8619_s25] sm:$0xff]   ;;  %v610_v1 = vld [vmem:[%s8619_s25 + $0x8] sm:$0xff]   ;;  %v614_v2 = vld [vmem:[%s8619_s25 + $0x10] sm:$0xff]  }
  0x1c   : > { %607 = vst [vmem:[%s8624_s3] sm:$0xff] %v606_v0   ;;  %v618_v3 = vld [vmem:[%s8619_s25 + $0x18] sm:$0xff]   ;;  %v622_v4 = vld [vmem:[%s8619_s25 + $0x20] sm:$0xff]   ;;  %v626_v5 = vld [vmem:[%s8619_s25 + $0x28] sm:$0xff]  }
  0x1d   : > { %611 = vst [vmem:[%s8624_s3 + $0x8] sm:$0xff] %v610_v1   ;;  %v630_v6 = vld [vmem:[%s8619_s25 + $0x30] sm:$0xff]   ;;  %v634_v7 = vld [vmem:[%s8619_s25 + $0x38] sm:$0xff]   ;;  %v638_v8 = vld [vmem:[%s8619_s25 + $0x40] sm:$0xff]  }
  0x1e   : > { %615 = vst [vmem:[%s8624_s3 + $0x10] sm:$0xff] %v614_v2   ;;  %v642_v9 = vld [vmem:[%s8619_s25 + $0x48] sm:$0xff]   ;;  %v646_v10 = vld [vmem:[%s8619_s25 + $0x50] sm:$0xff]   ;;  %v650_v11 = vld [vmem:[%s8619_s25 + $0x58] sm:$0xff]  }
  0x1f   : > { %619 = vst [vmem:[%s8624_s3 + $0x18] sm:$0xff] %v618_v3   ;;  %v654_v12 = vld [vmem:[%s8619_s25 + $0x60] sm:$0xff]   ;;  %v658_v13 = vld [vmem:[%s8619_s25 + $0x68] sm:$0xff]   ;;  %v662_v14 = vld [vmem:[%s8619_s25 + $0x70] sm:$0xff]  }
  0x20   : > { %623 = vst [vmem:[%s8624_s3 + $0x20] sm:$0xff] %v622_v4   ;;  %v666_v15 = vld [vmem:[%s8619_s25 + $0x78] sm:$0xff]   ;;  %v670_v16 = vld [vmem:[%s8619_s25 + $0x100] sm:$0xff]   ;;  %v674_v17 = vld [vmem:[%s8619_s25 + $0x108] sm:$0xff]  }
  0x21   : > { %627 = vst [vmem:[%s8624_s3 + $0x28] sm:$0xff] %v626_v5   ;;  %v678_v18 = vld [vmem:[%s8619_s25 + $0x110] sm:$0xff]   ;;  %v682_v19 = vld [vmem:[%s8619_s25 + $0x118] sm:$0xff]   ;;  %v686_v20 = vld [vmem:[%s8619_s25 + $0x120] sm:$0xff]  }
  0x22   : > { %631 = vst [vmem:[%s8624_s3 + $0x30] sm:$0xff] %v630_v6   ;;  %v690_v21 = vld [vmem:[%s8619_s25 + $0x128] sm:$0xff]   ;;  %v694_v22 = vld [vmem:[%s8619_s25 + $0x130] sm:$0xff]   ;;  %v698_v23 = vld [vmem:[%s8619_s25 + $0x138] sm:$0xff]  }
  0x23   : > { %635 = vst [vmem:[%s8624_s3 + $0x38] sm:$0xff] %v634_v7   ;;  %v702_v24 = vld [vmem:[%s8619_s25 + $0x140] sm:$0xff]   ;;  %v706_v25 = vld [vmem:[%s8619_s25 + $0x148] sm:$0xff]   ;;  %v710_v26 = vld [vmem:[%s8619_s25 + $0x150] sm:$0xff]  }
  0x24   : > { %639 = vst [vmem:[%s8624_s3 + $0x40] sm:$0xff] %v638_v8   ;;  %v714_v27 = vld [vmem:[%s8619_s25 + $0x158] sm:$0xff]   ;;  %v718_v28 = vld [vmem:[%s8619_s25 + $0x160] sm:$0xff]   ;;  %v722_v29 = vld [vmem:[%s8619_s25 + $0x168] sm:$0xff]  }
  0x25   : > { %643 = vst [vmem:[%s8624_s3 + $0x48] sm:$0xff] %v642_v9   ;;  %v726_v30 = vld [vmem:[%s8619_s25 + $0x170] sm:$0xff]   ;;  %v730_v31 = vld [vmem:[%s8619_s25 + $0x178] sm:$0xff]   ;;  %v734_v32 = vld [vmem:[%s8619_s25 + $0x200] sm:$0xff]  }
  0x26   : > { %647 = vst [vmem:[%s8624_s3 + $0x50] sm:$0xff] %v646_v10   ;;  %v738_v33 = vld [vmem:[%s8619_s25 + $0x208] sm:$0xff]   ;;  %v742_v34 = vld [vmem:[%s8619_s25 + $0x210] sm:$0xff]   ;;  %v746_v35 = vld [vmem:[%s8619_s25 + $0x218] sm:$0xff]  }
  0x27   : > { %651 = vst [vmem:[%s8624_s3 + $0x58] sm:$0xff] %v650_v11   ;;  %v750_v36 = vld [vmem:[%s8619_s25 + $0x220] sm:$0xff]   ;;  %v754_v37 = vld [vmem:[%s8619_s25 + $0x228] sm:$0xff]   ;;  %v758_v38 = vld [vmem:[%s8619_s25 + $0x230] sm:$0xff]  }
  0x28   : > { %655 = vst [vmem:[%s8624_s3 + $0x60] sm:$0xff] %v654_v12   ;;  %v762_v39 = vld [vmem:[%s8619_s25 + $0x238] sm:$0xff]   ;;  %v766_v40 = vld [vmem:[%s8619_s25 + $0x240] sm:$0xff]   ;;  %v770_v41 = vld [vmem:[%s8619_s25 + $0x248] sm:$0xff]  }
  0x29   : > { %659 = vst [vmem:[%s8624_s3 + $0x68] sm:$0xff] %v658_v13   ;;  %v774_v42 = vld [vmem:[%s8619_s25 + $0x250] sm:$0xff]   ;;  %v778_v43 = vld [vmem:[%s8619_s25 + $0x258] sm:$0xff]   ;;  %v782_v44 = vld [vmem:[%s8619_s25 + $0x260] sm:$0xff]  }
  0x2a   : > { %663 = vst [vmem:[%s8624_s3 + $0x70] sm:$0xff] %v662_v14   ;;  %v786_v45 = vld [vmem:[%s8619_s25 + $0x268] sm:$0xff]   ;;  %v790_v46 = vld [vmem:[%s8619_s25 + $0x270] sm:$0xff]   ;;  %v794_v47 = vld [vmem:[%s8619_s25 + $0x278] sm:$0xff]  }
  0x2b   : > { %667 = vst [vmem:[%s8624_s3 + $0x78] sm:$0xff] %v666_v15  }
  0x2c   : > { %671 = vst [vmem:[%s8624_s3 + $0x80] sm:$0xff] %v670_v16  }
  0x2d   : > { %675 = vst [vmem:[%s8624_s3 + $0x88] sm:$0xff] %v674_v17  }
  0x2e   : > { %679 = vst [vmem:[%s8624_s3 + $0x90] sm:$0xff] %v678_v18  }
  0x2f   : > { %683 = vst [vmem:[%s8624_s3 + $0x98] sm:$0xff] %v682_v19  }
  0x30   : > { %687 = vst [vmem:[%s8624_s3 + $0xa0] sm:$0xff] %v686_v20  }
  0x31   : > { %691 = vst [vmem:[%s8624_s3 + $0xa8] sm:$0xff] %v690_v21  }
  0x32   : > { %695 = vst [vmem:[%s8624_s3 + $0xb0] sm:$0xff] %v694_v22  }
  0x33   : > { %699 = vst [vmem:[%s8624_s3 + $0xb8] sm:$0xff] %v698_v23  }
  0x34   : > { %703 = vst [vmem:[%s8624_s3 + $0xc0] sm:$0xff] %v702_v24  }
  0x35   : > { %707 = vst [vmem:[%s8624_s3 + $0xc8] sm:$0xff] %v706_v25  }
  0x36   : > { %711 = vst [vmem:[%s8624_s3 + $0xd0] sm:$0xff] %v710_v26  }
  0x37   : > { %715 = vst [vmem:[%s8624_s3 + $0xd8] sm:$0xff] %v714_v27  }
  0x38   : > { %719 = vst [vmem:[%s8624_s3 + $0xe0] sm:$0xff] %v718_v28  }
  0x39   : > { %723 = vst [vmem:[%s8624_s3 + $0xe8] sm:$0xff] %v722_v29  }
  0x3a   : > { %727 = vst [vmem:[%s8624_s3 + $0xf0] sm:$0xff] %v726_v30  }
  0x3b   : > { %731 = vst [vmem:[%s8624_s3 + $0xf8] sm:$0xff] %v730_v31  }
  0x3c   : > { %735 = vst [vmem:[%s8624_s3 + $0x100] sm:$0xff] %v734_v32  }
  0x3d   : > { %739 = vst [vmem:[%s8624_s3 + $0x108] sm:$0xff] %v738_v33  }
  0x3e   : > { %743 = vst [vmem:[%s8624_s3 + $0x110] sm:$0xff] %v742_v34  }
  0x3f   : > { %747 = vst [vmem:[%s8624_s3 + $0x118] sm:$0xff] %v746_v35  }
  0x40   : > { %751 = vst [vmem:[%s8624_s3 + $0x120] sm:$0xff] %v750_v36  }
  0x41   : > { %755 = vst [vmem:[%s8624_s3 + $0x128] sm:$0xff] %v754_v37  }
  0x42   : > { %759 = vst [vmem:[%s8624_s3 + $0x130] sm:$0xff] %v758_v38  }
  0x43   : > { %763 = vst [vmem:[%s8624_s3 + $0x138] sm:$0xff] %v762_v39  }
  0x44   : > { %767 = vst [vmem:[%s8624_s3 + $0x140] sm:$0xff] %v766_v40  }
  0x45   : > { %771 = vst [vmem:[%s8624_s3 + $0x148] sm:$0xff] %v770_v41  }
  0x46   : > { %775 = vst [vmem:[%s8624_s3 + $0x150] sm:$0xff] %v774_v42  }
  0x47   : > { %779 = vst [vmem:[%s8624_s3 + $0x158] sm:$0xff] %v778_v43  }
  0x48   : > { %783 = vst [vmem:[%s8624_s3 + $0x160] sm:$0xff] %v782_v44  }
  0x49   : > { %787 = vst [vmem:[%s8624_s3 + $0x168] sm:$0xff] %v786_v45  }
  0x4a   : > { %791 = vst [vmem:[%s8624_s3 + $0x170] sm:$0xff] %v790_v46  }
  0x4b   : > { %795 = vst [vmem:[%s8624_s3 + $0x178] sm:$0xff] %v794_v47  }
  0x4c PF: > { %1013 = sbr.rel (!%p8607_p3) target bundleno = 182 (0xb6), region = 129  ;;  %s1015_s28 = sand.u32 (%p8607_p3), 1, %s8465_s22  }
  0x4d   : > { %s7681_s4 = sshll.u32 (%p8607_p3), %s8469_s23, 8  ;;  %s7768_s29 = smul.u32 (%p8607_p3), 768, %s1015_s28 }
  0x4e   : > { %s11985_s21 = sld [smem:[#allocation44_spill]] (%p8607_p3) }
  0x4f   : > { %s8731_s27 = scalar_lea.vmem (%p8607_p3), [#allocation3], %s7768_s29 }
  0x54   : > { %s8726_s24 = scalar_lea.vmem %s11985_s21, %s7681_s4 }
  0x55   : > { %v1239_v48 = vld [vmem:[%s8726_s24] sm:$0xff]  ;;  %v1241_v49 = vld [vmem:[%s8726_s24 + $0x8] sm:$0xff]  ;;  %v1243_v50 = vld [vmem:[%s8726_s24 + $0x10] sm:$0xff] }
  0x56   : > { %1240 = vst [vmem:[%s8731_s27] sm:$0xff] %v1239_v48  ;;  %v1245_v51 = vld [vmem:[%s8726_s24 + $0x18] sm:$0xff]  ;;  %v1247_v52 = vld [vmem:[%s8726_s24 + $0x20] sm:$0xff]  ;;  %v1249_v53 = vld [vmem:[%s8726_s24 + $0x28] sm:$0xff] }
  0x57   : > { %1242 = vst [vmem:[%s8731_s27 + $0x8] sm:$0xff] %v1241_v49  ;;  %v1251_v54 = vld [vmem:[%s8726_s24 + $0x30] sm:$0xff]  ;;  %v1253_v55 = vld [vmem:[%s8726_s24 + $0x38] sm:$0xff]  ;;  %v1255_v56 = vld [vmem:[%s8726_s24 + $0x40] sm:$0xff] }
  0x58   : > { %1244 = vst [vmem:[%s8731_s27 + $0x10] sm:$0xff] %v1243_v50  ;;  %v1257_v57 = vld [vmem:[%s8726_s24 + $0x48] sm:$0xff]  ;;  %v1259_v58 = vld [vmem:[%s8726_s24 + $0x50] sm:$0xff]  ;;  %v1261_v59 = vld [vmem:[%s8726_s24 + $0x58] sm:$0xff] }
  0x59   : > { %1246 = vst [vmem:[%s8731_s27 + $0x18] sm:$0xff] %v1245_v51  ;;  %v1263_v60 = vld [vmem:[%s8726_s24 + $0x60] sm:$0xff]  ;;  %v1265_v61 = vld [vmem:[%s8726_s24 + $0x68] sm:$0xff]  ;;  %v1267_v62 = vld [vmem:[%s8726_s24 + $0x70] sm:$0xff] }
  0x5a   : > { %1248 = vst [vmem:[%s8731_s27 + $0x20] sm:$0xff] %v1247_v52  ;;  %v1269_v63 = vld [vmem:[%s8726_s24 + $0x78] sm:$0xff]  ;;  %v1271_v0 = vld [vmem:[%s8726_s24 + $0x80] sm:$0xff]  ;;  %v1273_v1 = vld [vmem:[%s8726_s24 + $0x88] sm:$0xff] }
  0x5b   : > { %1250 = vst [vmem:[%s8731_s27 + $0x28] sm:$0xff] %v1249_v53  ;;  %v1275_v2 = vld [vmem:[%s8726_s24 + $0x90] sm:$0xff]  ;;  %v1277_v3 = vld [vmem:[%s8726_s24 + $0x98] sm:$0xff]  ;;  %v1279_v4 = vld [vmem:[%s8726_s24 + $0xa0] sm:$0xff] }
  0x5c   : > { %1252 = vst [vmem:[%s8731_s27 + $0x30] sm:$0xff] %v1251_v54  ;;  %v1281_v5 = vld [vmem:[%s8726_s24 + $0xa8] sm:$0xff]  ;;  %v1283_v6 = vld [vmem:[%s8726_s24 + $0xb0] sm:$0xff]  ;;  %v1285_v7 = vld [vmem:[%s8726_s24 + $0xb8] sm:$0xff] }
  0x5d   : > { %1254 = vst [vmem:[%s8731_s27 + $0x38] sm:$0xff] %v1253_v55  ;;  %v1287_v8 = vld [vmem:[%s8726_s24 + $0xc0] sm:$0xff]  ;;  %v1289_v9 = vld [vmem:[%s8726_s24 + $0xc8] sm:$0xff]  ;;  %v1291_v10 = vld [vmem:[%s8726_s24 + $0xd0] sm:$0xff] }
  0x5e   : > { %1256 = vst [vmem:[%s8731_s27 + $0x40] sm:$0xff] %v1255_v56  ;;  %v1293_v11 = vld [vmem:[%s8726_s24 + $0xd8] sm:$0xff]  ;;  %v1295_v12 = vld [vmem:[%s8726_s24 + $0xe0] sm:$0xff]  ;;  %v1297_v13 = vld [vmem:[%s8726_s24 + $0xe8] sm:$0xff] }
  0x5f   : > { %1258 = vst [vmem:[%s8731_s27 + $0x48] sm:$0xff] %v1257_v57  ;;  %v1299_v14 = vld [vmem:[%s8726_s24 + $0xf0] sm:$0xff]  ;;  %v1301_v15 = vld [vmem:[%s8726_s24 + $0xf8] sm:$0xff]  ;;  %v1303_v16 = vld [vmem:[%s8726_s24 + $0x200] sm:$0xff] }
  0x60   : > { %1260 = vst [vmem:[%s8731_s27 + $0x50] sm:$0xff] %v1259_v58  ;;  %v1305_v17 = vld [vmem:[%s8726_s24 + $0x208] sm:$0xff]  ;;  %v1307_v18 = vld [vmem:[%s8726_s24 + $0x210] sm:$0xff]  ;;  %v1309_v19 = vld [vmem:[%s8726_s24 + $0x218] sm:$0xff] }
  0x61   : > { %1262 = vst [vmem:[%s8731_s27 + $0x58] sm:$0xff] %v1261_v59  ;;  %v1311_v20 = vld [vmem:[%s8726_s24 + $0x220] sm:$0xff]  ;;  %v1313_v21 = vld [vmem:[%s8726_s24 + $0x228] sm:$0xff]  ;;  %v1315_v22 = vld [vmem:[%s8726_s24 + $0x230] sm:$0xff] }
  0x62   : > { %1264 = vst [vmem:[%s8731_s27 + $0x60] sm:$0xff] %v1263_v60  ;;  %v1317_v23 = vld [vmem:[%s8726_s24 + $0x238] sm:$0xff]  ;;  %v1319_v24 = vld [vmem:[%s8726_s24 + $0x240] sm:$0xff]  ;;  %v1321_v25 = vld [vmem:[%s8726_s24 + $0x248] sm:$0xff] }
  0x63   : > { %1266 = vst [vmem:[%s8731_s27 + $0x68] sm:$0xff] %v1265_v61  ;;  %v1323_v26 = vld [vmem:[%s8726_s24 + $0x250] sm:$0xff]  ;;  %v1325_v27 = vld [vmem:[%s8726_s24 + $0x258] sm:$0xff]  ;;  %v1327_v28 = vld [vmem:[%s8726_s24 + $0x260] sm:$0xff] }
  0x64   : > { %1268 = vst [vmem:[%s8731_s27 + $0x70] sm:$0xff] %v1267_v62  ;;  %v1329_v29 = vld [vmem:[%s8726_s24 + $0x268] sm:$0xff]  ;;  %v1331_v30 = vld [vmem:[%s8726_s24 + $0x270] sm:$0xff]  ;;  %v1333_v31 = vld [vmem:[%s8726_s24 + $0x278] sm:$0xff] }
  0x65   : > { %1270 = vst [vmem:[%s8731_s27 + $0x78] sm:$0xff] %v1269_v63  ;;  %v1335_v32 = vld [vmem:[%s8726_s24 + $0x280] sm:$0xff]  ;;  %v1337_v33 = vld [vmem:[%s8726_s24 + $0x288] sm:$0xff]  ;;  %v1339_v34 = vld [vmem:[%s8726_s24 + $0x290] sm:$0xff] }
  0x66   : > { %1272 = vst [vmem:[%s8731_s27 + $0x80] sm:$0xff] %v1271_v0  ;;  %v1341_v35 = vld [vmem:[%s8726_s24 + $0x298] sm:$0xff]  ;;  %v1343_v36 = vld [vmem:[%s8726_s24 + $0x2a0] sm:$0xff]  ;;  %v1345_v37 = vld [vmem:[%s8726_s24 + $0x2a8] sm:$0xff] }
  0x67   : > { %1274 = vst [vmem:[%s8731_s27 + $0x88] sm:$0xff] %v1273_v1  ;;  %v1347_v38 = vld [vmem:[%s8726_s24 + $0x2b0] sm:$0xff]  ;;  %v1349_v39 = vld [vmem:[%s8726_s24 + $0x2b8] sm:$0xff]  ;;  %v1351_v40 = vld [vmem:[%s8726_s24 + $0x2c0] sm:$0xff] }
  0x68   : > { %1276 = vst [vmem:[%s8731_s27 + $0x90] sm:$0xff] %v1275_v2  ;;  %v1353_v41 = vld [vmem:[%s8726_s24 + $0x2c8] sm:$0xff]  ;;  %v1355_v42 = vld [vmem:[%s8726_s24 + $0x2d0] sm:$0xff]  ;;  %v1357_v43 = vld [vmem:[%s8726_s24 + $0x2d8] sm:$0xff] }
  0x69   : > { %1278 = vst [vmem:[%s8731_s27 + $0x98] sm:$0xff] %v1277_v3  ;;  %v1359_v44 = vld [vmem:[%s8726_s24 + $0x2e0] sm:$0xff]  ;;  %v1361_v45 = vld [vmem:[%s8726_s24 + $0x2e8] sm:$0xff]  ;;  %v1363_v46 = vld [vmem:[%s8726_s24 + $0x2f0] sm:$0xff] }
  0x6a   : > { %1280 = vst [vmem:[%s8731_s27 + $0xa0] sm:$0xff] %v1279_v4  ;;  %v1365_v47 = vld [vmem:[%s8726_s24 + $0x2f8] sm:$0xff]  ;;  %v1367_v48 = vld [vmem:[%s8726_s24 + $0x400] sm:$0xff]  ;;  %v1369_v49 = vld [vmem:[%s8726_s24 + $0x408] sm:$0xff] }
  0x6b   : > { %1282 = vst [vmem:[%s8731_s27 + $0xa8] sm:$0xff] %v1281_v5  ;;  %v1371_v50 = vld [vmem:[%s8726_s24 + $0x410] sm:$0xff]  ;;  %v1373_v51 = vld [vmem:[%s8726_s24 + $0x418] sm:$0xff]  ;;  %v1375_v52 = vld [vmem:[%s8726_s24 + $0x420] sm:$0xff] }
  0x6c   : > { %1284 = vst [vmem:[%s8731_s27 + $0xb0] sm:$0xff] %v1283_v6  ;;  %v1377_v53 = vld [vmem:[%s8726_s24 + $0x428] sm:$0xff]  ;;  %v1379_v54 = vld [vmem:[%s8726_s24 + $0x430] sm:$0xff]  ;;  %v1381_v55 = vld [vmem:[%s8726_s24 + $0x438] sm:$0xff] }
  0x6d   : > { %1286 = vst [vmem:[%s8731_s27 + $0xb8] sm:$0xff] %v1285_v7  ;;  %v1383_v56 = vld [vmem:[%s8726_s24 + $0x440] sm:$0xff]  ;;  %v1385_v57 = vld [vmem:[%s8726_s24 + $0x448] sm:$0xff]  ;;  %v1387_v58 = vld [vmem:[%s8726_s24 + $0x450] sm:$0xff] }
  0x6e   : > { %1288 = vst [vmem:[%s8731_s27 + $0xc0] sm:$0xff] %v1287_v8  ;;  %v1389_v59 = vld [vmem:[%s8726_s24 + $0x458] sm:$0xff]  ;;  %v1391_v60 = vld [vmem:[%s8726_s24 + $0x460] sm:$0xff]  ;;  %v1393_v61 = vld [vmem:[%s8726_s24 + $0x468] sm:$0xff] }
  0x6f   : > { %1290 = vst [vmem:[%s8731_s27 + $0xc8] sm:$0xff] %v1289_v9  ;;  %v1395_v62 = vld [vmem:[%s8726_s24 + $0x470] sm:$0xff]  ;;  %v1397_v63 = vld [vmem:[%s8726_s24 + $0x478] sm:$0xff]  ;;  %v1399_v0 = vld [vmem:[%s8726_s24 + $0x480] sm:$0xff] }
  0x70   : > { %1292 = vst [vmem:[%s8731_s27 + $0xd0] sm:$0xff] %v1291_v10  ;;  %v1401_v1 = vld [vmem:[%s8726_s24 + $0x488] sm:$0xff]  ;;  %v1403_v2 = vld [vmem:[%s8726_s24 + $0x490] sm:$0xff]  ;;  %v1405_v3 = vld [vmem:[%s8726_s24 + $0x498] sm:$0xff] }
  0x71   : > { %1294 = vst [vmem:[%s8731_s27 + $0xd8] sm:$0xff] %v1293_v11  ;;  %v1407_v4 = vld [vmem:[%s8726_s24 + $0x4a0] sm:$0xff]  ;;  %v1409_v5 = vld [vmem:[%s8726_s24 + $0x4a8] sm:$0xff]  ;;  %v1411_v6 = vld [vmem:[%s8726_s24 + $0x4b0] sm:$0xff] }
  0x72   : > { %1296 = vst [vmem:[%s8731_s27 + $0xe0] sm:$0xff] %v1295_v12  ;;  %v1413_v7 = vld [vmem:[%s8726_s24 + $0x4b8] sm:$0xff]  ;;  %v1415_v8 = vld [vmem:[%s8726_s24 + $0x4c0] sm:$0xff]  ;;  %v1417_v9 = vld [vmem:[%s8726_s24 + $0x4c8] sm:$0xff] }
  0x73   : > { %1298 = vst [vmem:[%s8731_s27 + $0xe8] sm:$0xff] %v1297_v13  ;;  %v1419_v10 = vld [vmem:[%s8726_s24 + $0x4d0] sm:$0xff]  ;;  %v1421_v11 = vld [vmem:[%s8726_s24 + $0x4d8] sm:$0xff]  ;;  %v1423_v12 = vld [vmem:[%s8726_s24 + $0x4e0] sm:$0xff] }
  0x74   : > { %1300 = vst [vmem:[%s8731_s27 + $0xf0] sm:$0xff] %v1299_v14  ;;  %v1425_v13 = vld [vmem:[%s8726_s24 + $0x4e8] sm:$0xff]  ;;  %v1427_v14 = vld [vmem:[%s8726_s24 + $0x4f0] sm:$0xff] }
  0x75   : > { %1302 = vst [vmem:[%s8731_s27 + $0xf8] sm:$0xff] %v1301_v15  ;;  %v1429_v15 = vld [vmem:[%s8726_s24 + $0x4f8] sm:$0xff] }
  0x76   : > { %1304 = vst [vmem:[%s8731_s27 + $0x100] sm:$0xff] %v1303_v16 }
  0x77   : > { %1306 = vst [vmem:[%s8731_s27 + $0x108] sm:$0xff] %v1305_v17 }
  0x78   : > { %1308 = vst [vmem:[%s8731_s27 + $0x110] sm:$0xff] %v1307_v18 }
  0x79   : > { %1310 = vst [vmem:[%s8731_s27 + $0x118] sm:$0xff] %v1309_v19 }
  0x7a   : > { %1312 = vst [vmem:[%s8731_s27 + $0x120] sm:$0xff] %v1311_v20 }
  0x7b   : > { %1314 = vst [vmem:[%s8731_s27 + $0x128] sm:$0xff] %v1313_v21 }
  0x7c   : > { %1316 = vst [vmem:[%s8731_s27 + $0x130] sm:$0xff] %v1315_v22 }
  0x7d   : > { %1318 = vst [vmem:[%s8731_s27 + $0x138] sm:$0xff] %v1317_v23 }
  0x7e   : > { %1320 = vst [vmem:[%s8731_s27 + $0x140] sm:$0xff] %v1319_v24 }
  0x7f   : > { %1322 = vst [vmem:[%s8731_s27 + $0x148] sm:$0xff] %v1321_v25 }
  0x80   : > { %1324 = vst [vmem:[%s8731_s27 + $0x150] sm:$0xff] %v1323_v26 }
  0x81   : > { %1326 = vst [vmem:[%s8731_s27 + $0x158] sm:$0xff] %v1325_v27 }
  0x82   : > { %1328 = vst [vmem:[%s8731_s27 + $0x160] sm:$0xff] %v1327_v28 }
  0x83   : > { %1330 = vst [vmem:[%s8731_s27 + $0x168] sm:$0xff] %v1329_v29 }
  0x84   : > { %1332 = vst [vmem:[%s8731_s27 + $0x170] sm:$0xff] %v1331_v30 }
  0x85   : > { %1334 = vst [vmem:[%s8731_s27 + $0x178] sm:$0xff] %v1333_v31 }
  0x86   : > { %1336 = vst [vmem:[%s8731_s27 + $0x180] sm:$0xff] %v1335_v32 }
  0x87   : > { %1338 = vst [vmem:[%s8731_s27 + $0x188] sm:$0xff] %v1337_v33 }
  0x88   : > { %1340 = vst [vmem:[%s8731_s27 + $0x190] sm:$0xff] %v1339_v34 }
  0x89   : > { %1342 = vst [vmem:[%s8731_s27 + $0x198] sm:$0xff] %v1341_v35 }
  0x8a   : > { %1344 = vst [vmem:[%s8731_s27 + $0x1a0] sm:$0xff] %v1343_v36 }
  0x8b   : > { %1346 = vst [vmem:[%s8731_s27 + $0x1a8] sm:$0xff] %v1345_v37 }
  0x8c   : > { %1348 = vst [vmem:[%s8731_s27 + $0x1b0] sm:$0xff] %v1347_v38 }
  0x8d   : > { %1350 = vst [vmem:[%s8731_s27 + $0x1b8] sm:$0xff] %v1349_v39 }
  0x8e   : > { %1352 = vst [vmem:[%s8731_s27 + $0x1c0] sm:$0xff] %v1351_v40 }
  0x8f   : > { %1354 = vst [vmem:[%s8731_s27 + $0x1c8] sm:$0xff] %v1353_v41 }
  0x90   : > { %1356 = vst [vmem:[%s8731_s27 + $0x1d0] sm:$0xff] %v1355_v42 }
  0x91   : > { %1358 = vst [vmem:[%s8731_s27 + $0x1d8] sm:$0xff] %v1357_v43 }
  0x92   : > { %1360 = vst [vmem:[%s8731_s27 + $0x1e0] sm:$0xff] %v1359_v44 }
  0x93   : > { %1362 = vst [vmem:[%s8731_s27 + $0x1e8] sm:$0xff] %v1361_v45 }
  0x94   : > { %1364 = vst [vmem:[%s8731_s27 + $0x1f0] sm:$0xff] %v1363_v46 }
  0x95   : > { %1366 = vst [vmem:[%s8731_s27 + $0x1f8] sm:$0xff] %v1365_v47 }
  0x96   : > { %1368 = vst [vmem:[%s8731_s27 + $0x200] sm:$0xff] %v1367_v48 }
  0x97   : > { %1370 = vst [vmem:[%s8731_s27 + $0x208] sm:$0xff] %v1369_v49 }
  0x98   : > { %1372 = vst [vmem:[%s8731_s27 + $0x210] sm:$0xff] %v1371_v50 }
  0x99   : > { %1374 = vst [vmem:[%s8731_s27 + $0x218] sm:$0xff] %v1373_v51 }
  0x9a   : > { %1376 = vst [vmem:[%s8731_s27 + $0x220] sm:$0xff] %v1375_v52 }
  0x9b   : > { %1378 = vst [vmem:[%s8731_s27 + $0x228] sm:$0xff] %v1377_v53 }
  0x9c   : > { %1380 = vst [vmem:[%s8731_s27 + $0x230] sm:$0xff] %v1379_v54 }
  0x9d   : > { %1382 = vst [vmem:[%s8731_s27 + $0x238] sm:$0xff] %v1381_v55 }
  0x9e   : > { %1384 = vst [vmem:[%s8731_s27 + $0x240] sm:$0xff] %v1383_v56 }
  0x9f   : > { %1386 = vst [vmem:[%s8731_s27 + $0x248] sm:$0xff] %v1385_v57 }
  0xa0   : > { %1388 = vst [vmem:[%s8731_s27 + $0x250] sm:$0xff] %v1387_v58 }
  0xa1   : > { %1390 = vst [vmem:[%s8731_s27 + $0x258] sm:$0xff] %v1389_v59 }
  0xa2   : > { %1392 = vst [vmem:[%s8731_s27 + $0x260] sm:$0xff] %v1391_v60 }
  0xa3   : > { %1394 = vst [vmem:[%s8731_s27 + $0x268] sm:$0xff] %v1393_v61 }
  0xa4   : > { %1396 = vst [vmem:[%s8731_s27 + $0x270] sm:$0xff] %v1395_v62 }
  0xa5   : > { %1398 = vst [vmem:[%s8731_s27 + $0x278] sm:$0xff] %v1397_v63 }
  0xa6   : > { %1400 = vst [vmem:[%s8731_s27 + $0x280] sm:$0xff] %v1399_v0 }
  0xa7   : > { %1402 = vst [vmem:[%s8731_s27 + $0x288] sm:$0xff] %v1401_v1 }
  0xa8   : > { %1404 = vst [vmem:[%s8731_s27 + $0x290] sm:$0xff] %v1403_v2 }
  0xa9   : > { %1406 = vst [vmem:[%s8731_s27 + $0x298] sm:$0xff] %v1405_v3 }
  0xaa   : > { %1408 = vst [vmem:[%s8731_s27 + $0x2a0] sm:$0xff] %v1407_v4 }
  0xab   : > { %1410 = vst [vmem:[%s8731_s27 + $0x2a8] sm:$0xff] %v1409_v5 }
  0xac   : > { %1412 = vst [vmem:[%s8731_s27 + $0x2b0] sm:$0xff] %v1411_v6 }
  0xad   : > { %1414 = vst [vmem:[%s8731_s27 + $0x2b8] sm:$0xff] %v1413_v7 }
  0xae   : > { %1416 = vst [vmem:[%s8731_s27 + $0x2c0] sm:$0xff] %v1415_v8 }
  0xaf   : > { %1418 = vst [vmem:[%s8731_s27 + $0x2c8] sm:$0xff] %v1417_v9 }
  0xb0   : > { %1420 = vst [vmem:[%s8731_s27 + $0x2d0] sm:$0xff] %v1419_v10 }
  0xb1   : > { %1422 = vst [vmem:[%s8731_s27 + $0x2d8] sm:$0xff] %v1421_v11 }
  0xb2   : > { %1424 = vst [vmem:[%s8731_s27 + $0x2e0] sm:$0xff] %v1423_v12 }
  0xb3   : > { %1426 = vst [vmem:[%s8731_s27 + $0x2e8] sm:$0xff] %v1425_v13 }
  0xb4   : > { %1428 = vst [vmem:[%s8731_s27 + $0x2f0] sm:$0xff] %v1427_v14 }
  0xb5   : > { %1430 = vst [vmem:[%s8731_s27 + $0x2f8] sm:$0xff] %v1429_v15 }
  0xb6 PF: > { %p6916_p5 = scmp.ge.s32.totalorder %s8469_s23, 1  ;;  %p1435_p6 = scmp.lt.s32.totalorder %s8469_s23, 3 }
  0xb8   : > { %p1436_p7 = pnand %p6916_p5, %p1435_p6 }
  0xba   : > { %1439 = sbr.rel (%p1436_p7) target bundleno = 2739 (0xab3), region = 167 }
  0xbf   : > { %s11986_s28 = sld [smem:[#allocation45_spill]]  ;;  %vm1680_vm0 = vcmask 261120   ;;  %v2274_v18 = vld [vmem:[%s11936_s9] sm:$0x3]  ;;  %vm2564_vm1 = vcmask 1041408   ;;  %s11987_s0 = sadd.s32 4294967295, %s8469_s23  }
  0xc0   : > { %7277 = vmatpush.msk.msra.mxu1 %vm2564_vm1, %v2274_v18  ;;  %s6917_s21 = sshll.u32 %s11987_s0, 5  ;;  %s11988_s30 = sld [smem:[#allocation42_spill]]  ;;  %v7737_v34 = vld [vmem:[%s11932_s5 + $0x18] sm:$0xff]  ;;  %v7736_v36 = vld [vmem:[%s11932_s5 + $0x10] sm:$0xff]  ;;  %v7735_v41 = vld [vmem:[%s11932_s5 + $0x8] sm:$0xff]  ;;  %vm2275_vm2 = vcmask 15360  }
  0xc1   : > { %p1526_p8 = scmp.lt.s32.totalorder %s6917_s21, 63  ;;  %v3047_v35 = vsel %vm1680_vm0, %v7737_v34, 0  ;;  %v3044_v39 = vsel %vm1680_vm0, %v7736_v36, 0  ;;  %v3041_v42 = vsel %vm1680_vm0, %v7735_v41, 0  ;;  %s1442_s29 = sand.u32 1, %s8461_s1   ;;  %v7734_v43 = vld [vmem:[%s11932_s5] sm:$0xff] }
  0xc2   : > { %v3038_v44 = vsel %vm1680_vm0, %v7734_v43, 0  ;;  %v7741_v47 = vld [vmem:[%s11934_s7 + $0x18] sm:$0xff]  ;;  %s7769_s24 = smul.u32 384, %s1442_s29  ;;  %vm3478_vm3 = vcmask 523264   ;;  %vm4174_vm4 = vcmask 31744   ;;  %s12026_s3 = sld [smem:[#allocation41_spill]] }
  0xc3   : > { %s12164_s21 = smov (!%p1526_p8, %s6917_s21), 63  ;;  %7763 = vmatpush.bf16.msra.mxu3 %v7741_v47  ;;  %s8471_s27 = smov 32  }
  0xc4   : > { %s8945_s4 = sshll.u32 %s12164_s21, 3  ;;  %s9005_s23 = scalar_lea.vmem [#allocation2], %s7769_s24 }
  0xc5   : > { %v7685_v16 = vld [vmem:[%s11986_s28 + $0x18] sm:$0xff]  ;;  %v7684_v19 = vld [vmem:[%s11986_s28 + $0x10] sm:$0xff]  ;;  %v7683_v21 = vld [vmem:[%s11986_s28 + $0x8] sm:$0xff]  ;;  %s8472_s21 = smov 64  }
  0xc6   : > { %v1739_v17 = vsel %vm1680_vm0, %v7685_v16, 0  ;;  %v1736_v20 = vsel %vm1680_vm0, %v7684_v19, 0  ;;  %v1733_v22 = vsel %vm1680_vm0, %v7683_v21, 0  ;;  %v7682_v23 = vld [vmem:[%s11986_s28] sm:$0xff]  ;;  %s8952_s0 = scalar_lea.vmem %s11988_s30, %s8945_s4  ;;  %s7770_s30 = smul.u32 768, %s1442_s29  ;;  %v7687_v61 = vld [vmem:[%s9005_s23 + $0x8] sm:$0xff] }
  0xc7   : > { %7758 = vmatpush.bf16.xpose.msra.mxu2 %v1739_v17  ;;  %1745 = vmatpush.bf16.xpose.msra.mxu0 %v1739_v17  ;;  %v1730_v24 = vsel %vm1680_vm0, %v7682_v23, 0  ;;  %v1608_v25 = vld [vmem:[%s8952_s0 + $0xc0] sm:$0xff]  ;;  %v1609_v26 = vld [vmem:[%s8952_s0 + $0xc8] sm:$0xff]  ;;  %v1610_v28 = vld [vmem:[%s8952_s0 + $0xd0] sm:$0xff]  ;;  %s8473_s29 = smov 96  }
  0xc8   : > { %v1644_v27 = vpack.c.bf16 %v1609_v26, %v1608_v25  ;;  %v1611_v29 = vld [vmem:[%s8952_s0 + $0xd8] sm:$0xff]  ;;  %v1612_v31 = vld [vmem:[%s8952_s0 + $0xe0] sm:$0xff]  ;;  %v1613_v32 = vld [vmem:[%s8952_s0 + $0xe8] sm:$0xff]  ;;  %s8984_s25 = scalar_lea.vmem [#allocation3], %s7770_s30  ;;  %s9668_s24 = scalar_lea.vmem %s12026_s3, %s8945_s4 }
  0xc9   : > { %v1645_v30 = vpack.c.bf16 %v1611_v29, %v1610_v28  ;;  %v1646_v33 = vpack.c.bf16 %v1613_v32, %v1612_v31  ;;  %v1614_v37 = vld [vmem:[%s8952_s0 + $0xf0] sm:$0xff]  ;;  %v1615_v38 = vld [vmem:[%s8952_s0 + $0xf8] sm:$0xff]  ;;  %v7273_v46 = vld [vmem:[%s8984_s25 + $0x2e0] sm:$0xff]  ;;  %s11664_s3 = scalar_lea.vmem %s11947_s20, %s8945_s4 }
  0xca   : > { %v1647_v40 = vpack.c.bf16 %v1615_v38, %v1614_v37  ;;  %v7272_v45 = vld [vmem:[%s8984_s25 + $0x2d8] sm:$0xff]  ;;  %v1584_v48 = vld [vmem:[%s8952_s0] sm:$0xff]  ;;  %v1585_v49 = vld [vmem:[%s8952_s0 + $0x8] sm:$0xff] }
  0xcb   : > { %v1632_v50 = vpack.c.bf16 %v1585_v49, %v1584_v48  ;;  %v7274_v51 = vld [vmem:[%s8984_s25 + $0x2e8] sm:$0xff]  ;;  %v7275_v52 = vld [vmem:[%s8984_s25 + $0x2f0] sm:$0xff]  ;;  %v1587_v54 = vld [vmem:[%s8952_s0 + $0x18] sm:$0xff] }
  0xcc   : > { %v1586_v53 = vld [vmem:[%s8952_s0 + $0x10] sm:$0xff]  ;;  %v7276_v56 = vld [vmem:[%s8984_s25 + $0x2f8] sm:$0xff]  ;;  %v7686_v57 = vld [vmem:[%s9005_s23] sm:$0xff] }
  0xcd   : > { %v1633_v55 = vpack.c.bf16 %v1587_v54, %v1586_v53  ;;  %v1588_v58 = vld [vmem:[%s8952_s0 + $0x20] sm:$0xff]  ;;  %v1589_v59 = vld [vmem:[%s8952_s0 + $0x28] sm:$0xff]  ;;  %v1590_v62 = vld [vmem:[%s8952_s0 + $0x30] sm:$0xff] }
  0xce   : > { %v1634_v60 = vpack.c.bf16 %v1589_v59, %v1588_v58  ;;  %v1591_v63 = vld [vmem:[%s8952_s0 + $0x38] sm:$0xff]  ;;  %v7688_v2 = vld [vmem:[%s9005_s23 + $0x10] sm:$0xff]  ;;  %v1592_v3 = vld [vmem:[%s8952_s0 + $0x40] sm:$0xff] }
  0xcf   : > { %7759 = vmatpush.bf16.xpose.msra.mxu2 %v1736_v20  ;;  %1746 = vmatpush.bf16.xpose.msra.mxu0 %v1736_v20  ;;  %v1635_v0 = vpack.c.bf16 %v1591_v63, %v1590_v62  ;;  %v1593_v4 = vld [vmem:[%s8952_s0 + $0x48] sm:$0xff]  ;;  %v7689_v8 = vld [vmem:[%s9005_s23 + $0x18] sm:$0xff]  ;;  %v1594_v9 = vld [vmem:[%s8952_s0 + $0x50] sm:$0xff] }
  0xd0   : > { %v1636_v5 = vpack.c.bf16 %v1593_v4, %v1592_v3  ;;  %v1595_v10 = vld [vmem:[%s8952_s0 + $0x58] sm:$0xff]  ;;  %v7690_v14 = vld [vmem:[%s9005_s23 + $0x20] sm:$0xff]  ;;  %v1597_v16 = vld [vmem:[%s8952_s0 + $0x68] sm:$0xff] }
  0xd1   : > { %v1637_v11 = vpack.c.bf16 %v1595_v10, %v1594_v9  ;;  %v1596_v15 = vld [vmem:[%s8952_s0 + $0x60] sm:$0xff]  ;;  %v7691_v20 = vld [vmem:[%s9005_s23 + $0x28] sm:$0xff]  ;;  %v1598_v21 = vld [vmem:[%s8952_s0 + $0x70] sm:$0xff] }
  0xd2   : > { %v1638_v17 = vpack.c.bf16 %v1597_v16, %v1596_v15  ;;  %v7692_v26 = vld [vmem:[%s9005_s23 + $0x30] sm:$0xff]  ;;  %v1600_v28 = vld [vmem:[%s8952_s0 + $0x80] sm:$0xff]  ;;  %v1601_v29 = vld [vmem:[%s8952_s0 + $0x88] sm:$0xff] }
  0xd3   : > { %v7693_v34 = vld [vmem:[%s9005_s23 + $0x38] sm:$0xff]  ;;  %v1602_v36 = vld [vmem:[%s8952_s0 + $0x90] sm:$0xff] }
  0xd4   : > { %v1603_v37 = vld [vmem:[%s8952_s0 + $0x98] sm:$0xff]  ;;  %v1606_v59 = vld [vmem:[%s8952_s0 + $0xb0] sm:$0xff] }
  0xd5   : > { %v1641_v38 = vpack.c.bf16 %v1603_v37, %v1602_v36  ;;  %v2178_v4 = vld [vmem:[%s8984_s25 + $0x10] sm:$0xff]  ;;  %v2179_v16 = vld [vmem:[%s8984_s25 + $0x18] sm:$0xff] }
  0xd6   : > { %v7740_v10 = vld [vmem:[%s11934_s7 + $0x10] sm:$0xff]  ;;  %v7697_v37 = vld [vmem:[%s9005_s23 + $0x58] sm:$0xff] }
  0xd7   : > { %7760 = vmatpush.bf16.xpose.msra.mxu2 %v1733_v22  ;;  %1747 = vmatpush.bf16.xpose.msra.mxu0 %v1733_v22  ;;  %v1599_v22 = vld [vmem:[%s8952_s0 + $0x78] sm:$0xff]  ;;  %v7696_v15 = vld [vmem:[%s9005_s23 + $0x50] sm:$0xff] }
  0xd8   : > { %v1639_v23 = vpack.c.bf16 %v1599_v22, %v1598_v21  ;;  %7764 = vmatpush.bf16.msra.mxu3 %v7740_v10  ;;  %v7738_v21 = vld [vmem:[%s11934_s7] sm:$0xff] }
  0xdf   : > { %7761 = vmatpush.bf16.xpose.msra.mxu2 %v1730_v24  ;;  %1748 = vmatpush.bf16.xpose.msra.mxu0 %v1730_v24 }
  0xe6   : > { %6953 = vmatmul.msk.bf16.vlgmr.msra.gmra.mxu2 %vm1680_vm0, %v1644_v27  ;;  %6941 = vmatmul.msk.bf16.vlgmr.msra.gmra.mxu0 %vm1680_vm0, %v1632_v50  ;;  %v2176_v50 = vld [vmem:[%s8984_s25] sm:$0xff] }
  0xe7   : > { %7762 = vmatpush.msk.msrb.mxu2 %vm2564_vm1, %v2274_v18  ;;  %7278 = vmatmul.msk.f32.vlgmr.msra.gmra.mxu1 %vm2275_vm2, %v2176_v50 }
  0xe9   : > { %3053 = vmatpush.bf16.xpose.msra.mxu2 %v3047_v35 }
  0xf1   : > { %3054 = vmatpush.bf16.xpose.msra.mxu2 %v3044_v39 }
  0xf6   : > { %6954 = vmatmul.msk.bf16.gmra.mxu2 %vm1680_vm0, %v1645_v30  ;;  %6942 = vmatmul.msk.bf16.gmra.mxu0 %vm1680_vm0, %v1633_v55  ;;  %v1640_v30 = vpack.c.bf16 %v1601_v29, %v1600_v28  ;;  %v2180_v28 = vld [vmem:[%s8984_s25 + $0x20] sm:$0xff] }
  0xf7   : > { %v7706_v29 = vld [vmem:[%s9005_s23 + $0xa0] sm:$0xff] }
  0xf9   : > { %3055 = vmatpush.bf16.xpose.msra.mxu2 %v3041_v42  ;;  %v7694_v42 = vld [vmem:[%s9005_s23 + $0x40] sm:$0xff] }
 0x101   : > { %3056 = vmatpush.bf16.xpose.msra.mxu2 %v3038_v44  ;;  %v1604_v44 = vld [vmem:[%s8952_s0 + $0xa0] sm:$0xff] }
 0x106   : > { %6955 = vmatmul.msk.bf16.gmra.mxu2 %vm1680_vm0, %v1646_v33  ;;  %6943 = vmatmul.msk.bf16.gmra.mxu0 %vm1680_vm0, %v1634_v60  ;;  %v1607_v60 = vld [vmem:[%s8952_s0 + $0xb8] sm:$0xff] }
 0x116   : > { %6956 = vmatmul.msk.bf16.gmra.mxu2 %vm1680_vm0, %v1647_v40  ;;  %6944 = vmatmul.msk.bf16.gmra.mxu0 %vm1680_vm0, %v1635_v0 }
 0x126   : > { %7369 = vmatmul.msk.f32.vlgmr.msrb.gmra.mxu2 %vm2275_vm2, %v7272_v45  ;;  %6945 = vmatmul.msk.bf16.gmra.mxu0 %vm1680_vm0, %v1636_v5  ;;  %v1605_v45 = vld [vmem:[%s8952_s0 + $0xa8] sm:$0xff] }
 0x127   : > { %3627 = vmatpush.bf16.msrb.mxu2 %v7741_v47  ;;  %v9080_v47 = vld [vmem:[%s11933_s6] ss:$0 sm:$0xff] }
 0x12b   : > { %3628 = vmatpush.bf16.msrb.mxu2 %v7740_v10 }
 0x12e   : > { %7370 = vmatmul.msk.f32.gmra.mxu2 %vm2275_vm2, %v7273_v46  ;;  %v1642_v46 = vpack.c.bf16 %v1605_v45, %v1604_v44 }
 0x136   : > { %7371 = vmatmul.msk.f32.gmra.mxu2 %vm2275_vm2, %v7274_v51  ;;  %6946 = vmatmul.msk.bf16.gmra.mxu0 %vm1680_vm0, %v1637_v11 }
 0x13e   : > { %7372 = vmatmul.msk.f32.gmra.mxu2 %vm2275_vm2, %v7275_v52 }
 0x146   : > { %7373 = vmatmul.msk.f32.gmra.mxu2 %vm2275_vm2, %v7276_v56  ;;  %6947 = vmatmul.msk.bf16.gmra.mxu0 %vm1680_vm0, %v1638_v17  ;;  %v7695_v56 = vld [vmem:[%s9005_s23 + $0x48] sm:$0xff] }
 0x147   : > { %v7739_v17 = vld [vmem:[%s11934_s7 + $0x8] sm:$0xff] }
 0x148   : > { %7765 = vmatpush.bf16.msra.mxu3 %v7739_v17  ;;  %3629 = vmatpush.bf16.msrb.mxu2 %v7739_v17 }
 0x14c   : > { %7766 = vmatpush.bf16.msra.mxu3 %v7738_v21  ;;  %3630 = vmatpush.bf16.msrb.mxu2 %v7738_v21 }
 0x14e   : > { %7390 = vmatmul.msk.bf16.vlgmr.msra.gmra.mxu2 %vm1680_vm0, %v7686_v57  ;;  %v2177_v57 = vld [vmem:[%s8984_s25 + $0x8] sm:$0xff] }
 0x14f   : > { %7279 = vmatmul.msk.f32.gmra.mxu1 %vm2275_vm2, %v2177_v57  ;;  %v2183_v57 = vld [vmem:[%s8984_s25 + $0x38] sm:$0xff] }
 0x156   : > { %6948 = vmatmul.msk.bf16.gmra.mxu0 %vm1680_vm0, %v1639_v23 }
 0x157   : > { %7280 = vmatmul.msk.f32.gmra.mxu1 %vm2275_vm2, %v2178_v4  ;;  %v2184_v4 = vld [vmem:[%s8984_s25 + $0x40] sm:$0xff] }
 0x15e   : > { %7391 = vmatmul.msk.bf16.gmra.mxu2 %vm1680_vm0, %v7687_v61  ;;  %v1643_v61 = vpack.c.bf16 %v1607_v60, %v1606_v59 }
 0x15f   : > { %7281 = vmatmul.msk.f32.gmra.mxu1 %vm2275_vm2, %v2179_v16  ;;  %v2185_v16 = vld [vmem:[%s8984_s25 + $0x48] sm:$0xff] }
 0x163   : > { %v1750_v27 = vpop.f32.mrf.mxu0 }
 0x164   : > { %v9084_v49 = vadd.f32 %v9080_v47, %v1750_v27 }
 0x166   : > { %6949 = vmatmul.msk.bf16.gmra.mxu0 %vm1680_vm0, %v1640_v30 }
 0x167   : > { %7282 = vmatmul.msk.f32.gmra.mxu1 %vm2275_vm2, %v2180_v28 }
 0x169   : > { %v9017_v1 = vpop.f32.mrf.mxu2 }
 0x16b   : > { %v1752_v32 = vpop.f32.mrf.mxu0 }
 0x16c   : > { %v9089_v51 = vadd.f32 %v9080_v47, %v1752_v32 }
 0x16e   : > { %7392 = vmatmul.msk.bf16.gmra.mxu2 %vm1680_vm0, %v7688_v2  ;;  %v9304_v2 = vadd.f32 %v9080_v47, %v9017_v1 }
 0x171   : > { %v9023_v6 = vpop.f32.mrf.mxu2 }
 0x173   : > { %v1755_v35 = vpop.f32.mrf.mxu0 }
 0x174   : > { %v9107_v3 = vadd.f32 %v9080_v47, %v1755_v35 }
 0x176   : > { %6950 = vmatmul.msk.bf16.gmra.mxu0 %vm1680_vm0, %v1641_v38  ;;  %v2181_v38 = vld [vmem:[%s8984_s25 + $0x28] sm:$0xff] }
 0x177   : > { %7283 = vmatmul.msk.f32.gmra.mxu1 %vm2275_vm2, %v2181_v38 }
 0x179   : > { %v9026_v7 = vpop.f32.mrf.mxu2 }
 0x17b   : > { %v1757_v40 = vpop.f32.mrf.mxu0 }
 0x17c   : > { %v9112_v5 = vadd.f32 %v9080_v47, %v1757_v40 }
 0x17e   : > { %7393 = vmatmul.msk.bf16.gmra.mxu2 %vm1680_vm0, %v7689_v8 }
 0x181   : > { %v9032_v12 = vpop.f32.mrf.mxu2 }
 0x183   : > { %v1760_v43 = vpop.f32.mrf.mxu0 }
 0x184   : > { %v9134_v27 = vadd.f32 %v9080_v47, %v1760_v43 }
 0x186   : > { %6951 = vmatmul.msk.bf16.gmra.mxu0 %vm1680_vm0, %v1642_v46  ;;  %v2182_v46 = vld [vmem:[%s8984_s25 + $0x30] sm:$0xff] }
 0x187   : > { %7284 = vmatmul.msk.f32.gmra.mxu1 %vm2275_vm2, %v2182_v46  ;;  %v7700_v46 = vld [vmem:[%s9005_s23 + $0x70] sm:$0xff] }
 0x189   : > { %v9035_v13 = vpop.f32.mrf.mxu2 }
 0x18b   : > { %v1762_v53 = vpop.f32.mrf.mxu0 }
 0x18c   : > { %v9141_v30 = vadd.f32 %v9080_v47, %v1762_v53 }
 0x18e   : > { %7394 = vmatmul.msk.bf16.gmra.mxu2 %vm1680_vm0, %v7690_v14 }
 0x18f   : > { %7285 = vmatmul.msk.f32.gmra.mxu1 %vm2275_vm2, %v2183_v57 }
 0x191   : > { %v9041_v18 = vpop.f32.mrf.mxu2 }
 0x193   : > { %v1765_v58 = vpop.f32.mrf.mxu0 }
 0x194   : > { %v9154_v45 = vadd.f32 %v9080_v47, %v1765_v58 }
 0x196   : > { %6952 = vmatmul.msk.bf16.gmra.mxu0 %vm1680_vm0, %v1643_v61 }
 0x197   : > { %7286 = vmatmul.msk.f32.gmra.mxu1 %vm2275_vm2, %v2184_v4 }
 0x199   : > { %v9044_v19 = vpop.f32.mrf.mxu2 }
 0x19b   : > { %v1767_v9 = vpop.f32.mrf.mxu0 }
 0x19c   : > { %v9161_v50 = vadd.f32 %v9080_v47, %v1767_v9 }
 0x19e   : > { %7395 = vmatmul.msk.bf16.gmra.mxu2 %vm1680_vm0, %v7691_v20  ;;  %12000 = vst [vmem:[#allocation15_spill] sm:$0xff] %v9161_v50 }
 0x19f   : > { %7287 = vmatmul.msk.f32.gmra.mxu1 %vm2275_vm2, %v2185_v16 }
 0x1a1   : > { %v9050_v24 = vpop.f32.mrf.mxu2 }
 0x1a3   : > { %v1770_v20 = vpop.f32.mrf.mxu0 }
 0x1a4   : > { %v9170_v61 = vadd.f32 %v9080_v47, %v1770_v20 }
 0x1a9   : > { %v9053_v25 = vpop.f32.mrf.mxu2 }
 0x1aa   : > { %11989 = vst [vmem:[#allocation4_spill] sm:$0xff] %v9053_v25 }
 0x1ae   : > { %7396 = vmatmul.msk.bf16.gmra.mxu2 %vm1680_vm0, %v7692_v26 }
 0x1b1   : > { %v9059_v31 = vpop.f32.mrf.mxu2 }
 0x1b2   : > { %11990 = vst [vmem:[#allocation5_spill] sm:$0xff] %v9059_v31 }
 0x1b9   : > { %v9062_v33 = vpop.f32.mrf.mxu2 }
 0x1ba   : > { %11991 = vst [vmem:[#allocation6_spill] sm:$0xff] %v9062_v33 }
 0x1be   : > { %7397 = vmatmul.msk.bf16.gmra.mxu2 %vm1680_vm0, %v7693_v34  ;;  %v1772_v34 = vpop.f32.mrf.mxu0 }
 0x1bf   : > { %v9176_v9 = vadd.f32 %v9080_v47, %v1772_v34  ;;  %v2186_v34 = vld [vmem:[%s8984_s25 + $0x50] sm:$0xff] }
 0x1c0   : > { %7288 = vmatmul.msk.f32.gmra.mxu1 %vm2275_vm2, %v2186_v34 }
 0x1c1   : > { %v9068_v39 = vpop.f32.mrf.mxu2  ;;  %12001 = vst [vmem:[#allocation16_spill] sm:$0xff] %v9176_v9 }
 0x1c2   : > { %11992 = vst [vmem:[#allocation7_spill] sm:$0xff] %v9068_v39 }
 0x1c6   : > { %v1775_v40 = vpop.f32.mrf.mxu0 }
 0x1c7   : > { %v9185_v28 = vadd.f32 %v9080_v47, %v1775_v40  ;;  %v2187_v40 = vld [vmem:[%s8984_s25 + $0x58] sm:$0xff] }
 0x1c8   : > { %7289 = vmatmul.msk.f32.gmra.mxu1 %vm2275_vm2, %v2187_v40 }
 0x1c9   : > { %v9071_v41 = vpop.f32.mrf.mxu2 }
 0x1ca   : > { %11993 = vst [vmem:[#allocation8_spill] sm:$0xff] %v9071_v41 }
 0x1ce   : > { %7398 = vmatmul.msk.bf16.gmra.mxu2 %vm1680_vm0, %v7694_v42 }
 0x1d1   : > { %v3058_v48 = vpop.f32.mrf.mxu2 }
 0x1d2   : > { %v3059_v52 = vadd.f32 %v3058_v48, %v9084_v49 }
 0x1d4   : > { %7804 = vtanh.f32 %v3059_v52 }
 0x1d9   : > { %v3060_v54 = vpop.f32.mrf.mxu2 }
 0x1da   : > { %v3061_v55 = vadd.f32 %v3060_v54, %v9089_v51  ;;  %v9099_v62 = vpop.eup %7804 }
 0x1db   : > { %11994 = vst [vmem:[#allocation9_spill] sm:$0xff] %v9099_v62 }
 0x1dc   : > { %7806 = vtanh.f32 %v3061_v55  ;;  %v7698_v55 = vld [vmem:[%s9005_s23 + $0x60] sm:$0xff] }
 0x1de   : > { %7399 = vmatmul.msk.bf16.gmra.mxu2 %vm1680_vm0, %v7695_v56  ;;  %v1777_v56 = vpop.f32.mrf.mxu0 }
 0x1e1   : > { %v3063_v63 = vpop.f32.mrf.mxu2 }
 0x1e2   : > { %v9101_v0 = vpop.eup %7806  ;;  %v3064_v8 = vadd.f32 %v3063_v63, %v9107_v3 }
 0x1e3   : > { %11995 = vst [vmem:[#allocation10_spill] sm:$0xff] %v9101_v0 }
 0x1e4   : > { %7808 = vtanh.f32 %v3064_v8 }
 0x1e6   : > { %v1780_v8 = vpop.f32.mrf.mxu0 }
 0x1e9   : > { %v3065_v11 = vpop.f32.mrf.mxu2 }
 0x1ea   : > { %v3066_v14 = vadd.f32 %v3065_v11, %v9112_v5  ;;  %v9129_v22 = vpop.eup %7808 }
 0x1eb   : > { %11996 = vst [vmem:[#allocation11_spill] sm:$0xff] %v9129_v22 }
 0x1ec   : > { %7810 = vtanh.f32 %v3066_v14 }
 0x1ee   : > { %7400 = vmatmul.msk.bf16.gmra.mxu2 %vm1680_vm0, %v7696_v15  ;;  %v7699_v15 = vld [vmem:[%s9005_s23 + $0x68] sm:$0xff]  ;;  %v1782_v17 = vpop.f32.mrf.mxu0 }
 0x1f1   : > { %v3068_v23 = vpop.f32.mrf.mxu2 }
 0x1f2   : > { %v9131_v26 = vpop.eup %7810  ;;  %v3069_v32 = vadd.f32 %v3068_v23, %v9134_v27 }
 0x1f3   : > { %11997 = vst [vmem:[#allocation12_spill] sm:$0xff] %v9131_v26 }
 0x1f4   : > { %7812 = vtanh.f32 %v3069_v32 }
 0x1f9   : > { %v3070_v35 = vpop.f32.mrf.mxu2 }
 0x1fa   : > { %v3071_v36 = vadd.f32 %v3070_v35, %v9141_v30  ;;  %v9149_v42 = vpop.eup %7812  ;;  %v9191_v35 = vadd.f32 %v9080_v47, %v1777_v56  ;;  %v9200_v56 = vadd.f32 %v9080_v47, %v1780_v8 }
 0x1fb   : > { %11998 = vst [vmem:[#allocation13_spill] sm:$0xff] %v9149_v42 }
 0x1fc   : > { %7814 = vtanh.f32 %v3071_v36  ;;  %12002 = vst [vmem:[#allocation17_spill] sm:$0xff] %v9191_v35 }
 0x1fe   : > { %7401 = vmatmul.msk.bf16.gmra.mxu2 %vm1680_vm0, %v7697_v37  ;;  %v1785_v37 = vpop.f32.mrf.mxu0 }
 0x201   : > { %v3073_v43 = vpop.f32.mrf.mxu2 }
 0x202   : > { %v9151_v44 = vpop.eup %7814  ;;  %v3074_v52 = vadd.f32 %v3073_v43, %v9154_v45 }
 0x203   : > { %11999 = vst [vmem:[#allocation14_spill] sm:$0xff] %v9151_v44 }
 0x204   : > { %7816 = vtanh.f32 %v3074_v52 }
 0x209   : > { %v3075_v53 = vpop.f32.mrf.mxu2 }
 0x20a   : > { %v3076_v54 = vadd.f32 %v3075_v53, %v9161_v50  ;;  %v7817_v58 = vpop.eup %7816 }
 0x20c   : > { %7818 = vtanh.f32 %v3076_v54 }
 0x20e   : > { %7402 = vmatmul.msk.bf16.gmra.mxu2 %vm1680_vm0, %v7698_v55  ;;  %v1787_v55 = vpop.f32.mrf.mxu0 }
 0x211   : > { %v3078_v59 = vpop.f32.mrf.mxu2 }
 0x212   : > { %v7819_v60 = vpop.eup %7818  ;;  %v3079_v10 = vadd.f32 %v3078_v59, %v9170_v61  ;;  %v9206_v59 = vadd.f32 %v9080_v47, %v1782_v17  ;;  %v9215_v17 = vadd.f32 %v9080_v47, %v1785_v37  ;;  %v2191_v37 = vld [vmem:[%s8984_s25 + $0x78] sm:$0xff] }
 0x213   : > { %v3397_v63 = vpack.c.bf16 %v7819_v60, %v7817_v58  ;;  %v2188_v58 = vld [vmem:[%s8984_s25 + $0x60] sm:$0xff] }
 0x214   : > { %7820 = vtanh.f32 %v3079_v10  ;;  %7290 = vmatmul.msk.f32.gmra.mxu1 %vm2275_vm2, %v2188_v58  ;;  %12003 = vst [vmem:[#allocation18_spill] sm:$0xff] %v9206_v59  ;;  %v7701_v10 = vld [vmem:[%s9005_s23 + $0x78] sm:$0xff]  ;;  %v2192_v58 = vld [vmem:[%s8984_s25 + $0x80] sm:$0xff] }
 0x215   : > { %7457 = vmatmul.msk.bf16.vlgmr.msra.gmra.mxu3 %vm3478_vm3, %v3397_v63 }
 0x216   : > { %v1790_v8 = vpop.f32.mrf.mxu0 }
 0x219   : > { %v3080_v11 = vpop.f32.mrf.mxu2 }
 0x21a   : > { %v3081_v14 = vadd.f32 %v3080_v11, %v9176_v9  ;;  %v7821_v20 = vpop.eup %7820  ;;  %v2189_v11 = vld [vmem:[%s8984_s25 + $0x68] sm:$0xff] }
 0x21c   : > { %7822 = vtanh.f32 %v3081_v14  ;;  %7291 = vmatmul.msk.f32.gmra.mxu1 %vm2275_vm2, %v2189_v11 }
 0x21e   : > { %7403 = vmatmul.msk.bf16.gmra.mxu2 %vm1680_vm0, %v7699_v15 }
 0x221   : > { %v3083_v21 = vpop.f32.mrf.mxu2 }
 0x222   : > { %v7823_v23 = vpop.eup %7822  ;;  %v3084_v36 = vadd.f32 %v3083_v21, %v9185_v28  ;;  %v2190_v21 = vld [vmem:[%s8984_s25 + $0x70] sm:$0xff] }
 0x223   : > { %v3398_v32 = vpack.c.bf16 %v7823_v23, %v7821_v20  ;;  %v9221_v23 = vadd.f32 %v9080_v47, %v1787_v55  ;;  %v9232_v55 = vadd.f32 %v9080_v47, %v1790_v8 }
 0x224   : > { %7824 = vtanh.f32 %v3084_v36  ;;  %7292 = vmatmul.msk.f32.gmra.mxu1 %vm2275_vm2, %v2190_v21 }
 0x225   : > { %7458 = vmatmul.msk.bf16.gmra.mxu3 %vm3478_vm3, %v3398_v32  ;;  %12004 = vst [vmem:[#allocation19_spill] sm:$0xff] %v9221_v23  ;;  %v1792_v32 = vpop.f32.mrf.mxu0 }
 0x229   : > { %v3085_v38 = vpop.f32.mrf.mxu2 }
 0x22a   : > { %v3086_v43 = vadd.f32 %v3085_v38, %v9191_v35  ;;  %v7825_v52 = vpop.eup %7824 }
 0x22c   : > { %7826 = vtanh.f32 %v3086_v43  ;;  %v7702_v43 = vld [vmem:[%s9005_s23 + $0x80] sm:$0xff]  ;;  %7293 = vmatmul.msk.f32.gmra.mxu1 %vm2275_vm2, %v2191_v37 }
 0x22e   : > { %7404 = vmatmul.msk.bf16.gmra.mxu2 %vm1680_vm0, %v7700_v46  ;;  %v1795_v46 = vpop.f32.mrf.mxu0 }
 0x231   : > { %v3088_v53 = vpop.f32.mrf.mxu2 }
 0x232   : > { %v7827_v54 = vpop.eup %7826  ;;  %v3089_v60 = vadd.f32 %v3088_v53, %v9200_v56  ;;  %v9229_v53 = vpop.f32.mrf.mxu1 }
 0x233   : > { %v3399_v57 = vpack.c.bf16 %v7827_v54, %v7825_v52  ;;  %12005 = vst [vmem:[#allocation20_spill] sm:$0xff] %v9229_v53 }
 0x234   : > { %7828 = vtanh.f32 %v3089_v60  ;;  %7294 = vmatmul.msk.f32.gmra.mxu1 %vm2275_vm2, %v2192_v58  ;;  %v9238_v60 = vadd.f32 %v9080_v47, %v1792_v32  ;;  %v2195_v58 = vld [vmem:[%s8984_s25 + $0x98] sm:$0xff] }
 0x235   : > { %7459 = vmatmul.msk.bf16.gmra.mxu3 %vm3478_vm3, %v3399_v57 }
 0x236   : > { %12006 = vst [vmem:[#allocation21_spill] sm:$0xff] %v9238_v60  ;;  %v1797_v8 = vpop.f32.mrf.mxu0 }
 0x237   : > { %v9257_v37 = vadd.f32 %v9080_v47, %v1797_v8 }
 0x239   : > { %v3090_v63 = vpop.f32.mrf.mxu2  ;;  %12009 = vst [vmem:[#allocation24_spill] sm:$0xff] %v9257_v37 }
 0x23a   : > { %v3091_v4 = vadd.f32 %v3090_v63, %v9206_v59  ;;  %v7829_v14 = vpop.eup %7828 }
 0x23c   : > { %7830 = vtanh.f32 %v3091_v4 }
 0x23e   : > { %7405 = vmatmul.msk.bf16.gmra.mxu2 %vm1680_vm0, %v7701_v10  ;;  %v9241_v10 = vpop.f32.mrf.mxu1 }
 0x23f   : > { %12007 = vst [vmem:[#allocation22_spill] sm:$0xff] %v9241_v10 }
 0x241   : > { %v3093_v15 = vpop.f32.mrf.mxu2 }
 0x242   : > { %v7831_v16 = vpop.eup %7830  ;;  %v3094_v34 = vadd.f32 %v3093_v15, %v9215_v17  ;;  %v2193_v15 = vld [vmem:[%s8984_s25 + $0x88] sm:$0xff] }
 0x243   : > { %v3400_v20 = vpack.c.bf16 %v7831_v16, %v7829_v14  ;;  %v7703_v14 = vld [vmem:[%s9005_s23 + $0x88] sm:$0xff]  ;;  %7295 = vmatmul.msk.f32.gmra.mxu1 %vm2275_vm2, %v2193_v15 }
 0x244   : > { %7832 = vtanh.f32 %v3094_v34  ;;  %v9251_v34 = vadd.f32 %v9080_v47, %v1795_v46  ;;  %v7704_v46 = vld [vmem:[%s9005_s23 + $0x90] sm:$0xff] }
 0x245   : > { %7460 = vmatmul.msk.bf16.gmra.mxu3 %vm3478_vm3, %v3400_v20 }
 0x246   : > { %v9248_v21 = vpop.f32.mrf.mxu1 }
 0x247   : > { %12008 = vst [vmem:[#allocation23_spill] sm:$0xff] %v9248_v21 }
 0x249   : > { %v3095_v36 = vpop.f32.mrf.mxu2 }
 0x24a   : > { %v3096_v38 = vadd.f32 %v3095_v36, %v9221_v23  ;;  %v7833_v40 = vpop.eup %7832 }
 0x24c   : > { %7834 = vtanh.f32 %v3096_v38  ;;  %v2194_v38 = vld [vmem:[%s8984_s25 + $0x90] sm:$0xff] }
 0x24d   : > { %7296 = vmatmul.msk.f32.gmra.mxu1 %vm2275_vm2, %v2194_v38 }
 0x24e   : > { %7406 = vmatmul.msk.bf16.gmra.mxu2 %vm1680_vm0, %v7702_v43  ;;  %v1800_v43 = vpop.f32.mrf.mxu0 }
 0x24f   : > { %v9270_v15 = vadd.f32 %v9080_v47, %v1800_v43  ;;  %v7705_v43 = vld [vmem:[%s9005_s23 + $0x98] sm:$0xff] }
 0x251   : > { %v3098_v52 = vpop.f32.mrf.mxu2 }
 0x252   : > { %v7835_v54 = vpop.eup %7834  ;;  %v3099_v63 = vadd.f32 %v3098_v52, %v9232_v55 }
 0x253   : > { %v3401_v57 = vpack.c.bf16 %v7835_v54, %v7833_v40  ;;  %v9260_v54 = vpop.f32.mrf.mxu1 }
 0x254   : > { %7836 = vtanh.f32 %v3099_v63  ;;  %12010 = vst [vmem:[#allocation25_spill] sm:$0xff] %v9260_v54 }
 0x255   : > { %7461 = vmatmul.msk.bf16.gmra.mxu3 %vm3478_vm3, %v3401_v57  ;;  %7297 = vmatmul.msk.f32.gmra.mxu1 %vm2275_vm2, %v2195_v58 }
 0x256   : > { %v1802_v63 = vpop.f32.mrf.mxu0 }
 0x259   : > { %v3100_v4 = vpop.f32.mrf.mxu2 }
 0x25a   : > { %v3101_v11 = vadd.f32 %v3100_v4, %v9238_v60  ;;  %v7837_v16 = vpop.eup %7836 }
 0x25c   : > { %7838 = vtanh.f32 %v3101_v11 }
 0x25e   : > { %7407 = vmatmul.msk.bf16.gmra.mxu2 %vm1680_vm0, %v7703_v14  ;;  %v9267_v14 = vpop.f32.mrf.mxu1  ;;  %v1805_v38 = vpop.f32.mrf.mxu0 }
 0x25f   : > { %12011 = vst [vmem:[#allocation26_spill] sm:$0xff] %v9267_v14 }
 0x261   : > { %v3103_v20 = vpop.f32.mrf.mxu2 }
 0x262   : > { %v7839_v32 = vpop.eup %7838  ;;  %v3104_v40 = vadd.f32 %v3103_v20, %v9251_v34  ;;  %v2196_v20 = vld [vmem:[%s8984_s25 + $0xa0] sm:$0xff] }
 0x263   : > { %v3402_v36 = vpack.c.bf16 %v7839_v32, %v7837_v16  ;;  %7298 = vmatmul.msk.f32.gmra.mxu1 %vm2275_vm2, %v2196_v20  ;;  %v9276_v32 = vadd.f32 %v9080_v47, %v1802_v63 }
 0x264   : > { %7840 = vtanh.f32 %v3104_v40 }
 0x265   : > { %7462 = vmatmul.msk.bf16.gmra.mxu3 %vm3478_vm3, %v3402_v36 }
 0x266   : > { %v1807_v20 = vpop.f32.mrf.mxu0 }
 0x269   : > { %v3105_v52 = vpop.f32.mrf.mxu2 }
 0x26a   : > { %v3106_v57 = vadd.f32 %v3105_v52, %v9257_v37  ;;  %v7841_v4 = vpop.eup %7840  ;;  %v9279_v52 = vpop.f32.mrf.mxu1 }
 0x26b   : > { %12012 = vst [vmem:[#allocation27_spill] sm:$0xff] %v9279_v52 }
 0x26c   : > { %7842 = vtanh.f32 %v3106_v57 }
 0x26e   : > { %7408 = vmatmul.msk.bf16.gmra.mxu2 %vm1680_vm0, %v7704_v46  ;;  %v2197_v46 = vld [vmem:[%s8984_s25 + $0xa8] sm:$0xff] }
 0x26f   : > { %7299 = vmatmul.msk.f32.gmra.mxu1 %vm2275_vm2, %v2197_v46 }
 0x271   : > { %v3108_v11 = vpop.f32.mrf.mxu2 }
 0x272   : > { %v7843_v8 = vpop.eup %7842  ;;  %v3109_v36 = vadd.f32 %v3108_v11, %v9270_v15 }
 0x273   : > { %v3403_v16 = vpack.c.bf16 %v7843_v8, %v7841_v4  ;;  %v2603_v4 = vpop.f32.mrf.mxu1  ;;  %v9287_v8 = vadd.f32 %v9080_v47, %v1805_v38  ;;  %v2199_v38 = vld [vmem:[%s8984_s25 + $0xb8] sm:$0xff] }
 0x274   : > { %7844 = vtanh.f32 %v3109_v36  ;;  %v9293_v36 = vadd.f32 %v9080_v47, %v1807_v20 }
 0x275   : > { %7463 = vmatmul.msk.bf16.gmra.mxu3 %vm3478_vm3, %v3403_v16 }
 0x279   : > { %v3110_v40 = vpop.f32.mrf.mxu2 }
 0x27a   : > { %v3111_v57 = vadd.f32 %v3110_v40, %v9276_v32  ;;  %v7845_v58 = vpop.eup %7844  ;;  %v2198_v40 = vld [vmem:[%s8984_s25 + $0xb0] sm:$0xff] }
 0x27b   : > { %7300 = vmatmul.msk.f32.gmra.mxu1 %vm2275_vm2, %v2198_v40  ;;  %v2606_v46 = vpop.f32.mrf.mxu1 }
 0x27c   : > { %7846 = vtanh.f32 %v3111_v57 }
 0x27e   : > { %7409 = vmatmul.msk.bf16.gmra.mxu2 %vm1680_vm0, %v7705_v43 }
 0x281   : > { %v3113_v63 = vpop.f32.mrf.mxu2 }
 0x282   : > { %v7847_v11 = vpop.eup %7846  ;;  %v3114_v57 = vadd.f32 %v3113_v63, %v9287_v8  ;;  %v2200_v63 = vld [vmem:[%s8984_s25 + $0xc0] sm:$0xff] }
 0x283   : > { %v3404_v16 = vpack.c.bf16 %v7847_v11, %v7845_v58  ;;  %7301 = vmatmul.msk.f32.gmra.mxu1 %vm2275_vm2, %v2199_v38 }
 0x284   : > { %7848 = vtanh.f32 %v3114_v57  ;;  %v9316_v57 = vadd.f32 %v9080_v47, %v9023_v6 }
 0x285   : > { %7464 = vmatmul.msk.bf16.gmra.mxu3 %vm3478_vm3, %v3404_v16  ;;  %v2609_v16 = vpop.f32.mrf.mxu1 }
 0x289   : > { %v3115_v43 = vpop.f32.mrf.mxu2 }
 0x28a   : > { %v3116_v48 = vadd.f32 %v3115_v43, %v9293_v36  ;;  %v7849_v58 = vpop.eup %7848 }
 0x28b   : > { %7302 = vmatmul.msk.f32.gmra.mxu1 %vm2275_vm2, %v2200_v63  ;;  %v2201_v63 = vld [vmem:[%s8984_s25 + $0xc8] sm:$0xff] }
 0x28c   : > { %7850 = vtanh.f32 %v3116_v48 }
 0x28e   : > { %7410 = vmatmul.msk.bf16.gmra.mxu2 %vm1680_vm0, %v7706_v29  ;;  %v9311_v29 = vld [vmem:[%s11935_s8] ss:$0 sm:$0xff] }
 0x291   : > { %v3118_v11 = vpop.f32.mrf.mxu2 }
 0x292   : > { %v7851_v20 = vpop.eup %7850  ;;  %v3119_v48 = vadd.f32 %v3118_v11, %v9304_v2 }
 0x293   : > { %v3405_v40 = vpack.c.bf16 %v7851_v20, %v7849_v58  ;;  %v2612_v58 = vpop.f32.mrf.mxu1  ;;  %7303 = vmatmul.msk.f32.gmra.mxu1 %vm2275_vm2, %v2201_v63  ;;  %v9337_v63 = vadd.f32 %v9080_v47, %v9032_v12 }
 0x294   : > { %7852 = vtanh.f32 %v3119_v48 }
 0x295   : > { %7465 = vmatmul.msk.bf16.gmra.mxu3 %vm3478_vm3, %v3405_v40  ;;  %v7707_v40 = vld [vmem:[%s9005_s23 + $0xa8] sm:$0xff] }
 0x298   : > { %v3647_v43 = vpop.f32.mrf.mxu3 }
 0x299   : > { %v3648_v38 = vadd.f32 %v9311_v29, %v3647_v43  ;;  %v3120_v1 = vpop.f32.mrf.mxu2 }
 0x29a   : > { %v3121_v20 = vadd.f32 %v3120_v1, %v9316_v57  ;;  %v7853_v11 = vpop.eup %7852 }
 0x29b   : > { %7854 = vtanh.f32 %v3648_v38  ;;  %v2615_v33 = vpop.f32.mrf.mxu1  ;;  %v2202_v38 = vld [vmem:[%s8984_s25 + $0xd0] sm:$0xff] }
 0x29c   : > { %7856 = vtanh.f32 %v3121_v20  ;;  %v9330_v20 = vadd.f32 %v9080_v47, %v9026_v7  ;;  %7304 = vmatmul.msk.f32.gmra.mxu1 %vm2275_vm2, %v2202_v38  ;;  %v7708_v38 = vld [vmem:[%s9005_s23 + $0xb0] sm:$0xff] }
 0x29e   : > { %7411 = vmatmul.msk.bf16.gmra.mxu2 %vm1680_vm0, %v7707_v40 }
 0x2a0   : > { %v3649_v6 = vpop.f32.mrf.mxu3 }
 0x2a1   : > { %v7855_v41 = vpop.eup %7854  ;;  %v3650_v39 = vadd.f32 %v9311_v29, %v3649_v6  ;;  %v3123_v43 = vpop.f32.mrf.mxu2 }
 0x2a2   : > { %v7857_v31 = vpop.eup %7856  ;;  %v9325_v48 = vmul.f32 %v7855_v41, %v2603_v4  ;;  %v3124_v40 = vadd.f32 %v3123_v43, %v9330_v20 }
 0x2a3   : > { %7858 = vtanh.f32 %v3650_v39  ;;  %v3406_v1 = vpack.c.bf16 %v7857_v31, %v7853_v11  ;;  %v2618_v11 = vpop.f32.mrf.mxu1 }
 0x2a4   : > { %7860 = vtanh.f32 %v3124_v40 }
 0x2a5   : > { %7466 = vmatmul.msk.bf16.gmra.mxu3 %vm3478_vm3, %v3406_v1  ;;  %v2203_v1 = vld [vmem:[%s8984_s25 + $0xd8] sm:$0xff] }
 0x2a6   : > { %7305 = vmatmul.msk.f32.gmra.mxu1 %vm2275_vm2, %v2203_v1  ;;  %v9360_v1 = vadd.f32 %v9080_v47, %v9041_v18 }
 0x2a8   : > { %v3652_v41 = vpop.f32.mrf.mxu3 }
 0x2a9   : > { %v7859_v39 = vpop.eup %7858  ;;  %v3653_v31 = vadd.f32 %v9311_v29, %v3652_v41  ;;  %v3125_v4 = vpop.f32.mrf.mxu2 }
 0x2aa   : > { %v9340_v6 = vmul.f32 %v7859_v39, %v2606_v46  ;;  %v3126_v7 = vadd.f32 %v3125_v4, %v9337_v63  ;;  %v7861_v12 = vpop.eup %7860 }
 0x2ab   : > { %7862 = vtanh.f32 %v3653_v31  ;;  %v2621_v40 = vpop.f32.mrf.mxu1  ;;  %v2204_v31 = vld [vmem:[%s8984_s25 + $0xe0] sm:$0xff] }
 0x2ac   : > { %7864 = vtanh.f32 %v3126_v7  ;;  %v9353_v7 = vadd.f32 %v9080_v47, %v9035_v13 }
 0x2ae   : > { %7412 = vmatmul.msk.bf16.gmra.mxu2 %vm1680_vm0, %v7708_v38  ;;  %7306 = vmatmul.msk.f32.gmra.mxu1 %vm2275_vm2, %v2204_v31  ;;  %v7709_v31 = vld [vmem:[%s9005_s23 + $0xb8] sm:$0xff] }
 0x2b0   : > { %v3654_v43 = vpop.f32.mrf.mxu3 }
 0x2b1   : > { %v7863_v25 = vpop.eup %7862  ;;  %v3655_v41 = vadd.f32 %v9311_v29, %v3654_v43  ;;  %v3128_v52 = vpop.f32.mrf.mxu2 }
 0x2b2   : > { %v7865_v46 = vpop.eup %7864  ;;  %v9348_v39 = vmul.f32 %v7863_v25, %v2609_v16  ;;  %v3129_v38 = vadd.f32 %v3128_v52, %v9353_v7 }
 0x2b3   : > { %7866 = vtanh.f32 %v3655_v41  ;;  %v3407_v4 = vpack.c.bf16 %v7865_v46, %v7861_v12  ;;  %v2624_v41 = vpop.f32.mrf.mxu1 }
 0x2b4   : > { %7868 = vtanh.f32 %v3129_v38 }
 0x2b5   : > { %7467 = vmatmul.msk.bf16.gmra.mxu3 %vm3478_vm3, %v3407_v4  ;;  %v2205_v4 = vld [vmem:[%s8984_s25 + $0xe8] sm:$0xff] }
 0x2b6   : > { %7307 = vmatmul.msk.f32.gmra.mxu1 %vm2275_vm2, %v2205_v4  ;;  %v9383_v4 = vadd.f32 %v9080_v47, %v9050_v24 }
 0x2b8   : > { %v3657_v25 = vpop.f32.mrf.mxu3 }
 0x2b9   : > { %v7867_v16 = vpop.eup %7866  ;;  %v3658_v12 = vadd.f32 %v9311_v29, %v3657_v25  ;;  %v3130_v43 = vpop.f32.mrf.mxu2 }
 0x2ba   : > { %v9363_v46 = vmul.f32 %v7867_v16, %v2612_v58  ;;  %v3131_v13 = vadd.f32 %v3130_v43, %v9360_v1  ;;  %v7869_v18 = vpop.eup %7868 }
 0x2bb   : > { %7870 = vtanh.f32 %v3658_v12  ;;  %v2627_v38 = vpop.f32.mrf.mxu1  ;;  %v2206_v12 = vld [vmem:[%s8984_s25 + $0xf0] sm:$0xff] }
 0x2bc   : > { %7872 = vtanh.f32 %v3131_v13  ;;  %v9376_v13 = vadd.f32 %v9080_v47, %v9044_v19 }
 0x2be   : > { %7413 = vmatmul.msk.bf16.gmra.mxu2 %vm1680_vm0, %v7709_v31  ;;  %7308 = vmatmul.msk.f32.gmra.mxu1 %vm2275_vm2, %v2206_v12  ;;  %v7710_v12 = vld [vmem:[%s9005_s23 + $0xc0] sm:$0xff] }
 0x2c0   : > { %v3659_v52 = vpop.f32.mrf.mxu3 }
 0x2c1   : > { %v7871_v14 = vpop.eup %7870  ;;  %v3660_v25 = vadd.f32 %v9311_v29, %v3659_v52  ;;  %v3133_v54 = vpop.f32.mrf.mxu2 }
 0x2c2   : > { %v7873_v58 = vpop.eup %7872  ;;  %v9371_v16 = vmul.f32 %v7871_v14, %v2615_v33  ;;  %v3134_v31 = vadd.f32 %v3133_v54, %v9376_v13 }
 0x2c3   : > { %7874 = vtanh.f32 %v3660_v25  ;;  %v3408_v43 = vpack.c.bf16 %v7873_v58, %v7869_v18  ;;  %v2630_v25 = vpop.f32.mrf.mxu1 }
 0x2c4   : > { %7876 = vtanh.f32 %v3134_v31 }
 0x2c5   : > { %7468 = vmatmul.msk.bf16.gmra.mxu3 %vm3478_vm3, %v3408_v43  ;;  %v2207_v43 = vld [vmem:[%s8984_s25 + $0xf8] sm:$0xff] }
 0x2c6   : > { %7309 = vmatmul.msk.f32.gmra.mxu1 %vm2275_vm2, %v2207_v43 }
 0x2c8   : > { %v3662_v33 = vpop.f32.mrf.mxu3 }
 0x2c9   : > { %v7875_v14 = vpop.eup %7874  ;;  %v3663_v18 = vadd.f32 %v9311_v29, %v3662_v33  ;;  %v3135_v52 = vpop.f32.mrf.mxu2 }
 0x2ca   : > { %v9386_v58 = vmul.f32 %v7875_v14, %v2618_v11  ;;  %v3136_v19 = vadd.f32 %v3135_v52, %v9383_v4  ;;  %v7877_v24 = vpop.eup %7876  ;;  %v7213_v52 = vld [vmem:[%s8984_s25 + $0x100] sm:$0xff] }
 0x2cb   : > { %7878 = vtanh.f32 %v3663_v18  ;;  %v2633_v31 = vpop.f32.mrf.mxu1 }
 0x2cc   : > { %7880 = vtanh.f32 %v3136_v19 }
 0x2ce   : > { %7414 = vmatmul.msk.bf16.gmra.mxu2 %vm1680_vm0, %v7710_v12  ;;  %7310 = vmatmul.msk.f32.gmra.mxu1 %vm2275_vm2, %v7213_v52 }
 0x2d0   : > { %v3664_v47 = vpop.f32.mrf.mxu3 }
 0x2d1   : > { %v7879_v54 = vpop.eup %7878  ;;  %v3665_v33 = vadd.f32 %v9311_v29, %v3664_v47  ;;  %v3138_v21 = vpop.f32.mrf.mxu2 }
 0x2d2   : > { %v7881_v11 = vpop.eup %7880  ;;  %v9394_v14 = vmul.f32 %v7879_v54, %v2621_v40  ;;  %v3139_v19 = vadd.f32 %v3138_v21, %v9084_v49  ;;  %v7711_v54 = vld [vmem:[%s9005_s23 + $0xc8] sm:$0xff] }
 0x2d3   : > { %7882 = vtanh.f32 %v3665_v33  ;;  %v3409_v18 = vpack.c.bf16 %v7881_v11, %v7877_v24  ;;  %v2636_v53 = vpop.f32.mrf.mxu1  ;;  %v7214_v24 = vld [vmem:[%s8984_s25 + $0x108] sm:$0xff] }
 0x2d4   : > { %7884 = vtanh.f32 %v3139_v19 }
 0x2d5   : > { %7469 = vmatmul.msk.bf16.gmra.mxu3 %vm3478_vm3, %v3409_v18 }
 0x2d6   : > { %7311 = vmatmul.msk.f32.gmra.mxu1 %vm2275_vm2, %v7214_v24 }
 0x2d8   : > { %v3667_v12 = vpop.f32.mrf.mxu3 }
 0x2d9   : > { %v7883_v43 = vpop.eup %7882  ;;  %v3668_v47 = vadd.f32 %v9311_v29, %v3667_v12  ;;  %v3140_v10 = vpop.f32.mrf.mxu2 }
 0x2da   : > { %v9401_v42 = vmul.f32 %v7883_v43, %v2624_v41  ;;  %v3141_v40 = vadd.f32 %v3140_v10, %v9089_v51  ;;  %v7885_v21 = vpop.eup %7884  ;;  %v7215_v43 = vld [vmem:[%s8984_s25 + $0x110] sm:$0xff] }
 0x2db   : > { %7886 = vtanh.f32 %v3668_v47  ;;  %v2639_v19 = vpop.f32.mrf.mxu1 }
 0x2dc   : > { %7888 = vtanh.f32 %v3141_v40 }
 0x2de   : > { %7415 = vmatmul.msk.bf16.gmra.mxu2 %vm1680_vm0, %v7711_v54  ;;  %7312 = vmatmul.msk.f32.gmra.mxu1 %vm2275_vm2, %v7215_v43 }
 0x2e0   : > { %v3669_v33 = vpop.f32.mrf.mxu3 }
 0x2e1   : > { %v7887_v11 = vpop.eup %7886  ;;  %v3670_v18 = vadd.f32 %v9311_v29, %v3669_v33  ;;  %v3143_v52 = vpop.f32.mrf.mxu2 }
 0x2e2   : > { %v7889_v41 = vpop.eup %7888  ;;  %v9409_v12 = vmul.f32 %v7887_v11, %v2627_v38  ;;  %v3144_v47 = vadd.f32 %v3143_v52, %v9107_v3  ;;  %v7712_v11 = vld [vmem:[%s9005_s23 + $0xd0] sm:$0xff] }
 0x2e3   : > { %7890 = vtanh.f32 %v3670_v18  ;;  %v3410_v10 = vpack.c.bf16 %v7889_v41, %v7885_v21  ;;  %v2642_v44 = vpop.f32.mrf.mxu1  ;;  %v7216_v21 = vld [vmem:[%s8984_s25 + $0x118] sm:$0xff] }
 0x2e4   : > { %7892 = vtanh.f32 %v3144_v47 }
 0x2e5   : > { %7470 = vmatmul.msk.bf16.gmra.mxu3 %vm3478_vm3, %v3410_v10 }
 0x2e6   : > { %7313 = vmatmul.msk.f32.gmra.mxu1 %vm2275_vm2, %v7216_v21 }
 0x2e8   : > { %v3672_v40 = vpop.f32.mrf.mxu3 }
 0x2e9   : > { %v7891_v54 = vpop.eup %7890  ;;  %v3673_v24 = vadd.f32 %v9311_v29, %v3672_v40  ;;  %v3145_v33 = vpop.f32.mrf.mxu2 }
 0x2ea   : > { %v9416_v22 = vmul.f32 %v7891_v54, %v2630_v25  ;;  %v3146_v38 = vadd.f32 %v3145_v33, %v9112_v5  ;;  %v7893_v18 = vpop.eup %7892 }
 0x2eb   : > { %7894 = vtanh.f32 %v3673_v24  ;;  %v2645_v47 = vpop.f32.mrf.mxu1  ;;  %v7217_v24 = vld [vmem:[%s8984_s25 + $0x120] sm:$0xff] }
 0x2ec   : > { %7896 = vtanh.f32 %v3146_v38 }
 0x2ee   : > { %7416 = vmatmul.msk.bf16.gmra.mxu2 %vm1680_vm0, %v7712_v11  ;;  %7314 = vmatmul.msk.f32.gmra.mxu1 %vm2275_vm2, %v7217_v24 }
 0x2f0   : > { %v3674_v52 = vpop.f32.mrf.mxu3 }
 0x2f1   : > { %v7895_v41 = vpop.eup %7894  ;;  %v3675_v10 = vadd.f32 %v9311_v29, %v3674_v52  ;;  %v3148_v43 = vpop.f32.mrf.mxu2 }
 0x2f2   : > { %v7897_v25 = vpop.eup %7896  ;;  %v9424_v40 = vmul.f32 %v7895_v41, %v2633_v31  ;;  %v3149_v33 = vadd.f32 %v3148_v43, %v9134_v27  ;;  %v7713_v41 = vld [vmem:[%s9005_s23 + $0xd8] sm:$0xff] }
 0x2f3   : > { %7898 = vtanh.f32 %v3675_v10  ;;  %v3411_v54 = vpack.c.bf16 %v7897_v25, %v7893_v18  ;;  %v2648_v26 = vpop.f32.mrf.mxu1  ;;  %v7218_v18 = vld [vmem:[%s8984_s25 + $0x128] sm:$0xff] }
 0x2f4   : > { %7900 = vtanh.f32 %v3149_v33 }
 0x2f5   : > { %7471 = vmatmul.msk.bf16.gmra.mxu3 %vm3478_vm3, %v3411_v54 }
 0x2f6   : > { %7315 = vmatmul.msk.f32.gmra.mxu1 %vm2275_vm2, %v7218_v18 }
 0x2f8   : > { %v3677_v38 = vpop.f32.mrf.mxu3 }
 0x2f9   : > { %v7899_v11 = vpop.eup %7898  ;;  %v3678_v21 = vadd.f32 %v9311_v29, %v3677_v38  ;;  %v3150_v52 = vpop.f32.mrf.mxu2 }
 0x2fa   : > { %v9431_v62 = vmul.f32 %v7899_v11, %v2636_v53  ;;  %v3151_v31 = vadd.f32 %v3150_v52, %v9141_v30  ;;  %v7901_v10 = vpop.eup %7900 }
 0x2fb   : > { %7902 = vtanh.f32 %v3678_v21  ;;  %v2651_v33 = vpop.f32.mrf.mxu1  ;;  %v7219_v21 = vld [vmem:[%s8984_s25 + $0x130] sm:$0xff] }
 0x2fc   : > { %12013 = vst [vmem:[#allocation28_spill] sm:$0xff] %v9431_v62  ;;  %7904 = vtanh.f32 %v3151_v31 }
 0x2fe   : > { %7417 = vmatmul.msk.bf16.gmra.mxu2 %vm1680_vm0, %v7713_v41  ;;  %7316 = vmatmul.msk.f32.gmra.mxu1 %vm2275_vm2, %v7219_v21 }
 0x300   : > { %v3679_v43 = vpop.f32.mrf.mxu3 }
 0x301   : > { %v7903_v25 = vpop.eup %7902  ;;  %v3680_v54 = vadd.f32 %v9311_v29, %v3679_v43  ;;  %v3153_v24 = vpop.f32.mrf.mxu2 }
 0x302   : > { %v7905_v53 = vpop.eup %7904  ;;  %v9439_v38 = vmul.f32 %v7903_v25, %v2639_v19  ;;  %v3154_v52 = vadd.f32 %v3153_v24, %v9154_v45  ;;  %v7714_v25 = vld [vmem:[%s9005_s23 + $0xe0] sm:$0xff] }
 0x303   : > { %7906 = vtanh.f32 %v3680_v54  ;;  %v3412_v11 = vpack.c.bf16 %v7905_v53, %v7901_v10  ;;  %v2654_v0 = vpop.f32.mrf.mxu1  ;;  %v7220_v10 = vld [vmem:[%s8984_s25 + $0x138] sm:$0xff]  ;;  %v7747_v54 = vld [vmem:[%s11937_s10 + $0x28] sm:$0xff] }
 0x304   : > { %7908 = vtanh.f32 %v3154_v52  ;;  %v4239_v24 = vsel %vm4174_vm4, %v7747_v54, 0 }
 0x305   : > { %7472 = vmatmul.msk.bf16.gmra.mxu3 %vm3478_vm3, %v3412_v11  ;;  %4243 = vmatpush.bf16.xpose.msrb.mxu0 %v4239_v24 }
 0x306   : > { %7317 = vmatmul.msk.f32.gmra.mxu1 %vm2275_vm2, %v7220_v10 }
 0x308   : > { %v3682_v31 = vpop.f32.mrf.mxu3 }
 0x309   : > { %v7907_v41 = vpop.eup %7906  ;;  %v3683_v18 = vadd.f32 %v9311_v29, %v3682_v31  ;;  %v3155_v43 = vpop.f32.mrf.mxu2 }
 0x30a   : > { %v9446_v62 = vmul.f32 %v7907_v41, %v2642_v44  ;;  %v3156_v19 = vadd.f32 %v3155_v43, %v9161_v50  ;;  %v7909_v44 = vpop.eup %7908 }
 0x30b   : > { %7910 = vtanh.f32 %v3683_v18  ;;  %v2657_v31 = vpop.f32.mrf.mxu1 }
 0x30c   : > { %12014 = vst [vmem:[#allocation29_spill] sm:$0xff] %v9446_v62  ;;  %7912 = vtanh.f32 %v3156_v19  ;;  %v7221_v19 = vld [vmem:[%s8984_s25 + $0x140] sm:$0xff] }
 0x30e   : > { %7418 = vmatmul.msk.bf16.gmra.mxu2 %vm1680_vm0, %v7714_v25  ;;  %7318 = vmatmul.msk.f32.gmra.mxu1 %vm2275_vm2, %v7221_v19 }
 0x310   : > { %v3684_v53 = vpop.f32.mrf.mxu3 }
 0x311   : > { %v7911_v11 = vpop.eup %7910  ;;  %v3685_v21 = vadd.f32 %v9311_v29, %v3684_v53  ;;  %v3158_v52 = vpop.f32.mrf.mxu2 }
 0x312   : > { %v7913_v41 = vpop.eup %7912  ;;  %v9458_v18 = vmul.f32 %v7911_v11, %v2645_v47  ;;  %v3159_v25 = vadd.f32 %v3158_v52, %v9170_v61  ;;  %v7715_v11 = vld [vmem:[%s9005_s23 + $0xe8] sm:$0xff] }
 0x313   : > { %7914 = vtanh.f32 %v3685_v21  ;;  %v3413_v43 = vpack.c.bf16 %v7913_v41, %v7909_v44  ;;  %v2660_v62 = vpop.f32.mrf.mxu1  ;;  %v7222_v44 = vld [vmem:[%s8984_s25 + $0x148] sm:$0xff] }
 0x314   : > { %7916 = vtanh.f32 %v3159_v25 }
 0x315   : > { %7473 = vmatmul.msk.bf16.gmra.mxu3 %vm3478_vm3, %v3413_v43 }
 0x316   : > { %7319 = vmatmul.msk.f32.gmra.mxu1 %vm2275_vm2, %v7222_v44 }
 0x318   : > { %v3687_v10 = vpop.f32.mrf.mxu3 }
 0x319   : > { %v7915_v54 = vpop.eup %7914  ;;  %v3688_v24 = vadd.f32 %v9311_v29, %v3687_v10  ;;  %v3160_v53 = vpop.f32.mrf.mxu2 }
 0x31a   : > { %v9465_v50 = vmul.f32 %v7915_v54, %v2648_v26  ;;  %v3161_v47 = vadd.f32 %v3160_v53, %v9176_v9  ;;  %v7917_v21 = vpop.eup %7916 }
 0x31b   : > { %7918 = vtanh.f32 %v3688_v24  ;;  %v2663_v25 = vpop.f32.mrf.mxu1  ;;  %v7223_v24 = vld [vmem:[%s8984_s25 + $0x150] sm:$0xff] }
 0x31c   : > { %12015 = vst [vmem:[#allocation30_spill] sm:$0xff] %v9465_v50  ;;  %7920 = vtanh.f32 %v3161_v47 }
 0x31e   : > { %7419 = vmatmul.msk.bf16.gmra.mxu2 %vm1680_vm0, %v7715_v11  ;;  %7320 = vmatmul.msk.f32.gmra.mxu1 %vm2275_vm2, %v7223_v24 }
 0x320   : > { %v3689_v52 = vpop.f32.mrf.mxu3 }
 0x321   : > { %v7919_v41 = vpop.eup %7918  ;;  %v3690_v43 = vadd.f32 %v9311_v29, %v3689_v52  ;;  %v3163_v19 = vpop.f32.mrf.mxu2 }
 0x322   : > { %v7921_v26 = vpop.eup %7920  ;;  %v9473_v10 = vmul.f32 %v7919_v41, %v2651_v33  ;;  %v3164_v53 = vadd.f32 %v3163_v19, %v9185_v28  ;;  %v7716_v41 = vld [vmem:[%s9005_s23 + $0xf0] sm:$0xff] }
 0x323   : > { %7922 = vtanh.f32 %v3690_v43  ;;  %v3414_v54 = vpack.c.bf16 %v7921_v26, %v7917_v21  ;;  %v2666_v50 = vpop.f32.mrf.mxu1  ;;  %v7224_v21 = vld [vmem:[%s8984_s25 + $0x158] sm:$0xff]  ;;  %v7746_v43 = vld [vmem:[%s11937_s10 + $0x20] sm:$0xff] }
 0x324   : > { %7924 = vtanh.f32 %v3164_v53  ;;  %v4236_v19 = vsel %vm4174_vm4, %v7746_v43, 0 }
 0x325   : > { %7474 = vmatmul.msk.bf16.gmra.mxu3 %vm3478_vm3, %v3414_v54  ;;  %4244 = vmatpush.bf16.xpose.msrb.mxu0 %v4236_v19 }
 0x326   : > { %7321 = vmatmul.msk.f32.gmra.mxu1 %vm2275_vm2, %v7224_v21 }
 0x328   : > { %v3692_v47 = vpop.f32.mrf.mxu3 }
 0x329   : > { %v7923_v11 = vpop.eup %7922  ;;  %v3693_v44 = vadd.f32 %v9311_v29, %v3692_v47  ;;  %v3165_v52 = vpop.f32.mrf.mxu2 }
 0x32a   : > { %v9480_v9 = vmul.f32 %v7923_v11, %v2654_v0  ;;  %v3166_v33 = vadd.f32 %v3165_v52, %v9191_v35  ;;  %v7925_v0 = vpop.eup %7924 }
 0x32b   : > { %7926 = vtanh.f32 %v3693_v44  ;;  %v2669_v47 = vpop.f32.mrf.mxu1 }
 0x32c   : > { %12016 = vst [vmem:[#allocation31_spill] sm:$0xff] %v9480_v9  ;;  %7928 = vtanh.f32 %v3166_v33  ;;  %v7225_v33 = vld [vmem:[%s8984_s25 + $0x160] sm:$0xff] }
 0x32e   : > { %7420 = vmatmul.msk.bf16.gmra.mxu2 %vm1680_vm0, %v7716_v41  ;;  %7322 = vmatmul.msk.f32.gmra.mxu1 %vm2275_vm2, %v7225_v33 }
 0x330   : > { %v3694_v26 = vpop.f32.mrf.mxu3 }
 0x331   : > { %v7927_v54 = vpop.eup %7926  ;;  %v3695_v24 = vadd.f32 %v9311_v29, %v3694_v26  ;;  %v3168_v53 = vpop.f32.mrf.mxu2 }
 0x332   : > { %v7929_v11 = vpop.eup %7928  ;;  %v9492_v44 = vmul.f32 %v7927_v54, %v2657_v31  ;;  %v3169_v41 = vadd.f32 %v3168_v53, %v9200_v56  ;;  %v7717_v54 = vld [vmem:[%s9005_s23 + $0xf8] sm:$0xff] }
 0x333   : > { %7930 = vtanh.f32 %v3695_v24  ;;  %v3415_v52 = vpack.c.bf16 %v7929_v11, %v7925_v0  ;;  %v2672_v9 = vpop.f32.mrf.mxu1  ;;  %v7226_v0 = vld [vmem:[%s8984_s25 + $0x168] sm:$0xff] }
 0x334   : > { %7932 = vtanh.f32 %v3169_v41 }
 0x335   : > { %7475 = vmatmul.msk.bf16.gmra.mxu3 %vm3478_vm3, %v3415_v52 }
 0x336   : > { %7323 = vmatmul.msk.f32.gmra.mxu1 %vm2275_vm2, %v7226_v0 }
 0x338   : > { %v3697_v21 = vpop.f32.mrf.mxu3 }
 0x339   : > { %v7931_v43 = vpop.eup %7930  ;;  %v3698_v19 = vadd.f32 %v9311_v29, %v3697_v21  ;;  %v3170_v26 = vpop.f32.mrf.mxu2 }
 0x33a   : > { %v9499_v35 = vmul.f32 %v7931_v43, %v2660_v62  ;;  %v3171_v31 = vadd.f32 %v3170_v26, %v9206_v59  ;;  %v7933_v24 = vpop.eup %7932 }
 0x33b   : > { %7934 = vtanh.f32 %v3698_v19  ;;  %v2675_v41 = vpop.f32.mrf.mxu1  ;;  %v7227_v19 = vld [vmem:[%s8984_s25 + $0x170] sm:$0xff] }
 0x33c   : > { %12017 = vst [vmem:[#allocation32_spill] sm:$0xff] %v9499_v35  ;;  %7936 = vtanh.f32 %v3171_v31 }
 0x33e   : > { %7421 = vmatmul.msk.bf16.gmra.mxu2 %vm1680_vm0, %v7717_v54  ;;  %7324 = vmatmul.msk.f32.gmra.mxu1 %vm2275_vm2, %v7227_v19 }
 0x340   : > { %v3699_v53 = vpop.f32.mrf.mxu3 }
 0x341   : > { %v7935_v11 = vpop.eup %7934  ;;  %v3700_v52 = vadd.f32 %v9311_v29, %v3699_v53  ;;  %v3173_v33 = vpop.f32.mrf.mxu2 }
 0x342   : > { %v7937_v62 = vpop.eup %7936  ;;  %v9507_v21 = vmul.f32 %v7935_v11, %v2663_v25  ;;  %v3174_v26 = vadd.f32 %v3173_v33, %v9215_v17  ;;  %v7718_v11 = vld [vmem:[%s9005_s23 + $0x100] sm:$0xff] }
 0x343   : > { %7938 = vtanh.f32 %v3700_v52  ;;  %v3416_v43 = vpack.c.bf16 %v7937_v62, %v7933_v24  ;;  %v2678_v35 = vpop.f32.mrf.mxu1  ;;  %v7228_v24 = vld [vmem:[%s8984_s25 + $0x178] sm:$0xff] }
 0x344   : > { %7940 = vtanh.f32 %v3174_v26  ;;  %v7745_v52 = vld [vmem:[%s11937_s10 + $0x18] sm:$0xff] }
 0x345   : > { %7476 = vmatmul.msk.bf16.gmra.mxu3 %vm3478_vm3, %v3416_v43  ;;  %v4233_v33 = vsel %vm4174_vm4, %v7745_v52, 0 }
 0x346   : > { %7325 = vmatmul.msk.f32.gmra.mxu1 %vm2275_vm2, %v7228_v24  ;;  %4245 = vmatpush.bf16.xpose.msrb.mxu0 %v4233_v33 }
 0x348   : > { %v3702_v31 = vpop.f32.mrf.mxu3 }
 0x349   : > { %v7939_v54 = vpop.eup %7938  ;;  %v3703_v0 = vadd.f32 %v9311_v29, %v3702_v31  ;;  %v3175_v53 = vpop.f32.mrf.mxu2 }
 0x34a   : > { %v9514_v59 = vmul.f32 %v7939_v54, %v2666_v50  ;;  %v3176_v25 = vadd.f32 %v3175_v53, %v9221_v23  ;;  %v7941_v50 = vpop.eup %7940 }
 0x34b   : > { %7942 = vtanh.f32 %v3703_v0  ;;  %v2681_v31 = vpop.f32.mrf.mxu1 }
 0x34c   : > { %12018 = vst [vmem:[#allocation33_spill] sm:$0xff] %v9514_v59  ;;  %7944 = vtanh.f32 %v3176_v25  ;;  %v7229_v25 = vld [vmem:[%s8984_s25 + $0x180] sm:$0xff] }
 0x34e   : > { %7422 = vmatmul.msk.bf16.gmra.mxu2 %vm1680_vm0, %v7718_v11  ;;  %7326 = vmatmul.msk.f32.gmra.mxu1 %vm2275_vm2, %v7229_v25 }
 0x350   : > { %v3704_v62 = vpop.f32.mrf.mxu3 }
 0x351   : > { %v7943_v43 = vpop.eup %7942  ;;  %v3705_v19 = vadd.f32 %v9311_v29, %v3704_v62  ;;  %v3178_v26 = vpop.f32.mrf.mxu2 }
 0x352   : > { %v7945_v54 = vpop.eup %7944  ;;  %v9526_v0 = vmul.f32 %v7943_v43, %v2669_v47  ;;  %v3179_v11 = vadd.f32 %v3178_v26, %v9232_v55  ;;  %v7719_v43 = vld [vmem:[%s9005_s23 + $0x108] sm:$0xff] }
 0x353   : > { %7946 = vtanh.f32 %v3705_v19  ;;  %v3417_v53 = vpack.c.bf16 %v7945_v54, %v7941_v50  ;;  %v2684_v59 = vpop.f32.mrf.mxu1  ;;  %v7230_v50 = vld [vmem:[%s8984_s25 + $0x188] sm:$0xff] }
 0x354   : > { %7948 = vtanh.f32 %v3179_v11 }
 0x355   : > { %7477 = vmatmul.msk.bf16.gmra.mxu3 %vm3478_vm3, %v3417_v53 }
 0x356   : > { %7327 = vmatmul.msk.f32.gmra.mxu1 %vm2275_vm2, %v7230_v50 }
 0x358   : > { %v3707_v24 = vpop.f32.mrf.mxu3 }
 0x359   : > { %v7947_v52 = vpop.eup %7946  ;;  %v3708_v33 = vadd.f32 %v9311_v29, %v3707_v24  ;;  %v3180_v62 = vpop.f32.mrf.mxu2 }
 0x35a   : > { %v9533_v23 = vmul.f32 %v7947_v52, %v2672_v9  ;;  %v3181_v47 = vadd.f32 %v3180_v62, %v9238_v60  ;;  %v7949_v19 = vpop.eup %7948 }
 0x35b   : > { %7950 = vtanh.f32 %v3708_v33  ;;  %v2687_v11 = vpop.f32.mrf.mxu1  ;;  %v7231_v33 = vld [vmem:[%s8984_s25 + $0x190] sm:$0xff] }
 0x35c   : > { %12019 = vst [vmem:[#allocation34_spill] sm:$0xff] %v9533_v23  ;;  %7952 = vtanh.f32 %v3181_v47 }
 0x35e   : > { %7423 = vmatmul.msk.bf16.gmra.mxu2 %vm1680_vm0, %v7719_v43  ;;  %7328 = vmatmul.msk.f32.gmra.mxu1 %vm2275_vm2, %v7231_v33 }
 0x360   : > { %v3709_v26 = vpop.f32.mrf.mxu3 }
 0x361   : > { %v7951_v54 = vpop.eup %7950  ;;  %v3710_v53 = vadd.f32 %v9311_v29, %v3709_v26  ;;  %v3183_v25 = vpop.f32.mrf.mxu2 }
 0x362   : > { %v7953_v9 = vpop.eup %7952  ;;  %v9541_v24 = vmul.f32 %v7951_v54, %v2675_v41  ;;  %v3184_v62 = vadd.f32 %v3183_v25, %v9251_v34  ;;  %v7720_v54 = vld [vmem:[%s9005_s23 + $0x110] sm:$0xff] }
 0x363   : > { %7954 = vtanh.f32 %v3710_v53  ;;  %v3418_v52 = vpack.c.bf16 %v7953_v9, %v7949_v19  ;;  %v2690_v23 = vpop.f32.mrf.mxu1  ;;  %v7232_v19 = vld [vmem:[%s8984_s25 + $0x198] sm:$0xff]  ;;  %v7744_v53 = vld [vmem:[%s11937_s10 + $0x10] sm:$0xff] }
 0x364   : > { %7956 = vtanh.f32 %v3184_v62  ;;  %v4230_v25 = vsel %vm4174_vm4, %v7744_v53, 0 }
 0x365   : > { %7478 = vmatmul.msk.bf16.gmra.mxu3 %vm3478_vm3, %v3418_v52  ;;  %4246 = vmatpush.bf16.xpose.msrb.mxu0 %v4230_v25 }
 0x366   : > { %7329 = vmatmul.msk.f32.gmra.mxu1 %vm2275_vm2, %v7232_v19 }
 0x368   : > { %v3712_v47 = vpop.f32.mrf.mxu3 }
 0x369   : > { %v7955_v43 = vpop.eup %7954  ;;  %v3713_v50 = vadd.f32 %v9311_v29, %v3712_v47  ;;  %v3185_v26 = vpop.f32.mrf.mxu2 }
 0x36a   : > { %v9548_v60 = vmul.f32 %v7955_v43, %v2678_v35  ;;  %v3186_v41 = vadd.f32 %v3185_v26, %v9257_v37  ;;  %v7957_v35 = vpop.eup %7956 }
 0x36b   : > { %7958 = vtanh.f32 %v3713_v50  ;;  %v2693_v47 = vpop.f32.mrf.mxu1 }
 0x36c   : > { %12020 = vst [vmem:[#allocation35_spill] sm:$0xff] %v9548_v60  ;;  %7960 = vtanh.f32 %v3186_v41  ;;  %v7233_v41 = vld [vmem:[%s8984_s25 + $0x1a0] sm:$0xff] }
 0x36e   : > { %7424 = vmatmul.msk.bf16.gmra.mxu2 %vm1680_vm0, %v7720_v54  ;;  %7330 = vmatmul.msk.f32.gmra.mxu1 %vm2275_vm2, %v7233_v41 }
 0x370   : > { %v3714_v9 = vpop.f32.mrf.mxu3 }
 0x371   : > { %v7959_v52 = vpop.eup %7958  ;;  %v3715_v33 = vadd.f32 %v9311_v29, %v3714_v9  ;;  %v3188_v62 = vpop.f32.mrf.mxu2 }
 0x372   : > { %v7961_v43 = vpop.eup %7960  ;;  %v9560_v50 = vmul.f32 %v7959_v52, %v2681_v31  ;;  %v3189_v54 = vadd.f32 %v3188_v62, %v9270_v15  ;;  %v7721_v52 = vld [vmem:[%s9005_s23 + $0x118] sm:$0xff] }
 0x373   : > { %7962 = vtanh.f32 %v3715_v33  ;;  %v3419_v26 = vpack.c.bf16 %v7961_v43, %v7957_v35  ;;  %v2696_v60 = vpop.f32.mrf.mxu1  ;;  %v7234_v35 = vld [vmem:[%s8984_s25 + $0x1a8] sm:$0xff] }
 0x374   : > { %12021 = vst [vmem:[#allocation36_spill] sm:$0xff] %v9560_v50  ;;  %7964 = vtanh.f32 %v3189_v54 }
 0x375   : > { %7479 = vmatmul.msk.bf16.gmra.mxu3 %vm3478_vm3, %v3419_v26 }
 0x376   : > { %7331 = vmatmul.msk.f32.gmra.mxu1 %vm2275_vm2, %v7234_v35 }
 0x378   : > { %v3717_v19 = vpop.f32.mrf.mxu3 }
 0x379   : > { %v7963_v53 = vpop.eup %7962  ;;  %v3718_v25 = vadd.f32 %v9311_v29, %v3717_v19  ;;  %v3190_v9 = vpop.f32.mrf.mxu2 }
 0x37a   : > { %v9567_v37 = vmul.f32 %v7963_v53, %v2684_v59  ;;  %v3191_v31 = vadd.f32 %v3190_v9, %v9276_v32  ;;  %v7965_v33 = vpop.eup %7964 }
 0x37b   : > { %7966 = vtanh.f32 %v3718_v25  ;;  %v2699_v54 = vpop.f32.mrf.mxu1  ;;  %v7235_v25 = vld [vmem:[%s8984_s25 + $0x1b0] sm:$0xff] }
 0x37c   : > { %12022 = vst [vmem:[#allocation37_spill] sm:$0xff] %v9567_v37  ;;  %7968 = vtanh.f32 %v3191_v31 }
 0x37e   : > { %7425 = vmatmul.msk.bf16.gmra.mxu2 %vm1680_vm0, %v7721_v52  ;;  %7332 = vmatmul.msk.f32.gmra.mxu1 %vm2275_vm2, %v7235_v25 }
 0x380   : > { %v3719_v62 = vpop.f32.mrf.mxu3 }
 0x381   : > { %v7967_v43 = vpop.eup %7966  ;;  %v3720_v26 = vadd.f32 %v9311_v29, %v3719_v62  ;;  %v3193_v41 = vpop.f32.mrf.mxu2 }
 0x382   : > { %v7969_v59 = vpop.eup %7968  ;;  %v9575_v19 = vmul.f32 %v7967_v43, %v2687_v11  ;;  %v3194_v9 = vadd.f32 %v3193_v41, %v9287_v8  ;;  %v7722_v43 = vld [vmem:[%s9005_s23 + $0x120] sm:$0xff] }
 0x383   : > { %7970 = vtanh.f32 %v3720_v26  ;;  %v3420_v53 = vpack.c.bf16 %v7969_v59, %v7965_v33  ;;  %v2702_v37 = vpop.f32.mrf.mxu1  ;;  %v7236_v33 = vld [vmem:[%s8984_s25 + $0x1b8] sm:$0xff]  ;;  %v7743_v26 = vld [vmem:[%s11937_s10 + $0x8] sm:$0xff] }
 0x384   : > { %7972 = vtanh.f32 %v3194_v9  ;;  %v4227_v41 = vsel %vm4174_vm4, %v7743_v26, 0 }
 0x385   : > { %7480 = vmatmul.msk.bf16.gmra.mxu3 %vm3478_vm3, %v3420_v53  ;;  %4247 = vmatpush.bf16.xpose.msrb.mxu0 %v4227_v41 }
 0x386   : > { %7333 = vmatmul.msk.f32.gmra.mxu1 %vm2275_vm2, %v7236_v33 }
 0x388   : > { %v3722_v31 = vpop.f32.mrf.mxu3 }
 0x389   : > { %v7971_v52 = vpop.eup %7970  ;;  %v3723_v35 = vadd.f32 %v9311_v29, %v3722_v31  ;;  %v3195_v62 = vpop.f32.mrf.mxu2 }
 0x38a   : > { %v9582_v50 = vmul.f32 %v7971_v52, %v2690_v23  ;;  %v3196_v11 = vadd.f32 %v3195_v62, %v9293_v36  ;;  %v7973_v23 = vpop.eup %7972 }
 0x38b   : > { %7974 = vtanh.f32 %v3723_v35  ;;  %v9594_v31 = vpop.f32.mrf.mxu1 }
 0x38c   : > { %12023 = vst [vmem:[#allocation38_spill] sm:$0xff] %v9582_v50  ;;  %7976 = vtanh.f32 %v3196_v11  ;;  %v7237_v11 = vld [vmem:[%s8984_s25 + $0x1c0] sm:$0xff] }
 0x38e   : > { %7426 = vmatmul.msk.bf16.gmra.mxu2 %vm1680_vm0, %v7722_v43  ;;  %7334 = vmatmul.msk.f32.gmra.mxu1 %vm2275_vm2, %v7237_v11 }
 0x390   : > { %v3724_v59 = vpop.f32.mrf.mxu3 }
 0x391   : > { %v7975_v53 = vpop.eup %7974  ;;  %v3725_v25 = vadd.f32 %v9311_v29, %v3724_v59  ;;  %v3198_v9 = vpop.f32.mrf.mxu2 }
 0x392   : > { %v7977_v52 = vpop.eup %7976  ;;  %v9596_v35 = vmul.f32 %v7975_v53, %v2693_v47  ;;  %v3199_v43 = vadd.f32 %v3198_v9, %v9304_v2 }
 0x393   : > { %7978 = vtanh.f32 %v3725_v25  ;;  %v3421_v62 = vpack.c.bf16 %v7977_v52, %v7973_v23  ;;  %v9603_v50 = vpop.f32.mrf.mxu1  ;;  %v7723_v23 = vld [vmem:[%s9005_s23 + $0x128] sm:$0xff] }
 0x394   : > { %12024 = vst [vmem:[#allocation39_spill] sm:$0xff] %v9596_v35  ;;  %7980 = vtanh.f32 %v3199_v43  ;;  %v7238_v25 = vld [vmem:[%s8984_s25 + $0x1c8] sm:$0xff] }
 0x395   : > { %7481 = vmatmul.msk.bf16.gmra.mxu3 %vm3478_vm3, %v3421_v62 }
 0x396   : > { %7335 = vmatmul.msk.f32.gmra.mxu1 %vm2275_vm2, %v7238_v25 }
 0x398   : > { %v3727_v33 = vpop.f32.mrf.mxu3 }
 0x399   : > { %v7979_v26 = vpop.eup %7978  ;;  %v3728_v41 = vadd.f32 %v9311_v29, %v3727_v33  ;;  %v3200_v59 = vpop.f32.mrf.mxu2 }
 0x39a   : > { %v9605_v47 = vmul.f32 %v7979_v26, %v2696_v60  ;;  %v3201_v53 = vadd.f32 %v3200_v59, %v9316_v57  ;;  %v7981_v9 = vpop.eup %7980 }
 0x39b   : > { %7982 = vtanh.f32 %v3728_v41  ;;  %v9613_v43 = vpop.f32.mrf.mxu1  ;;  %v7239_v41 = vld [vmem:[%s8984_s25 + $0x1d0] sm:$0xff] }
 0x39c   : > { %12025 = vst [vmem:[#allocation40_spill] sm:$0xff] %v9605_v47  ;;  %7984 = vtanh.f32 %v3201_v53 }
 0x39e   : > { %7427 = vmatmul.msk.bf16.gmra.mxu2 %vm1680_vm0, %v7723_v23  ;;  %7336 = vmatmul.msk.f32.gmra.mxu1 %vm2275_vm2, %v7239_v41 }
 0x3a0   : > { %v3729_v52 = vpop.f32.mrf.mxu3 }
 0x3a1   : > { %v7983_v62 = vpop.eup %7982  ;;  %v3730_v11 = vadd.f32 %v9311_v29, %v3729_v52  ;;  %v3203_v33 = vpop.f32.mrf.mxu2 }
 0x3a2   : > { %v7985_v60 = vpop.eup %7984  ;;  %v4006_v26 = vmul.f32 %v7983_v62, %v2699_v54  ;;  %v3204_v23 = vadd.f32 %v3203_v33, %v9330_v20  ;;  %v7742_v33 = vld [vmem:[%s11937_s10] sm:$0xff] }
 0x3a3   : > { %7986 = vtanh.f32 %v3730_v11  ;;  %v3422_v59 = vpack.c.bf16 %v7985_v60, %v7981_v9  ;;  %v9623_v54 = vpop.f32.mrf.mxu1  ;;  %v7724_v11 = vld [vmem:[%s9005_s23 + $0x130] sm:$0xff] }
 0x3a4   : > { %v9617_v53 = vadd.f32 %v4006_v26, %v9325_v48  ;;  %7988 = vtanh.f32 %v3204_v23  ;;  %v7240_v48 = vld [vmem:[%s8984_s25 + $0x1d8] sm:$0xff] }
 0x3a5   : > { %7482 = vmatmul.msk.bf16.gmra.mxu3 %vm3478_vm3, %v3422_v59 }
 0x3a6   : > { %7337 = vmatmul.msk.f32.gmra.mxu1 %vm2275_vm2, %v7240_v48 }
 0x3a8   : > { %v3732_v25 = vpop.f32.mrf.mxu3 }
 0x3a9   : > { %v7987_v52 = vpop.eup %7986  ;;  %v3733_v47 = vadd.f32 %v9311_v29, %v3732_v25  ;;  %v3205_v35 = vpop.f32.mrf.mxu2 }
 0x3aa   : > { %v4007_v9 = vmul.f32 %v7987_v52, %v2702_v37  ;;  %v3206_v62 = vadd.f32 %v3205_v35, %v9337_v63  ;;  %v4224_v37 = vsel %vm4174_vm4, %v7742_v33, 0  ;;  %v7989_v29 = vpop.eup %7988 }
 0x3ab   : > { %7990 = vtanh.f32 %v3733_v47  ;;  %4248 = vmatpush.bf16.xpose.msrb.mxu0 %v4224_v37  ;;  %v9643_v41 = vpop.f32.mrf.mxu1 }
 0x3ac   : > { %v9629_v60 = vadd.f32 %v4007_v9, %v9340_v6  ;;  %7992 = vtanh.f32 %v3206_v62  ;;  %v9640_v6 = vld [vmem:[%s11935_s8] ss:$0 sm:$0xff] }
 0x3ad   : > { %v7241_v9 = vld [vmem:[%s8984_s25 + $0x1e0] sm:$0xff] }
 0x3ae   : > { %7428 = vmatmul.msk.bf16.gmra.mxu2 %vm1680_vm0, %v7724_v11  ;;  %7338 = vmatmul.msk.f32.gmra.mxu1 %vm2275_vm2, %v7241_v9 }
 0x3b0   : > { %v3734_v35 = vpop.f32.mrf.mxu3 }
 0x3b1   : > { %v7991_v47 = vpop.eup %7990  ;;  %v3735_v26 = vadd.f32 %v9640_v6, %v3734_v35  ;;  %v3208_v59 = vpop.f32.mrf.mxu2 }
 0x3b2   : > { %v7993_v23 = vpop.eup %7992  ;;  %v4008_v25 = vmul.f32 %v7991_v47, %v9594_v31  ;;  %v3209_v11 = vadd.f32 %v3208_v59, %v9353_v7  ;;  %v7725_v47 = vld [vmem:[%s9005_s23 + $0x138] sm:$0xff] }
 0x3b3   : > { %7994 = vtanh.f32 %v3735_v26  ;;  %v3423_v52 = vpack.c.bf16 %v7993_v23, %v7989_v29  ;;  %v9654_v35 = vpop.f32.mrf.mxu1  ;;  %v7242_v26 = vld [vmem:[%s8984_s25 + $0x1e8] sm:$0xff] }
 0x3b4   : > { %v9648_v62 = vadd.f32 %v4008_v25, %v9348_v39  ;;  %7996 = vtanh.f32 %v3209_v11  ;;  %v1552_v25 = vld [vmem:[%s9668_s24] sm:$0xff] }
 0x3b5   : > { %7483 = vmatmul.msk.bf16.gmra.mxu3 %vm3478_vm3, %v3423_v52  ;;  %v1553_v52 = vld [vmem:[%s9668_s24 + $0x8] sm:$0xff] }
 0x3b6   : > { %7339 = vmatmul.msk.f32.gmra.mxu1 %vm2275_vm2, %v7242_v26 }
 0x3b8   : > { %v3737_v48 = vpop.f32.mrf.mxu3 }
 0x3b9   : > { %v7995_v33 = vpop.eup %7994  ;;  %v3738_v37 = vadd.f32 %v9640_v6, %v3737_v48  ;;  %v3210_v31 = vpop.f32.mrf.mxu2 }
 0x3ba   : > { %v4009_v29 = vmul.f32 %v7995_v33, %v9603_v50  ;;  %v3211_v39 = vadd.f32 %v3210_v31, %v9360_v1  ;;  %v7997_v50 = vpop.eup %7996  ;;  %v1616_v33 = vpack.c.bf16 %v1553_v52, %v1552_v25 }
 0x3bb   : > { %7998 = vtanh.f32 %v3738_v37  ;;  %v9674_v48 = vpop.f32.mrf.mxu1 }
 0x3bc   : > { %v9661_v23 = vadd.f32 %v4009_v29, %v9363_v46  ;;  %8000 = vtanh.f32 %v3211_v39  ;;  %7526 = vmatmul.msk.bf16.vlgmr.msrb.gmra.mxu0 %vm4174_vm4, %v1616_v33  ;;  %v7243_v39 = vld [vmem:[%s8984_s25 + $0x1f0] sm:$0xff]  ;;  %v7244_v33 = vld [vmem:[%s8984_s25 + $0x1f8] sm:$0xff] }
 0x3be   : > { %7429 = vmatmul.msk.bf16.gmra.mxu2 %vm1680_vm0, %v7725_v47  ;;  %7340 = vmatmul.msk.f32.gmra.mxu1 %vm2275_vm2, %v7243_v39  ;;  %v1554_v39 = vld [vmem:[%s9668_s24 + $0x10] sm:$0xff] }
 0x3c0   : > { %v3739_v59 = vpop.f32.mrf.mxu3 }
 0x3c1   : > { %v7999_v9 = vpop.eup %7998  ;;  %v3740_v46 = vadd.f32 %v9640_v6, %v3739_v59  ;;  %v3213_v11 = vpop.f32.mrf.mxu2 }
 0x3c2   : > { %v8001_v37 = vpop.eup %8000  ;;  %v4010_v31 = vmul.f32 %v7999_v9, %v9613_v43  ;;  %v3214_v26 = vadd.f32 %v3213_v11, %v9376_v13  ;;  %v7753_v11 = vld [vmem:[%s11939_s12 + $0x28] sm:$0xff] }
 0x3c3   : > { %8002 = vtanh.f32 %v3740_v46  ;;  %v3424_v29 = vpack.c.bf16 %v8001_v37, %v7997_v50  ;;  %v9686_v9 = vpop.f32.mrf.mxu1  ;;  %v7726_v46 = vld [vmem:[%s9005_s23 + $0x140] sm:$0xff] }
 0x3c4   : > { %v9680_v47 = vadd.f32 %v4010_v31, %v9371_v16  ;;  %8004 = vtanh.f32 %v3214_v26  ;;  %v4452_v31 = vsel %vm3478_vm3, %v7753_v11, 0  ;;  %v1555_v26 = vld [vmem:[%s9668_s24 + $0x18] sm:$0xff] }
 0x3c5   : > { %7484 = vmatmul.msk.bf16.gmra.mxu3 %vm3478_vm3, %v3424_v29  ;;  %4456 = vmatpush.bf16.xpose.msra.mxu0 %v4452_v31 }
 0x3c6   : > { %7341 = vmatmul.msk.f32.gmra.mxu1 %vm2275_vm2, %v7244_v33  ;;  %v7245_v33 = vld [vmem:[%s8984_s25 + $0x200] sm:$0xff] }
 0x3c8   : > { %v3742_v59 = vpop.f32.mrf.mxu3 }
 0x3c9   : > { %v8003_v25 = vpop.eup %8002  ;;  %v3743_v43 = vadd.f32 %v9640_v6, %v3742_v59  ;;  %v3215_v52 = vpop.f32.mrf.mxu2 }
 0x3ca   : > { %v4011_v50 = vmul.f32 %v8003_v25, %v9623_v54  ;;  %v3216_v16 = vadd.f32 %v3215_v52, %v9383_v4  ;;  %v8005_v54 = vpop.eup %8004  ;;  %v1617_v52 = vpack.c.bf16 %v1555_v26, %v1554_v39 }
 0x3cb   : > { %8006 = vtanh.f32 %v3743_v43  ;;  %v9704_v43 = vpop.f32.mrf.mxu1 }
 0x3cc   : > { %v9693_v37 = vadd.f32 %v4011_v50, %v9386_v58  ;;  %8008 = vtanh.f32 %v3216_v16  ;;  %7527 = vmatmul.msk.bf16.gmra.mxu0 %vm4174_vm4, %v1617_v52  ;;  %v7246_v52 = vld [vmem:[%s8984_s25 + $0x208] sm:$0xff] }
 0x3ce   : > { %7430 = vmatmul.msk.bf16.gmra.mxu2 %vm1680_vm0, %v7726_v46  ;;  %7342 = vmatmul.msk.f32.gmra.mxu1 %vm2275_vm2, %v7245_v33 }
 0x3d0   : > { %v3744_v29 = vpop.f32.mrf.mxu3 }
 0x3d1   : > { %v8007_v59 = vpop.eup %8006  ;;  %v3745_v58 = vadd.f32 %v9640_v6, %v3744_v29  ;;  %v3218_v25 = vpop.f32.mrf.mxu2 }
 0x3d2   : > { %v8009_v50 = vpop.eup %8008  ;;  %v4012_v16 = vmul.f32 %v8007_v59, %v9643_v41  ;;  %v3219_v31 = vadd.f32 %v3218_v25, %v9084_v49 }
 0x3d3   : > { %8010 = vtanh.f32 %v3745_v58  ;;  %v3425_v46 = vpack.c.bf16 %v8009_v50, %v8005_v54  ;;  %v9716_v26 = vpop.f32.mrf.mxu1  ;;  %v7727_v58 = vld [vmem:[%s9005_s23 + $0x148] sm:$0xff] }
 0x3d4   : > { %v9710_v11 = vadd.f32 %v4012_v16, %v9394_v14  ;;  %8012 = vtanh.f32 %v3219_v31  ;;  %v1556_v16 = vld [vmem:[%s9668_s24 + $0x20] sm:$0xff] }
 0x3d5   : > { %7485 = vmatmul.msk.bf16.gmra.mxu3 %vm3478_vm3, %v3425_v46  ;;  %v1557_v46 = vld [vmem:[%s9668_s24 + $0x28] sm:$0xff] }
 0x3d6   : > { %7343 = vmatmul.msk.f32.gmra.mxu1 %vm2275_vm2, %v7246_v52 }
 0x3d8   : > { %v3747_v29 = vpop.f32.mrf.mxu3 }
 0x3d9   : > { %v8011_v39 = vpop.eup %8010  ;;  %v3748_v41 = vadd.f32 %v9640_v6, %v3747_v29  ;;  %v3220_v54 = vpop.f32.mrf.mxu2  ;;  %v1618_v29 = vpack.c.bf16 %v1557_v46, %v1556_v16  ;;  %v7728_v46 = vld [vmem:[%s9005_s23 + $0x150] sm:$0xff] }
 0x3da   : > { %v4013_v59 = vmul.f32 %v8011_v39, %v9654_v35  ;;  %v3221_v14 = vadd.f32 %v3220_v54, %v9089_v51  ;;  %v8013_v49 = vpop.eup %8012  ;;  %v7247_v54 = vld [vmem:[%s8984_s25 + $0x210] sm:$0xff] }
 0x3db   : > { %8014 = vtanh.f32 %v3748_v41  ;;  %v9730_v31 = vpop.f32.mrf.mxu1 }
 0x3dc   : > { %v9723_v50 = vadd.f32 %v4013_v59, %v9401_v42  ;;  %8016 = vtanh.f32 %v3221_v14  ;;  %7528 = vmatmul.msk.bf16.gmra.mxu0 %vm4174_vm4, %v1618_v29  ;;  %v1558_v29 = vld [vmem:[%s9668_s24 + $0x30] sm:$0xff] }
 0x3de   : > { %7431 = vmatmul.msk.bf16.gmra.mxu2 %vm1680_vm0, %v7727_v58  ;;  %7344 = vmatmul.msk.f32.gmra.mxu1 %vm2275_vm2, %v7247_v54 }
 0x3e0   : > { %v3749_v25 = vpop.f32.mrf.mxu3 }
 0x3e1   : > { %v8015_v33 = vpop.eup %8014  ;;  %v3750_v35 = vadd.f32 %v9640_v6, %v3749_v25  ;;  %v3223_v51 = vpop.f32.mrf.mxu2 }
 0x3e2   : > { %v8017_v39 = vpop.eup %8016  ;;  %v4014_v42 = vmul.f32 %v8015_v33, %v9674_v48  ;;  %v3224_v14 = vadd.f32 %v3223_v51, %v9107_v3  ;;  %v7248_v33 = vld [vmem:[%s8984_s25 + $0x218] sm:$0xff] }
 0x3e3   : > { %8018 = vtanh.f32 %v3750_v35  ;;  %v3426_v41 = vpack.c.bf16 %v8017_v39, %v8013_v49  ;;  %v9742_v25 = vpop.f32.mrf.mxu1  ;;  %v1559_v39 = vld [vmem:[%s9668_s24 + $0x38] sm:$0xff] }
 0x3e4   : > { %v9736_v59 = vadd.f32 %v4014_v42, %v9409_v12  ;;  %8020 = vtanh.f32 %v3224_v14  ;;  %v1619_v54 = vpack.c.bf16 %v1559_v39, %v1558_v29  ;;  %v7729_v39 = vld [vmem:[%s9005_s23 + $0x158] sm:$0xff] }
 0x3e5   : > { %7486 = vmatmul.msk.bf16.gmra.mxu3 %vm3478_vm3, %v3426_v41 }
 0x3e6   : > { %7345 = vmatmul.msk.f32.gmra.mxu1 %vm2275_vm2, %v7248_v33 }
 0x3e8   : > { %v3752_v58 = vpop.f32.mrf.mxu3 }
 0x3e9   : > { %v8019_v52 = vpop.eup %8018  ;;  %v3753_v48 = vadd.f32 %v9640_v6, %v3752_v58  ;;  %v3225_v49 = vpop.f32.mrf.mxu2 }
 0x3ea   : > { %v4015_v16 = vmul.f32 %v8019_v52, %v9686_v9  ;;  %v3226_v12 = vadd.f32 %v3225_v49, %v9112_v5  ;;  %v8021_v3 = vpop.eup %8020  ;;  %v7249_v52 = vld [vmem:[%s8984_s25 + $0x220] sm:$0xff] }
 0x3eb   : > { %8022 = vtanh.f32 %v3753_v48  ;;  %v9756_v41 = vpop.f32.mrf.mxu1  ;;  %v7752_v49 = vld [vmem:[%s11939_s12 + $0x20] sm:$0xff] }
 0x3ec   : > { %v9749_v35 = vadd.f32 %v4015_v16, %v9416_v22  ;;  %8024 = vtanh.f32 %v3226_v12  ;;  %7529 = vmatmul.msk.bf16.gmra.mxu0 %vm4174_vm4, %v1619_v54  ;;  %v4449_v16 = vsel %vm3478_vm3, %v7752_v49, 0 }
 0x3ed   : > { %4457 = vmatpush.bf16.xpose.msra.mxu0 %v4449_v16 }
 0x3ee   : > { %7432 = vmatmul.msk.bf16.gmra.mxu2 %vm1680_vm0, %v7728_v46  ;;  %7346 = vmatmul.msk.f32.gmra.mxu1 %vm2275_vm2, %v7249_v52 }
 0x3f0   : > { %v3754_v51 = vpop.f32.mrf.mxu3 }
 0x3f1   : > { %v8023_v42 = vpop.eup %8022  ;;  %v3755_v9 = vadd.f32 %v9640_v6, %v3754_v51  ;;  %v3228_v5 = vpop.f32.mrf.mxu2 }
 0x3f2   : > { %v8025_v14 = vpop.eup %8024  ;;  %v4016_v22 = vmul.f32 %v8023_v42, %v9704_v43  ;;  %v3229_v43 = vadd.f32 %v3228_v5, %v9134_v27  ;;  %v7250_v27 = vld [vmem:[%s8984_s25 + $0x228] sm:$0xff]  ;;  %v12027_v42 = vld [vmem:[#allocation28_spill] sm:$0xff] }
 0x3f3   : > { %8026 = vtanh.f32 %v3755_v9  ;;  %v3427_v58 = vpack.c.bf16 %v8025_v14, %v8021_v3  ;;  %v9772_v3 = vpop.f32.mrf.mxu1  ;;  %v1560_v14 = vld [vmem:[%s9668_s24 + $0x40] sm:$0xff] }
 0x3f4   : > { %v9762_v48 = vadd.f32 %v4016_v22, %v9424_v40  ;;  %8028 = vtanh.f32 %v3229_v43  ;;  %v1561_v22 = vld [vmem:[%s9668_s24 + $0x48] sm:$0xff] }
 0x3f5   : > { %7487 = vmatmul.msk.bf16.gmra.mxu3 %vm3478_vm3, %v3427_v58  ;;  %v1620_v49 = vpack.c.bf16 %v1561_v22, %v1560_v14  ;;  %v7252_v14 = vld [vmem:[%s8984_s25 + $0x238] sm:$0xff]  ;;  %v12029_v22 = vld [vmem:[#allocation29_spill] sm:$0xff] }
 0x3f6   : > { %7347 = vmatmul.msk.f32.gmra.mxu1 %vm2275_vm2, %v7250_v27 }
 0x3f8   : > { %v3757_v12 = vpop.f32.mrf.mxu3 }
 0x3f9   : > { %v8027_v46 = vpop.eup %8026  ;;  %v3758_v40 = vadd.f32 %v9640_v6, %v3757_v12  ;;  %v3230_v33 = vpop.f32.mrf.mxu2 }
 0x3fa   : > { %v4017_v51 = vmul.f32 %v8027_v46, %v9716_v26  ;;  %v3231_v29 = vadd.f32 %v3230_v33, %v9141_v30  ;;  %v8029_v5 = vpop.eup %8028  ;;  %v7251_v46 = vld [vmem:[%s8984_s25 + $0x230] sm:$0xff] }
 0x3fb   : > { %8030 = vtanh.f32 %v3758_v40  ;;  %v9786_v52 = vpop.f32.mrf.mxu1 }
 0x3fc   : > { %v9779_v9 = vadd.f32 %v4017_v51, %v12027_v42  ;;  %8032 = vtanh.f32 %v3231_v29  ;;  %7530 = vmatmul.msk.bf16.gmra.mxu0 %vm4174_vm4, %v1620_v49  ;;  %v1563_v49 = vld [vmem:[%s9668_s24 + $0x58] sm:$0xff] }
 0x3fe   : > { %7433 = vmatmul.msk.bf16.gmra.mxu2 %vm1680_vm0, %v7729_v39  ;;  %7348 = vmatmul.msk.f32.gmra.mxu1 %vm2275_vm2, %v7251_v46 }
 0x400   : > { %v3759_v54 = vpop.f32.mrf.mxu3 }
 0x401   : > { %v8031_v58 = vpop.eup %8030  ;;  %v3760_v26 = vadd.f32 %v9640_v6, %v3759_v54  ;;  %v3233_v30 = vpop.f32.mrf.mxu2  ;;  %v7730_v54 = vld [vmem:[%s9005_s23 + $0x160] sm:$0xff] }
 0x402   : > { %v8033_v43 = vpop.eup %8032  ;;  %v4018_v16 = vmul.f32 %v8031_v58, %v9730_v31  ;;  %v3234_v33 = vadd.f32 %v3233_v30, %v9154_v45  ;;  %v1562_v30 = vld [vmem:[%s9668_s24 + $0x50] sm:$0xff] }
 0x403   : > { %8034 = vtanh.f32 %v3760_v26  ;;  %v3428_v12 = vpack.c.bf16 %v8033_v43, %v8029_v5  ;;  %v9798_v27 = vpop.f32.mrf.mxu1  ;;  %v1621_v46 = vpack.c.bf16 %v1563_v49, %v1562_v30  ;;  %v7254_v30 = vld [vmem:[%s8984_s25 + $0x248] sm:$0xff]  ;;  %v12031_v49 = vld [vmem:[#allocation30_spill] sm:$0xff] }
 0x404   : > { %v9792_v40 = vadd.f32 %v4018_v16, %v9439_v38  ;;  %8036 = vtanh.f32 %v3234_v33  ;;  %v12028_v38 = vld [vmem:[#allocation15_spill] sm:$0xff] }
 0x405   : > { %7488 = vmatmul.msk.bf16.gmra.mxu3 %vm3478_vm3, %v3428_v12 }
 0x406   : > { %7349 = vmatmul.msk.f32.gmra.mxu1 %vm2275_vm2, %v7252_v14 }
 0x408   : > { %v3762_v51 = vpop.f32.mrf.mxu3 }
 0x409   : > { %v8035_v29 = vpop.eup %8034  ;;  %v3763_v31 = vadd.f32 %v9640_v6, %v3762_v51  ;;  %v3235_v39 = vpop.f32.mrf.mxu2 }
 0x40a   : > { %v4019_v42 = vmul.f32 %v8035_v29, %v9742_v25  ;;  %v3236_v5 = vadd.f32 %v3235_v39, %v12028_v38  ;;  %v8037_v45 = vpop.eup %8036 }
 0x40b   : > { %8038 = vtanh.f32 %v3763_v31  ;;  %v9812_v12 = vpop.f32.mrf.mxu1  ;;  %v7253_v31 = vld [vmem:[%s8984_s25 + $0x240] sm:$0xff] }
 0x40c   : > { %v9805_v58 = vadd.f32 %v4019_v42, %v12029_v22  ;;  %8040 = vtanh.f32 %v3236_v5  ;;  %7531 = vmatmul.msk.bf16.gmra.mxu0 %vm4174_vm4, %v1621_v46  ;;  %v1565_v46 = vld [vmem:[%s9668_s24 + $0x68] sm:$0xff] }
 0x40e   : > { %7434 = vmatmul.msk.bf16.gmra.mxu2 %vm1680_vm0, %v7730_v54  ;;  %7350 = vmatmul.msk.f32.gmra.mxu1 %vm2275_vm2, %v7253_v31 }
 0x410   : > { %v3764_v26 = vpop.f32.mrf.mxu3 }
 0x411   : > { %v8039_v43 = vpop.eup %8038  ;;  %v3765_v25 = vadd.f32 %v9640_v6, %v3764_v26  ;;  %v3238_v16 = vpop.f32.mrf.mxu2  ;;  %v7731_v26 = vld [vmem:[%s9005_s23 + $0x168] sm:$0xff] }
 0x412   : > { %v8041_v33 = vpop.eup %8040  ;;  %v4020_v51 = vmul.f32 %v8039_v43, %v9756_v41  ;;  %v3239_v42 = vadd.f32 %v3238_v16, %v9170_v61  ;;  %v1564_v16 = vld [vmem:[%s9668_s24 + $0x60] sm:$0xff] }
 0x413   : > { %8042 = vtanh.f32 %v3765_v25  ;;  %v3429_v29 = vpack.c.bf16 %v8041_v33, %v8037_v45  ;;  %v9824_v14 = vpop.f32.mrf.mxu1  ;;  %v1622_v31 = vpack.c.bf16 %v1565_v46, %v1564_v16  ;;  %v7732_v46 = vld [vmem:[%s9005_s23 + $0x170] sm:$0xff] }
 0x414   : > { %v9818_v39 = vadd.f32 %v4020_v51, %v9458_v18  ;;  %8044 = vtanh.f32 %v3239_v42  ;;  %v12030_v18 = vld [vmem:[#allocation16_spill] sm:$0xff] }
 0x415   : > { %7489 = vmatmul.msk.bf16.gmra.mxu3 %vm3478_vm3, %v3429_v29 }
 0x416   : > { %7351 = vmatmul.msk.f32.gmra.mxu1 %vm2275_vm2, %v7254_v30 }
 0x418   : > { %v3767_v38 = vpop.f32.mrf.mxu3 }
 0x419   : > { %v8043_v5 = vpop.eup %8042  ;;  %v3768_v41 = vadd.f32 %v9640_v6, %v3767_v38  ;;  %v3240_v54 = vpop.f32.mrf.mxu2 }
 0x41a   : > { %v4021_v22 = vmul.f32 %v8043_v5, %v9772_v3  ;;  %v3241_v45 = vadd.f32 %v3240_v54, %v12030_v18  ;;  %v8045_v61 = vpop.eup %8044 }
 0x41b   : > { %8046 = vtanh.f32 %v3768_v41  ;;  %v9838_v29 = vpop.f32.mrf.mxu1  ;;  %v7255_v41 = vld [vmem:[%s8984_s25 + $0x250] sm:$0xff] }
 0x41c   : > { %v9831_v43 = vadd.f32 %v4021_v22, %v12031_v49  ;;  %8048 = vtanh.f32 %v3241_v45  ;;  %7532 = vmatmul.msk.bf16.gmra.mxu0 %vm4174_vm4, %v1622_v31  ;;  %v7751_v22 = vld [vmem:[%s11939_s12 + $0x18] sm:$0xff] }
 0x41d   : > { %v4446_v18 = vsel %vm3478_vm3, %v7751_v22, 0 }
 0x41e   : > { %7435 = vmatmul.msk.bf16.gmra.mxu2 %vm1680_vm0, %v7731_v26  ;;  %7352 = vmatmul.msk.f32.gmra.mxu1 %vm2275_vm2, %v7255_v41 }
 0x41f   : > { %4458 = vmatpush.bf16.xpose.msra.mxu0 %v4446_v18 }
 0x420   : > { %v3769_v25 = vpop.f32.mrf.mxu3 }
 0x421   : > { %v8047_v33 = vpop.eup %8046  ;;  %v3770_v3 = vadd.f32 %v9640_v6, %v3769_v25  ;;  %v3243_v51 = vpop.f32.mrf.mxu2  ;;  %v12032_v25 = vld [vmem:[#allocation17_spill] sm:$0xff] }
 0x422   : > { %v8049_v42 = vpop.eup %8048  ;;  %v4022_v38 = vmul.f32 %v8047_v33, %v9786_v52  ;;  %v3244_v52 = vadd.f32 %v3243_v51, %v9185_v28  ;;  %v7256_v28 = vld [vmem:[%s8984_s25 + $0x258] sm:$0xff] }
 0x423   : > { %8050 = vtanh.f32 %v3770_v3  ;;  %v3430_v5 = vpack.c.bf16 %v8049_v42, %v8045_v61  ;;  %v9854_v49 = vpop.f32.mrf.mxu1  ;;  %v12033_v33 = vld [vmem:[#allocation31_spill] sm:$0xff]  ;;  %v1566_v42 = vld [vmem:[%s9668_s24 + $0x70] sm:$0xff] }
 0x424   : > { %v9844_v54 = vadd.f32 %v4022_v38, %v9473_v10  ;;  %8052 = vtanh.f32 %v3244_v52  ;;  %v1567_v38 = vld [vmem:[%s9668_s24 + $0x78] sm:$0xff] }
 0x425   : > { %7490 = vmatmul.msk.bf16.gmra.mxu3 %vm3478_vm3, %v3430_v5  ;;  %v1623_v52 = vpack.c.bf16 %v1567_v38, %v1566_v42  ;;  %v7258_v42 = vld [vmem:[%s8984_s25 + $0x268] sm:$0xff]  ;;  %v12035_v38 = vld [vmem:[#allocation32_spill] sm:$0xff] }
 0x426   : > { %7353 = vmatmul.msk.f32.gmra.mxu1 %vm2275_vm2, %v7256_v28 }
 0x428   : > { %v3772_v45 = vpop.f32.mrf.mxu3 }
 0x429   : > { %v8051_v26 = vpop.eup %8050  ;;  %v3773_v10 = vadd.f32 %v9640_v6, %v3772_v45  ;;  %v3245_v30 = vpop.f32.mrf.mxu2 }
 0x42a   : > { %v4023_v61 = vmul.f32 %v8051_v26, %v9798_v27  ;;  %v3246_v16 = vadd.f32 %v3245_v30, %v12032_v25  ;;  %v8053_v51 = vpop.eup %8052 }
 0x42b   : > { %8054 = vtanh.f32 %v3773_v10  ;;  %v9868_v22 = vpop.f32.mrf.mxu1  ;;  %v7257_v10 = vld [vmem:[%s8984_s25 + $0x260] sm:$0xff] }
 0x42c   : > { %v9861_v3 = vadd.f32 %v4023_v61, %v12033_v33  ;;  %8056 = vtanh.f32 %v3246_v16  ;;  %7533 = vmatmul.msk.bf16.gmra.mxu0 %vm4174_vm4, %v1623_v52  ;;  %v1568_v52 = vld [vmem:[%s9668_s24 + $0x80] sm:$0xff] }
 0x42e   : > { %7436 = vmatmul.msk.bf16.gmra.mxu2 %vm1680_vm0, %v7732_v46  ;;  %7354 = vmatmul.msk.f32.gmra.mxu1 %vm2275_vm2, %v7257_v10 }
 0x430   : > { %v3774_v31 = vpop.f32.mrf.mxu3 }
 0x431   : > { %v8055_v5 = vpop.eup %8054  ;;  %v3775_v27 = vadd.f32 %v9640_v6, %v3774_v31  ;;  %v3248_v41 = vpop.f32.mrf.mxu2  ;;  %v7733_v31 = vld [vmem:[%s9005_s23 + $0x178] sm:$0xff] }
 0x432   : > { %v8057_v18 = vpop.eup %8056  ;;  %v4024_v45 = vmul.f32 %v8055_v5, %v9812_v12  ;;  %v3249_v61 = vadd.f32 %v3248_v41, %v9200_v56 }
 0x433   : > { %8058 = vtanh.f32 %v3775_v27  ;;  %v3431_v26 = vpack.c.bf16 %v8057_v18, %v8053_v51  ;;  %v9880_v28 = vpop.f32.mrf.mxu1 }
 0x434   : > { %v9874_v30 = vadd.f32 %v4024_v45, %v9492_v44  ;;  %8060 = vtanh.f32 %v3249_v61  ;;  %v12034_v44 = vld [vmem:[#allocation18_spill] sm:$0xff] }
 0x435   : > { %7491 = vmatmul.msk.bf16.gmra.mxu3 %vm3478_vm3, %v3431_v26 }
 0x436   : > { %7355 = vmatmul.msk.f32.gmra.mxu1 %vm2275_vm2, %v7258_v42 }
 0x438   : > { %v3777_v25 = vpop.f32.mrf.mxu3 }
 0x439   : > { %v8059_v16 = vpop.eup %8058  ;;  %v3778_v12 = vadd.f32 %v9640_v6, %v3777_v25  ;;  %v3250_v46 = vpop.f32.mrf.mxu2 }
 0x43a   : > { %v4025_v33 = vmul.f32 %v8059_v16, %v9824_v14  ;;  %v3251_v51 = vadd.f32 %v3250_v46, %v12034_v44  ;;  %v8061_v56 = vpop.eup %8060  ;;  %v9891_v41 = vpop.f32.mrf.mxu0  ;;  %v1569_v14 = vld [vmem:[%s9668_s24 + $0x88] sm:$0xff]  ;;  %v7259_v46 = vld [vmem:[%s8984_s25 + $0x270] sm:$0xff] }
 0x43b   : > { %8062 = vtanh.f32 %v3778_v12  ;;  %12036 = vst [vmem:[#allocation28_spill] sm:$0xff] %v9891_v41  ;;  %v9896_v10 = vpop.f32.mrf.mxu1  ;;  %v1624_v61 = vpack.c.bf16 %v1569_v14, %v1568_v52  ;;  %v7260_v14 = vld [vmem:[%s8984_s25 + $0x278] sm:$0xff] }
 0x43c   : > { %v9887_v5 = vadd.f32 %v4025_v33, %v12035_v38  ;;  %8064 = vtanh.f32 %v3251_v51 }
 0x43d   : > { %7534 = vmatmul.msk.bf16.gmra.mxu0 %vm4174_vm4, %v1624_v61  ;;  %v12041_v61 = vld [vmem:[#allocation9_spill] sm:$0xff] }
 0x43e   : > { %7437 = vmatmul.msk.bf16.gmra.mxu2 %vm1680_vm0, %v7733_v31  ;;  %7356 = vmatmul.msk.f32.gmra.mxu1 %vm2275_vm2, %v7259_v46 }
 0x440   : > { %v3779_v27 = vpop.f32.mrf.mxu3 }
 0x441   : > { %v8063_v18 = vpop.eup %8062  ;;  %v3780_v45 = vadd.f32 %v9640_v6, %v3779_v27  ;;  %v3253_v26 = vpop.f32.mrf.mxu2  ;;  %v12038_v27 = vld [vmem:[#allocation19_spill] sm:$0xff] }
 0x442   : > { %v8065_v25 = vpop.eup %8064  ;;  %v4026_v16 = vmul.f32 %v8063_v18, %v9838_v29  ;;  %v3254_v44 = vadd.f32 %v3253_v26, %v9215_v17  ;;  %v9907_v31 = vpop.f32.mrf.mxu0  ;;  %v12039_v18 = vld [vmem:[#allocation33_spill] sm:$0xff]  ;;  %v12040_v26 = vld [vmem:[#allocation10_spill] sm:$0xff] }
 0x443   : > { %8066 = vtanh.f32 %v3780_v45  ;;  %v3432_v12 = vpack.c.bf16 %v8065_v25, %v8061_v56  ;;  %12037 = vst [vmem:[#allocation15_spill] sm:$0xff] %v9907_v31  ;;  %v9910_v56 = vpop.f32.mrf.mxu1  ;;  %v7750_v45 = vld [vmem:[%s11939_s12 + $0x10] sm:$0xff]  ;;  %v12042_v25 = vpack.c.bf16 %v12040_v26, %v12041_v61 }
 0x444   : > { %v9902_v33 = vadd.f32 %v4026_v16, %v9507_v21  ;;  %8068 = vtanh.f32 %v3254_v44  ;;  %v1570_v44 = vld [vmem:[%s9668_s24 + $0x90] sm:$0xff] }
 0x445   : > { %7492 = vmatmul.msk.bf16.gmra.mxu3 %vm3478_vm3, %v3432_v12 }
 0x446   : > { %7357 = vmatmul.msk.f32.gmra.mxu1 %vm2275_vm2, %v7260_v14 }
 0x448   : > { %v3782_v51 = vpop.f32.mrf.mxu3 }
 0x449   : > { %v8067_v42 = vpop.eup %8066  ;;  %v3783_v29 = vadd.f32 %v9640_v6, %v3782_v51  ;;  %v3255_v38 = vpop.f32.mrf.mxu2  ;;  %v1571_v51 = vld [vmem:[%s9668_s24 + $0x98] sm:$0xff] }
 0x44a   : > { %v4027_v21 = vmul.f32 %v8067_v42, %v9854_v49  ;;  %v3256_v52 = vadd.f32 %v3255_v38, %v12038_v27  ;;  %v4443_v49 = vsel %vm3478_vm3, %v7750_v45, 0  ;;  %v8069_v16 = vpop.eup %8068  ;;  %v9927_v46 = vpop.f32.mrf.mxu0  ;;  %v1625_v27 = vpack.c.bf16 %v1571_v51, %v1570_v44  ;;  %v7261_v45 = vld [vmem:[%s8984_s25 + $0x280] sm:$0xff]  ;;  %v12045_v51 = vld [vmem:[#allocation21_spill] sm:$0xff] }
 0x44b   : > { %8070 = vtanh.f32 %v3783_v29  ;;  %4459 = vmatpush.bf16.xpose.msra.mxu0 %v4443_v49  ;;  %12043 = vst [vmem:[#allocation29_spill] sm:$0xff] %v9927_v46 }
 0x44c   : > { %v9916_v17 = vadd.f32 %v4027_v21, %v12039_v18  ;;  %8072 = vtanh.f32 %v3256_v52  ;;  %v9932_v21 = vpop.f32.mrf.mxu1 }
 0x44d   : > { %7535 = vmatmul.msk.bf16.gmra.mxu0 %vm4174_vm4, %v1625_v27  ;;  %v12046_v27 = vld [vmem:[#allocation34_spill] sm:$0xff] }
 0x44e   : > { %7454 = vmatmul.msk.bf16.vlgmr.msrb.gmra.mxu2 %vm3478_vm3, %v12042_v25  ;;  %7358 = vmatmul.msk.f32.gmra.mxu1 %vm2275_vm2, %v7261_v45 }
 0x450   : > { %v3784_v12 = vpop.f32.mrf.mxu3 }
 0x451   : > { %v8071_v42 = vpop.eup %8070  ;;  %v3785_v29 = vadd.f32 %v9640_v6, %v3784_v12  ;;  %v3258_v38 = vpop.f32.mrf.mxu2 }
 0x452   : > { %v8073_v52 = vpop.eup %8072  ;;  %v4028_v14 = vmul.f32 %v8071_v42, %v9868_v22  ;;  %v3259_v61 = vadd.f32 %v3258_v38, %v9232_v55  ;;  %v9943_v49 = vpop.f32.mrf.mxu0  ;;  %v12047_v38 = vld [vmem:[#allocation12_spill] sm:$0xff] }
 0x453   : > { %8074 = vtanh.f32 %v3785_v29  ;;  %v3433_v18 = vpack.c.bf16 %v8073_v52, %v8069_v16  ;;  %12044 = vst [vmem:[#allocation16_spill] sm:$0xff] %v9943_v49  ;;  %v7262_v29 = vld [vmem:[%s8984_s25 + $0x288] sm:$0xff]  ;;  %v12048_v52 = vld [vmem:[#allocation11_spill] sm:$0xff] }
 0x454   : > { %v9938_v26 = vadd.f32 %v4028_v14, %v9526_v0  ;;  %v9946_v44 = vpop.f32.mrf.mxu1  ;;  %8076 = vtanh.f32 %v3259_v61  ;;  %v12049_v14 = vpack.c.bf16 %v12047_v38, %v12048_v52  ;;  %v7263_v38 = vld [vmem:[%s8984_s25 + $0x290] sm:$0xff] }
 0x455   : > { %7493 = vmatmul.msk.bf16.gmra.mxu3 %vm3478_vm3, %v3433_v18 }
 0x456   : > { %7359 = vmatmul.msk.f32.gmra.mxu1 %vm2275_vm2, %v7262_v29 }
 0x458   : > { %v3787_v25 = vpop.f32.mrf.mxu3 }
 0x459   : > { %v8075_v12 = vpop.eup %8074  ;;  %v3788_v22 = vadd.f32 %v9640_v6, %v3787_v25  ;;  %v3260_v16 = vpop.f32.mrf.mxu2  ;;  %v1573_v25 = vld [vmem:[%s9668_s24 + $0xa8] sm:$0xff] }
 0x45a   : > { %v4029_v0 = vmul.f32 %v8075_v12, %v9880_v28  ;;  %v3261_v42 = vadd.f32 %v3260_v16, %v12045_v51  ;;  %v8077_v18 = vpop.eup %8076  ;;  %v9959_v61 = vpop.f32.mrf.mxu0  ;;  %v1572_v28 = vld [vmem:[%s9668_s24 + $0xa0] sm:$0xff] }
 0x45b   : > { %8078 = vtanh.f32 %v3788_v22  ;;  %12050 = vst [vmem:[#allocation30_spill] sm:$0xff] %v9959_v61  ;;  %v1626_v51 = vpack.c.bf16 %v1573_v25, %v1572_v28 }
 0x45c   : > { %v9952_v55 = vadd.f32 %v4029_v0, %v12046_v27  ;;  %8080 = vtanh.f32 %v3261_v42  ;;  %v9964_v0 = vpop.f32.mrf.mxu1 }
 0x45d   : > { %7536 = vmatmul.msk.bf16.gmra.mxu0 %vm4174_vm4, %v1626_v51  ;;  %v7264_v51 = vld [vmem:[%s8984_s25 + $0x298] sm:$0xff] }
 0x45e   : > { %7455 = vmatmul.msk.bf16.gmra.mxu2 %vm3478_vm3, %v12049_v14  ;;  %7360 = vmatmul.msk.f32.gmra.mxu1 %vm2275_vm2, %v7263_v38 }
 0x460   : > { %v3789_v45 = vpop.f32.mrf.mxu3 }
 0x461   : > { %v8079_v12 = vpop.eup %8078  ;;  %v3790_v22 = vadd.f32 %v9640_v6, %v3789_v45  ;;  %v3263_v16 = vpop.f32.mrf.mxu2 }
 0x462   : > { %v8081_v42 = vpop.eup %8080  ;;  %v4030_v29 = vmul.f32 %v8079_v12, %v9896_v10  ;;  %v3264_v14 = vadd.f32 %v3263_v16, %v9251_v34  ;;  %v9977_v10 = vpop.f32.mrf.mxu0  ;;  %v12054_v34 = vld [vmem:[#allocation14_spill] sm:$0xff]  ;;  %v12055_v16 = vld [vmem:[#allocation13_spill] sm:$0xff] }
 0x463   : > { %8082 = vtanh.f32 %v3790_v22  ;;  %v3434_v27 = vpack.c.bf16 %v8081_v42, %v8077_v18  ;;  %12051 = vst [vmem:[#allocation17_spill] sm:$0xff] %v9977_v10  ;;  %v12053_v42 = vld [vmem:[#allocation35_spill] sm:$0xff] }
 0x464   : > { %v9970_v52 = vadd.f32 %v4030_v29, %v9541_v24  ;;  %v9979_v25 = vpop.f32.mrf.mxu1  ;;  %v12052_v24 = vld [vmem:[#allocation24_spill] sm:$0xff]  ;;  %8084 = vtanh.f32 %v3264_v14 }
 0x465   : > { %7494 = vmatmul.msk.bf16.gmra.mxu3 %vm3478_vm3, %v3434_v27  ;;  %v12056_v27 = vpack.c.bf16 %v12054_v34, %v12055_v16  ;;  %v7749_v34 = vld [vmem:[%s11939_s12 + $0x8] sm:$0xff] }
 0x466   : > { %7361 = vmatmul.msk.f32.gmra.mxu1 %vm2275_vm2, %v7264_v51  ;;  %v7265_v51 = vld [vmem:[%s8984_s25 + $0x2a0] sm:$0xff] }
 0x468   : > { %v9975_v45 = vpop.f32.mrf.mxu3 }
 0x469   : > { %v8083_v28 = vpop.eup %8082  ;;  %v3265_v18 = vpop.f32.mrf.mxu2 }
 0x46a   : > { %v4031_v12 = vmul.f32 %v8083_v28, %v9910_v56  ;;  %v3266_v22 = vadd.f32 %v3265_v18, %v12052_v24  ;;  %v9994_v61 = vpop.f32.mrf.mxu0  ;;  %v1574_v56 = vld [vmem:[%s9668_s24 + $0xb0] sm:$0xff]  ;;  %v1575_v28 = vld [vmem:[%s9668_s24 + $0xb8] sm:$0xff]  ;;  %v8085_v14 = vpop.eup %8084 }
 0x46b   : > { %12057 = vst [vmem:[#allocation31_spill] sm:$0xff] %v9994_v61 }
 0x46c   : > { %v9985_v29 = vadd.f32 %v4031_v12, %v12053_v42  ;;  %8086 = vtanh.f32 %v3266_v22  ;;  %v9998_v24 = vpop.f32.mrf.mxu1  ;;  %v1627_v12 = vpack.c.bf16 %v1575_v28, %v1574_v56 }
 0x46e   : > { %7456 = vmatmul.msk.bf16.gmra.mxu2 %vm3478_vm3, %v12056_v27  ;;  %7537 = vmatmul.msk.bf16.gmra.mxu0 %vm4174_vm4, %v1627_v12  ;;  %v4440_v27 = vsel %vm3478_vm3, %v7749_v34, 0  ;;  %v1577_v34 = vld [vmem:[%s9668_s24 + $0xc8] sm:$0xff] }
 0x46f   : > { %7362 = vmatmul.msk.f32.gmra.mxu1 %vm2275_vm2, %v7265_v51  ;;  %4460 = vmatpush.bf16.xpose.msra.mxu0 %v4440_v27 }
 0x470   : > { %v9992_v38 = vpop.f32.mrf.mxu3 }
 0x471   : > { %v3268_v18 = vpop.f32.mrf.mxu2 }
 0x472   : > { %v8087_v42 = vpop.eup %8086  ;;  %v3269_v16 = vadd.f32 %v3268_v18, %v9270_v15  ;;  %v10011_v28 = vpop.f32.mrf.mxu0  ;;  %v1576_v18 = vld [vmem:[%s9668_s24 + $0xc0] sm:$0xff] }
 0x473   : > { %v3435_v22 = vpack.c.bf16 %v8087_v42, %v8085_v14  ;;  %12058 = vst [vmem:[#allocation18_spill] sm:$0xff] %v10011_v28  ;;  %v1628_v61 = vpack.c.bf16 %v1577_v34, %v1576_v18 }
 0x474   : > { %v10013_v12 = vpop.f32.mrf.mxu1  ;;  %8088 = vtanh.f32 %v3269_v16  ;;  %v7267_v16 = vld [vmem:[%s8984_s25 + $0x2b0] sm:$0xff] }
 0x475   : > { %7495 = vmatmul.msk.bf16.gmra.mxu3 %vm3478_vm3, %v3435_v22  ;;  %v7266_v22 = vld [vmem:[%s8984_s25 + $0x2a8] sm:$0xff] }
 0x477   : > { %7363 = vmatmul.msk.f32.gmra.mxu1 %vm2275_vm2, %v7266_v22 }
 0x478   : > { %v10009_v56 = vpop.f32.mrf.mxu3 }
 0x479   : > { %v3270_v14 = vpop.f32.mrf.mxu2 }
 0x47a   : > { %v3271_v42 = vadd.f32 %v3270_v14, %v9276_v32  ;;  %v10020_v15 = vpop.f32.mrf.mxu0  ;;  %v8089_v27 = vpop.eup %8088 }
 0x47b   : > { %12059 = vst [vmem:[#allocation32_spill] sm:$0xff] %v10020_v15 }
 0x47c   : > { %8090 = vtanh.f32 %v3271_v42  ;;  %v10024_v28 = vpop.f32.mrf.mxu1 }
 0x47e   : > { %7538 = vmatmul.msk.bf16.gmra.mxu0 %vm4174_vm4, %v1628_v61  ;;  %v7268_v61 = vld [vmem:[%s8984_s25 + $0x2b8] sm:$0xff] }
 0x47f   : > { %7364 = vmatmul.msk.f32.gmra.mxu1 %vm2275_vm2, %v7267_v16 }
 0x480   : > { %v10018_v51 = vpop.f32.mrf.mxu3 }
 0x481   : > { %v3273_v49 = vpop.f32.mrf.mxu2 }
 0x482   : > { %v8091_v46 = vpop.eup %8090  ;;  %v3274_v14 = vadd.f32 %v3273_v49, %v9287_v8  ;;  %v10033_v22 = vpop.f32.mrf.mxu0  ;;  %v1578_v8 = vld [vmem:[%s9668_s24 + $0xd0] sm:$0xff]  ;;  %v1579_v49 = vld [vmem:[%s9668_s24 + $0xd8] sm:$0xff] }
 0x483   : > { %v3436_v32 = vpack.c.bf16 %v8091_v46, %v8089_v27  ;;  %12060 = vst [vmem:[#allocation19_spill] sm:$0xff] %v10033_v22 }
 0x484   : > { %v10035_v10 = vpop.f32.mrf.mxu1  ;;  %8092 = vtanh.f32 %v3274_v14 }
 0x485   : > { %7496 = vmatmul.msk.bf16.gmra.mxu3 %vm3478_vm3, %v3436_v32 }
 0x487   : > { %7365 = vmatmul.msk.f32.gmra.mxu1 %vm2275_vm2, %v7268_v61  ;;  %v8381_v61 = vld [vmem:[%s8952_s0] sm:$0xff] }
 0x488   : > { %v10031_v42 = vpop.f32.mrf.mxu3  ;;  %5759 = vrot.lane.b32.xlu1 %v8381_v61, %s8471_s27  ;;  %v7270_v61 = vld [vmem:[%s8984_s25 + $0x2c8] sm:$0xff] }
 0x489   : > { %v3275_v15 = vpop.f32.mrf.mxu2 }
 0x48a   : > { %v3276_v46 = vadd.f32 %v3275_v15, %v9293_v36  ;;  %v10042_v34 = vpop.f32.mrf.mxu0  ;;  %v8093_v27 = vpop.eup %8092  ;;  %v1629_v36 = vpack.c.bf16 %v1579_v49, %v1578_v8  ;;  %v8383_v8 = vld [vmem:[%s8952_s0 + $0x8] sm:$0xff] }
 0x48b   : > { %12061 = vst [vmem:[#allocation33_spill] sm:$0xff] %v10042_v34  ;;  %v8382_v34 = vld [vmem:[%s8952_s0 + $0x10] sm:$0xff]  ;;  %5761 = vrot.lane.b32.xlu2 %v8383_v8, %s8471_s27  ;;  %v8384_v8 = vld [vmem:[%s8952_s0 + $0x18] sm:$0xff] }
 0x48c   : > { %8094 = vtanh.f32 %v3276_v46  ;;  %v10046_v16 = vpop.f32.mrf.mxu1  ;;  %v7269_v46 = vld [vmem:[%s8984_s25 + $0x2c0] sm:$0xff]  ;;  %5763 = vrot.lane.b32.xlu0 %v8382_v34, %s8471_s27 }
 0x48e   : > { %7539 = vmatmul.msk.bf16.gmra.mxu0 %vm4174_vm4, %v1629_v36 }
 0x48f   : > { %7366 = vmatmul.msk.f32.gmra.mxu1 %vm2275_vm2, %v7269_v46 }
 0x490   : > { %v10040_v18 = vpop.f32.mrf.mxu3  ;;  %5765 = vrot.lane.b32.xlu1 %v8384_v8, %s8471_s27 }
 0x491   : > { %v3278_v32 = vpop.f32.mrf.mxu2 }
 0x492   : > { %v8095_v15 = vpop.eup %8094  ;;  %v3279_v49 = vadd.f32 %v3278_v32, %v9304_v2  ;;  %v10059_v36 = vpop.f32.mrf.mxu0  ;;  %v8385_v2 = vld [vmem:[%s8952_s0 + $0x28] sm:$0xff]  ;;  %v8386_v32 = vld [vmem:[%s8952_s0 + $0x20] sm:$0xff] }
 0x493   : > { %v3437_v14 = vpack.c.bf16 %v8095_v15, %v8093_v27  ;;  %12062 = vst [vmem:[#allocation10_spill] sm:$0xff] %v10059_v36  ;;  %5767 = vrot.lane.b32.xlu2 %v8386_v32, %s8471_s27  ;;  %v7748_v32 = vld [vmem:[%s11939_s12] sm:$0xff] }
 0x494   : > { %v10061_v46 = vpop.f32.mrf.mxu1  ;;  %8096 = vtanh.f32 %v3279_v49  ;;  %5769 = vrot.lane.b32.xlu0 %v8385_v2, %s8471_s27  ;;  %v1581_v49 = vld [vmem:[%s9668_s24 + $0xe8] sm:$0xff] }
 0x495   : > { %7497 = vmatmul.msk.bf16.gmra.mxu3 %vm3478_vm3, %v3437_v14 }
 0x497   : > { %7367 = vmatmul.msk.f32.gmra.mxu1 %vm2275_vm2, %v7270_v61 }
 0x498   : > { %v3807_v27 = vpop.f32.mrf.mxu3 }
 0x499   : > { %v3280_v15 = vpop.f32.mrf.mxu2  ;;  %v3808_v34 = vadd.f32 %v9640_v6, %v3807_v27 }
 0x49a   : > { %v3281_v14 = vadd.f32 %v3280_v15, %v9316_v57  ;;  %v1580_v57 = vld [vmem:[%s9668_s24 + $0xe0] sm:$0xff]  ;;  %v8097_v27 = vpop.eup %8096  ;;  %v10078_v31 = vpop.f32.mrf.mxu0 }
 0x49b   : > { %v1630_v8 = vpack.c.bf16 %v1581_v49, %v1580_v57  ;;  %12063 = vst [vmem:[#allocation9_spill] sm:$0xff] %v10078_v31  ;;  %v4437_v57 = vsel %vm3478_vm3, %v7748_v32, 0  ;;  %v8388_v49 = vld [vmem:[%s8952_s0 + $0x30] sm:$0xff]  ;;  %v10099_v32 = vld [vmem:[%s11935_s8] ss:$0 sm:$0xff] }
 0x49c   : > { %8098 = vtanh.f32 %v3281_v14  ;;  %v10076_v61 = vpop.f32.mrf.mxu1  ;;  %5771 = vrot.lane.b32.xlu2 %v8388_v49, %s8471_s27  ;;  %4461 = vmatpush.bf16.xpose.msra.mxu0 %v4437_v57  ;;  %v8391_v57 = vld [vmem:[%s8952_s0 + $0x40] sm:$0xff] }
 0x49d   : > { %8100 = vtanh.f32 %v3808_v34  ;;  %v7271_v34 = vld [vmem:[%s8984_s25 + $0x2d0] sm:$0xff] }
 0x49e   : > { %7540 = vmatmul.msk.bf16.gmra.mxu0 %vm4174_vm4, %v1630_v8 }
 0x49f   : > { %7368 = vmatmul.msk.f32.gmra.mxu1 %vm2275_vm2, %v7271_v34 }
 0x4a0   : > { %v3809_v36 = vpop.f32.mrf.mxu3 }
 0x4a1   : > { %v3810_v15 = vadd.f32 %v9640_v6, %v3809_v36  ;;  %v3283_v14 = vpop.f32.mrf.mxu2  ;;  %v8387_v36 = vld [vmem:[%s8952_s0 + $0x38] sm:$0xff] }
 0x4a2   : > { %v8099_v22 = vpop.eup %8098  ;;  %5773 = vrot.lane.b32.xlu0 %v8387_v36, %s8471_s27 }
 0x4a3   : > { %8102 = vtanh.f32 %v3810_v15  ;;  %v3438_v2 = vpack.c.bf16 %v8099_v22, %v8097_v27  ;;  %v8101_v6 = vpop.eup %8100  ;;  %v3284_v22 = vadd.f32 %v3283_v14, %v9330_v20 }
 0x4a4   : > { %v4038_v27 = vmul.f32 %v8101_v6, %v10024_v28  ;;  %v2810_v14 = vpop.f32.mrf.mxu1  ;;  %5775 = vrot.lane.b32.xlu2 %v8391_v57, %s8471_s27 }
 0x4a5   : > { %7498 = vmatmul.msk.bf16.gmra.mxu3 %vm3478_vm3, %v3438_v2  ;;  %8104 = vtanh.f32 %v3284_v22  ;;  %v1582_v22 = vld [vmem:[%s9668_s24 + $0xf0] sm:$0xff] }
 0x4a6   : > { %v10103_v28 = vadd.f32 %v9617_v53, %v4038_v27  ;;  %v1583_v53 = vld [vmem:[%s9668_s24 + $0xf8] sm:$0xff] }
 0x4a8   : > { %v3812_v15 = vpop.f32.mrf.mxu3 }
 0x4a9   : > { %v8103_v8 = vpop.eup %8102  ;;  %v3285_v34 = vpop.f32.mrf.mxu2  ;;  %v3813_v20 = vadd.f32 %v10099_v32, %v3812_v15 }
 0x4aa   : > { %v4039_v2 = vmul.f32 %v8103_v8, %v10035_v10  ;;  %v3286_v31 = vadd.f32 %v3285_v34, %v9337_v63  ;;  %v10108_v10 = vpop.f32.mrf.mxu0  ;;  %v8390_v63 = vld [vmem:[%s8952_s0 + $0x48] sm:$0xff] }
 0x4ab   : > { %12064 = vst [vmem:[#allocation21_spill] sm:$0xff] %v10108_v10  ;;  %5777 = vrot.lane.b32.xlu0 %v8390_v63, %s8471_s27  ;;  %v8105_v27 = vpop.eup %8104 }
 0x4ac   : > { %v10106_v6 = vadd.f32 %v9629_v60, %v4039_v2  ;;  %8106 = vtanh.f32 %v3286_v31  ;;  %v1631_v31 = vpack.c.bf16 %v1583_v53, %v1582_v22  ;;  %v2813_v63 = vpop.f32.mrf.mxu1 }
 0x4ad   : > { %8108 = vtanh.f32 %v3813_v20 }
 0x4ae   : > { %7541 = vmatmul.msk.bf16.gmra.mxu0 %vm4174_vm4, %v1631_v31 }
 0x4b0   : > { %v3814_v49 = vpop.f32.mrf.mxu3 }
 0x4b1   : > { %v3815_v60 = vadd.f32 %v10099_v32, %v3814_v49  ;;  %v3288_v15 = vpop.f32.mrf.mxu2 }
 0x4b2   : > { %v8107_v8 = vpop.eup %8106  ;;  %v10121_v36 = vpop.f32.mrf.mxu0  ;;  %v3289_v20 = vadd.f32 %v3288_v15, %v9353_v7 }
 0x4b3   : > { %8110 = vtanh.f32 %v3815_v60  ;;  %v3439_v34 = vpack.c.bf16 %v8107_v8, %v8105_v27  ;;  %v8109_v2 = vpop.eup %8108 }
 0x4b4   : > { %v4040_v57 = vmul.f32 %v8109_v2, %v10046_v16  ;;  %8112 = vtanh.f32 %v3289_v20  ;;  %v2816_v16 = vpop.f32.mrf.mxu1 }
 0x4b5   : > { %7499 = vmatmul.msk.bf16.gmra.mxu3 %vm3478_vm3, %v3439_v34 }
 0x4b6   : > { %v10129_v60 = vadd.f32 %v9648_v62, %v4040_v57 }
 0x4b8   : > { %v3817_v10 = vpop.f32.mrf.mxu3 }
 0x4b9   : > { %v8111_v41 = vpop.eup %8110  ;;  %v3290_v49 = vpop.f32.mrf.mxu2  ;;  %v3818_v27 = vadd.f32 %v10099_v32, %v3817_v10 }
 0x4ba   : > { %v4041_v22 = vmul.f32 %v8111_v41, %v10061_v46  ;;  %v3291_v53 = vadd.f32 %v3290_v49, %v9360_v1  ;;  %v10136_v8 = vpop.f32.mrf.mxu0  ;;  %v8113_v41 = vpop.eup %8112 }
 0x4bc   : > { %v10132_v31 = vadd.f32 %v9661_v23, %v4041_v22  ;;  %8114 = vtanh.f32 %v3291_v53  ;;  %v10142_v22 = vpop.f32.mrf.mxu1 }
 0x4bd   : > { %8116 = vtanh.f32 %v3818_v27 }
 0x4be   : > { %v4334_v7 = vpack.c.bf16 %v10132_v31, %v10129_v60 }
 0x4c0   : > { %v3819_v15 = vpop.f32.mrf.mxu3 }
 0x4c1   : > { %v3820_v1 = vadd.f32 %v10099_v32, %v3819_v15  ;;  %v3293_v46 = vpop.f32.mrf.mxu2 }
 0x4c2   : > { %v8115_v10 = vpop.eup %8114  ;;  %v3294_v23 = vadd.f32 %v3293_v46, %v9376_v13  ;;  %v10145_v15 = vpop.f32.mrf.mxu0 }
 0x4c3   : > { %8118 = vtanh.f32 %v3820_v1  ;;  %v3440_v62 = vpack.c.bf16 %v8115_v10, %v8113_v41  ;;  %v8117_v34 = vpop.eup %8116 }
 0x4c4   : > { %v4042_v2 = vmul.f32 %v8117_v34, %v10076_v61  ;;  %8120 = vtanh.f32 %v3294_v23  ;;  %v3793_v61 = vadd.f32 %v10099_v32, %v9975_v45  ;;  %v2822_v23 = vpop.f32.mrf.mxu1 }
 0x4c5   : > { %7500 = vmatmul.msk.bf16.gmra.mxu3 %vm3478_vm3, %v3440_v62 }
 0x4c6   : > { %v10149_v1 = vadd.f32 %v9680_v47, %v4042_v2 }
 0x4c8   : > { %v3822_v20 = vpop.f32.mrf.mxu3 }
 0x4c9   : > { %v8119_v57 = vpop.eup %8118  ;;  %v3295_v49 = vpop.f32.mrf.mxu2  ;;  %v3823_v41 = vadd.f32 %v10099_v32, %v3822_v20  ;;  %v3795_v20 = vadd.f32 %v10099_v32, %v9992_v38 }
 0x4ca   : > { %v4043_v53 = vmul.f32 %v8119_v57, %v2810_v14  ;;  %v3296_v27 = vadd.f32 %v3295_v49, %v9383_v4  ;;  %v8121_v46 = vpop.eup %8120  ;;  %v10160_v2 = vpop.f32.mrf.mxu0 }
 0x4cc   : > { %v10152_v13 = vadd.f32 %v9693_v37, %v4043_v53  ;;  %8122 = vtanh.f32 %v3296_v27  ;;  %v2825_v14 = vpop.f32.mrf.mxu1 }
 0x4cd   : > { %8124 = vtanh.f32 %v3823_v41 }
 0x4ce   : > { %8126 = vtanh.f32 %v3793_v61 }
 0x4d0   : > { %v3824_v4 = vpop.f32.mrf.mxu3 }
 0x4d1   : > { %v3825_v10 = vadd.f32 %v10099_v32, %v3824_v4  ;;  %v3632_v62 = vpop.f32.mrf.mxu2 }
 0x4d2   : > { %v8123_v34 = vpop.eup %8122  ;;  %v3633_v47 = vadd.f32 %v10099_v32, %v3632_v62 }
 0x4d3   : > { %8128 = vtanh.f32 %v3825_v10  ;;  %v3441_v37 = vpack.c.bf16 %v8123_v34, %v8121_v46  ;;  %v8125_v45 = vpop.eup %8124  ;;  %v12065_v46 = vld [vmem:[#allocation20_spill] sm:$0xff] }
 0x4d4   : > { %8130 = vtanh.f32 %v3633_v47  ;;  %v8127_v57 = vpop.eup %8126  ;;  %v4044_v49 = vmul.f32 %v8125_v45, %v2813_v63  ;;  %v12066_v63 = vld [vmem:[#allocation36_spill] sm:$0xff] }
 0x4d5   : > { %7501 = vmatmul.msk.bf16.gmra.mxu3 %vm3478_vm3, %v3441_v37  ;;  %8132 = vtanh.f32 %v3795_v20  ;;  %v4032_v38 = vmul.f32 %v8127_v57, %v9932_v21  ;;  %v12067_v57 = vld [vmem:[#allocation22_spill] sm:$0xff] }
 0x4d6   : > { %v10169_v47 = vadd.f32 %v9710_v11, %v4044_v49 }
 0x4d8   : > { %v3827_v53 = vpop.f32.mrf.mxu3 }
 0x4d9   : > { %v8129_v27 = vpop.eup %8128  ;;  %v3634_v41 = vpop.f32.mrf.mxu2  ;;  %v3828_v34 = vadd.f32 %v10099_v32, %v3827_v53 }
 0x4da   : > { %v8131_v61 = vpop.eup %8130  ;;  %v4045_v4 = vmul.f32 %v8129_v27, %v2816_v16  ;;  %v3635_v10 = vadd.f32 %v10099_v32, %v3634_v41  ;;  %v3798_v16 = vadd.f32 %v10099_v32, %v10009_v56  ;;  %v10180_v27 = vpop.f32.mrf.mxu0 }
 0x4db   : > { %v3968_v62 = vmul.f32 %v8131_v61, %v12065_v46  ;;  %v8133_v49 = vpop.eup %8132  ;;  %v12068_v46 = vld [vmem:[#allocation37_spill] sm:$0xff] }
 0x4dc   : > { %v10172_v37 = vadd.f32 %v9723_v50, %v4045_v4  ;;  %8134 = vtanh.f32 %v3635_v10  ;;  %v4033_v10 = vmul.f32 %v8133_v49, %v9946_v44  ;;  %v12069_v49 = vld [vmem:[#allocation23_spill] sm:$0xff] }
 0x4dd   : > { %v4064_v45 = vadd.f32 %v12066_v63, %v3968_v62  ;;  %8136 = vtanh.f32 %v3828_v34  ;;  %v3800_v34 = vadd.f32 %v10099_v32, %v10018_v51  ;;  %v2828_v63 = vpop.f32.mrf.mxu1 }
 0x4de   : > { %8138 = vtanh.f32 %v3798_v16 }
 0x4df   : > { %v4096_v53 = vadd.f32 %v4064_v45, %v4032_v38 }
 0x4e0   : > { %v3829_v11 = vpop.f32.mrf.mxu3 }
 0x4e1   : > { %v3830_v50 = vadd.f32 %v10099_v32, %v3829_v11  ;;  %v3637_v41 = vpop.f32.mrf.mxu2 }
 0x4e2   : > { %v8135_v61 = vpop.eup %8134  ;;  %v3638_v21 = vadd.f32 %v10099_v32, %v3637_v41  ;;  %v10190_v20 = vpop.f32.mrf.mxu0 }
 0x4e3   : > { %v3969_v4 = vmul.f32 %v8135_v61, %v12067_v57  ;;  %8140 = vtanh.f32 %v3830_v50  ;;  %v8137_v56 = vpop.eup %8136 }
 0x4e4   : > { %8142 = vtanh.f32 %v3638_v21  ;;  %v8139_v45 = vpop.eup %8138  ;;  %v4046_v11 = vmul.f32 %v8137_v56, %v10142_v22 }
 0x4e5   : > { %v4065_v62 = vadd.f32 %v12068_v46, %v3969_v4  ;;  %8144 = vtanh.f32 %v3800_v34 }
 0x4e7   : > { %v4097_v38 = vadd.f32 %v4065_v62, %v4033_v10  ;;  %v10197_v10 = vadd.f32 %v9736_v59, %v4046_v11  ;;  %v2831_v59 = vpop.f32.mrf.mxu1 }
 0x4e8   : > { %v3832_v16 = vpop.f32.mrf.mxu3 }
 0x4e9   : > { %v8141_v41 = vpop.eup %8140  ;;  %v4330_v61 = vpack.c.bf16 %v4097_v38, %v4096_v53  ;;  %v3639_v50 = vpop.f32.mrf.mxu2  ;;  %v3833_v51 = vadd.f32 %v10099_v32, %v3832_v16  ;;  %v4034_v53 = vmul.f32 %v8139_v45, %v9964_v0 }
 0x4ea   : > { %v8143_v21 = vpop.eup %8142  ;;  %v4047_v57 = vmul.f32 %v8141_v41, %v2822_v23  ;;  %v3640_v44 = vadd.f32 %v10099_v32, %v3639_v50  ;;  %v10208_v41 = vpop.f32.mrf.mxu0  ;;  %v12071_v50 = vld [vmem:[#allocation38_spill] sm:$0xff] }
 0x4eb   : > { %v3970_v4 = vmul.f32 %v8143_v21, %v12069_v49  ;;  %7566 = vmatmul.msk.bf16.vlgmr.msra.gmra.mxu0 %vm3478_vm3, %v4330_v61  ;;  %v8145_v34 = vpop.eup %8144  ;;  %v12070_v61 = vld [vmem:[#allocation25_spill] sm:$0xff] }
 0x4ec   : > { %v10200_v22 = vadd.f32 %v9749_v35, %v4047_v57  ;;  %8146 = vtanh.f32 %v3640_v44  ;;  %v4035_v45 = vmul.f32 %v8145_v34, %v9979_v25  ;;  %v3803_v57 = vadd.f32 %v10099_v32, %v10031_v42 }
 0x4ed   : > { %v4066_v23 = vadd.f32 %v9575_v19, %v3970_v4  ;;  %8148 = vtanh.f32 %v3833_v51  ;;  %v3805_v44 = vadd.f32 %v10099_v32, %v10040_v18 }
 0x4ee   : > { %v4337_v56 = vpack.c.bf16 %v10200_v22, %v10197_v10  ;;  %v12088_v10 = vld [vmem:[#allocation7_spill] sm:$0xff] }
 0x4ef   : > { %v4098_v46 = vadd.f32 %v4066_v23, %v4034_v53  ;;  %v2834_v42 = vpop.f32.mrf.mxu1 }
 0x4f0   : > { %v3834_v62 = vpop.f32.mrf.mxu3 }
 0x4f1   : > { %v3835_v38 = vadd.f32 %v10099_v32, %v3834_v62  ;;  %v3642_v16 = vpop.f32.mrf.mxu2 }
 0x4f2   : > { %v8147_v11 = vpop.eup %8146  ;;  %v3643_v35 = vadd.f32 %v10099_v32, %v3642_v16 }
 0x4f3   : > { %v3971_v0 = vmul.f32 %v8147_v11, %v12070_v61  ;;  %8150 = vtanh.f32 %v3835_v38  ;;  %v8149_v19 = vpop.eup %8148 }
 0x4f4   : > { %8152 = vtanh.f32 %v3643_v35  ;;  %v4048_v4 = vmul.f32 %v8149_v19, %v2825_v14  ;;  %v10226_v14 = vpop.f32.mrf.mxu0 }
 0x4f5   : > { %v4067_v21 = vadd.f32 %v12071_v50, %v3971_v0  ;;  %8154 = vtanh.f32 %v3803_v57  ;;  %v12074_v57 = vld [vmem:[#allocation27_spill] sm:$0xff] }
 0x4f6   : > { %8156 = vtanh.f32 %v3805_v44  ;;  %v10221_v11 = vadd.f32 %v9762_v48, %v4048_v4  ;;  %v12073_v48 = vld [vmem:[#allocation39_spill] sm:$0xff] }
 0x4f7   : > { %v4099_v49 = vadd.f32 %v4067_v21, %v4035_v45 }
 0x4f8   : > { %v3837_v51 = vpop.f32.mrf.mxu3 }
 0x4f9   : > { %v8151_v53 = vpop.eup %8150  ;;  %v3644_v23 = vpop.f32.mrf.mxu2  ;;  %v4331_v62 = vpack.c.bf16 %v4099_v49, %v4098_v46  ;;  %v3838_v25 = vadd.f32 %v10099_v32, %v3837_v51  ;;  %v12072_v46 = vld [vmem:[#allocation26_spill] sm:$0xff]  ;;  %v12075_v51 = vld [vmem:[#allocation40_spill] sm:$0xff] }
 0x4fa   : > { %v4049_v38 = vmul.f32 %v8151_v53, %v2828_v63  ;;  %v3645_v16 = vadd.f32 %v10099_v32, %v3644_v23  ;;  %v8153_v34 = vpop.eup %8152  ;;  %v2837_v23 = vpop.f32.mrf.mxu1 }
 0x4fb   : > { %7567 = vmatmul.msk.bf16.gmra.mxu0 %vm3478_vm3, %v4331_v62  ;;  %v3972_v35 = vmul.f32 %v8153_v34, %v12072_v46  ;;  %v8155_v61 = vpop.eup %8154 }
 0x4fc   : > { %v10224_v18 = vadd.f32 %v9779_v9, %v4049_v38  ;;  %8158 = vtanh.f32 %v3645_v16  ;;  %v8157_v19 = vpop.eup %8156  ;;  %v4036_v49 = vmul.f32 %v8155_v61, %v9998_v24  ;;  %v10237_v62 = vpop.f32.mrf.mxu0 }
 0x4fd   : > { %8160 = vtanh.f32 %v3838_v25  ;;  %v4068_v21 = vadd.f32 %v12073_v48, %v3972_v35  ;;  %v4037_v4 = vmul.f32 %v8157_v19, %v10013_v12 }
 0x4fe   : > { %v4338_v63 = vpack.c.bf16 %v10224_v18, %v10221_v11 }
 0x4ff   : > { %v4100_v38 = vadd.f32 %v4068_v21, %v4036_v49 }
 0x500   : > { %v3839_v0 = vpop.f32.mrf.mxu3 }
 0x501   : > { %v3840_v45 = vadd.f32 %v10099_v32, %v3839_v0 }
 0x502   : > { %v8159_v50 = vpop.eup %8158  ;;  %v2840_v19 = vpop.f32.mrf.mxu1 }
 0x503   : > { %v3973_v9 = vmul.f32 %v8159_v50, %v12074_v57  ;;  %8162 = vtanh.f32 %v3840_v45  ;;  %v8161_v44 = vpop.eup %8160 }
 0x504   : > { %v4050_v25 = vmul.f32 %v8161_v44, %v2831_v59  ;;  %v10249_v45 = vpop.f32.mrf.mxu0 }
 0x505   : > { %v4069_v53 = vadd.f32 %v12075_v51, %v3973_v9 }
 0x506   : > { %v10242_v24 = vadd.f32 %v9792_v40, %v4050_v25 }
 0x507   : > { %v4101_v16 = vadd.f32 %v4069_v53, %v4037_v4  ;;  %v12076_v4 = vpack.c.bf16 %v10106_v6, %v10103_v28 }
 0x508   : > { %v3842_v34 = vpop.f32.mrf.mxu3 }
 0x509   : > { %v8163_v46 = vpop.eup %8162  ;;  %v4332_v0 = vpack.c.bf16 %v4101_v16, %v4100_v38  ;;  %v3843_v50 = vadd.f32 %v10099_v32, %v3842_v34 }
 0x50a   : > { %v4051_v35 = vmul.f32 %v8163_v46, %v2834_v42  ;;  %v2843_v40 = vpop.f32.mrf.mxu1 }
 0x50b   : > { %7568 = vmatmul.msk.bf16.gmra.mxu0 %vm3478_vm3, %v4332_v0  ;;  %8164 = vtanh.f32 %v3843_v50 }
 0x50c   : > { %v10245_v12 = vadd.f32 %v9805_v58, %v4051_v35  ;;  %v10252_v49 = vpop.f32.mrf.mxu0 }
 0x50e   : > { %v4339_v61 = vpack.c.bf16 %v10245_v12, %v10242_v24  ;;  %v10388_v24 = vld [vmem:[%s11938_s11] ss:$0 sm:$0xff] }
 0x50f   : > { %v12090_v12 = vld [vmem:[#allocation28_spill] sm:$0xff] }
 0x510   : > { %v3844_v59 = vpop.f32.mrf.mxu3 }
 0x511   : > { %v3845_v42 = vadd.f32 %v10099_v32, %v3844_v59  ;;  %v8165_v48 = vpop.eup %8164 }
 0x512   : > { %v4052_v21 = vmul.f32 %v8165_v48, %v2837_v23  ;;  %v2846_v25 = vpop.f32.mrf.mxu1  ;;  %v7755_v48 = vld [vmem:[%s11940_s13 + $0x8] sm:$0xff] }
 0x513   : > { %8166 = vtanh.f32 %v3845_v42  ;;  %v6053_v31 = vsel %vm1680_vm0, %v7755_v48, 0  ;;  %v12082_v48 = vpack.c.bf16 %v10172_v37, %v10169_v47  ;;  %v12085_v37 = vld [vmem:[#allocation5_spill] sm:$0xff] }
 0x514   : > { %v10260_v51 = vadd.f32 %v9818_v39, %v4052_v21  ;;  %v10268_v34 = vpop.f32.mrf.mxu0  ;;  %6061 = vmatpush.bf16.xpose.msrb.mxu1 %v6053_v31 }
 0x518   : > { %v3847_v57 = vpop.f32.mrf.mxu3 }
 0x519   : > { %v8167_v9 = vpop.eup %8166  ;;  %v3848_v58 = vadd.f32 %v10099_v32, %v3847_v57 }
 0x51a   : > { %v4053_v44 = vmul.f32 %v8167_v9, %v2840_v19  ;;  %v2849_v19 = vpop.f32.mrf.mxu1 }
 0x51b   : > { %7569 = vmatmul.msk.bf16.gmra.mxu0 %vm3478_vm3, %v12076_v4  ;;  %8168 = vtanh.f32 %v3848_v58  ;;  %v12079_v4 = vpack.c.bf16 %v10152_v13, %v10149_v1 }
 0x51c   : > { %v10263_v53 = vadd.f32 %v9831_v43, %v4053_v44  ;;  %v10283_v42 = vpop.f32.mrf.mxu0 }
 0x51d   : > { %12077 = vst [vmem:[#allocation34_spill] sm:$0xff] %v10283_v42 }
 0x51e   : > { %v4340_v23 = vpack.c.bf16 %v10263_v53, %v10260_v51 }
 0x520   : > { %v3849_v38 = vpop.f32.mrf.mxu3 }
 0x521   : > { %v3850_v16 = vadd.f32 %v10099_v32, %v3849_v38  ;;  %v8169_v28 = vpop.eup %8168 }
 0x522   : > { %v4054_v6 = vmul.f32 %v8169_v28, %v2843_v40 }
 0x523   : > { %8170 = vtanh.f32 %v3850_v16 }
 0x524   : > { %v10276_v43 = vadd.f32 %v9844_v54, %v4054_v6  ;;  %v10290_v9 = vpop.f32.mrf.mxu0 }
 0x525   : > { %12078 = vst [vmem:[#allocation12_spill] sm:$0xff] %v10290_v9 }
 0x528   : > { %v3852_v46 = vpop.f32.mrf.mxu3 }
 0x529   : > { %v8171_v0 = vpop.eup %8170  ;;  %v3853_v35 = vadd.f32 %v10099_v32, %v3852_v46 }
 0x52a   : > { %v4055_v39 = vmul.f32 %v8171_v0, %v2846_v25 }
 0x52b   : > { %7570 = vmatmul.msk.bf16.gmra.mxu0 %vm3478_vm3, %v4334_v7  ;;  %8172 = vtanh.f32 %v3853_v35  ;;  %v2852_v7 = vpop.f32.mrf.mxu1 }
 0x52c   : > { %v10279_v50 = vadd.f32 %v9861_v3, %v4055_v39  ;;  %v10306_v46 = vpop.f32.mrf.mxu0 }
 0x52d   : > { %12080 = vst [vmem:[#allocation11_spill] sm:$0xff] %v10306_v46 }
 0x52e   : > { %v4341_v59 = vpack.c.bf16 %v10279_v50, %v10276_v43  ;;  %v12091_v43 = vld [vmem:[#allocation15_spill] sm:$0xff] }
 0x52f   : > { %v10405_v50 = vadd.f32 %v10388_v24, %v12091_v43 }
 0x530   : > { %v3854_v60 = vpop.f32.mrf.mxu3 }
 0x531   : > { %v3855_v54 = vadd.f32 %v10099_v32, %v3854_v60  ;;  %v8173_v3 = vpop.eup %8172 }
 0x532   : > { %v4056_v21 = vmul.f32 %v8173_v3, %v2849_v19 }
 0x533   : > { %8174 = vtanh.f32 %v3855_v54  ;;  %v2855_v1 = vpop.f32.mrf.mxu1 }
 0x534   : > { %v10298_v38 = vadd.f32 %v9874_v30, %v4056_v21  ;;  %v12081_v30 = vld [vmem:[#allocation4_spill] sm:$0xff]  ;;  %v10320_v54 = vpop.f32.mrf.mxu0 }
 0x535   : > { %12083 = vst [vmem:[#allocation24_spill] sm:$0xff] %v10320_v54 }
 0x538   : > { %v3857_v57 = vpop.f32.mrf.mxu3 }
 0x539   : > { %v8175_v40 = vpop.eup %8174  ;;  %v3858_v58 = vadd.f32 %v10099_v32, %v3857_v57 }
 0x53a   : > { %v4057_v44 = vmul.f32 %v8175_v40, %v2852_v7 }
 0x53b   : > { %7571 = vmatmul.msk.bf16.gmra.mxu0 %vm3478_vm3, %v12079_v4  ;;  %8176 = vtanh.f32 %v3858_v58  ;;  %v12086_v58 = vld [vmem:[#allocation6_spill] sm:$0xff] }
 0x53c   : > { %v10301_v16 = vadd.f32 %v9887_v5, %v4057_v44  ;;  %v10325_v47 = vpop.f32.mrf.mxu0 }
 0x53d   : > { %12084 = vst [vmem:[#allocation35_spill] sm:$0xff] %v10325_v47 }
 0x53e   : > { %v4342_v25 = vpack.c.bf16 %v10301_v16, %v10298_v38 }
 0x540   : > { %v3859_v28 = vpop.f32.mrf.mxu3 }
 0x541   : > { %v3860_v6 = vadd.f32 %v10099_v32, %v3859_v28  ;;  %v8177_v0 = vpop.eup %8176 }
 0x542   : > { %v4058_v13 = vmul.f32 %v8177_v0, %v2855_v1 }
 0x543   : > { %8178 = vtanh.f32 %v3860_v6 }
 0x544   : > { %v10315_v60 = vadd.f32 %v9902_v33, %v4058_v13  ;;  %v10342_v1 = vpop.f32.mrf.mxu0 }
 0x545   : > { %12087 = vst [vmem:[#allocation14_spill] sm:$0xff] %v10342_v1 }
 0x548   : > { %v3862_v39 = vpop.f32.mrf.mxu3 }
 0x549   : > { %v8179_v35 = vpop.eup %8178  ;;  %v3863_v5 = vadd.f32 %v10099_v32, %v3862_v39 }
 0x54a   : > { %v4059_v19 = vmul.f32 %v8179_v35, %v12081_v30 }
 0x54b   : > { %7572 = vmatmul.msk.bf16.gmra.mxu0 %vm3478_vm3, %v12082_v48  ;;  %8180 = vtanh.f32 %v3863_v5 }
 0x54c   : > { %v10318_v31 = vadd.f32 %v9916_v17, %v4059_v19 }
 0x54e   : > { %v4343_v3 = vpack.c.bf16 %v10318_v31, %v10315_v60 }
 0x550   : > { %v3864_v7 = vpop.f32.mrf.mxu3 }
 0x551   : > { %v3865_v21 = vadd.f32 %v10099_v32, %v3864_v7  ;;  %v8181_v57 = vpop.eup %8180 }
 0x552   : > { %v4060_v40 = vmul.f32 %v8181_v57, %v12085_v37 }
 0x553   : > { %8182 = vtanh.f32 %v3865_v21 }
 0x554   : > { %v10335_v28 = vadd.f32 %v9938_v26, %v4060_v40  ;;  %v12089_v26 = vld [vmem:[#allocation8_spill] sm:$0xff]  ;;  %v12092_v40 = vld [vmem:[#allocation17_spill] sm:$0xff] }
 0x555   : > { %v10414_v38 = vadd.f32 %v10388_v24, %v12092_v40 }
 0x558   : > { %v3867_v33 = vpop.f32.mrf.mxu3 }
 0x559   : > { %v8183_v44 = vpop.eup %8182  ;;  %v3868_v4 = vadd.f32 %v10099_v32, %v3867_v33 }
 0x55a   : > { %v4061_v17 = vmul.f32 %v8183_v44, %v12086_v58  ;;  %v10423_v44 = vpop.permute.xlu0 %5763 }
 0x55b   : > { %7573 = vmatmul.msk.bf16.gmra.mxu0 %vm3478_vm3, %v4337_v56  ;;  %8184 = vtanh.f32 %v3868_v4  ;;  %12093 = vst [vmem:[#allocation13_spill] sm:$0xff] %v10423_v44  ;;  %v12094_v4 = vld [vmem:[#allocation29_spill] sm:$0xff] }
 0x55c   : > { %v10338_v6 = vadd.f32 %v9952_v55, %v4061_v17  ;;  %v7757_v17 = vld [vmem:[%s11942_s15 + $0x8] sm:$0xff] }
 0x55d   : > { %v6262_v60 = vsel %vm1680_vm0, %v7757_v17, 0 }
 0x55e   : > { %v4344_v0 = vpack.c.bf16 %v10338_v6, %v10335_v28  ;;  %6270 = vmatpush.bf16.xpose.msrb.mxu3 %v6262_v60 }
 0x560   : > { %v3869_v13 = vpop.f32.mrf.mxu3 }
 0x561   : > { %v3870_v39 = vadd.f32 %v10099_v32, %v3869_v13  ;;  %v8185_v35 = vpop.eup %8184  ;;  %v10434_v13 = vadd.f32 %v10388_v24, %v12094_v4 }
 0x562   : > { %v4062_v22 = vmul.f32 %v8185_v35, %v12088_v10  ;;  %v12095_v35 = vld [vmem:[#allocation31_spill] sm:$0xff] }
 0x563   : > { %8186 = vtanh.f32 %v3870_v39  ;;  %v10439_v10 = vadd.f32 %v10388_v24, %v12095_v35 }
 0x564   : > { %v10353_v19 = vadd.f32 %v9970_v52, %v4062_v22 }
 0x568   : > { %v4463_v56 = vpop.f32.mrf.mxu0 }
 0x569   : > { %v8187_v30 = vpop.eup %8186  ;;  %5215 = vrot.lane.b32.xlu0 %v4463_v56, %s8472_s21 }
 0x56a   : > { %v4063_v55 = vmul.f32 %v8187_v30, %v12089_v26 }
 0x56b   : > { %7574 = vmatmul.msk.bf16.gmra.mxu0 %vm3478_vm3, %v4338_v63 }
 0x56c   : > { %v10356_v32 = vadd.f32 %v9985_v29, %v4063_v55  ;;  %v10454_v55 = vpop.permute.xlu2 %5761 }
 0x56e   : > { %v4345_v5 = vpack.c.bf16 %v10356_v32, %v10353_v19 }
 0x570   : > { %v4465_v48 = vpop.f32.mrf.mxu0 }
 0x571   : > { %5217 = vrot.lane.b32.xlu0 %v4465_v48, %s8472_s21  ;;  %v4544_v21 = vadd.f32 %v4465_v48, %v10405_v50  ;;  %v10456_v48 = vpop.permute.xlu0 %5769 }
 0x572   : > { %12097 = vst [vmem:[#allocation20_spill] sm:$0xff] %v10456_v48 }
 0x573   : > { %v7583_v57 = vmul.f32 -1.442695, %v4544_v21 }
 0x578   : > { %v4468_v7 = vpop.f32.mrf.mxu0 }
 0x579   : > { %5219 = vrot.lane.b32.xlu1 %v4468_v7, %s8472_s21  ;;  %v4545_v31 = vadd.f32 %v4468_v7, %v10434_v13 }
 0x57b   : > { %7575 = vmatmul.msk.bf16.gmra.mxu0 %vm3478_vm3, %v4339_v61  ;;  %v10392_v61 = vadd.f32 %v10388_v24, %v12090_v12  ;;  %v7584_v12 = vmul.f32 -1.442695, %v4545_v31 }
 0x57d   : > { %v4543_v53 = vadd.f32 %v4463_v56, %v10392_v61  ;;  %v12096_v56 = vld [vmem:[#allocation16_spill] sm:$0xff] }
 0x57e   : > { %v10450_v30 = vadd.f32 %v10388_v24, %v12096_v56 }
 0x580   : > { %v4470_v11 = vpop.f32.mrf.mxu0 }
 0x581   : > { %5221 = vrot.lane.b32.xlu1 %v4470_v11, %s8472_s21  ;;  %v4546_v7 = vadd.f32 %v4470_v11, %v10450_v30  ;;  %v10471_v11 = vpop.permute.xlu2 %5767 }
 0x582   : > { %12099 = vst [vmem:[#allocation36_spill] sm:$0xff] %v10471_v11 }
 0x583   : > { %v7585_v21 = vmul.f32 -1.442695, %v4546_v7 }
 0x588   : > { %v10367_v52 = vpop.f32.mrf.mxu0 }
 0x589   : > { %5223 = vrot.lane.b32.xlu2 %v10367_v52, %s8472_s21 }
 0x58b   : > { %7576 = vmatmul.msk.bf16.gmra.mxu0 %vm3478_vm3, %v4340_v23  ;;  %v7582_v23 = vmul.f32 -1.442695, %v4543_v53 }
 0x58d   : > { %8188 = vpow2.f32 %v7582_v23 }
 0x58e   : > { %8190 = vpow2.f32 %v7583_v57  ;;  %v12098_v57 = vld [vmem:[#allocation30_spill] sm:$0xff] }
 0x590   : > { %v4475_v29 = vpop.f32.mrf.mxu0 }
 0x591   : > { %5225 = vrot.lane.b32.xlu2 %v4475_v29, %s8472_s21 }
 0x593   : > { %v8189_v37 = vpop.eup %8188 }
 0x594   : > { %v10421_v33 = vadd.f32 1.0, %v8189_v37  ;;  %v8191_v39 = vpop.eup %8190  ;;  %v10467_v37 = vadd.f32 %v10388_v24, %v12098_v57 }
 0x595   : > { %v10452_v26 = vadd.f32 1.0, %v8191_v39 }
 0x596   : > { %8192 = vrcp.f32 %v10421_v33  ;;  %v4547_v4 = vadd.f32 %v10367_v52, %v10467_v37  ;;  %v10494_v52 = vpop.permute.xlu2 %5771  ;;  %vm4708_vm6 = vweird.f32 %v10421_v33  ;;  %v4712_v57 = vand.u32 2147483647, %v10421_v33 }
 0x597   : > { %12101 = vst [vmem:[#allocation37_spill] sm:$0xff] %v10494_v52  ;;  %vm4723_vm10 = vweird.f32 %v10452_v26  ;;  %v4727_v19 = vand.u32 2147483647, %v10452_v26 }
 0x598   : > { %v4478_v18 = vpop.f32.mrf.mxu0  ;;  %v7586_v28 = vmul.f32 -1.442695, %v4547_v4  ;;  %vm4713_vm8 = vcmp.eq.f32.partialorder %v4712_v57, 8.507059e+37 }
 0x599   : > { %5227 = vrot.lane.b32.xlu2 %v4478_v18, %s8472_s21  ;;  %vm4728_vm12 = vcmp.eq.f32.partialorder %v4727_v19, 8.507059e+37 }
 0x59b   : > { %7577 = vmatmul.msk.bf16.gmra.mxu0 %vm3478_vm3, %v4341_v59 }
 0x5a0   : > { %v10381_v63 = vpop.f32.mrf.mxu0 }
 0x5a1   : > { %5229 = vrot.lane.b32.xlu0 %v10381_v63, %s8472_s21 }
 0x5a8   : > { %v10394_v51 = vpop.f32.mrf.mxu0 }
 0x5a9   : > { %5231 = vrot.lane.b32.xlu0 %v10394_v51, %s8472_s21 }
 0x5ab   : > { %7578 = vmatmul.msk.bf16.gmra.mxu0 %vm3478_vm3, %v4342_v25  ;;  %v4548_v25 = vadd.f32 %v4475_v29, %v10414_v38  ;;  %v8193_v29 = vpop.eup %8192 }
 0x5ac   : > { %vm4709_vm5 = vweird.f32 %v8193_v29 }
 0x5ad   : > { %v7587_v58 = vmul.f32 -1.442695, %v4548_v25  ;;  %v10473_v25 = vpop.permute.xlu0 %5773  ;;  %vm4710_vm7 = vmor %vm4708_vm6, %vm4709_vm5 }
 0x5ae   : > { %12100 = vst [vmem:[#allocation22_spill] sm:$0xff] %v10473_v25 }
 0x5af   : > { %8194 = vpow2.f32 %v7587_v58 }
 0x5b0   : > { %v10407_v59 = vpop.f32.mrf.mxu0  ;;  %8196 = vrcp.f32 %v10452_v26 }
 0x5b1   : > { %5233 = vrot.lane.b32.xlu1 %v10407_v59, %s8472_s21  ;;  %8198 = vpow2.f32 %v7584_v12 }
 0x5b5   : > { %v8195_v23 = vpop.eup %8194  ;;  %v10496_v12 = vpop.permute.xlu0 %5777 }
 0x5b6   : > { %v10469_v40 = vadd.f32 1.0, %v8195_v23  ;;  %v10479_v17 = vpop.eup %8196  ;;  %12102 = vst [vmem:[#allocation23_spill] sm:$0xff] %v10496_v12 }
 0x5b7   : > { %v8199_v39 = vpop.eup %8198  ;;  %v4719_v31 = vmul.f32 %v10479_v17, %v10452_v26  ;;  %vm4724_vm9 = vweird.f32 %v10479_v17 }
 0x5b8   : > { %v10416_v16 = vpop.f32.mrf.mxu0  ;;  %v10490_v6 = vadd.f32 1.0, %v8199_v39  ;;  %vm4725_vm11 = vmor %vm4723_vm10, %vm4724_vm9  ;;  %v4789_v25 = vand.u32 2147483648, %v10469_v40  ;;  %vm4783_vm14 = vweird.f32 %v10469_v40 }
 0x5b9   : > { %5235 = vrot.lane.b32.xlu1 %v10416_v16, %s8472_s21 }
 0x5ba   : > { %vm4738_vm5 = vweird.f32 %v10490_v6 }
 0x5bb   : > { %7579 = vmatmul.msk.bf16.gmra.mxu0 %vm3478_vm3, %v4343_v3  ;;  %v4549_v3 = vadd.f32 %v4478_v18, %v10439_v10  ;;  %v4704_v18 = vmul.f32 %v8193_v29, %v10421_v33 }
 0x5bd   : > { %v7588_v53 = vmul.f32 -1.442695, %v4549_v3  ;;  %v4705_v58 = vsub.f32 1.0, %v4704_v18  ;;  %v4714_v18 = vand.u32 2147483648, %v10421_v33 }
 0x5bf   : > { %8200 = vpow2.f32 %v7588_v53  ;;  %v4706_v60 = vmul.f32 %v8193_v29, %v4705_v58  ;;  %v4720_v53 = vsub.f32 1.0, %v4719_v31  ;;  %v10515_v31 = vpop.permute.xlu1 %5759 }
 0x5c0   : > { %v10441_v22 = vpop.f32.mrf.mxu0  ;;  %8202 = vpow2.f32 %v7585_v21 }
 0x5c1   : > { %5237 = vrot.lane.b32.xlu2 %v10441_v22, %s8472_s21  ;;  %8204 = vrcp.f32 %v10469_v40  ;;  %v4707_v7 = vadd.f32 %v8193_v29, %v4706_v60  ;;  %v4721_v4 = vmul.f32 %v10479_v17, %v4720_v53  ;;  %v4715_v60 = vor.u32 1.1754944e-38, %v4714_v18 }
 0x5c2   : > { %8206 = vpow2.f32 %v7586_v28 }
 0x5c3   : > { %8208 = vrcp.f32 %v10490_v6  ;;  %v4711_v58 = vsel %vm4710_vm7, %v8193_v29, %v4707_v7  ;;  %v10519_v29 = vpop.permute.xlu2 %5775  ;;  %v4722_v53 = vadd.f32 %v10479_v17, %v4721_v4  ;;  %v12104_v4 = vld [vmem:[#allocation18_spill] sm:$0xff] }
 0x5c4   : > { %v10517_v28 = vsel %vm4713_vm8, %v4715_v60, %v4711_v58  ;;  %12103 = vst [vmem:[#allocation25_spill] sm:$0xff] %v10519_v29  ;;  %v4729_v58 = vand.u32 2147483648, %v10452_v26 }
 0x5c5   : > { %v8201_v35 = vpop.eup %8200 }
 0x5c6   : > { %v10492_v56 = vadd.f32 1.0, %v8201_v35 }
 0x5c7   : > { %v10553_v54 = vpop.permute.xlu1 %5765 }
 0x5c8   : > { %v10461_v43 = vpop.f32.mrf.mxu0  ;;  %8210 = vrcp.f32 %v10492_v56  ;;  %12105 = vst [vmem:[#allocation38_spill] sm:$0xff] %v10553_v54  ;;  %vm4798_vm7 = vweird.f32 %v10492_v56 }
 0x5c9   : > { %5239 = vrot.lane.b32.xlu0 %v10461_v43, %s8472_s21 }
 0x5cb   : > { %7580 = vmatmul.msk.bf16.gmra.mxu0 %vm3478_vm3, %v4344_v0  ;;  %v8203_v0 = vpop.eup %8202 }
 0x5cc   : > { %v10498_v23 = vpop.eup %8204  ;;  %v10502_v21 = vadd.f32 1.0, %v8203_v0 }
 0x5cd   : > { %v4779_v39 = vmul.f32 %v10498_v23, %v10469_v40  ;;  %v8207_v33 = vpop.eup %8206  ;;  %vm4784_vm13 = vweird.f32 %v10498_v23 }
 0x5ce   : > { %8212 = vrcp.f32 %v10502_v21  ;;  %v10525_v7 = vpop.eup %8208  ;;  %v10533_v60 = vadd.f32 1.0, %v8207_v33  ;;  %vm10573_vm15 = vmor %vm4783_vm14, %vm4784_vm13 }
 0x5cf   : > { %v4780_v18 = vsub.f32 1.0, %v4779_v39  ;;  %v10530_v1 = vpop.eup %8210  ;;  %v4734_v32 = vmul.f32 %v10525_v7, %v10490_v6  ;;  %v10544_v39 = vadd.f32 %v10388_v24, %v12104_v4  ;;  %vm4739_vm1 = vweird.f32 %v10525_v7 }
 0x5d0   : > { %v10486_v3 = vpop.f32.mrf.mxu0  ;;  %v4794_v47 = vmul.f32 %v10530_v1, %v10492_v56  ;;  %8214 = vrcp.f32 %v10533_v60  ;;  %vm10615_vm6 = vmor %vm4738_vm5, %vm4739_vm1  ;;  %vm4768_vm1 = vweird.f32 %v10533_v60 }
 0x5d1   : > { %5241 = vrot.lane.b32.xlu1 %v10486_v3, %s8472_s21  ;;  %v4781_v33 = vmul.f32 %v10498_v23, %v4780_v18  ;;  %v4550_v46 = vadd.f32 %v10381_v63, %v10544_v39  ;;  %v4735_v29 = vsub.f32 1.0, %v4734_v32  ;;  %v4787_v63 = vand.u32 2147483647, %v10469_v40 }
 0x5d3   : > { %v4782_v12 = vadd.f32 %v10498_v23, %v4781_v33  ;;  %v7589_v52 = vmul.f32 -1.442695, %v4550_v46  ;;  %v4736_v32 = vmul.f32 %v10525_v7, %v4735_v29  ;;  %v4742_v29 = vand.u32 2147483647, %v10490_v6 }
 0x5d4   : > { %vm4788_vm2 = vcmp.eq.f32.partialorder %v4787_v63, 8.507059e+37 }
 0x5d5   : > { %v4786_v40 = vsel %vm10573_vm15, %v10498_v23, %v4782_v12  ;;  %8216 = vpow2.f32 %v7589_v52  ;;  %v12110_v52 = vld [vmem:[#allocation19_spill] sm:$0xff]  ;;  %vm4743_vm10 = vcmp.eq.f32.partialorder %v4742_v29, 8.507059e+37 }
 0x5d6   : > { %v10605_v63 = vadd.f32 %v10388_v24, %v12110_v52 }
 0x5d8   : > { %v10510_v35 = vpop.f32.mrf.mxu0 }
 0x5d9   : > { %5243 = vrot.lane.b32.xlu2 %v10510_v35, %s8472_s21 }
 0x5db   : > { %v5216_v0 = vpop.permute.xlu0 %5215  ;;  %7581 = vmatmul.msk.bf16.gmra.mxu0 %vm3478_vm3, %v4345_v5  ;;  %v10540_v5 = vpop.eup %8212  ;;  %vm4799_vm3 = vweird.f32 %v10530_v1 }
 0x5dc   : > { %v5311_v57 = vmul.f32 %v5216_v0, %v10517_v28  ;;  %v4726_v0 = vsel %vm4725_vm11, %v10479_v17, %v4722_v53  ;;  %v4749_v17 = vmul.f32 %v10540_v5, %v10502_v21  ;;  %vm4754_vm8 = vweird.f32 %v10540_v5  ;;  %vm10631_vm9 = vmor %vm4798_vm7, %vm4799_vm3 }
 0x5dd   : > { %vm4753_vm11 = vweird.f32 %v10502_v21 }
 0x5de   : > { %5375 = vrot.lane.b32.xlu0 %v5311_v57, %s8472_s21  ;;  %v4730_v57 = vor.u32 1.1754944e-38, %v4729_v58  ;;  %v4795_v58 = vsub.f32 1.0, %v4794_v47  ;;  %v10577_v47 = vpop.eup %8214 }
 0x5df   : > { %v4764_v12 = vmul.f32 %v10577_v47, %v10533_v60  ;;  %vm4769_vm15 = vweird.f32 %v10577_v47 }
 0x5e0   : > { %v10550_v26 = vpop.f32.mrf.mxu0  ;;  %v10557_v4 = vsel %vm4728_vm12, %v4730_v57, %v4726_v0  ;;  %v4750_v0 = vsub.f32 1.0, %v4749_v17  ;;  %v12108_v57 = vld [vmem:[#allocation32_spill] sm:$0xff]  ;;  %v4790_v17 = vor.u32 1.1754944e-38, %v4789_v25  ;;  %v4744_v25 = vand.u32 2147483648, %v10490_v6  ;;  %vm10651_vm12 = vmor %vm4753_vm11, %vm4754_vm8 }
 0x5e1   : > { %v10581_v46 = vadd.f32 %v10388_v24, %v12108_v57  ;;  %v4737_v57 = vadd.f32 %v10525_v7, %v4736_v32  ;;  %v4804_v32 = vand.u32 2147483648, %v10492_v56 }
 0x5e2   : > { %v4751_v48 = vmul.f32 %v10540_v5, %v4750_v0  ;;  %v10597_v23 = vsel %vm4788_vm2, %v4790_v17, %v4786_v40  ;;  %v12111_v0 = vld [vmem:[#allocation10_spill] sm:$0xff]  ;;  %vm4770_vm2 = vmor %vm4768_vm1, %vm4769_vm15 }
 0x5e3   : > { %v5218_v53 = vpop.permute.xlu0 %5217  ;;  %v10561_v18 = vpop.permute.xlu2 %5223  ;;  %v4551_v42 = vadd.f32 %v10394_v51, %v10581_v46  ;;  %12109 = vst [vmem:[#allocation26_spill] sm:$0xff] %v10597_v23  ;;  %v10611_v40 = vadd.f32 %v10388_v24, %v12111_v0  ;;  %v4741_v6 = vsel %vm10615_vm6, %v10525_v7, %v4737_v57  ;;  %v4765_v0 = vsub.f32 1.0, %v4764_v12 }
 0x5e4   : > { %v5312_v19 = vmul.f32 %v5218_v53, %v10557_v4  ;;  %v4796_v53 = vmul.f32 %v10530_v1, %v4795_v58  ;;  %v4752_v52 = vadd.f32 %v10540_v5, %v4751_v48  ;;  %v4757_v48 = vand.u32 2147483647, %v10502_v21 }
 0x5e5   : > { %v7590_v17 = vmul.f32 -1.442695, %v4551_v42  ;;  %v4552_v12 = vadd.f32 %v10407_v59, %v10605_v63 }
 0x5e6   : > { %5377 = vrot.lane.b32.xlu1 %v5312_v19, %s8472_s21  ;;  %5245 = vrot.lane.b32.xlu0 %v10550_v26, %s8472_s21  ;;  %v4797_v11 = vadd.f32 %v10530_v1, %v4796_v53  ;;  %v4805_v53 = vor.u32 1.1754944e-38, %v4804_v32  ;;  %v4756_v59 = vsel %vm10651_vm12, %v10540_v5, %v4752_v52  ;;  %vm4758_vm14 = vcmp.eq.f32.partialorder %v4757_v48, 8.507059e+37  ;;  %v12121_v52 = vld [vmem:[#allocation33_spill] sm:$0xff] }
 0x5e7   : > { %8218 = vpow2.f32 %v7590_v17  ;;  %v4772_v48 = vand.u32 2147483647, %v10533_v60 }
 0x5e8   : > { %v10587_v19 = vpop.f32.mrf.mxu0  ;;  %v4801_v7 = vsel %vm10631_vm9, %v10530_v1, %v4797_v11  ;;  %v4554_v1 = vadd.f32 %v10441_v22, %v10611_v40 }
 0x5e9   : > { %vm4773_vm3 = vcmp.eq.f32.partialorder %v4772_v48, 8.507059e+37 }
 0x5ea   : > { %v7593_v54 = vmul.f32 -1.442695, %v4554_v1 }
 0x5eb   : > { %v5220_v58 = vpop.permute.xlu1 %5219  ;;  %v5226_v33 = vpop.permute.xlu2 %5225 }
 0x5ec   : > { %v5316_v51 = vmul.f32 %v5226_v33, %v10597_v23  ;;  %v4802_v33 = vand.u32 2147483647, %v10492_v56  ;;  %v8217_v56 = vpop.eup %8216  ;;  %v4759_v23 = vand.u32 2147483648, %v10502_v21  ;;  %v4766_v21 = vmul.f32 %v10577_v47, %v4765_v0 }
 0x5ed   : > { %v10660_v11 = vadd.f32 1.0, %v8217_v56  ;;  %v10677_v0 = vadd.f32 %v10388_v24, %v12121_v52  ;;  %v4774_v56 = vand.u32 2147483648, %v10533_v60 }
 0x5ee   : > { %5385 = vrot.lane.b32.xlu0 %v5316_v51, %s8472_s21  ;;  %5247 = vrot.lane.b32.xlu1 %v10587_v19, %s8472_s21  ;;  %v4745_v51 = vor.u32 1.1754944e-38, %v4744_v25  ;;  %vm4803_vm13 = vcmp.eq.f32.partialorder %v4802_v33, 8.507059e+37  ;;  %v4760_v42 = vor.u32 1.1754944e-38, %v4759_v23  ;;  %v7591_v33 = vmul.f32 -1.442695, %v4552_v12 }
 0x5ef   : > { %v10663_v32 = vsel %vm4803_vm13, %v4805_v53, %v4801_v7  ;;  %8220 = vrcp.f32 %v10660_v11  ;;  %v4767_v5 = vadd.f32 %v10577_v47, %v4766_v21  ;;  %v4775_v25 = vor.u32 1.1754944e-38, %v4774_v56 }
 0x5f0   : > { %v10639_v57 = vpop.f32.mrf.mxu0  ;;  %v10647_v29 = vsel %vm4743_vm10, %v4745_v51, %v4741_v6  ;;  %12119 = vst [vmem:[#allocation27_spill] sm:$0xff] %v10663_v32  ;;  %v10667_v22 = vsel %vm4758_vm14, %v4760_v42, %v4756_v59  ;;  %8222 = vpow2.f32 %v7591_v33  ;;  %vm4813_vm6 = vweird.f32 %v10660_v11 }
 0x5f1   : > { %5249 = vrot.lane.b32.xlu2 %v10639_v57, %s8472_s21  ;;  %12116 = vst [vmem:[#allocation39_spill] sm:$0xff] %v10647_v29  ;;  %v5313_v51 = vmul.f32 %v5220_v58, %v10647_v29  ;;  %v8219_v58 = vpop.eup %8218  ;;  %8224 = vpow2.f32 %v7593_v54  ;;  %v4771_v12 = vsel %vm4770_vm2, %v10577_v47, %v4767_v5 }
 0x5f2   : > { %12120 = vst [vmem:[#allocation40_spill] sm:$0xff] %v10667_v22  ;;  %v10688_v53 = vadd.f32 1.0, %v8219_v58  ;;  %v10690_v59 = vsel %vm4773_vm3, %v4775_v25, %v4771_v12 }
 0x5f3   : > { %v5228_v6 = vpop.permute.xlu2 %5227  ;;  %v5222_v9 = vpop.permute.xlu1 %5221  ;;  %12122 = vst [vmem:[#allocation4_spill] sm:$0xff] %v10690_v59 }
 0x5f4   : > { %v5317_v17 = vmul.f32 %v5228_v6, %v10663_v32  ;;  %v5314_v23 = vmul.f32 %v5222_v9, %v10667_v22  ;;  %v4553_v9 = vadd.f32 %v10416_v16, %v10677_v0  ;;  %8226 = vrcp.f32 %v10688_v53 }
 0x5f5   : > { %v8221_v1 = vpop.eup %8220  ;;  %v5315_v16 = vmul.f32 %v10561_v18, %v10690_v59  ;;  %v12123_v18 = vld [vmem:[#allocation9_spill] sm:$0xff]  ;;  %vm4828_vm10 = vweird.f32 %v10688_v53 }
 0x5f6   : > { %5387 = vrot.lane.b32.xlu0 %v5317_v17, %s8472_s21  ;;  %5379 = vrot.lane.b32.xlu1 %v5313_v51, %s8472_s21  ;;  %v7592_v21 = vmul.f32 -1.442695, %v4553_v9  ;;  %v8223_v60 = vpop.eup %8222  ;;  %v4809_v47 = vmul.f32 %v8221_v1, %v10660_v11  ;;  %vm4814_vm5 = vweird.f32 %v8221_v1 }
 0x5f7   : > { %v8225_v54 = vpop.eup %8224  ;;  %v10701_v42 = vadd.f32 1.0, %v8223_v60  ;;  %vm4815_vm7 = vmor %vm4813_vm6, %vm4814_vm5 }
 0x5f8   : > { %v10680_v7 = vpop.f32.mrf.mxu0  ;;  %8228 = vpow2.f32 %v7592_v21  ;;  %v10703_v51 = vadd.f32 1.0, %v8225_v54  ;;  %v4810_v17 = vsub.f32 1.0, %v4809_v47  ;;  %v4817_v54 = vand.u32 2147483647, %v10660_v11 }
 0x5f9   : > { %5381 = vrot.lane.b32.xlu2 %v5314_v23, %s8472_s21  ;;  %8230 = vrcp.f32 %v10701_v42  ;;  %v10709_v23 = vadd.f32 %v10388_v24, %v12123_v18  ;;  %vm4843_vm15 = vweird.f32 %v10701_v42 }
 0x5fa   : > { %v8227_v33 = vpop.eup %8226  ;;  %8232 = vrcp.f32 %v10703_v51  ;;  %v4811_v58 = vmul.f32 %v8221_v1, %v4810_v17  ;;  %v12124_v17 = vld [vmem:[#allocation21_spill] sm:$0xff]  ;;  %vm4818_vm8 = vcmp.eq.f32.partialorder %v4817_v54, 8.507059e+37  ;;  %vm4873_vm2 = vweird.f32 %v10703_v51 }
 0x5fb   : > { %v4824_v52 = vmul.f32 %v8227_v33, %v10688_v53  ;;  %v4555_v48 = vadd.f32 %v10461_v43, %v10709_v23  ;;  %v10731_v18 = vadd.f32 %v10388_v24, %v12124_v17  ;;  %vm4829_vm9 = vweird.f32 %v8227_v33 }
 0x5fc   : > { %v4812_v25 = vadd.f32 %v8221_v1, %v4811_v58  ;;  %vm4830_vm11 = vmor %vm4828_vm10, %vm4829_vm9 }
 0x5fd   : > { %v4825_v21 = vsub.f32 1.0, %v4824_v52  ;;  %v7594_v47 = vmul.f32 -1.442695, %v4555_v48  ;;  %v4556_v17 = vadd.f32 %v10486_v3, %v10731_v18  ;;  %v4832_v3 = vand.u32 2147483647, %v10688_v53 }
 0x5fe   : > { %5251 = vrot.lane.b32.xlu1 %v10680_v7, %s8472_s21  ;;  %v8229_v5 = vpop.eup %8228  ;;  %v4816_v58 = vsel %vm4815_vm7, %v8221_v1, %v4812_v25 }
 0x5ff   : > { %v10720_v9 = vadd.f32 1.0, %v8229_v5  ;;  %v10722_v12 = vpop.eup %8230  ;;  %v10738_v5 = vadd.f32 %v10388_v24, %v10121_v36  ;;  %v4826_v52 = vmul.f32 %v8227_v33, %v4825_v21  ;;  %v7595_v22 = vmul.f32 -1.442695, %v4556_v17 }
 0x600   : > { %v10698_v6 = vpop.f32.mrf.mxu0  ;;  %v10724_v60 = vpop.eup %8232  ;;  %v4839_v43 = vmul.f32 %v10722_v12, %v10701_v42  ;;  %vm4833_vm12 = vcmp.eq.f32.partialorder %v4832_v3, 8.507059e+37  ;;  %vm4844_vm13 = vweird.f32 %v10722_v12 }
 0x601   : > { %5383 = vrot.lane.b32.xlu2 %v5315_v16, %s8472_s21  ;;  %v4819_v16 = vand.u32 2147483648, %v10660_v11  ;;  %8234 = vrcp.f32 %v10720_v9  ;;  %v4869_v11 = vmul.f32 %v10724_v60, %v10703_v51  ;;  %v4557_v32 = vadd.f32 %v10510_v35, %v10738_v5  ;;  %vm10771_vm1 = vmor %vm4843_vm15, %vm4844_vm13 }
 0x602   : > { %8236 = vpow2.f32 %v7594_v47  ;;  %v4840_v44 = vsub.f32 1.0, %v4839_v43  ;;  %v4827_v36 = vadd.f32 %v8227_v33, %v4826_v52  ;;  %vm4874_vm14 = vweird.f32 %v10724_v60 }
 0x603   : > { %v4820_v48 = vor.u32 1.1754944e-38, %v4819_v16  ;;  %v4870_v25 = vsub.f32 1.0, %v4869_v11  ;;  %v4834_v16 = vand.u32 2147483648, %v10688_v53  ;;  %v7596_v54 = vmul.f32 -1.442695, %v4557_v32  ;;  %vm4875_vm3 = vmor %vm4873_vm2, %vm4874_vm14 }
 0x604   : > { %v4841_v35 = vmul.f32 %v10722_v12, %v4840_v44  ;;  %v4831_v43 = vsel %vm4830_vm11, %v8227_v33, %v4827_v36  ;;  %8238 = vpow2.f32 %v7595_v22  ;;  %v4849_v22 = vand.u32 2147483648, %v10701_v42 }
 0x605   : > { %v10746_v59 = vsel %vm4818_vm8, %v4820_v48, %v4816_v58  ;;  %v4835_v52 = vor.u32 1.1754944e-38, %v4834_v16  ;;  %8240 = vpow2.f32 %v7596_v54  ;;  %v4879_v36 = vand.u32 2147483648, %v10703_v51 }
 0x606   : > { %v4842_v32 = vadd.f32 %v10722_v12, %v4841_v35  ;;  %v4877_v16 = vand.u32 2147483647, %v10703_v51  ;;  %vm4858_vm8 = vweird.f32 %v10720_v9 }
 0x607   : > { %v10749_v21 = vpop.eup %8234  ;;  %v10759_v11 = vsel %vm4833_vm12, %v4835_v52, %v4831_v43 }
 0x608   : > { %v10712_v56 = vpop.f32.mrf.mxu0  ;;  %v8237_v47 = vpop.eup %8236  ;;  %v4854_v58 = vmul.f32 %v10749_v21, %v10720_v9  ;;  %12125 = vst [vmem:[#allocation5_spill] sm:$0xff] %v10759_v11  ;;  %v4846_v35 = vsel %vm10771_vm1, %v10722_v12, %v4842_v32  ;;  %vm4878_vm6 = vcmp.eq.f32.partialorder %v4877_v16, 8.507059e+37  ;;  %vm4859_vm7 = vweird.f32 %v10749_v21 }
 0x609   : > { %5253 = vrot.lane.b32.xlu2 %v10698_v6, %s8472_s21  ;;  %5255 = vrot.lane.b32.xlu1 %v10712_v56, %s8472_s21  ;;  %v10761_v53 = vadd.f32 1.0, %v8237_v47  ;;  %vm4860_vm9 = vmor %vm4858_vm8, %vm4859_vm7 }
 0x60a   : > { %v4855_v17 = vsub.f32 1.0, %v4854_v58  ;;  %v8239_v3 = vpop.eup %8238  ;;  %v4880_v58 = vor.u32 1.1754944e-38, %v4879_v36 }
 0x60b   : > { %8242 = vrcp.f32 %v10761_v53  ;;  %v8241_v54 = vpop.eup %8240  ;;  %v10785_v51 = vadd.f32 1.0, %v8239_v3  ;;  %vm4888_vm12 = vweird.f32 %v10761_v53 }
 0x60c   : > { %v4856_v43 = vmul.f32 %v10749_v21, %v4855_v17  ;;  %v10799_v17 = vadd.f32 %v10388_v24, %v10136_v8 }
 0x60d   : > { %8244 = vrcp.f32 %v10785_v51  ;;  %vm4903_vm2 = vweird.f32 %v10785_v51 }
 0x60e   : > { %v4857_v32 = vadd.f32 %v10749_v21, %v4856_v43  ;;  %v4558_v36 = vadd.f32 %v10550_v26, %v10799_v17 }
 0x610   : > { %v4861_v8 = vsel %vm4860_vm9, %v10749_v21, %v4857_v32  ;;  %v7597_v16 = vmul.f32 -1.442695, %v4558_v36  ;;  %v4892_v36 = vand.u32 2147483647, %v10761_v53 }
 0x612   : > { %vm4893_vm14 = vcmp.eq.f32.partialorder %v4892_v36, 8.507059e+37 }
 0x613   : > { %v5230_v29 = vpop.permute.xlu0 %5229 }
 0x614   : > { %v5318_v1 = vmul.f32 %v5230_v29, %v10746_v59  ;;  %v4871_v29 = vmul.f32 %v10724_v60, %v4870_v25  ;;  %v4847_v25 = vand.u32 2147483647, %v10701_v42  ;;  %v4850_v42 = vor.u32 1.1754944e-38, %v4849_v22 }
 0x615   : > { %v4864_v22 = vand.u32 2147483648, %v10720_v9 }
 0x616   : > { %5389 = vrot.lane.b32.xlu1 %v5318_v1, %s8472_s21  ;;  %v4872_v48 = vadd.f32 %v10724_v60, %v4871_v29  ;;  %vm4848_vm5 = vcmp.eq.f32.partialorder %v4847_v25, 8.507059e+37 }
 0x617   : > { %v10787_v52 = vsel %vm4848_vm5, %v4850_v42, %v4846_v35  ;;  %v4865_v25 = vor.u32 1.1754944e-38, %v4864_v22  ;;  %v10817_v42 = vadd.f32 %v10388_v24, %v10145_v15  ;;  %v4894_v15 = vand.u32 2147483648, %v10761_v53 }
 0x618   : > { %v4876_v47 = vsel %vm4875_vm3, %v10724_v60, %v4872_v48  ;;  %v8243_v48 = vpop.eup %8242 }
 0x619   : > { %v4884_v1 = vmul.f32 %v8243_v48, %v10761_v53  ;;  %v8245_v35 = vpop.eup %8244  ;;  %v4559_v26 = vadd.f32 %v10587_v19, %v10817_v42  ;;  %vm4889_vm11 = vweird.f32 %v8243_v48 }
 0x61a   : > { %v4899_v21 = vmul.f32 %v8245_v35, %v10785_v51  ;;  %vm4890_vm13 = vmor %vm4888_vm12, %vm4889_vm11  ;;  %vm4904_vm15 = vweird.f32 %v8245_v35 }
 0x61b   : > { %v5232_v44 = vpop.permute.xlu0 %5231  ;;  %v5238_v29 = vpop.permute.xlu2 %5237  ;;  %vm10839_vm5 = vmor %vm4903_vm2, %vm4904_vm15 }
 0x61c   : > { %v5319_v33 = vmul.f32 %v5232_v44, %v10759_v11  ;;  %v10789_v44 = vadd.f32 1.0, %v8241_v54 }
 0x61e   : > { %5391 = vrot.lane.b32.xlu2 %v5319_v33, %s8472_s21  ;;  %v10791_v33 = vsel %vm4878_vm6, %v4880_v58, %v4876_v47  ;;  %8246 = vrcp.f32 %v10789_v44  ;;  %vm4918_vm3 = vweird.f32 %v10789_v44 }
 0x61f   : > { %v5322_v12 = vmul.f32 %v5238_v29, %v10791_v33  ;;  %8248 = vpow2.f32 %v7597_v16  ;;  %v4895_v16 = vor.u32 1.1754944e-38, %v4894_v15 }
 0x623   : > { %v5234_v11 = vpop.permute.xlu1 %5233 }
 0x624   : > { %v5320_v60 = vmul.f32 %v5234_v11, %v10787_v52  ;;  %v4862_v11 = vand.u32 2147483647, %v10720_v9  ;;  %v4885_v9 = vsub.f32 1.0, %v4884_v1  ;;  %v8247_v43 = vpop.eup %8246 }
 0x625   : > { %v4914_v29 = vmul.f32 %v8247_v43, %v10789_v44  ;;  %vm4919_vm1 = vweird.f32 %v8247_v43 }
 0x626   : > { %5393 = vrot.lane.b32.xlu0 %v5320_v60, %s8472_s21  ;;  %5397 = vrot.lane.b32.xlu2 %v5322_v12, %s8472_s21  ;;  %vm4863_vm10 = vcmp.eq.f32.partialorder %v4862_v11, 8.507059e+37  ;;  %v4886_v58 = vmul.f32 %v8243_v48, %v4885_v9  ;;  %v7598_v12 = vmul.f32 -1.442695, %v4559_v26  ;;  %v4900_v60 = vsub.f32 1.0, %v4899_v21  ;;  %v8249_v11 = vpop.eup %8248  ;;  %vm4920_vm6 = vmor %vm4918_vm3, %vm4919_vm1 }
 0x627   : > { %v10812_v54 = vsel %vm4863_vm10, %v4865_v25, %v4861_v8  ;;  %v4915_v32 = vsub.f32 1.0, %v4914_v29  ;;  %v10827_v8 = vadd.f32 1.0, %v8249_v11  ;;  %v4924_v29 = vand.u32 2147483648, %v10789_v44 }
 0x628   : > { %v4887_v22 = vadd.f32 %v8243_v48, %v4886_v58  ;;  %8250 = vpow2.f32 %v7598_v12  ;;  %v4901_v19 = vmul.f32 %v8245_v35, %v4900_v60  ;;  %v4922_v58 = vand.u32 2147483647, %v10789_v44 }
 0x629   : > { %v4916_v1 = vmul.f32 %v8247_v43, %v4915_v32  ;;  %8252 = vrcp.f32 %v10827_v8  ;;  %v4907_v60 = vand.u32 2147483647, %v10785_v51  ;;  %v4925_v36 = vor.u32 1.1754944e-38, %v4924_v29 }
 0x62a   : > { %v4891_v25 = vsel %vm4890_vm13, %v8243_v48, %v4887_v22  ;;  %v4902_v9 = vadd.f32 %v8245_v35, %v4901_v19  ;;  %v4909_v48 = vand.u32 2147483648, %v10785_v51  ;;  %vm4923_vm7 = vcmp.eq.f32.partialorder %v4922_v58, 8.507059e+37 }
 0x62b   : > { %v5236_v3 = vpop.permute.xlu1 %5235  ;;  %v4917_v26 = vadd.f32 %v8247_v43, %v4916_v1  ;;  %vm4908_vm8 = vcmp.eq.f32.partialorder %v4907_v60, 8.507059e+37  ;;  %v10850_v44 = vadd.f32 %v10388_v24, %v10160_v2  ;;  %vm4933_vm10 = vweird.f32 %v10827_v8 }
 0x62c   : > { %v5321_v47 = vmul.f32 %v5236_v3, %v10812_v54  ;;  %v4906_v11 = vsel %vm10839_vm5, %v8245_v35, %v4902_v9  ;;  %v4910_v19 = vor.u32 1.1754944e-38, %v4909_v48 }
 0x62d   : > { %v4921_v22 = vsel %vm4920_vm6, %v8247_v43, %v4917_v26 }
 0x62e   : > { %5395 = vrot.lane.b32.xlu1 %v5321_v47, %s8472_s21  ;;  %v10829_v47 = vsel %vm4893_vm14, %v4895_v16, %v4891_v25  ;;  %v8251_v21 = vpop.eup %8250  ;;  %v10852_v25 = vsel %vm4923_vm7, %v4925_v36, %v4921_v22  ;;  %v10854_v16 = vsel %vm4908_vm8, %v4910_v19, %v4906_v11  ;;  %v4939_v22 = vand.u32 2147483648, %v10827_v8 }
 0x62f   : > { %v10844_v32 = vadd.f32 1.0, %v8251_v21  ;;  %v8253_v1 = vpop.eup %8252  ;;  %v10866_v21 = vadd.f32 %v10388_v24, %v10180_v27  ;;  %v4937_v27 = vand.u32 2147483647, %v10827_v8 }
 0x630   : > { %v4929_v9 = vmul.f32 %v8253_v1, %v10827_v8  ;;  %vm4934_vm9 = vweird.f32 %v8253_v1 }
 0x631   : > { %8254 = vrcp.f32 %v10844_v32  ;;  %vm4935_vm11 = vmor %vm4933_vm10, %vm4934_vm9  ;;  %vm4938_vm12 = vcmp.eq.f32.partialorder %v4937_v27, 8.507059e+37  ;;  %vm4948_vm14 = vweird.f32 %v10844_v32 }
 0x632   : > { %v4930_v26 = vsub.f32 1.0, %v4929_v9 }
 0x633   : > { %v5244_v15 = vpop.permute.xlu2 %5243 }
 0x634   : > { %v5325_v43 = vmul.f32 %v5244_v15, %v10852_v25  ;;  %v4931_v29 = vmul.f32 %v8253_v1, %v4930_v26 }
 0x636   : > { %v4932_v12 = vadd.f32 %v8253_v1, %v4931_v29 }
 0x638   : > { %v4936_v36 = vsel %vm4935_vm11, %v8253_v1, %v4932_v12  ;;  %v4954_v1 = vand.u32 2147483648, %v10844_v32 }
 0x63b   : > { %v5240_v3 = vpop.permute.xlu0 %5239 }
 0x63c   : > { %v5323_v53 = vmul.f32 %v5240_v3, %v10829_v47  ;;  %v4560_v3 = vadd.f32 %v10639_v57, %v10850_v44  ;;  %v4561_v57 = vadd.f32 %v10680_v7, %v10866_v21  ;;  %v4940_v7 = vor.u32 1.1754944e-38, %v4939_v22 }
 0x63e   : > { %5399 = vrot.lane.b32.xlu1 %v5323_v53, %s8472_s21  ;;  %v7599_v2 = vmul.f32 -1.442695, %v4560_v3  ;;  %v8255_v53 = vpop.eup %8254  ;;  %v7600_v15 = vmul.f32 -1.442695, %v4561_v57 }
 0x63f   : > { %v4944_v48 = vmul.f32 %v8255_v53, %v10844_v32  ;;  %vm4949_vm13 = vweird.f32 %v8255_v53 }
 0x640   : > { %8256 = vpow2.f32 %v7599_v2  ;;  %v10879_v2 = vsel %vm4938_vm12, %v4940_v7, %v4936_v36  ;;  %vm4950_vm15 = vmor %vm4948_vm14, %vm4949_vm13 }
 0x641   : > { %v4945_v60 = vsub.f32 1.0, %v4944_v48  ;;  %8258 = vpow2.f32 %v7600_v15 }
 0x643   : > { %v5242_v51 = vpop.permute.xlu1 %5241  ;;  %v4946_v19 = vmul.f32 %v8255_v53, %v4945_v60 }
 0x644   : > { %v5324_v35 = vmul.f32 %v5242_v51, %v10854_v16 }
 0x645   : > { %v4947_v29 = vadd.f32 %v8255_v53, %v4946_v19 }
 0x646   : > { %5401 = vrot.lane.b32.xlu2 %v5324_v35, %s8472_s21  ;;  %5403 = vrot.lane.b32.xlu1 %v5325_v43, %s8472_s21  ;;  %v8257_v11 = vpop.eup %8256 }
 0x647   : > { %v10874_v51 = vadd.f32 1.0, %v8257_v11  ;;  %v8259_v48 = vpop.eup %8258  ;;  %v4951_v57 = vsel %vm4950_vm15, %v8255_v53, %v4947_v29 }
 0x648   : > { %v10890_v12 = vadd.f32 1.0, %v8259_v48 }
 0x649   : > { %8260 = vrcp.f32 %v10874_v51  ;;  %vm4963_vm3 = vweird.f32 %v10874_v51 }
 0x64a   : > { %vm4978_vm8 = vweird.f32 %v10890_v12 }
 0x64b   : > { %v10876_v43 = vpop.permute.xlu2 %5249 }
 0x650   : > { %v5376_v58 = vpop.permute.xlu0 %5375 }
 0x651   : > { %v5471_v35 = vadd.f32 %v5376_v58, %v10392_v61  ;;  %v4952_v61 = vand.u32 2147483647, %v10844_v32  ;;  %v10888_v58 = vpop.eup %8260  ;;  %v10901_v32 = vadd.f32 %v10388_v24, %v10208_v41  ;;  %v8392_v41 = vld [vmem:[%s8952_s0 + $0x58] sm:$0xff] }
 0x652   : > { %v4959_v53 = vmul.f32 %v10888_v58, %v10874_v51  ;;  %vm4964_vm2 = vweird.f32 %v10888_v58 }
 0x653   : > { %vm4953_vm1 = vcmp.eq.f32.partialorder %v4952_v61, 8.507059e+37  ;;  %v5382_v60 = vpop.permute.xlu2 %5381  ;;  %v4563_v19 = vadd.f32 %v10712_v56, %v10901_v32  ;;  %vm4965_vm5 = vmor %vm4963_vm3, %vm4964_vm2 }
 0x654   : > { %v5474_v7 = vadd.f32 %v5382_v60, %v10450_v30  ;;  %v10921_v30 = vadd.f32 %v10388_v24, %v10190_v20  ;;  %v4969_v20 = vand.u32 2147483648, %v10874_v51  ;;  %v8393_v24 = vld [vmem:[%s8952_s0 + $0x68] sm:$0xff] }
 0x655   : > { %v7602_v61 = vmul.f32 -1.442695, %v4563_v19 }
 0x656   : > { %v4562_v48 = vadd.f32 %v10698_v6, %v10921_v30  ;;  %v4967_v6 = vand.u32 2147483647, %v10874_v51 }
 0x658   : > { %v5378_v3 = vpop.permute.xlu1 %5377  ;;  %v5246_v9 = vpop.permute.xlu0 %5245  ;;  %vm4968_vm6 = vcmp.eq.f32.partialorder %v4967_v6, 8.507059e+37 }
 0x659   : > { %v5472_v26 = vadd.f32 %v5378_v3, %v10405_v50  ;;  %v5326_v8 = vmul.f32 %v5246_v9, %v10879_v2  ;;  %v4955_v50 = vor.u32 1.1754944e-38, %v4954_v1  ;;  %v10908_v3 = vpop.f32.mrf.mxu0  ;;  %v4960_v9 = vsub.f32 1.0, %v4959_v53 }
 0x65b   : > { %8262 = vtanh.f32 %v5472_v26  ;;  %5405 = vrot.lane.b32.xlu2 %v5326_v8, %s8472_s21  ;;  %v10892_v11 = vsel %vm4953_vm1, %v4955_v50, %v4951_v57  ;;  %v5384_v29 = vpop.permute.xlu2 %5383 }
 0x65c   : > { %8264 = vtanh.f32 %v5471_v35  ;;  %v5475_v57 = vadd.f32 %v5384_v29, %v10467_v37 }
 0x65d   : > { %8266 = vrcp.f32 %v10890_v12 }
 0x65e   : > { %8268 = vtanh.f32 %v5474_v7 }
 0x660   : > { %v5248_v22 = vpop.permute.xlu1 %5247  ;;  %v10913_v1 = vpop.permute.xlu0 %5385 }
 0x661   : > { %v8263_v15 = vpop.eup %8262  ;;  %v5327_v27 = vmul.f32 %v5248_v22, %v10892_v11  ;;  %v5476_v6 = vadd.f32 %v10913_v1, %v10414_v38 }
 0x662   : > { %v8265_v36 = vpop.eup %8264  ;;  %5601 = vrot.lane.b32.xlu0 %v8263_v15, %s8473_s29 }
 0x663   : > { %5599 = vrot.lane.b32.xlu2 %v8265_v36, %s8473_s29  ;;  %5407 = vrot.lane.b32.xlu1 %v5327_v27, %s8472_s21  ;;  %v10911_v8 = vpop.eup %8266  ;;  %v7601_v27 = vmul.f32 -1.442695, %v4562_v48  ;;  %v10938_v37 = vpop.permute.xlu2 %5253 }
 0x664   : > { %v4974_v56 = vmul.f32 %v10911_v8, %v10890_v12  ;;  %v8269_v50 = vpop.eup %8268  ;;  %vm4979_vm7 = vweird.f32 %v10911_v8 }
 0x665   : > { %vm4980_vm9 = vmor %vm4978_vm8, %vm4979_vm7 }
 0x666   : > { %v4975_v22 = vsub.f32 1.0, %v4974_v56 }
 0x668   : > { %v5380_v35 = vpop.permute.xlu1 %5379  ;;  %v5388_v36 = vpop.permute.xlu0 %5387  ;;  %v4976_v7 = vmul.f32 %v10911_v8, %v4975_v22 }
 0x669   : > { %v5473_v26 = vadd.f32 %v5380_v35, %v10434_v13  ;;  %v4961_v13 = vmul.f32 %v10888_v58, %v4960_v9  ;;  %v10942_v35 = vpop.f32.mrf.mxu0  ;;  %v4970_v9 = vor.u32 1.1754944e-38, %v4969_v20  ;;  %v5477_v51 = vadd.f32 %v5388_v36, %v10439_v10 }
 0x66a   : > { %5781 = vrot.lane.b32.xlu0 %v8392_v41, %s8471_s27  ;;  %v4982_v10 = vand.u32 2147483647, %v10890_v12 }
 0x66b   : > { %5257 = vrot.lane.b32.xlu2 %v10908_v3, %s8472_s21  ;;  %8270 = vtanh.f32 %v5473_v26  ;;  %v4962_v60 = vadd.f32 %v10888_v58, %v4961_v13  ;;  %v4977_v13 = vadd.f32 %v10911_v8, %v4976_v7 }
 0x66c   : > { %8272 = vpow2.f32 %v7602_v61  ;;  %vm4983_vm10 = vcmp.eq.f32.partialorder %v4982_v10, 8.507059e+37 }
 0x66d   : > { %8274 = vtanh.f32 %v5475_v57  ;;  %v4966_v19 = vsel %vm4965_vm5, %v10888_v58, %v4962_v60  ;;  %v4984_v58 = vand.u32 2147483648, %v10890_v12  ;;  %v4981_v48 = vsel %vm4980_vm9, %v10911_v8, %v4977_v13  ;;  %v8394_v8 = vld [vmem:[%s8952_s0 + $0x50] sm:$0xff] }
 0x66e   : > { %8276 = vpow2.f32 %v7601_v27  ;;  %v10947_v29 = vsel %vm4968_vm6, %v4970_v9, %v4966_v19  ;;  %v7754_v9 = vld [vmem:[%s11940_s13] sm:$0xff] }
 0x66f   : > { %v5328_v61 = vmul.f32 %v10876_v43, %v10947_v29  ;;  %8278 = vtanh.f32 %v5477_v51 }
 0x670   : > { %v5252_v57 = vpop.permute.xlu1 %5251 }
 0x671   : > { %v8271_v15 = vpop.eup %8270  ;;  %v10965_v12 = vpop.f32.mrf.mxu0 }
 0x672   : > { %5785 = vrot.lane.b32.xlu0 %v8393_v24, %s8471_s27  ;;  %5603 = vrot.lane.b32.xlu1 %v8271_v15, %s8473_s29  ;;  %v8273_v53 = vpop.eup %8272 }
 0x673   : > { %5605 = vrot.lane.b32.xlu2 %v8269_v50, %s8473_s29  ;;  %v10945_v26 = vadd.f32 1.0, %v8273_v53  ;;  %v8275_v41 = vpop.eup %8274  ;;  %v4985_v50 = vor.u32 1.1754944e-38, %v4984_v58 }
 0x674   : > { %v8277_v56 = vpop.eup %8276 }
 0x675   : > { %8280 = vrcp.f32 %v10945_v26  ;;  %v10963_v22 = vadd.f32 1.0, %v8277_v56  ;;  %v10967_v15 = vsel %vm4983_vm10, %v4985_v50, %v4981_v48  ;;  %v8279_v20 = vpop.eup %8278  ;;  %v5014_v56 = vand.u32 2147483648, %v10945_v26  ;;  %v8396_v50 = vld [vmem:[%s8952_s0 + $0x60] sm:$0xff] }
 0x676   : > { %v5329_v24 = vmul.f32 %v5252_v57, %v10967_v15  ;;  %vm5008_vm12 = vweird.f32 %v10945_v26  ;;  %v5012_v57 = vand.u32 2147483647, %v10945_v26 }
 0x677   : > { %vm4993_vm1 = vweird.f32 %v10963_v22 }
 0x678   : > { %v5392_v43 = vpop.permute.xlu2 %5391  ;;  %vm5013_vm14 = vcmp.eq.f32.partialorder %v5012_v57, 8.507059e+37 }
 0x679   : > { %v5479_v60 = vadd.f32 %v5392_v43, %v10581_v46  ;;  %v10978_v7 = vpop.f32.mrf.mxu0 }
 0x67a   : > { %5607 = vrot.lane.b32.xlu0 %v8275_v41, %s8473_s29  ;;  %5259 = vrot.lane.b32.xlu1 %v10942_v35, %s8472_s21  ;;  %v6050_v41 = vsel %vm1680_vm0, %v7754_v9, 0 }
 0x67b   : > { %5409 = vrot.lane.b32.xlu2 %v5328_v61, %s8472_s21  ;;  %v8281_v27 = vpop.eup %8280  ;;  %8282 = vtanh.f32 %v5479_v60  ;;  %v5256_v1 = vpop.permute.xlu1 %5255  ;;  %6062 = vmatpush.bf16.xpose.msrb.mxu1 %v6050_v41  ;;  %v10993_v61 = vld [vmem:[%s11938_s11] ss:$0 sm:$0xff] }
 0x67c   : > { %8284 = vrcp.f32 %v10963_v22  ;;  %v5004_v46 = vmul.f32 %v8281_v27, %v10945_v26  ;;  %v10997_v13 = vadd.f32 %v10993_v61, %v10226_v14  ;;  %vm5009_vm11 = vweird.f32 %v8281_v27 }
 0x67d   : > { %8286 = vtanh.f32 %v5476_v6  ;;  %vm5010_vm13 = vmor %vm5008_vm12, %vm5009_vm11 }
 0x67e   : > { %v5005_v53 = vsub.f32 1.0, %v5004_v46  ;;  %v4564_v48 = vadd.f32 %v10908_v3, %v10997_v13 }
 0x680   : > { %v5006_v51 = vmul.f32 %v8281_v27, %v5005_v53  ;;  %v4999_v53 = vand.u32 2147483648, %v10963_v22 }
 0x681   : > { %v8283_v36 = vpop.eup %8282 }
 0x682   : > { %5611 = vrot.lane.b32.xlu0 %v8279_v20, %s8473_s29  ;;  %5411 = vrot.lane.b32.xlu1 %v5329_v24, %s8472_s21  ;;  %v8285_v19 = vpop.eup %8284  ;;  %v5007_v10 = vadd.f32 %v8281_v27, %v5006_v51  ;;  %v5015_v24 = vor.u32 1.1754944e-38, %v5014_v56  ;;  %v5398_v56 = vpop.permute.xlu2 %5397 }
 0x683   : > { %5779 = vrot.lane.b32.xlu2 %v8394_v8, %s8471_s27  ;;  %v4989_v38 = vmul.f32 %v8285_v19, %v10963_v22  ;;  %v8287_v43 = vpop.eup %8286  ;;  %v7603_v8 = vmul.f32 -1.442695, %v4564_v48  ;;  %vm4994_vm15 = vweird.f32 %v8285_v19 }
 0x684   : > { %v5011_v60 = vsel %vm5010_vm13, %v8281_v27, %v5007_v10  ;;  %v4997_v27 = vand.u32 2147483647, %v10963_v22  ;;  %vm4995_vm2 = vmor %vm4993_vm1, %vm4994_vm15 }
 0x685   : > { %v4990_v58 = vsub.f32 1.0, %v4989_v38  ;;  %v11007_v46 = vsel %vm5013_vm14, %v5015_v24, %v5011_v60  ;;  %8288 = vpow2.f32 %v7603_v8  ;;  %v5000_v38 = vor.u32 1.1754944e-38, %v4999_v53 }
 0x686   : > { %v5331_v26 = vmul.f32 %v5256_v1, %v11007_v46  ;;  %vm4998_vm3 = vcmp.eq.f32.partialorder %v4997_v27, 8.507059e+37  ;;  %v11033_v60 = vadd.f32 %v10993_v61, %v10249_v45  ;;  %v11042_v45 = vadd.f32 %v10993_v61, %v10237_v62 }
 0x687   : > { %v4991_v14 = vmul.f32 %v8285_v19, %v4990_v58 }
 0x688   : > { %v5390_v20 = vpop.permute.xlu1 %5389  ;;  %v4566_v8 = vadd.f32 %v10965_v12, %v11033_v60 }
 0x689   : > { %v5478_v3 = vadd.f32 %v5390_v20, %v10544_v39  ;;  %v4992_v6 = vadd.f32 %v8285_v19, %v4991_v14 }
 0x68a   : > { %5615 = vrot.lane.b32.xlu0 %v8283_v36, %s8473_s29  ;;  %5263 = vrot.lane.b32.xlu1 %v10978_v7, %s8472_s21  ;;  %v11011_v36 = vpop.f32.mrf.mxu0 }
 0x68b   : > { %5261 = vrot.lane.b32.xlu2 %v10965_v12, %s8472_s21  ;;  %8290 = vtanh.f32 %v5478_v3  ;;  %v4996_v9 = vsel %vm4995_vm2, %v8285_v19, %v4992_v6  ;;  %v8289_v58 = vpop.eup %8288  ;;  %v4565_v12 = vadd.f32 %v10942_v35, %v11042_v45 }
 0x68c   : > { %v11020_v51 = vsel %vm4998_vm3, %v5000_v38, %v4996_v9  ;;  %v4692_v19 = vadd.f32 1.0, %v8289_v58 }
 0x68d   : > { %v5330_v22 = vmul.f32 %v10938_v37, %v11020_v51  ;;  %v7604_v38 = vmul.f32 -1.442695, %v4565_v12 }
 0x68e   : > { %vm5023_vm6 = vweird.f32 %v4692_v19 }
 0x692   : > { %5609 = vrot.lane.b32.xlu1 %v8287_v43, %s8473_s29  ;;  %v8291_v43 = vpop.eup %8290 }
 0x693   : > { %5783 = vrot.lane.b32.xlu2 %v8396_v50, %s8471_s27 }
 0x698   : > { %v5394_v39 = vpop.permute.xlu0 %5393 }
 0x699   : > { %v5480_v1 = vadd.f32 %v5394_v39, %v10605_v63  ;;  %v5482_v63 = vadd.f32 %v5398_v56, %v10611_v40 }
 0x69a   : > { %5415 = vrot.lane.b32.xlu1 %v5331_v26, %s8472_s21  ;;  %v7605_v26 = vmul.f32 -1.442695, %v4566_v8 }
 0x69b   : > { %5265 = vrot.lane.b32.xlu2 %v11011_v36, %s8472_s21  ;;  %8292 = vtanh.f32 %v5480_v1  ;;  %v5027_v1 = vand.u32 2147483647, %v4692_v19 }
 0x69d   : > { %vm5028_vm8 = vcmp.eq.f32.partialorder %v5027_v1, 8.507059e+37 }
 0x6a0   : > { %v5396_v41 = vpop.permute.xlu1 %5395 }
 0x6a1   : > { %v5481_v10 = vadd.f32 %v5396_v41, %v10677_v0  ;;  %v8293_v48 = vpop.eup %8292  ;;  %v5402_v0 = vpop.permute.xlu2 %5401 }
 0x6a2   : > { %5613 = vrot.lane.b32.xlu1 %v8291_v43, %s8473_s29  ;;  %v5484_v50 = vadd.f32 %v5402_v0, %v10731_v18 }
 0x6a3   : > { %5413 = vrot.lane.b32.xlu2 %v5330_v22, %s8472_s21  ;;  %8294 = vtanh.f32 %v5481_v10 }
 0x6a4   : > { %8296 = vrcp.f32 %v4692_v19 }
 0x6a5   : > { %8298 = vtanh.f32 %v5482_v63  ;;  %v11058_v63 = vadd.f32 %v10993_v61, %v10268_v34  ;;  %v11072_v34 = vadd.f32 %v10993_v61, %v10252_v49  ;;  %v5856_v49 = vmul.f32 %v10454_v55, %v10557_v4 }
 0x6a9   : > { %v8295_v57 = vpop.eup %8294 }
 0x6aa   : > { %5619 = vrot.lane.b32.xlu0 %v8295_v57, %s8473_s29  ;;  %5617 = vrot.lane.b32.xlu1 %v8293_v48, %s8473_s29  ;;  %v8297_v37 = vpop.eup %8296  ;;  %v11060_v48 = vpop.f32.mrf.mxu0  ;;  %v4568_v57 = vadd.f32 %v11011_v36, %v11058_v63  ;;  %v4567_v36 = vadd.f32 %v10978_v7, %v11072_v34 }
 0x6ab   : > { %v8299_v40 = vpop.eup %8298  ;;  %v5019_v24 = vmul.f32 %v8297_v37, %v4692_v19  ;;  %vm5024_vm5 = vweird.f32 %v8297_v37 }
 0x6ac   : > { %vm5025_vm7 = vmor %vm5023_vm6, %vm5024_vm5 }
 0x6ad   : > { %v5020_v6 = vsub.f32 1.0, %v5019_v24 }
 0x6b0   : > { %v5400_v14 = vpop.permute.xlu1 %5399 }
 0x6b1   : > { %v5483_v20 = vadd.f32 %v5400_v14, %v10709_v23  ;;  %v5021_v23 = vmul.f32 %v8297_v37, %v5020_v6  ;;  %v7607_v14 = vmul.f32 -1.442695, %v4568_v57 }
 0x6b2   : > { %5621 = vrot.lane.b32.xlu1 %v8299_v40, %s8473_s29  ;;  %v5535_v40 = vsub.f32 1.0, %v10517_v28  ;;  %v11088_v7 = vpop.f32.mrf.mxu0 }
 0x6b3   : > { %8300 = vtanh.f32 %v5483_v20  ;;  %v5022_v9 = vadd.f32 %v8297_v37, %v5021_v23  ;;  %v8397_v20 = vld [vmem:[%s8952_s0 + $0x70] sm:$0xff] }
 0x6b4   : > { %8302 = vtanh.f32 %v5484_v50 }
 0x6b5   : > { %v5406_v3 = vpop.permute.xlu2 %5405  ;;  %8304 = vpow2.f32 %v7605_v26  ;;  %v5026_v58 = vsel %vm5025_vm7, %v8297_v37, %v5022_v9  ;;  %v5855_v26 = vmul.f32 %v10515_v31, %v10517_v28  ;;  %v7606_v9 = vmul.f32 -1.442695, %v4567_v36 }
 0x6b6   : > { %v5486_v18 = vadd.f32 %v5406_v3, %v10799_v17  ;;  %v5029_v17 = vand.u32 2147483648, %v4692_v19  ;;  %v5536_v3 = vsub.f32 1.0, %v10557_v4 }
 0x6b8   : > { %8306 = vtanh.f32 %v5486_v18  ;;  %v5030_v22 = vor.u32 1.1754944e-38, %v5029_v17  ;;  %v5404_v18 = vpop.permute.xlu1 %5403 }
 0x6b9   : > { %v8301_v53 = vpop.eup %8300  ;;  %8308 = vpow2.f32 %v7604_v38  ;;  %v5485_v38 = vadd.f32 %v5404_v18, %v10738_v5 }
 0x6ba   : > { %v8303_v27 = vpop.eup %8302  ;;  %5623 = vrot.lane.b32.xlu0 %v8301_v53, %s8473_s29  ;;  %v11051_v43 = vsel %vm5028_vm8, %v5030_v22, %v5026_v58 }
 0x6bb   : > { %5625 = vrot.lane.b32.xlu1 %v8303_v27, %s8473_s29  ;;  %v8305_v41 = vpop.eup %8304 }
 0x6bc   : > { %v11049_v10 = vadd.f32 1.0, %v8305_v41 }
 0x6bd   : > { %v5600_v39 = vpop.permute.xlu2 %5599 }
 0x6be   : > { %v8307_v62 = vpop.eup %8306  ;;  %8310 = vrcp.f32 %v11049_v10  ;;  %v5695_v8 = vmul.f32 %v5600_v39, %v5535_v40  ;;  %v5059_v22 = vand.u32 2147483648, %v11049_v10  ;;  %vm5053_vm10 = vweird.f32 %v11049_v10 }
 0x6bf   : > { %v8309_v19 = vpop.eup %8308 }
 0x6c0   : > { %v11066_v0 = vadd.f32 1.0, %v8309_v19  ;;  %v11090_v39 = vadd.f32 %v5855_v26, %v5695_v8  ;;  %v5060_v36 = vor.u32 1.1754944e-38, %v5059_v22 }
 0x6c2   : > { %8312 = vrcp.f32 %v11066_v0  ;;  %vm5038_vm14 = vweird.f32 %v11066_v0 }
 0x6c3   : > { %5629 = vrot.lane.b32.xlu1 %v8307_v62, %s8473_s29  ;;  %8314 = vpow2.f32 %v7607_v14  ;;  %v12132_v14 = vld [vmem:[#allocation40_spill] sm:$0xff] }
 0x6c4   : > { %v8311_v50 = vpop.eup %8310  ;;  %8316 = vpow2.f32 %v7606_v9 }
 0x6c5   : > { %v5258_v35 = vpop.permute.xlu2 %5257  ;;  %v5049_v24 = vmul.f32 %v8311_v50, %v11049_v10  ;;  %8318 = vtanh.f32 %v5485_v38  ;;  %vm5054_vm9 = vweird.f32 %v8311_v50 }
 0x6c6   : > { %v5332_v56 = vmul.f32 %v5258_v35, %v11051_v43  ;;  %v5057_v35 = vand.u32 2147483647, %v11049_v10  ;;  %vm11112_vm11 = vmor %vm5053_vm10, %vm5054_vm9  ;;  %v12133_v10 = vld [vmem:[#allocation39_spill] sm:$0xff] }
 0x6c7   : > { %v5050_v23 = vsub.f32 1.0, %v5049_v24 }
 0x6c8   : > { %5417 = vrot.lane.b32.xlu2 %v5332_v56, %s8472_s21  ;;  %v11086_v12 = vpop.eup %8312  ;;  %vm5058_vm12 = vcmp.eq.f32.partialorder %v5057_v35, 8.507059e+37 }
 0x6c9   : > { %v8315_v31 = vpop.eup %8314  ;;  %v5051_v28 = vmul.f32 %v8311_v50, %v5050_v23  ;;  %v5034_v4 = vmul.f32 %v11086_v12, %v11066_v0  ;;  %vm5039_vm13 = vweird.f32 %v11086_v12 }
 0x6ca   : > { %v11102_v1 = vadd.f32 1.0, %v8315_v31  ;;  %v8317_v56 = vpop.eup %8316  ;;  %vm5040_vm15 = vmor %vm5038_vm14, %vm5039_vm13 }
 0x6cb   : > { %5267 = vrot.lane.b32.xlu1 %v11060_v48, %s8472_s21  ;;  %v5052_v62 = vadd.f32 %v8311_v50, %v5051_v28  ;;  %v5035_v58 = vsub.f32 1.0, %v5034_v4  ;;  %v8319_v57 = vpop.eup %8318  ;;  %v5044_v28 = vand.u32 2147483648, %v11066_v0 }
 0x6cc   : > { %8320 = vrcp.f32 %v11102_v1  ;;  %vm5083_vm3 = vweird.f32 %v11102_v1 }
 0x6cd   : > { %v5606_v37 = vpop.permute.xlu2 %5605  ;;  %v5056_v40 = vsel %vm11112_vm11, %v8311_v50, %v5052_v62  ;;  %v5036_v24 = vmul.f32 %v11086_v12, %v5035_v58  ;;  %v5042_v58 = vand.u32 2147483647, %v11066_v0  ;;  %v5045_v19 = vor.u32 1.1754944e-38, %v5044_v28 }
 0x6ce   : > { %v11128_v50 = vsel %vm5058_vm12, %v5060_v36, %v5056_v40 }
 0x6cf   : > { %vm5043_vm1 = vcmp.eq.f32.partialorder %v5042_v58, 8.507059e+37 }
 0x6d0   : > { %5787 = vrot.lane.b32.xlu2 %v8397_v20, %s8471_s27  ;;  %v5538_v20 = vsub.f32 1.0, %v12132_v14 }
 0x6d2   : > { %v5698_v8 = vmul.f32 %v5606_v37, %v5538_v20  ;;  %v5037_v37 = vadd.f32 %v11086_v12, %v5036_v24  ;;  %v8321_v31 = vpop.eup %8320 }
 0x6d3   : > { %vm5084_vm2 = vweird.f32 %v8321_v31 }
 0x6d4   : > { %v5602_v6 = vpop.permute.xlu0 %5601  ;;  %v5041_v35 = vsel %vm5040_vm15, %v11086_v12, %v5037_v37  ;;  %v5087_v37 = vand.u32 2147483647, %v11102_v1  ;;  %vm5085_vm5 = vmor %vm5083_vm3, %vm5084_vm2 }
 0x6d5   : > { %v5696_v53 = vmul.f32 %v5602_v6, %v5536_v3  ;;  %v11084_v27 = vpop.permute.xlu2 %5409  ;;  %v11104_v41 = vpop.permute.xlu1 %5407  ;;  %v5537_v3 = vsub.f32 1.0, %v12133_v10  ;;  %v12134_v6 = vld [vmem:[#allocation13_spill] sm:$0xff]  ;;  %v11153_v40 = vsel %vm5043_vm1, %v5045_v19, %v5041_v35  ;;  %v12137_v19 = vld [vmem:[#allocation12_spill] sm:$0xff] }
 0x6d6   : > { %v5857_v26 = vmul.f32 %v12134_v6, %v12133_v10  ;;  %v5488_v0 = vadd.f32 %v11084_v27, %v10850_v44  ;;  %v8398_v10 = vld [vmem:[%s8952_s0 + $0x80] sm:$0xff]  ;;  %v8399_v27 = vld [vmem:[%s8952_s0 + $0x78] sm:$0xff]  ;;  %vm5088_vm6 = vcmp.eq.f32.partialorder %v5087_v37, 8.507059e+37 }
 0x6d7   : > { %v11092_v17 = vadd.f32 %v5856_v49, %v5696_v53  ;;  %v12135_v49 = vld [vmem:[#allocation38_spill] sm:$0xff]  ;;  %v11126_v53 = vadd.f32 1.0, %v8317_v56  ;;  %v5079_v56 = vmul.f32 %v8321_v31, %v11102_v1 }
 0x6d8   : > { %5269 = vrot.lane.b32.xlu2 %v11088_v7, %s8472_s21  ;;  %v5858_v18 = vmul.f32 %v12135_v49, %v12132_v14 }
 0x6d9   : > { %v5919_v55 = vpack.c.bf16 %v11092_v17, %v11090_v39  ;;  %8322 = vrcp.f32 %v11126_v53  ;;  %v5080_v36 = vsub.f32 1.0, %v5079_v56  ;;  %vm5068_vm8 = vweird.f32 %v11126_v53 }
 0x6da   : > { %v11134_v4 = vadd.f32 %v5858_v18, %v5698_v8  ;;  %8324 = vtanh.f32 %v5488_v0  ;;  %v11180_v0 = vadd.f32 %v10993_v61, %v12137_v19 }
 0x6db   : > { %5959 = vrot.lane.b32.xlu0 %v5919_v55, %s8473_s29 }
 0x6dc   : > { %v11151_v14 = vpop.permute.xlu0 %5781 }
 0x6dd   : > { %v11106_v5 = vpop.permute.xlu2 %5779 }
 0x6df   : > { %v8323_v8 = vpop.eup %8322 }
 0x6e0   : > { %v5064_v44 = vmul.f32 %v8323_v8, %v11126_v53  ;;  %v8325_v18 = vpop.eup %8324  ;;  %vm5069_vm7 = vweird.f32 %v8323_v8 }
 0x6e1   : > { %vm5070_vm9 = vmor %vm5068_vm8, %vm5069_vm7 }
 0x6e2   : > { %v5065_v49 = vsub.f32 1.0, %v5064_v44 }
 0x6e3   : > { %5627 = vrot.lane.b32.xlu0 %v8319_v57, %s8473_s29  ;;  %v11146_v57 = vpop.f32.mrf.mxu0 }
 0x6e4   : > { %v5604_v23 = vpop.permute.xlu1 %5603  ;;  %v5066_v58 = vmul.f32 %v8323_v8, %v5065_v49 }
 0x6e5   : > { %v5262_v9 = vpop.permute.xlu2 %5261  ;;  %v5697_v38 = vmul.f32 %v5604_v23, %v5537_v3  ;;  %v5081_v3 = vmul.f32 %v8321_v31, %v5080_v36  ;;  %v4570_v36 = vadd.f32 %v11088_v7, %v11180_v0  ;;  %v12139_v7 = vld [vmem:[#allocation26_spill] sm:$0xff] }
 0x6e6   : > { %v5334_v55 = vmul.f32 %v5262_v9, %v11128_v50  ;;  %v11168_v9 = vpop.permute.xlu0 %5785 }
 0x6e7   : > { %v11136_v62 = vadd.f32 %v5857_v26, %v5697_v38  ;;  %v5082_v26 = vadd.f32 %v8321_v31, %v5081_v3  ;;  %v5089_v38 = vand.u32 2147483648, %v11102_v1  ;;  %v5067_v1 = vadd.f32 %v8323_v8, %v5066_v58  ;;  %v12138_v3 = vld [vmem:[#allocation4_spill] sm:$0xff] }
 0x6e8   : > { %5421 = vrot.lane.b32.xlu2 %v5334_v55, %s8472_s21  ;;  %v5539_v44 = vsub.f32 1.0, %v12138_v3 }
 0x6e9   : > { %12136 = vst [vmem:[#allocation6_spill] sm:$0xff] %v11136_v62  ;;  %v5920_v22 = vpack.c.bf16 %v11134_v4, %v11136_v62  ;;  %v5086_v28 = vsel %vm5085_vm5, %v8321_v31, %v5082_v26  ;;  %v5072_v31 = vand.u32 2147483647, %v11126_v53 }
 0x6eb   : > { %5961 = vrot.lane.b32.xlu0 %v5920_v22, %s8473_s29  ;;  %v11166_v23 = vpop.f32.mrf.mxu0  ;;  %v5090_v22 = vor.u32 1.1754944e-38, %v5089_v38  ;;  %vm5073_vm10 = vcmp.eq.f32.partialorder %v5072_v31, 8.507059e+37 }
 0x6ec   : > { %v5260_v20 = vpop.permute.xlu1 %5259 }
 0x6ed   : > { %v5333_v24 = vmul.f32 %v5260_v20, %v11153_v40  ;;  %v11156_v12 = vpop.permute.xlu2 %5783  ;;  %v11176_v35 = vsel %vm5088_vm6, %v5090_v22, %v5086_v28  ;;  %v12140_v22 = vld [vmem:[#allocation36_spill] sm:$0xff] }
 0x6ee   : > { %v5859_v19 = vmul.f32 %v12140_v22, %v12138_v3  ;;  %v12144_v3 = vld [vmem:[#allocation34_spill] sm:$0xff]  ;;  %v5542_v22 = vsub.f32 1.0, %v10746_v59 }
 0x6ef   : > { %5419 = vrot.lane.b32.xlu1 %v5333_v24, %s8472_s21  ;;  %v5074_v24 = vand.u32 2147483648, %v11126_v53 }
 0x6f0   : > { %5791 = vrot.lane.b32.xlu2 %v8398_v10, %s8471_s27  ;;  %v5608_v10 = vpop.permute.xlu0 %5607 }
 0x6f1   : > { %v5075_v49 = vor.u32 1.1754944e-38, %v5074_v24  ;;  %v5699_v38 = vmul.f32 %v5608_v10, %v5539_v44  ;;  %v8400_v10 = vld [vmem:[%s8952_s0 + $0x90] sm:$0xff]  ;;  %v11214_v44 = vadd.f32 %v10993_v61, %v12144_v3 }
 0x6f3   : > { %5789 = vrot.lane.b32.xlu0 %v8399_v27, %s8471_s27  ;;  %v5071_v27 = vsel %vm5070_vm9, %v8323_v8, %v5067_v1  ;;  %v11193_v37 = vpop.f32.mrf.mxu0  ;;  %v12141_v8 = vld [vmem:[#allocation20_spill] sm:$0xff] }
 0x6f4   : > { %v11164_v6 = vpop.permute.xlu1 %5411  ;;  %v11195_v53 = vsel %vm5073_vm10, %v5075_v49, %v5071_v27  ;;  %v4569_v27 = vadd.f32 %v11060_v48, %v11214_v44 }
 0x6f5   : > { %v5266_v55 = vpop.permute.xlu2 %5265 }
 0x6f6   : > { %v5336_v20 = vmul.f32 %v5266_v55, %v11176_v35  ;;  %v5540_v55 = vsub.f32 1.0, %v12139_v7 }
 0x6f7   : > { %5633 = vrot.lane.b32.xlu1 %v8325_v18, %s8473_s29  ;;  %v7609_v18 = vmul.f32 -1.442695, %v4570_v36  ;;  %v11203_v36 = vadd.f32 %v5859_v19, %v5699_v38 }
 0x6f8   : > { %5273 = vrot.lane.b32.xlu2 %v11166_v23, %s8472_s21 }
 0x6f9   : > { %8326 = vpow2.f32 %v7609_v18  ;;  %12142 = vst [vmem:[#allocation7_spill] sm:$0xff] %v11203_v36 }
 0x6fb   : > { %v11223_v38 = vpop.f32.mrf.mxu0 }
 0x6fc   : > { %v5264_v56 = vpop.permute.xlu1 %5263 }
 0x6fd   : > { %v5414_v26 = vpop.permute.xlu2 %5413  ;;  %v5335_v1 = vmul.f32 %v5264_v56, %v11195_v53 }
 0x6fe   : > { %v5490_v28 = vadd.f32 %v5414_v26, %v10921_v30  ;;  %v5487_v30 = vadd.f32 %v11104_v41, %v10817_v42  ;;  %v7608_v42 = vmul.f32 -1.442695, %v4569_v27  ;;  %v5612_v41 = vpop.permute.xlu0 %5611 }
 0x6ff   : > { %5271 = vrot.lane.b32.xlu1 %v11146_v57, %s8472_s21  ;;  %v8327_v49 = vpop.eup %8326 }
 0x700   : > { %5425 = vrot.lane.b32.xlu2 %v5336_v20, %s8472_s21  ;;  %v5860_v20 = vmul.f32 %v12141_v8, %v12139_v7  ;;  %8328 = vtanh.f32 %v5490_v28  ;;  %v4698_v7 = vadd.f32 1.0, %v8327_v49  ;;  %v12146_v8 = vld [vmem:[#allocation37_spill] sm:$0xff] }
 0x701   : > { %8330 = vtanh.f32 %v5487_v30 }
 0x702   : > { %8332 = vpow2.f32 %v7608_v42  ;;  %v7756_v42 = vld [vmem:[%s11942_s15] sm:$0xff]  ;;  %vm5113_vm12 = vweird.f32 %v4698_v7 }
 0x703   : > { %8334 = vrcp.f32 %v4698_v7 }
 0x704   : > { %v5610_v58 = vpop.permute.xlu1 %5609 }
 0x705   : > { %v5700_v24 = vmul.f32 %v5610_v58, %v5540_v55  ;;  %v12145_v55 = vld [vmem:[#allocation27_spill] sm:$0xff] }
 0x706   : > { %v8329_v18 = vpop.eup %8328  ;;  %v5541_v28 = vsub.f32 1.0, %v12145_v55 }
 0x707   : > { %v11205_v31 = vadd.f32 %v5860_v20, %v5700_v24  ;;  %5423 = vrot.lane.b32.xlu1 %v5335_v1, %s8472_s21  ;;  %v8331_v48 = vpop.eup %8330  ;;  %v5861_v20 = vmul.f32 %v12146_v8, %v12145_v55  ;;  %v12147_v1 = vld [vmem:[#allocation22_spill] sm:$0xff]  ;;  %v5544_v55 = vsub.f32 1.0, %v10787_v52 }
 0x708   : > { %5795 = vrot.lane.b32.xlu2 %v8400_v10, %s8471_s27  ;;  %v5701_v58 = vmul.f32 %v5612_v41, %v5541_v28  ;;  %v5862_v24 = vmul.f32 %v12147_v1, %v10746_v59  ;;  %v6259_v28 = vsel %vm1680_vm0, %v7756_v42, 0  ;;  %v12150_v1 = vld [vmem:[#allocation23_spill] sm:$0xff] }
 0x709   : > { %12143 = vst [vmem:[#allocation8_spill] sm:$0xff] %v11205_v31  ;;  %v5921_v56 = vpack.c.bf16 %v11205_v31, %v11203_v36  ;;  %6271 = vmatpush.bf16.xpose.msrb.mxu3 %v6259_v28  ;;  %v12151_v31 = vld [vmem:[#allocation25_spill] sm:$0xff] }
 0x70a   : > { %v11235_v30 = vadd.f32 %v5861_v20, %v5701_v58  ;;  %v12149_v58 = vld [vmem:[#allocation5_spill] sm:$0xff] }
 0x70b   : > { %5963 = vrot.lane.b32.xlu0 %v5921_v56, %s8473_s29  ;;  %v8333_v56 = vpop.eup %8332  ;;  %v5863_v42 = vmul.f32 %v12151_v31, %v12149_v58  ;;  %v5119_v31 = vand.u32 2147483648, %v4698_v7 }
 0x70c   : > { %v11221_v26 = vpop.permute.xlu1 %5415  ;;  %v8335_v49 = vpop.eup %8334 }
 0x70d   : > { %v5109_v41 = vmul.f32 %v8335_v49, %v4698_v7  ;;  %vm5114_vm11 = vweird.f32 %v8335_v49 }
 0x70e   : > { %vm5115_vm13 = vmor %vm5113_vm12, %vm5114_vm11 }
 0x70f   : > { %5637 = vrot.lane.b32.xlu1 %v8329_v18, %s8473_s29  ;;  %v11244_v18 = vadd.f32 1.0, %v8333_v56  ;;  %v5110_v20 = vsub.f32 1.0, %v5109_v41  ;;  %v8401_v56 = vld [vmem:[%s8952_s0 + $0x88] sm:$0xff] }
 0x710   : > { %5277 = vrot.lane.b32.xlu2 %v11223_v38, %s8472_s21 }
 0x711   : > { %8336 = vrcp.f32 %v11244_v18  ;;  %v5111_v28 = vmul.f32 %v8335_v49, %v5110_v20  ;;  %vm5098_vm1 = vweird.f32 %v11244_v18 }
 0x713   : > { %5631 = vrot.lane.b32.xlu0 %v8331_v48, %s8473_s29  ;;  %v5616_v48 = vpop.permute.xlu0 %5615 }
 0x714   : > { %v5614_v19 = vpop.permute.xlu1 %5613 }
 0x715   : > { %v5702_v10 = vmul.f32 %v5614_v19, %v5542_v22  ;;  %v5543_v22 = vsub.f32 1.0, %v12149_v58 }
 0x717   : > { %v11237_v3 = vadd.f32 %v5862_v24, %v5702_v10  ;;  %5275 = vrot.lane.b32.xlu1 %v11193_v37, %s8472_s21  ;;  %v5864_v24 = vmul.f32 %v12150_v1, %v10787_v52  ;;  %v5703_v10 = vmul.f32 %v5616_v48, %v5543_v22  ;;  %v5112_v48 = vadd.f32 %v8335_v49, %v5111_v28 }
 0x718   : > { %v5117_v22 = vand.u32 2147483647, %v4698_v7  ;;  %v5866_v7 = vmul.f32 %v11151_v14, %v10791_v33 }
 0x719   : > { %12148 = vst [vmem:[#allocation28_spill] sm:$0xff] %v11237_v3  ;;  %v5922_v27 = vpack.c.bf16 %v11237_v3, %v11235_v30  ;;  %v8337_v3 = vpop.eup %8336  ;;  %v11261_v36 = vadd.f32 %v5863_v42, %v5703_v10  ;;  %v5116_v20 = vsel %vm5115_vm13, %v8335_v49, %v5112_v48 }
 0x71a   : > { %vm5118_vm14 = vcmp.eq.f32.partialorder %v5117_v22, 8.507059e+37  ;;  %vm5099_vm15 = vweird.f32 %v8337_v3  ;;  %v5104_v22 = vand.u32 2147483648, %v11244_v18 }
 0x71b   : > { %5965 = vrot.lane.b32.xlu0 %v5922_v27, %s8473_s29  ;;  %vm5100_vm2 = vmor %vm5098_vm1, %vm5099_vm15 }
 0x71c   : > { %v5618_v59 = vpop.permute.xlu1 %5617  ;;  %v5620_v1 = vpop.permute.xlu0 %5619 }
 0x71d   : > { %v5704_v19 = vmul.f32 %v5618_v59, %v5544_v55  ;;  %v5489_v59 = vadd.f32 %v11164_v6, %v10866_v21  ;;  %v5094_v55 = vmul.f32 %v8337_v3, %v11244_v18  ;;  %v5546_v21 = vsub.f32 1.0, %v10791_v33 }
 0x71e   : > { %v5120_v6 = vor.u32 1.1754944e-38, %v5119_v31  ;;  %v5102_v33 = vand.u32 2147483647, %v11244_v18 }
 0x71f   : > { %v11259_v62 = vadd.f32 %v5864_v24, %v5704_v19  ;;  %8338 = vtanh.f32 %v5489_v59  ;;  %v5095_v19 = vsub.f32 1.0, %v5094_v55  ;;  %v5545_v24 = vsub.f32 1.0, %v10812_v54 }
 0x720   : > { %v11273_v42 = vsel %vm5118_vm14, %v5120_v6, %v5116_v20  ;;  %vm5103_vm3 = vcmp.eq.f32.partialorder %v5102_v33, 8.507059e+37  ;;  %v12153_v33 = vld [vmem:[#allocation24_spill] sm:$0xff] }
 0x721   : > { %v5923_v52 = vpack.c.bf16 %v11259_v62, %v11261_v36  ;;  %v5096_v28 = vmul.f32 %v8337_v3, %v5095_v19  ;;  %v5705_v55 = vmul.f32 %v5620_v1, %v5545_v24  ;;  %v8402_v1 = vld [vmem:[%s8952_s0 + $0xa0] sm:$0xff]  ;;  %v12152_v24 = vld [vmem:[#allocation11_spill] sm:$0xff] }
 0x722   : > { %v5418_v8 = vpop.permute.xlu2 %5417  ;;  %v11301_v18 = vadd.f32 %v10993_v61, %v12152_v24 }
 0x723   : > { %5793 = vrot.lane.b32.xlu0 %v8401_v56, %s8471_s27  ;;  %v5097_v31 = vadd.f32 %v8337_v3, %v5096_v28  ;;  %v5547_v28 = vsub.f32 1.0, %v10829_v47 }
 0x724   : > { %v5622_v27 = vpop.permute.xlu1 %5621 }
 0x725   : > { %v5706_v10 = vmul.f32 %v5622_v27, %v5546_v21  ;;  %v5865_v27 = vmul.f32 %v11106_v5, %v10812_v54  ;;  %v5101_v20 = vsel %vm5100_vm2, %v8337_v3, %v5097_v31  ;;  %v5105_v21 = vor.u32 1.1754944e-38, %v5104_v22 }
 0x726   : > { %v5492_v54 = vadd.f32 %v5418_v8, %v10997_v13  ;;  %v5548_v13 = vsub.f32 1.0, %v10854_v16 }
 0x727   : > { %v11284_v48 = vadd.f32 %v5866_v7, %v5706_v10  ;;  %v11287_v19 = vadd.f32 %v5865_v27, %v5705_v55  ;;  %v11295_v6 = vsel %vm5103_vm3, %v5105_v21, %v5101_v20  ;;  %v5868_v7 = vmul.f32 %v11168_v9, %v10854_v16  ;;  %v8403_v27 = vld [vmem:[%s8952_s0 + $0x98] sm:$0xff] }
 0x728   : > { %8340 = vtanh.f32 %v5492_v54  ;;  %v5867_v55 = vmul.f32 %v11156_v12, %v10829_v47  ;;  %v5491_v47 = vadd.f32 %v11221_v26, %v10901_v32  ;;  %v12154_v32 = vld [vmem:[#allocation35_spill] sm:$0xff] }
 0x729   : > { %v5924_v14 = vpack.c.bf16 %v11284_v48, %v11287_v19  ;;  %v11335_v26 = vadd.f32 %v10993_v61, %v12154_v32 }
 0x72a   : > { %v11265_v41 = vpop.permute.xlu2 %5787 }
 0x72b   : > { %5967 = vrot.lane.b32.xlu0 %v5923_v52, %s8473_s29  ;;  %v8339_v52 = vpop.eup %8338 }
 0x72c   : > { %v5624_v3 = vpop.permute.xlu0 %5623 }
 0x72d   : > { %v5626_v58 = vpop.permute.xlu1 %5625  ;;  %v5707_v8 = vmul.f32 %v5624_v3, %v5547_v28 }
 0x72e   : > { %v8341_v22 = vpop.eup %8340 }
 0x732   : > { %v5270_v56 = vpop.permute.xlu2 %5269 }
 0x733   : > { %v5338_v59 = vmul.f32 %v5270_v56, %v11273_v42  ;;  %5635 = vrot.lane.b32.xlu0 %v8339_v52, %s8473_s29  ;;  %v4571_v56 = vadd.f32 %v11146_v57, %v11301_v18  ;;  %v5708_v52 = vmul.f32 %v5626_v58, %v5548_v13  ;;  %v11315_v57 = vadd.f32 %v5867_v55, %v5707_v8 }
 0x735   : > { %v11279_v49 = vpop.permute.xlu1 %5629  ;;  %5429 = vrot.lane.b32.xlu2 %v5338_v59, %s8472_s21  ;;  %v7610_v59 = vmul.f32 -1.442695, %v4571_v56  ;;  %v11317_v31 = vadd.f32 %v5868_v7, %v5708_v52  ;;  %v5549_v52 = vsub.f32 1.0, %v10852_v25 }
 0x737   : > { %8342 = vpow2.f32 %v7610_v59  ;;  %v5925_v12 = vpack.c.bf16 %v11317_v31, %v11315_v57 }
 0x738   : > { %8344 = vtanh.f32 %v5491_v47  ;;  %v5869_v47 = vmul.f32 %v11265_v41, %v10852_v25 }
 0x73b   : > { %5969 = vrot.lane.b32.xlu0 %v5924_v14, %s8473_s29  ;;  %v11321_v14 = vadd.f32 %v10993_v61, %v12153_v33 }
 0x73d   : > { %v5268_v5 = vpop.permute.xlu1 %5267  ;;  %5799 = vrot.lane.b32.xlu2 %v8402_v1, %s8471_s27  ;;  %v4572_v16 = vadd.f32 %v11166_v23, %v11321_v14  ;;  %v8343_v20 = vpop.eup %8342  ;;  %v4573_v1 = vadd.f32 %v11193_v37, %v11335_v26  ;;  %v5550_v37 = vsub.f32 1.0, %v10879_v2 }
 0x73e   : > { %v5337_v10 = vmul.f32 %v5268_v5, %v11295_v6  ;;  %v4699_v21 = vadd.f32 1.0, %v8343_v20  ;;  %v8345_v54 = vpop.eup %8344 }
 0x73f   : > { %v7611_v9 = vmul.f32 -1.442695, %v4572_v16  ;;  %v7612_v3 = vmul.f32 -1.442695, %v4573_v1 }
 0x740   : > { %5427 = vrot.lane.b32.xlu1 %v5337_v10, %s8472_s21  ;;  %v5134_v41 = vand.u32 2147483648, %v4699_v21  ;;  %vm5128_vm6 = vweird.f32 %v4699_v21 }
 0x741   : > { %8346 = vpow2.f32 %v7611_v9 }
 0x742   : > { %8348 = vrcp.f32 %v4699_v21  ;;  %v5422_v55 = vpop.permute.xlu2 %5421 }
 0x743   : > { %5797 = vrot.lane.b32.xlu0 %v8403_v27, %s8471_s27 }
 0x747   : > { %v8347_v5 = vpop.eup %8346 }
 0x748   : > { %5641 = vrot.lane.b32.xlu1 %v8341_v22, %s8473_s29  ;;  %v11339_v24 = vadd.f32 1.0, %v8347_v5  ;;  %v8349_v10 = vpop.eup %8348 }
 0x749   : > { %v5124_v28 = vmul.f32 %v8349_v10, %v4699_v21  ;;  %vm5129_vm5 = vweird.f32 %v8349_v10 }
 0x74a   : > { %8350 = vrcp.f32 %v11339_v24  ;;  %vm5130_vm7 = vmor %vm5128_vm6, %vm5129_vm5  ;;  %vm5143_vm10 = vweird.f32 %v11339_v24 }
 0x74b   : > { %5971 = vrot.lane.b32.xlu0 %v5925_v12, %s8473_s29  ;;  %8352 = vpow2.f32 %v7612_v3  ;;  %v5125_v8 = vsub.f32 1.0, %v5124_v28  ;;  %v5710_v12 = vmul.f32 %v11279_v49, %v5550_v37  ;;  %v11364_v49 = vpop.permute.xlu2 %5791  ;;  %v5135_v28 = vor.u32 1.1754944e-38, %v5134_v41 }
 0x74d   : > { %v5960_v58 = vpop.permute.xlu0 %5959  ;;  %v5126_v33 = vmul.f32 %v8349_v10, %v5125_v8 }
 0x74e   : > { %7622 = vmatmul.msk.bf16.vlgmr.msrb.gmra.mxu1 %vm1680_vm0, %v5960_v58 }
 0x74f   : > { %v5127_v25 = vadd.f32 %v8349_v10, %v5126_v33  ;;  %v8404_v33 = vld [vmem:[%s8952_s0 + $0xa8] sm:$0xff] }
 0x750   : > { %v8351_v7 = vpop.eup %8350 }
 0x751   : > { %v8353_v16 = vpop.eup %8352  ;;  %v5139_v9 = vmul.f32 %v8351_v7, %v11339_v24  ;;  %vm5144_vm9 = vweird.f32 %v8351_v7 }
 0x752   : > { %vm5145_vm11 = vmor %vm5143_vm10, %vm5144_vm9 }
 0x753   : > { %5639 = vrot.lane.b32.xlu0 %v8345_v54, %s8473_s29  ;;  %v11355_v54 = vadd.f32 1.0, %v8353_v16  ;;  %v5140_v32 = vsub.f32 1.0, %v5139_v9 }
 0x755   : > { %v5628_v23 = vpop.permute.xlu0 %5627  ;;  %v5141_v3 = vmul.f32 %v8351_v7, %v5140_v32  ;;  %vm5158_vm14 = vweird.f32 %v11355_v54 }
 0x756   : > { %v5709_v27 = vmul.f32 %v5628_v23, %v5549_v52 }
 0x758   : > { %v11351_v20 = vadd.f32 %v5869_v47, %v5709_v27  ;;  %v5149_v27 = vand.u32 2147483648, %v11339_v24 }
 0x75a   : > { %v5150_v9 = vor.u32 1.1754944e-38, %v5149_v27 }
 0x75d   : > { %v5962_v56 = vpop.permute.xlu0 %5961 }
 0x75e   : > { %7623 = vmatmul.msk.bf16.gmra.mxu1 %vm1680_vm0, %v5962_v56  ;;  %v5131_v56 = vsel %vm5130_vm7, %v8349_v10, %v5127_v25 }
 0x761   : > { %v5420_v13 = vpop.permute.xlu1 %5419 }
 0x762   : > { %v5493_v59 = vadd.f32 %v5420_v13, %v11042_v45  ;;  %v5494_v13 = vadd.f32 %v5422_v55, %v11033_v60  ;;  %v12155_v60 = vld [vmem:[#allocation14_spill] sm:$0xff] }
 0x763   : > { %v11378_v10 = vadd.f32 %v10993_v61, %v12155_v60 }
 0x764   : > { %8354 = vtanh.f32 %v5493_v59  ;;  %v5142_v59 = vadd.f32 %v8351_v7, %v5141_v3 }
 0x765   : > { %v5790_v22 = vpop.permute.xlu0 %5789  ;;  %8356 = vrcp.f32 %v11355_v54  ;;  %v4574_v47 = vadd.f32 %v11223_v38, %v11378_v10 }
 0x766   : > { %v5870_v58 = vmul.f32 %v5790_v22, %v10879_v2  ;;  %v5132_v2 = vand.u32 2147483647, %v4699_v21  ;;  %v5147_v22 = vand.u32 2147483647, %v11339_v24  ;;  %8358 = vtanh.f32 %v5494_v13 }
 0x767   : > { %v5146_v55 = vsel %vm5145_vm11, %v8351_v7, %v5142_v59  ;;  %v7613_v25 = vmul.f32 -1.442695, %v4574_v47 }
 0x768   : > { %v11353_v45 = vadd.f32 %v5870_v58, %v5710_v12  ;;  %vm5133_vm8 = vcmp.eq.f32.partialorder %v5132_v2, 8.507059e+37  ;;  %v5274_v12 = vpop.permute.xlu2 %5273  ;;  %vm5148_vm12 = vcmp.eq.f32.partialorder %v5147_v22, 8.507059e+37 }
 0x769   : > { %v11357_v23 = vpop.permute.xlu1 %5633  ;;  %v11367_v52 = vsel %vm5133_vm8, %v5135_v28, %v5131_v56  ;;  %v11383_v24 = vsel %vm5148_vm12, %v5150_v9, %v5146_v55  ;;  %v8405_v56 = vld [vmem:[%s8952_s0 + $0xb0] sm:$0xff]  ;;  %v5162_v28 = vand.u32 2147483647, %v11355_v54  ;;  %v5552_v9 = vsub.f32 1.0, %v10947_v29 }
 0x76a   : > { %v8355_v5 = vpop.eup %8354  ;;  %v5926_v1 = vpack.c.bf16 %v11353_v45, %v11351_v20 }
 0x76b   : > { %5643 = vrot.lane.b32.xlu1 %v8355_v5, %s8473_s29  ;;  %v8357_v21 = vpop.eup %8356  ;;  %v5340_v5 = vmul.f32 %v5274_v12, %v11383_v24  ;;  %vm5163_vm1 = vcmp.eq.f32.partialorder %v5162_v28, 8.507059e+37 }
 0x76c   : > { %5973 = vrot.lane.b32.xlu0 %v5926_v1, %s8473_s29  ;;  %v5154_v16 = vmul.f32 %v8357_v21, %v11355_v54  ;;  %v8359_v1 = vpop.eup %8358  ;;  %vm5159_vm13 = vweird.f32 %v8357_v21 }
 0x76d   : > { %vm5160_vm15 = vmor %vm5158_vm14, %vm5159_vm13 }
 0x76e   : > { %v5155_v61 = vsub.f32 1.0, %v5154_v16 }
 0x770   : > { %v5156_v7 = vmul.f32 %v8357_v21, %v5155_v61  ;;  %v5426_v59 = vpop.permute.xlu2 %5425 }
 0x771   : > { %v5272_v8 = vpop.permute.xlu1 %5271 }
 0x772   : > { %v5339_v37 = vmul.f32 %v5272_v8, %v11367_v52  ;;  %v5157_v3 = vadd.f32 %v8357_v21, %v5156_v7 }
 0x774   : > { %5801 = vrot.lane.b32.xlu0 %v8404_v33, %s8471_s27  ;;  %5431 = vrot.lane.b32.xlu2 %v5339_v37, %s8472_s21  ;;  %v5161_v37 = vsel %vm5160_vm15, %v8357_v21, %v5157_v3  ;;  %v5496_v33 = vadd.f32 %v5426_v59, %v11058_v63  ;;  %v5551_v21 = vsub.f32 1.0, %v10892_v11 }
 0x778   : > { %v5796_v3 = vpop.permute.xlu2 %5795 }
 0x779   : > { %v5424_v58 = vpop.permute.xlu1 %5423 }
 0x77a   : > { %v5495_v32 = vadd.f32 %v5424_v58, %v11072_v34  ;;  %v5164_v34 = vand.u32 2147483648, %v11355_v54 }
 0x77c   : > { %8360 = vtanh.f32 %v5495_v32  ;;  %5433 = vrot.lane.b32.xlu0 %v5340_v5, %s8472_s21  ;;  %5645 = vrot.lane.b32.xlu2 %v8359_v1, %s8473_s29  ;;  %v5165_v27 = vor.u32 1.1754944e-38, %v5164_v34  ;;  %v5871_v5 = vmul.f32 %v11364_v49, %v10892_v11  ;;  %v5712_v32 = vmul.f32 %v11357_v23, %v5552_v9  ;;  %v8406_v49 = vld [vmem:[%s8952_s0 + $0xb8] sm:$0xff] }
 0x77d   : > { %v5964_v38 = vpop.permute.xlu0 %5963  ;;  %8362 = vpow2.f32 %v7613_v25  ;;  %v5873_v9 = vmul.f32 %v5796_v3, %v10967_v15 }
 0x77e   : > { %7624 = vmatmul.msk.bf16.gmra.mxu1 %vm1680_vm0, %v5964_v38  ;;  %v11399_v55 = vsel %vm5163_vm1, %v5165_v27, %v5161_v37 }
 0x781   : > { %v11390_v41 = vpop.permute.xlu1 %5637 }
 0x782   : > { %v8361_v2 = vpop.eup %8360 }
 0x783   : > { %v8363_v13 = vpop.eup %8362 }
 0x784   : > { %5803 = vrot.lane.b32.xlu0 %v8405_v56, %s8471_s27  ;;  %5647 = vrot.lane.b32.xlu2 %v8361_v2, %s8473_s29  ;;  %v4702_v22 = vadd.f32 1.0, %v8363_v13 }
 0x785   : > { %v5632_v8 = vpop.permute.xlu0 %5631 }
 0x786   : > { %8364 = vrcp.f32 %v4702_v22  ;;  %v5711_v58 = vmul.f32 %v5632_v8, %v5551_v21  ;;  %v5179_v23 = vand.u32 2147483648, %v4702_v22  ;;  %vm5173_vm3 = vweird.f32 %v4702_v22  ;;  %v5278_v8 = vpop.permute.xlu2 %5277  ;;  %v8407_v21 = vld [vmem:[%s8952_s0 + $0xc0] sm:$0xff] }
 0x787   : > { %8366 = vtanh.f32 %v5496_v33 }
 0x788   : > { %v11411_v25 = vadd.f32 %v5871_v5, %v5711_v58  ;;  %v5180_v59 = vor.u32 1.1754944e-38, %v5179_v23 }
 0x789   : > { %v5276_v60 = vpop.permute.xlu1 %5275 }
 0x78a   : > { %v5341_v16 = vmul.f32 %v5276_v60, %v11399_v55  ;;  %v5553_v60 = vsub.f32 1.0, %v10967_v15 }
 0x78c   : > { %5435 = vrot.lane.b32.xlu0 %v5341_v16, %s8472_s21  ;;  %v8365_v47 = vpop.eup %8364 }
 0x78d   : > { %v5966_v54 = vpop.permute.xlu0 %5965  ;;  %v8367_v12 = vpop.eup %8366  ;;  %v5169_v61 = vmul.f32 %v8365_v47, %v4702_v22  ;;  %vm5174_vm2 = vweird.f32 %v8365_v47 }
 0x78e   : > { %7625 = vmatmul.msk.bf16.gmra.mxu1 %vm1680_vm0, %v5966_v54  ;;  %vm5175_vm5 = vmor %vm5173_vm3, %vm5174_vm2  ;;  %v5554_v54 = vsub.f32 1.0, %v11020_v51 }
 0x78f   : > { %v5170_v7 = vsub.f32 1.0, %v5169_v61 }
 0x790   : > { %v5714_v58 = vmul.f32 %v11390_v41, %v5554_v54  ;;  %v8408_v41 = vld [vmem:[%s8952_s0 + $0xc8] sm:$0xff]  ;;  %v5556_v54 = vsub.f32 1.0, %v11051_v43 }
 0x791   : > { %v5171_v56 = vmul.f32 %v8365_v47, %v5170_v7  ;;  %v5430_v7 = vpop.permute.xlu2 %5429 }
 0x792   : > { %v5498_v15 = vadd.f32 %v5430_v7, %v11180_v0 }
 0x793   : > { %v5172_v11 = vadd.f32 %v8365_v47, %v5171_v56 }
 0x794   : > { %5649 = vrot.lane.b32.xlu0 %v8367_v12, %s8473_s29 }
 0x795   : > { %v5794_v63 = vpop.permute.xlu0 %5793  ;;  %v5176_v13 = vsel %vm5175_vm5, %v8365_v47, %v5172_v11 }
 0x796   : > { %v5872_v1 = vmul.f32 %v5794_v63, %v10947_v29  ;;  %v5177_v29 = vand.u32 2147483647, %v4702_v22 }
 0x798   : > { %v11413_v38 = vadd.f32 %v5872_v1, %v5712_v32  ;;  %vm5178_vm6 = vcmp.eq.f32.partialorder %v5177_v29, 8.507059e+37 }
 0x799   : > { %v11421_v37 = vsel %vm5178_vm6, %v5180_v59, %v5176_v13 }
 0x79a   : > { %v5927_v2 = vpack.c.bf16 %v11413_v38, %v11411_v25  ;;  %v5342_v27 = vmul.f32 %v5278_v8, %v11421_v37 }
 0x79c   : > { %5975 = vrot.lane.b32.xlu1 %v5927_v2, %s8473_s29 }
 0x79d   : > { %v5968_v34 = vpop.permute.xlu0 %5967 }
 0x79e   : > { %7626 = vmatmul.msk.bf16.gmra.mxu1 %vm1680_vm0, %v5968_v34  ;;  %v11452_v34 = vld [vmem:[%s11941_s14] ss:$0 sm:$0xff] }
 0x7a4   : > { %5805 = vrot.lane.b32.xlu1 %v8406_v49, %s8471_s27 }
 0x7a5   : > { %v5636_v28 = vpop.permute.xlu0 %5635 }
 0x7a6   : > { %v5713_v47 = vmul.f32 %v5636_v28, %v5553_v60 }
 0x7a8   : > { %v11434_v5 = vadd.f32 %v5873_v9, %v5713_v47 }
 0x7ac   : > { %5437 = vrot.lane.b32.xlu1 %v5342_v27, %s8472_s21  ;;  %v5555_v27 = vsub.f32 1.0, %v11007_v46 }
 0x7ad   : > { %v5970_v33 = vpop.permute.xlu0 %5969 }
 0x7ae   : > { %7627 = vmatmul.msk.bf16.gmra.mxu1 %vm1680_vm0, %v5970_v33 }
 0x7b2   : > { %v5428_v22 = vpop.permute.xlu1 %5427 }
 0x7b3   : > { %v5497_v16 = vadd.f32 %v5428_v22, %v11214_v44  ;;  %v5800_v22 = vpop.permute.xlu2 %5799 }
 0x7b4   : > { %5807 = vrot.lane.b32.xlu1 %v8407_v21, %s8471_s27 }
 0x7b5   : > { %8368 = vtanh.f32 %v5497_v16  ;;  %v5798_v12 = vpop.permute.xlu0 %5797 }
 0x7b6   : > { %v5874_v63 = vmul.f32 %v5798_v12, %v11020_v51  ;;  %v8409_v51 = vld [vmem:[%s8952_s0 + $0xd8] sm:$0xff]  ;;  %8370 = vtanh.f32 %v5498_v15 }
 0x7b8   : > { %v11436_v32 = vadd.f32 %v5874_v63, %v5714_v58  ;;  %v5875_v58 = vmul.f32 %v5800_v22, %v11007_v46 }
 0x7ba   : > { %v5928_v61 = vpack.c.bf16 %v11436_v32, %v11434_v5  ;;  %v5642_v60 = vpop.permute.xlu1 %5641 }
 0x7bb   : > { %v8369_v44 = vpop.eup %8368  ;;  %v5716_v63 = vmul.f32 %v5642_v60, %v5556_v54 }
 0x7bc   : > { %5977 = vrot.lane.b32.xlu2 %v5928_v61, %s8473_s29  ;;  %5651 = vrot.lane.b32.xlu1 %v8369_v44, %s8473_s29  ;;  %v8371_v3 = vpop.eup %8370 }
 0x7bd   : > { %v5972_v1 = vpop.permute.xlu0 %5971 }
 0x7be   : > { %7628 = vmatmul.msk.bf16.gmra.mxu1 %vm1680_vm0, %v5972_v1 }
 0x7c4   : > { %5809 = vrot.lane.b32.xlu2 %v8408_v41, %s8471_s27  ;;  %5813 = vrot.lane.b32.xlu1 %v8409_v51, %s8471_s27 }
 0x7c5   : > { %v5640_v49 = vpop.permute.xlu0 %5639 }
 0x7c6   : > { %v5715_v47 = vmul.f32 %v5640_v49, %v5555_v27 }
 0x7c8   : > { %v11464_v1 = vadd.f32 %v5875_v58, %v5715_v47  ;;  %v5558_v47 = vsub.f32 1.0, %v11128_v50 }
 0x7cb   : > { %v6064_v2 = vpop.f32.mrf.mxu1 }
 0x7cc   : > { %5653 = vrot.lane.b32.xlu2 %v8371_v3, %s8473_s29  ;;  %v6065_v56 = vadd.f32 %v11452_v34, %v6064_v2  ;;  %v8410_v2 = vld [vmem:[%s8952_s0 + $0xd0] sm:$0xff] }
 0x7ce   : > { %v6144_v23 = vmax.f32 %v6065_v56, 0.0  ;;  %v5432_v51 = vpop.permute.xlu2 %5431 }
 0x7d3   : > { %v6066_v11 = vpop.f32.mrf.mxu1 }
 0x7d4   : > { %v6067_v0 = vadd.f32 %v11452_v34, %v6066_v11 }
 0x7d6   : > { %v6145_v29 = vmax.f32 %v6067_v0, 0.0 }
 0x7d8   : > { %v6176_v28 = vpack.c.bf16 %v6145_v29, %v6144_v23 }
 0x7da   : > { %7646 = vmatmul.msk.bf16.vlgmr.msrb.gmra.mxu3 %vm1680_vm0, %v6176_v28 }
 0x7db   : > { %v6069_v13 = vpop.f32.mrf.mxu1 }
 0x7dc   : > { %v6070_v59 = vadd.f32 %v11452_v34, %v6069_v13 }
 0x7dd   : > { %v5644_v49 = vpop.permute.xlu1 %5643 }
 0x7de   : > { %v5974_v8 = vpop.permute.xlu0 %5973  ;;  %v6146_v21 = vmax.f32 %v6070_v59, 0.0 }
 0x7df   : > { %7629 = vmatmul.msk.bf16.gmra.mxu1 %vm1680_vm0, %v5974_v8 }
 0x7e3   : > { %v6071_v33 = vpop.f32.mrf.mxu1 }
 0x7e4   : > { %v6072_v16 = vadd.f32 %v11452_v34, %v6071_v33 }
 0x7e6   : > { %v6147_v12 = vmax.f32 %v6072_v16, 0.0  ;;  %v5802_v9 = vpop.permute.xlu0 %5801 }
 0x7e7   : > { %v5876_v44 = vmul.f32 %v5802_v9, %v11051_v43  ;;  %v5499_v43 = vadd.f32 %v5432_v51, %v11301_v18  ;;  %v5646_v18 = vpop.permute.xlu2 %5645 }
 0x7e8   : > { %v6177_v61 = vpack.c.bf16 %v6147_v12, %v6146_v21  ;;  %v5557_v21 = vsub.f32 1.0, %v11153_v40 }
 0x7e9   : > { %v11466_v7 = vadd.f32 %v5876_v44, %v5716_v63  ;;  %v5718_v44 = vmul.f32 %v5646_v18, %v5558_v47 }
 0x7ea   : > { %7647 = vmatmul.msk.bf16.gmra.mxu3 %vm1680_vm0, %v6177_v61  ;;  %v5717_v61 = vmul.f32 %v5644_v49, %v5557_v21 }
 0x7eb   : > { %v5929_v15 = vpack.c.bf16 %v11466_v7, %v11464_v1 }
 0x7ed   : > { %5979 = vrot.lane.b32.xlu0 %v5929_v15, %s8473_s29 }
 0x7ee   : > { %v5434_v41 = vpop.permute.xlu0 %5433 }
 0x7ef   : > { %v5500_v46 = vadd.f32 %v5434_v41, %v11321_v14  ;;  %v8411_v14 = vld [vmem:[%s8952_s0 + $0xe8] sm:$0xff]  ;;  %v5648_v33 = vpop.permute.xlu2 %5647 }
 0x7f1   : > { %8372 = vtanh.f32 %v5500_v46 }
 0x7f2   : > { %8374 = vtanh.f32 %v5499_v43 }
 0x7f5   : > { %5811 = vrot.lane.b32.xlu0 %v8410_v2, %s8471_s27  ;;  %v6401_v2 = vld [vmem:[%s11944_s17] sm:$0x3] }
 0x7f6   : > { %v5804_v22 = vpop.permute.xlu0 %5803 }
 0x7f7   : > { %v8373_v3 = vpop.eup %8372  ;;  %v5877_v12 = vmul.f32 %v5804_v22, %v11153_v40  ;;  %v6455_v40 = vsel %vm1680_vm0, %v6401_v2, 0 }
 0x7f8   : > { %5657 = vrot.lane.b32.xlu1 %v8373_v3, %s8473_s29  ;;  %v8375_v11 = vpop.eup %8374  ;;  %6464 = vmatpush.bf16.xpose.msrb.mxu0 %v6455_v40 }
 0x7f9   : > { %v11490_v46 = vadd.f32 %v5877_v12, %v5717_v61  ;;  %v8413_v61 = vld [vmem:[%s8952_s0 + $0xf8] sm:$0xff] }
 0x7fb   : > { %v6074_v56 = vpop.f32.mrf.mxu1 }
 0x7fc   : > { %v6075_v0 = vadd.f32 %v11452_v34, %v6074_v56 }
 0x7fd   : > { %5655 = vrot.lane.b32.xlu0 %v8375_v11, %s8473_s29 }
 0x7fe   : > { %v6148_v28 = vmax.f32 %v6075_v0, 0.0  ;;  %v5436_v3 = vpop.permute.xlu0 %5435 }
 0x803   : > { %v6076_v23 = vpop.f32.mrf.mxu1 }
 0x804   : > { %v6077_v29 = vadd.f32 %v11452_v34, %v6076_v23  ;;  %v5501_v23 = vadd.f32 %v5436_v3, %v11335_v26 }
 0x805   : > { %5817 = vrot.lane.b32.xlu0 %v8411_v14, %s8471_s27 }
 0x806   : > { %v6149_v13 = vmax.f32 %v6077_v29, 0.0  ;;  %v5650_v49 = vpop.permute.xlu0 %5649 }
 0x808   : > { %v6178_v8 = vpack.c.bf16 %v6149_v13, %v6148_v28  ;;  %v5559_v13 = vsub.f32 1.0, %v11195_v53 }
 0x80a   : > { %7648 = vmatmul.msk.bf16.gmra.mxu3 %vm1680_vm0, %v6178_v8  ;;  %v5560_v8 = vsub.f32 1.0, %v11176_v35 }
 0x80b   : > { %v6079_v59 = vpop.f32.mrf.mxu1 }
 0x80c   : > { %v6080_v60 = vadd.f32 %v11452_v34, %v6079_v59 }
 0x80e   : > { %v5976_v27 = vpop.permute.xlu1 %5975  ;;  %v6150_v9 = vmax.f32 %v6080_v60, 0.0 }
 0x80f   : > { %7630 = vmatmul.msk.bf16.gmra.mxu1 %vm1680_vm0, %v5976_v27  ;;  %v8412_v27 = vld [vmem:[%s8952_s0 + $0xe0] sm:$0xff] }
 0x813   : > { %v6081_v16 = vpop.f32.mrf.mxu1 }
 0x814   : > { %v6082_v54 = vadd.f32 %v11452_v34, %v6081_v16  ;;  %v5719_v16 = vmul.f32 %v5648_v33, %v5559_v13 }
 0x816   : > { %v6151_v58 = vmax.f32 %v6082_v54, 0.0  ;;  %v5806_v63 = vpop.permute.xlu1 %5805  ;;  %v5978_v51 = vpop.permute.xlu2 %5977  ;;  %v5720_v54 = vmul.f32 %v5650_v49, %v5560_v8  ;;  %v11536_v49 = vld [vmem:[%s11943_s16] ss:$0 sm:$0xff] }
 0x817   : > { %v5878_v15 = vmul.f32 %v5806_v63, %v11128_v50 }
 0x818   : > { %v6179_v41 = vpack.c.bf16 %v6151_v58, %v6150_v9 }
 0x819   : > { %v11492_v43 = vadd.f32 %v5878_v15, %v5718_v44  ;;  %v8414_v15 = vld [vmem:[%s8952_s0 + $0xf0] sm:$0xff] }
 0x81a   : > { %7649 = vmatmul.msk.bf16.gmra.mxu3 %vm1680_vm0, %v6179_v41 }
 0x81b   : > { %v6084_v56 = vpop.f32.mrf.mxu1  ;;  %v5930_v11 = vpack.c.bf16 %v11492_v43, %v11490_v46 }
 0x81c   : > { %v6085_v29 = vadd.f32 %v11452_v34, %v6084_v56 }
 0x81d   : > { %5981 = vrot.lane.b32.xlu2 %v5930_v11, %s8473_s29 }
 0x81e   : > { %v5438_v50 = vpop.permute.xlu1 %5437  ;;  %v5810_v14 = vpop.permute.xlu2 %5809 }
 0x81f   : > { %v5502_v0 = vadd.f32 %v5438_v50, %v11378_v10  ;;  %7631 = vmatmul.msk.bf16.gmra.mxu1 %vm1680_vm0, %v5978_v51  ;;  %v5880_v59 = vmul.f32 %v5810_v14, %v11176_v35  ;;  %v6152_v10 = vmax.f32 %v6085_v29, 0.0 }
 0x821   : > { %8376 = vtanh.f32 %v5502_v0  ;;  %v11514_v12 = vadd.f32 %v5880_v59, %v5720_v54  ;;  %v5561_v54 = vsub.f32 1.0, %v11295_v6 }
 0x822   : > { %8378 = vtanh.f32 %v5501_v23 }
 0x823   : > { %v6086_v18 = vpop.f32.mrf.mxu1 }
 0x824   : > { %v6087_v28 = vadd.f32 %v11452_v34, %v6086_v18 }
 0x825   : > { %5815 = vrot.lane.b32.xlu2 %v8412_v27, %s8471_s27 }
 0x826   : > { %v6153_v22 = vmax.f32 %v6087_v28, 0.0  ;;  %v5808_v26 = vpop.permute.xlu1 %5807 }
 0x827   : > { %v8377_v60 = vpop.eup %8376  ;;  %v5879_v47 = vmul.f32 %v5808_v26, %v11195_v53 }
 0x828   : > { %v6180_v21 = vpack.c.bf16 %v6153_v22, %v6152_v10  ;;  %5661 = vrot.lane.b32.xlu0 %v8377_v60, %s8473_s29  ;;  %v8379_v63 = vpop.eup %8378  ;;  %v5654_v22 = vpop.permute.xlu2 %5653 }
 0x829   : > { %v11516_v35 = vadd.f32 %v5879_v47, %v5719_v16  ;;  %v5562_v16 = vsub.f32 1.0, %v11273_v42 }
 0x82a   : > { %7650 = vmatmul.msk.bf16.gmra.mxu3 %vm1680_vm0, %v6180_v21 }
 0x82b   : > { %v6089_v9 = vpop.f32.mrf.mxu1  ;;  %v5931_v58 = vpack.c.bf16 %v11514_v12, %v11516_v35 }
 0x82c   : > { %v6090_v53 = vadd.f32 %v11452_v34, %v6089_v9 }
 0x82d   : > { %5659 = vrot.lane.b32.xlu2 %v8379_v63, %s8473_s29  ;;  %5983 = vrot.lane.b32.xlu1 %v5931_v58, %s8473_s29 }
 0x82e   : > { %v6154_v41 = vmax.f32 %v6090_v53, 0.0  ;;  %v5652_v29 = vpop.permute.xlu1 %5651 }
 0x833   : > { %v6091_v33 = vpop.f32.mrf.mxu1 }
 0x834   : > { %v6092_v44 = vadd.f32 %v11452_v34, %v6091_v33  ;;  %v5722_v33 = vmul.f32 %v5654_v22, %v5562_v16 }
 0x835   : > { %5821 = vrot.lane.b32.xlu2 %v8413_v61, %s8471_s27  ;;  %5819 = vrot.lane.b32.xlu1 %v8414_v15, %s8471_s27  ;;  %s11675_s27 = scalar_lea.vmem %s11946_s19, %s8945_s4 }
 0x836   : > { %v6155_v51 = vmax.f32 %v6092_v44, 0.0  ;;  %v5814_v13 = vpop.permute.xlu1 %5813  ;;  %v5721_v44 = vmul.f32 %v5652_v29, %v5561_v54 }
 0x837   : > { %v5882_v47 = vmul.f32 %v5814_v13, %v11273_v42  ;;  %v5563_v13 = vsub.f32 1.0, %v11367_v52 }
 0x838   : > { %v6181_v2 = vpack.c.bf16 %v6155_v51, %v6154_v41 }
 0x839   : > { %v11547_v51 = vadd.f32 %v5882_v47, %v5722_v33 }
 0x83a   : > { %7651 = vmatmul.msk.bf16.gmra.mxu3 %vm1680_vm0, %v6181_v2 }
 0x83b   : > { %v6094_v3 = vpop.f32.mrf.mxu1 }
 0x83c   : > { %v6095_v40 = vadd.f32 %v11452_v34, %v6094_v3 }
 0x83e   : > { %v6156_v50 = vmax.f32 %v6095_v40, 0.0 }
 0x843   : > { %v6096_v56 = vpop.f32.mrf.mxu1 }
 0x844   : > { %v6097_v11 = vadd.f32 %v11452_v34, %v6096_v56 }
 0x846   : > { %v6157_v0 = vmax.f32 %v6097_v11, 0.0 }
 0x848   : > { %v6182_v23 = vpack.c.bf16 %v6157_v0, %v6156_v50 }
 0x84a   : > { %7652 = vmatmul.msk.bf16.gmra.mxu3 %vm1680_vm0, %v6182_v23 }
 0x85c   : > { %v6099_v14 = vpop.f32.mrf.mxu1 }
 0x85d   : > { %v6273_v18 = vpop.f32.mrf.mxu3  ;;  %v6100_v8 = vadd.f32 %v11452_v34, %v6099_v14 }
 0x85e   : > { %v6274_v59 = vadd.f32 %v11536_v49, %v6273_v18 }
 0x85f   : > { %v5980_v28 = vpop.permute.xlu0 %5979  ;;  %v6158_v21 = vmax.f32 %v6100_v8, 0.0 }
 0x860   : > { %7632 = vmatmul.msk.bf16.gmra.mxu1 %vm1680_vm0, %v5980_v28  ;;  %v6353_v9 = vmax.f32 %v6274_v59, 0.0  ;;  %v5564_v28 = vsub.f32 1.0, %v11383_v24 }
 0x864   : > { %v6101_v27 = vpop.f32.mrf.mxu1 }
 0x865   : > { %v6275_v10 = vpop.f32.mrf.mxu3  ;;  %v6102_v26 = vadd.f32 %v11452_v34, %v6101_v27 }
 0x866   : > { %v6276_v60 = vadd.f32 %v11536_v49, %v6275_v10 }
 0x867   : > { %v6159_v58 = vmax.f32 %v6102_v26, 0.0  ;;  %v5812_v53 = vpop.permute.xlu0 %5811 }
 0x868   : > { %v6354_v63 = vmax.f32 %v6276_v60, 0.0  ;;  %v5881_v61 = vmul.f32 %v5812_v53, %v11295_v6 }
 0x869   : > { %v6183_v15 = vpack.c.bf16 %v6159_v58, %v6158_v21 }
 0x86a   : > { %v6385_v41 = vpack.c.bf16 %v6354_v63, %v6353_v9  ;;  %v11549_v2 = vadd.f32 %v5881_v61, %v5721_v44  ;;  %v5658_v18 = vpop.permute.xlu1 %5657  ;;  %v12156_v9 = vld [vmem:[#allocation7_spill] sm:$0xff] }
 0x86b   : > { %7653 = vmatmul.msk.bf16.gmra.mxu3 %vm1680_vm0, %v6183_v15  ;;  %v5724_v59 = vmul.f32 %v5658_v18, %v5564_v28 }
 0x86c   : > { %7662 = vmatmul.msk.bf16.vlgmr.msrb.gmra.mxu0 %vm1680_vm0, %v6385_v41  ;;  %v5932_v42 = vpack.c.bf16 %v11547_v51, %v11549_v2 }
 0x86d   : > { %v6278_v3 = vpop.f32.mrf.mxu3 }
 0x86e   : > { %5985 = vrot.lane.b32.xlu0 %v5932_v42, %s8473_s29  ;;  %v6279_v56 = vadd.f32 %v11536_v49, %v6278_v3 }
 0x86f   : > { %v5656_v40 = vpop.permute.xlu0 %5655 }
 0x870   : > { %v6355_v0 = vmax.f32 %v6279_v56, 0.0  ;;  %v5723_v27 = vmul.f32 %v5656_v40, %v5563_v13  ;;  %v5566_v40 = vsub.f32 1.0, %v11421_v37 }
 0x875   : > { %v6280_v6 = vpop.f32.mrf.mxu3 }
 0x876   : > { %v6281_v11 = vadd.f32 %v11536_v49, %v6280_v6  ;;  %6642 = vrot.lane.b32.xlu0 %v11090_v39, %s8473_s29 }
 0x877   : > { %v5982_v50 = vpop.permute.xlu2 %5981  ;;  %v5818_v14 = vpop.permute.xlu0 %5817 }
 0x878   : > { %v6356_v23 = vmax.f32 %v6281_v11, 0.0  ;;  %7633 = vmatmul.msk.bf16.gmra.mxu1 %vm1680_vm0, %v5982_v50  ;;  %v5884_v8 = vmul.f32 %v5818_v14, %v11383_v24  ;;  %v5565_v11 = vsub.f32 1.0, %v11399_v55 }
 0x87a   : > { %v6386_v29 = vpack.c.bf16 %v6356_v23, %v6355_v0  ;;  %v11568_v22 = vadd.f32 %v5884_v8, %v5724_v59 }
 0x87c   : > { %7663 = vmatmul.msk.bf16.gmra.mxu0 %vm1680_vm0, %v6386_v29 }
 0x87e   : > { %6648 = vrot.lane.b32.xlu0 %v11134_v4, %s8473_s29 }
 0x87f   : > { %v5816_v39 = vpop.permute.xlu2 %5815 }
 0x880   : > { %v5883_v10 = vmul.f32 %v5816_v39, %v11367_v52 }
 0x882   : > { %v11570_v26 = vadd.f32 %v5883_v10, %v5723_v27 }
 0x884   : > { %v5933_v60 = vpack.c.bf16 %v11568_v22, %v11570_v26 }
 0x886   : > { %6654 = vrot.lane.b32.xlu0 %v11235_v30, %s8473_s29  ;;  %5987 = vrot.lane.b32.xlu1 %v5933_v60, %s8473_s29 }
 0x887   : > { %v5660_v44 = vpop.permute.xlu2 %5659 }
 0x888   : > { %v5725_v14 = vmul.f32 %v5660_v44, %v5565_v11 }
 0x88c   : > { %v6104_v24 = vpop.f32.mrf.mxu1 }
 0x88d   : > { %v6283_v16 = vpop.f32.mrf.mxu3  ;;  %v6105_v4 = vadd.f32 %v11452_v34, %v6104_v24 }
 0x88e   : > { %6660 = vrot.lane.b32.xlu0 %v11259_v62, %s8473_s29  ;;  %6644 = vrot.lane.b32.xlu1 %v11092_v17, %s8473_s29  ;;  %v6284_v52 = vadd.f32 %v11536_v49, %v6283_v16 }
 0x88f   : > { %v6160_v62 = vmax.f32 %v6105_v4, 0.0  ;;  %v5822_v50 = vpop.permute.xlu2 %5821 }
 0x890   : > { %v6357_v63 = vmax.f32 %v6284_v52, 0.0  ;;  %v5886_v8 = vmul.f32 %v5822_v50, %v11421_v37  ;;  %v12158_v52 = vld [vmem:[#allocation6_spill] sm:$0xff]  ;;  %v8416_v50 = vld [vmem:[%s9668_s24 + $0x8] sm:$0xff] }
 0x894   : > { %v6106_v54 = vpop.f32.mrf.mxu1 }
 0x895   : > { %v6107_v47 = vadd.f32 %v11452_v34, %v6106_v54  ;;  %v6285_v21 = vpop.f32.mrf.mxu3 }
 0x896   : > { %v6286_v30 = vadd.f32 %v11536_v49, %v6285_v21  ;;  %6666 = vrot.lane.b32.xlu0 %v11315_v57, %s8473_s29  ;;  %6650 = vrot.lane.b32.xlu1 %v12156_v9, %s8473_s29  ;;  %v12157_v57 = vld [vmem:[#allocation28_spill] sm:$0xff] }
 0x897   : > { %v6161_v58 = vmax.f32 %v6107_v47, 0.0 }
 0x898   : > { %v6358_v17 = vmax.f32 %v6286_v30, 0.0 }
 0x899   : > { %v6184_v53 = vpack.c.bf16 %v6161_v58, %v6160_v62 }
 0x89a   : > { %v6387_v33 = vpack.c.bf16 %v6358_v17, %v6357_v63  ;;  %v5662_v42 = vpop.permute.xlu0 %5661 }
 0x89b   : > { %7654 = vmatmul.msk.bf16.gmra.mxu3 %vm1680_vm0, %v6184_v53  ;;  %v5726_v23 = vmul.f32 %v5662_v42, %v5566_v40 }
 0x89c   : > { %v6109_v61 = vpop.f32.mrf.mxu1  ;;  %7664 = vmatmul.msk.bf16.gmra.mxu0 %vm1680_vm0, %v6387_v33 }
 0x89d   : > { %v6288_v15 = vpop.f32.mrf.mxu3  ;;  %v6110_v3 = vadd.f32 %v11452_v34, %v6109_v61  ;;  %v5918_v60 = vadd.f32 %v5886_v8, %v5726_v23 }
 0x89e   : > { %6672 = vrot.lane.b32.xlu0 %v11353_v45, %s8473_s29  ;;  %6656 = vrot.lane.b32.xlu1 %v12157_v57, %s8473_s29  ;;  %v6289_v56 = vadd.f32 %v11536_v49, %v6288_v15 }
 0x89f   : > { %v5984_v41 = vpop.permute.xlu1 %5983  ;;  %v6162_v18 = vmax.f32 %v6110_v3, 0.0  ;;  %v8415_v3 = vld [vmem:[%s9668_s24] sm:$0xff] }
 0x8a0   : > { %7634 = vmatmul.msk.bf16.gmra.mxu1 %vm1680_vm0, %v5984_v41  ;;  %v6359_v39 = vmax.f32 %v6289_v56, 0.0 }
 0x8a4   : > { %v6111_v6 = vpop.f32.mrf.mxu1 }
 0x8a5   : > { %v6112_v0 = vadd.f32 %v11452_v34, %v6111_v6  ;;  %v6290_v45 = vpop.f32.mrf.mxu3 }
 0x8a6   : > { %v6291_v29 = vadd.f32 %v11536_v49, %v6290_v45  ;;  %6678 = vrot.lane.b32.xlu0 %v11434_v5, %s8473_s29  ;;  %6662 = vrot.lane.b32.xlu1 %v11287_v19, %s8473_s29 }
 0x8a7   : > { %v6163_v28 = vmax.f32 %v6112_v0, 0.0  ;;  %v5820_v13 = vpop.permute.xlu1 %5819 }
 0x8a8   : > { %v6360_v59 = vmax.f32 %v6291_v29, 0.0  ;;  %v5885_v27 = vmul.f32 %v5820_v13, %v11399_v55 }
 0x8a9   : > { %v6185_v10 = vpack.c.bf16 %v6163_v28, %v6162_v18 }
 0x8aa   : > { %v6388_v24 = vpack.c.bf16 %v6360_v59, %v6359_v39  ;;  %v5917_v16 = vadd.f32 %v5885_v27, %v5725_v14 }
 0x8ab   : > { %7655 = vmatmul.msk.bf16.gmra.mxu3 %vm1680_vm0, %v6185_v10  ;;  %v8417_v10 = vld [vmem:[%s9668_s24 + $0x10] sm:$0xff] }
 0x8ac   : > { %7665 = vmatmul.msk.bf16.gmra.mxu0 %vm1680_vm0, %v6388_v24  ;;  %v5934_v5 = vpack.c.bf16 %v5918_v60, %v5917_v16 }
 0x8ad   : > { %v6293_v19 = vpop.f32.mrf.mxu3 }
 0x8ae   : > { %6684 = vrot.lane.b32.xlu0 %v11466_v7, %s8473_s29  ;;  %6668 = vrot.lane.b32.xlu1 %v11317_v31, %s8473_s29  ;;  %v6294_v55 = vadd.f32 %v11536_v49, %v6293_v19 }
 0x8af   : > { %5989 = vrot.lane.b32.xlu2 %v5934_v5, %s8473_s29 }
 0x8b0   : > { %v6361_v7 = vmax.f32 %v6294_v55, 0.0 }
 0x8b5   : > { %v6295_v37 = vpop.f32.mrf.mxu3 }
 0x8b6   : > { %v6296_v4 = vadd.f32 %v11536_v49, %v6295_v37  ;;  %6690 = vrot.lane.b32.xlu0 %v11516_v35, %s8473_s29  ;;  %6674 = vrot.lane.b32.xlu1 %v11411_v25, %s8473_s29  ;;  %v12159_v35 = vld [vmem:[#allocation8_spill] sm:$0xff] }
 0x8b7   : > { %6646 = vrot.lane.b32.xlu2 %v12158_v52, %s8473_s29 }
 0x8b8   : > { %v6362_v54 = vmax.f32 %v6296_v4, 0.0 }
 0x8ba   : > { %v6389_v47 = vpack.c.bf16 %v6362_v54, %v6361_v7  ;;  %v8418_v7 = vld [vmem:[%s9668_s24 + $0x18] sm:$0xff] }
 0x8bc   : > { %7666 = vmatmul.msk.bf16.gmra.mxu0 %vm1680_vm0, %v6389_v47 }
 0x8bd   : > { %v6298_v31 = vpop.f32.mrf.mxu3 }
 0x8be   : > { %6696 = vrot.lane.b32.xlu0 %v11547_v51, %s8473_s29  ;;  %6680 = vrot.lane.b32.xlu1 %v11436_v32, %s8473_s29  ;;  %v6299_v25 = vadd.f32 %v11536_v49, %v6298_v31 }
 0x8bf   : > { %6652 = vrot.lane.b32.xlu2 %v12159_v35, %s8473_s29 }
 0x8c0   : > { %v6363_v51 = vmax.f32 %v6299_v25, 0.0 }
 0x8c5   : > { %v6300_v21 = vpop.f32.mrf.mxu3 }
 0x8c6   : > { %v6301_v30 = vadd.f32 %v11536_v49, %v6300_v21  ;;  %6686 = vrot.lane.b32.xlu1 %v11490_v46, %s8473_s29  ;;  %6702 = vrot.lane.b32.xlu0 %v5917_v16, %s8473_s29 }
 0x8c7   : > { %6658 = vrot.lane.b32.xlu2 %v11261_v36, %s8473_s29 }
 0x8c8   : > { %v6364_v9 = vmax.f32 %v6301_v30, 0.0 }
 0x8ca   : > { %v6390_v62 = vpack.c.bf16 %v6364_v9, %v6363_v51 }
 0x8cc   : > { %7667 = vmatmul.msk.bf16.gmra.mxu0 %vm1680_vm0, %v6390_v62 }
 0x8cd   : > { %v6303_v32 = vpop.f32.mrf.mxu3 }
 0x8ce   : > { %6692 = vrot.lane.b32.xlu1 %v11514_v12, %s8473_s29  ;;  %v6304_v58 = vadd.f32 %v11536_v49, %v6303_v32 }
 0x8cf   : > { %6664 = vrot.lane.b32.xlu2 %v11284_v48, %s8473_s29 }
 0x8d0   : > { %v6365_v36 = vmax.f32 %v6304_v58, 0.0  ;;  %v8419_v58 = vld [vmem:[%s9668_s24 + $0x20] sm:$0xff] }
 0x8d5   : > { %v6305_v46 = vpop.f32.mrf.mxu3 }
 0x8d6   : > { %v6306_v63 = vadd.f32 %v11536_v49, %v6305_v46  ;;  %6698 = vrot.lane.b32.xlu1 %v11570_v26, %s8473_s29 }
 0x8d7   : > { %6670 = vrot.lane.b32.xlu2 %v11351_v20, %s8473_s29  ;;  %v11657_v20 = vld [vmem:[%s11945_s18] ss:$0 sm:$0xff] }
 0x8d8   : > { %v6366_v17 = vmax.f32 %v6306_v63, 0.0 }
 0x8da   : > { %v6391_v53 = vpack.c.bf16 %v6366_v17, %v6365_v36 }
 0x8dc   : > { %7668 = vmatmul.msk.bf16.gmra.mxu0 %vm1680_vm0, %v6391_v53 }
 0x8dd   : > { %v6114_v12 = vpop.f32.mrf.mxu1 }
 0x8de   : > { %6704 = vrot.lane.b32.xlu1 %v5918_v60, %s8473_s29  ;;  %v6115_v26 = vadd.f32 %v11452_v34, %v6114_v12 }
 0x8df   : > { %6676 = vrot.lane.b32.xlu2 %v11413_v38, %s8473_s29 }
 0x8e0   : > { %v5986_v48 = vpop.permute.xlu0 %5985  ;;  %v6164_v38 = vmax.f32 %v6115_v26, 0.0 }
 0x8e1   : > { %7635 = vmatmul.msk.bf16.gmra.mxu1 %vm1680_vm0, %v5986_v48 }
 0x8e5   : > { %v6116_v33 = vpop.f32.mrf.mxu1 }
 0x8e6   : > { %v6117_v44 = vadd.f32 %v11452_v34, %v6116_v33 }
 0x8e7   : > { %6682 = vrot.lane.b32.xlu2 %v11464_v1, %s8473_s29 }
 0x8e8   : > { %v6165_v61 = vmax.f32 %v6117_v44, 0.0  ;;  %v6643_v15 = vpop.permute.xlu0 %6642  ;;  %v8420_v44 = vld [vmem:[%s9668_s24 + $0x28] sm:$0xff] }
 0x8e9   : > { %v6466_v57 = vpop.f32.mrf.mxu0  ;;  %6738 = vst.msk [vmem:[%s11664_s3] sm:$0xff] %vm1680_vm0, %v6643_v15 }
 0x8ea   : > { %v6467_v41 = vadd.f32 %v11657_v20, %v6466_v57  ;;  %v6186_v42 = vpack.c.bf16 %v6165_v61, %v6164_v38 }
 0x8ec   : > { %v6546_v1 = vadd.f32 %v8415_v3, %v6467_v41  ;;  %7656 = vmatmul.msk.bf16.gmra.mxu3 %vm1680_vm0, %v6186_v42 }
 0x8ee   : > { %6578 = vst.msk [vmem:[%s11675_s27] sm:$0xff] %vm4174_vm4, %v6546_v1  ;;  %v6308_v40 = vpop.f32.mrf.mxu3 }
 0x8ef   : > { %6688 = vrot.lane.b32.xlu2 %v11492_v43, %s8473_s29  ;;  %v6309_v45 = vadd.f32 %v11536_v49, %v6308_v40 }
 0x8f0   : > { %v6649_v56 = vpop.permute.xlu0 %6648 }
 0x8f1   : > { %v6468_v6 = vpop.f32.mrf.mxu0  ;;  %6741 = vst.msk [vmem:[%s11664_s3 + $0x18] sm:$0xff] %vm1680_vm0, %v6649_v56  ;;  %v6367_v28 = vmax.f32 %v6309_v45, 0.0 }
 0x8f2   : > { %v6469_v11 = vadd.f32 %v11657_v20, %v6468_v6 }
 0x8f4   : > { %v6547_v0 = vadd.f32 %v8416_v50, %v6469_v11 }
 0x8f5   : > { %v6119_v23 = vpop.f32.mrf.mxu1 }
 0x8f6   : > { %6579 = vst.msk [vmem:[%s11675_s27 + $0x8] sm:$0xff] %vm4174_vm4, %v6547_v0  ;;  %v6310_v29 = vpop.f32.mrf.mxu3  ;;  %v6120_v27 = vadd.f32 %v11452_v34, %v6119_v23 }
 0x8f7   : > { %v6311_v14 = vadd.f32 %v11536_v49, %v6310_v29  ;;  %6694 = vrot.lane.b32.xlu2 %v11549_v2, %s8473_s29 }
 0x8f8   : > { %v6655_v43 = vpop.permute.xlu0 %6654  ;;  %v5988_v18 = vpop.permute.xlu1 %5987  ;;  %v6166_v16 = vmax.f32 %v6120_v27, 0.0  ;;  %v8422_v27 = vld [vmem:[%s9668_s24 + $0x38] sm:$0xff] }
 0x8f9   : > { %v6368_v13 = vmax.f32 %v6311_v14, 0.0  ;;  %6744 = vst.msk [vmem:[%s11664_s3 + $0x30] sm:$0xff] %vm1680_vm0, %v6655_v43  ;;  %7636 = vmatmul.msk.bf16.gmra.mxu1 %vm1680_vm0, %v5988_v18  ;;  %v6471_v8 = vpop.f32.mrf.mxu0  ;;  %v8421_v14 = vld [vmem:[%s9668_s24 + $0x30] sm:$0xff] }
 0x8fa   : > { %v6472_v39 = vadd.f32 %v11657_v20, %v6471_v8 }
 0x8fb   : > { %v6392_v59 = vpack.c.bf16 %v6368_v13, %v6367_v28 }
 0x8fc   : > { %v6548_v60 = vadd.f32 %v8417_v10, %v6472_v39 }
 0x8fd   : > { %v6121_v2 = vpop.f32.mrf.mxu1  ;;  %7669 = vmatmul.msk.bf16.gmra.mxu0 %vm1680_vm0, %v6392_v59 }
 0x8fe   : > { %6580 = vst.msk [vmem:[%s11675_s27 + $0x10] sm:$0xff] %vm4174_vm4, %v6548_v60  ;;  %v6122_v24 = vadd.f32 %v11452_v34, %v6121_v2 }
 0x8ff   : > { %6700 = vrot.lane.b32.xlu2 %v11568_v22, %s8473_s29 }
 0x900   : > { %v6167_v5 = vmax.f32 %v6122_v24, 0.0  ;;  %v6661_v19 = vpop.permute.xlu0 %6660  ;;  %v6645_v55 = vpop.permute.xlu1 %6644 }
 0x901   : > { %6747 = vst.msk [vmem:[%s11664_s3 + $0x48] sm:$0xff] %vm1680_vm0, %v6661_v19  ;;  %v6473_v37 = vpop.f32.mrf.mxu0 }
 0x902   : > { %v6187_v4 = vpack.c.bf16 %v6167_v5, %v6166_v16  ;;  %6739 = vst.msk [vmem:[%s11664_s3 + $0x8] sm:$0xff] %vm1680_vm0, %v6645_v55  ;;  %v6474_v52 = vadd.f32 %v11657_v20, %v6473_v37 }
 0x904   : > { %v6549_v54 = vadd.f32 %v8418_v7, %v6474_v52  ;;  %7657 = vmatmul.msk.bf16.gmra.mxu3 %vm1680_vm0, %v6187_v4 }
 0x906   : > { %6581 = vst.msk [vmem:[%s11675_s27 + $0x18] sm:$0xff] %vm4174_vm4, %v6549_v54  ;;  %v8423_v54 = vld [vmem:[%s9668_s24 + $0x40] sm:$0xff] }
 0x908   : > { %v6667_v22 = vpop.permute.xlu0 %6666  ;;  %v6651_v47 = vpop.permute.xlu1 %6650 }
 0x909   : > { %6750 = vst.msk [vmem:[%s11664_s3 + $0x60] sm:$0xff] %vm1680_vm0, %v6667_v22  ;;  %v5990_v31 = vpop.permute.xlu2 %5989 }
 0x90a   : > { %6742 = vst.msk [vmem:[%s11664_s3 + $0x20] sm:$0xff] %vm1680_vm0, %v6651_v47  ;;  %7637 = vmatmul.msk.bf16.gmra.mxu1 %vm1680_vm0, %v5990_v31 }
 0x910   : > { %v6673_v35 = vpop.permute.xlu0 %6672  ;;  %v6657_v25 = vpop.permute.xlu1 %6656 }
 0x911   : > { %6753 = vst.msk [vmem:[%s11664_s3 + $0x78] sm:$0xff] %vm1680_vm0, %v6673_v35  ;;  %v6647_v21 = vpop.permute.xlu2 %6646 }
 0x912   : > { %6740 = vst.msk [vmem:[%s11664_s3 + $0x10] sm:$0xff] %vm1680_vm0, %v6647_v21  ;;  %v8424_v21 = vld [vmem:[%s9668_s24 + $0x48] sm:$0xff] }
 0x913   : > { %6745 = vst.msk [vmem:[%s11664_s3 + $0x38] sm:$0xff] %vm1680_vm0, %v6657_v25 }
 0x918   : > { %v6679_v30 = vpop.permute.xlu0 %6678  ;;  %v6663_v51 = vpop.permute.xlu1 %6662 }
 0x919   : > { %6756 = vst.msk [vmem:[%s11664_s3 + $0x90] sm:$0xff] %vm1680_vm0, %v6679_v30  ;;  %v6653_v9 = vpop.permute.xlu2 %6652  ;;  %v6476_v62 = vpop.f32.mrf.mxu0 }
 0x91a   : > { %6743 = vst.msk [vmem:[%s11664_s3 + $0x28] sm:$0xff] %vm1680_vm0, %v6653_v9  ;;  %v6477_v32 = vadd.f32 %v11657_v20, %v6476_v62 }
 0x91b   : > { %6748 = vst.msk [vmem:[%s11664_s3 + $0x50] sm:$0xff] %vm1680_vm0, %v6663_v51 }
 0x91c   : > { %v6550_v46 = vadd.f32 %v8419_v58, %v6477_v32  ;;  %v8425_v58 = vld [vmem:[%s9668_s24 + $0x50] sm:$0xff] }
 0x91d   : > { %v6124_v63 = vpop.f32.mrf.mxu1 }
 0x91e   : > { %6582 = vst.msk [vmem:[%s11675_s27 + $0x20] sm:$0xff] %vm4174_vm4, %v6550_v46  ;;  %v6313_v36 = vpop.f32.mrf.mxu3  ;;  %v6125_v33 = vadd.f32 %v11452_v34, %v6124_v63 }
 0x91f   : > { %v6314_v61 = vadd.f32 %v11536_v49, %v6313_v36 }
 0x920   : > { %v6685_v17 = vpop.permute.xlu0 %6684  ;;  %v6669_v53 = vpop.permute.xlu1 %6668  ;;  %v6168_v3 = vmax.f32 %v6125_v33, 0.0 }
 0x921   : > { %6759 = vst.msk [vmem:[%s11664_s3 + $0xa8] sm:$0xff] %vm1680_vm0, %v6685_v17  ;;  %v6659_v12 = vpop.permute.xlu2 %6658  ;;  %v6478_v48 = vpop.f32.mrf.mxu0  ;;  %v6369_v6 = vmax.f32 %v6314_v61, 0.0 }
 0x922   : > { %6746 = vst.msk [vmem:[%s11664_s3 + $0x40] sm:$0xff] %vm1680_vm0, %v6659_v12  ;;  %v6479_v26 = vadd.f32 %v11657_v20, %v6478_v48  ;;  %v8426_v12 = vld [vmem:[%s9668_s24 + $0x58] sm:$0xff] }
 0x923   : > { %6751 = vst.msk [vmem:[%s11664_s3 + $0x68] sm:$0xff] %vm1680_vm0, %v6669_v53 }
 0x924   : > { %v6551_v38 = vadd.f32 %v8420_v44, %v6479_v26 }
 0x925   : > { %v6126_v15 = vpop.f32.mrf.mxu1 }
 0x926   : > { %6583 = vst.msk [vmem:[%s11675_s27 + $0x28] sm:$0xff] %vm4174_vm4, %v6551_v38  ;;  %v6127_v57 = vadd.f32 %v11452_v34, %v6126_v15  ;;  %v6315_v41 = vpop.f32.mrf.mxu3  ;;  %v8427_v38 = vld [vmem:[%s9668_s24 + $0x60] sm:$0xff] }
 0x927   : > { %v6316_v42 = vadd.f32 %v11536_v49, %v6315_v41 }
 0x928   : > { %v6169_v1 = vmax.f32 %v6127_v57, 0.0  ;;  %v6691_v40 = vpop.permute.xlu0 %6690  ;;  %v6675_v56 = vpop.permute.xlu1 %6674 }
 0x929   : > { %v6370_v11 = vmax.f32 %v6316_v42, 0.0  ;;  %6762 = vst.msk [vmem:[%s11664_s3 + $0xc0] sm:$0xff] %vm1680_vm0, %v6691_v40  ;;  %v6665_v50 = vpop.permute.xlu2 %6664  ;;  %v6481_v0 = vpop.f32.mrf.mxu0  ;;  %v8428_v42 = vld [vmem:[%s9668_s24 + $0x68] sm:$0xff] }
 0x92a   : > { %v6188_v45 = vpack.c.bf16 %v6169_v1, %v6168_v3  ;;  %6749 = vst.msk [vmem:[%s11664_s3 + $0x58] sm:$0xff] %vm1680_vm0, %v6665_v50  ;;  %v6482_v23 = vadd.f32 %v11657_v20, %v6481_v0 }
 0x92b   : > { %v6393_v29 = vpack.c.bf16 %v6370_v11, %v6369_v6  ;;  %6754 = vst.msk [vmem:[%s11664_s3 + $0x80] sm:$0xff] %vm1680_vm0, %v6675_v56 }
 0x92c   : > { %v6552_v43 = vadd.f32 %v8421_v14, %v6482_v23  ;;  %7658 = vmatmul.msk.bf16.gmra.mxu3 %vm1680_vm0, %v6188_v45 }
 0x92d   : > { %7670 = vmatmul.msk.bf16.gmra.mxu0 %vm1680_vm0, %v6393_v29 }
 0x92e   : > { %6584 = vst.msk [vmem:[%s11675_s27 + $0x30] sm:$0xff] %vm4174_vm4, %v6552_v43  ;;  %v6318_v18 = vpop.f32.mrf.mxu3 }
 0x92f   : > { %v6319_v60 = vadd.f32 %v11536_v49, %v6318_v18 }
 0x930   : > { %v6697_v28 = vpop.permute.xlu0 %6696  ;;  %v6681_v13 = vpop.permute.xlu1 %6680 }
 0x931   : > { %6765 = vst.msk [vmem:[%s11664_s3 + $0xd8] sm:$0xff] %vm1680_vm0, %v6697_v28  ;;  %v6671_v8 = vpop.permute.xlu2 %6670  ;;  %v6483_v39 = vpop.f32.mrf.mxu0  ;;  %v6371_v19 = vmax.f32 %v6319_v60, 0.0 }
 0x932   : > { %6752 = vst.msk [vmem:[%s11664_s3 + $0x70] sm:$0xff] %vm1680_vm0, %v6671_v8  ;;  %v6484_v59 = vadd.f32 %v11657_v20, %v6483_v39 }
 0x933   : > { %6757 = vst.msk [vmem:[%s11664_s3 + $0x98] sm:$0xff] %vm1680_vm0, %v6681_v13 }
 0x934   : > { %v6553_v10 = vadd.f32 %v8422_v27, %v6484_v59  ;;  %v8429_v59 = vld [vmem:[%s9668_s24 + $0x70] sm:$0xff] }
 0x936   : > { %6585 = vst.msk [vmem:[%s11675_s27 + $0x38] sm:$0xff] %vm4174_vm4, %v6553_v10  ;;  %v6320_v2 = vpop.f32.mrf.mxu3 }
 0x937   : > { %v6321_v24 = vadd.f32 %v11536_v49, %v6320_v2 }
 0x938   : > { %v6703_v16 = vpop.permute.xlu0 %6702  ;;  %v6687_v5 = vpop.permute.xlu1 %6686 }
 0x939   : > { %v6372_v55 = vmax.f32 %v6321_v24, 0.0  ;;  %6768 = vst.msk [vmem:[%s11664_s3 + $0xf0] sm:$0xff] %vm1680_vm0, %v6703_v16  ;;  %v6677_v37 = vpop.permute.xlu2 %6676  ;;  %v6486_v4 = vpop.f32.mrf.mxu0 }
 0x93a   : > { %6755 = vst.msk [vmem:[%s11664_s3 + $0x88] sm:$0xff] %vm1680_vm0, %v6677_v37  ;;  %v6487_v52 = vadd.f32 %v11657_v20, %v6486_v4 }
 0x93b   : > { %v6394_v7 = vpack.c.bf16 %v6372_v55, %v6371_v19  ;;  %6760 = vst.msk [vmem:[%s11664_s3 + $0xb0] sm:$0xff] %vm1680_vm0, %v6687_v5  ;;  %v8430_v55 = vld [vmem:[%s9668_s24 + $0x78] sm:$0xff] }
 0x93c   : > { %v6554_v22 = vadd.f32 %v8423_v54, %v6487_v52 }
 0x93d   : > { %7671 = vmatmul.msk.bf16.gmra.mxu0 %vm1680_vm0, %v6394_v7 }
 0x93e   : > { %6586 = vst.msk [vmem:[%s11675_s27 + $0x40] sm:$0xff] %vm4174_vm4, %v6554_v22 }
 0x940   : > { %v6693_v47 = vpop.permute.xlu1 %6692 }
 0x941   : > { %v6683_v31 = vpop.permute.xlu2 %6682  ;;  %6763 = vst.msk [vmem:[%s11664_s3 + $0xc8] sm:$0xff] %vm1680_vm0, %v6693_v47  ;;  %v6488_v35 = vpop.f32.mrf.mxu0 }
 0x942   : > { %6758 = vst.msk [vmem:[%s11664_s3 + $0xa0] sm:$0xff] %vm1680_vm0, %v6683_v31  ;;  %v6489_v25 = vadd.f32 %v11657_v20, %v6488_v35 }
 0x944   : > { %v6555_v30 = vadd.f32 %v8424_v21, %v6489_v25 }
 0x946   : > { %6587 = vst.msk [vmem:[%s11675_s27 + $0x48] sm:$0xff] %vm4174_vm4, %v6555_v30 }
 0x948   : > { %v6699_v51 = vpop.permute.xlu1 %6698 }
 0x949   : > { %v6689_v9 = vpop.permute.xlu2 %6688  ;;  %6766 = vst.msk [vmem:[%s11664_s3 + $0xe0] sm:$0xff] %vm1680_vm0, %v6699_v51  ;;  %v6491_v62 = vpop.f32.mrf.mxu0 }
 0x94a   : > { %6761 = vst.msk [vmem:[%s11664_s3 + $0xb8] sm:$0xff] %vm1680_vm0, %v6689_v9  ;;  %v6492_v32 = vadd.f32 %v11657_v20, %v6491_v62 }
 0x94c   : > { %v6556_v46 = vadd.f32 %v8425_v58, %v6492_v32 }
 0x94e   : > { %6588 = vst.msk [vmem:[%s11675_s27 + $0x50] sm:$0xff] %vm4174_vm4, %v6556_v46  ;;  %v8431_v46 = vld [vmem:[%s9668_s24 + $0x80] sm:$0xff] }
 0x950   : > { %v6705_v63 = vpop.permute.xlu1 %6704 }
 0x951   : > { %v6695_v36 = vpop.permute.xlu2 %6694  ;;  %6769 = vst.msk [vmem:[%s11664_s3 + $0xf8] sm:$0xff] %vm1680_vm0, %v6705_v63  ;;  %v6493_v17 = vpop.f32.mrf.mxu0 }
 0x952   : > { %6764 = vst.msk [vmem:[%s11664_s3 + $0xd0] sm:$0xff] %vm1680_vm0, %v6695_v36  ;;  %v6494_v53 = vadd.f32 %v11657_v20, %v6493_v17 }
 0x954   : > { %v6557_v48 = vadd.f32 %v8426_v12, %v6494_v53  ;;  %v8432_v53 = vld [vmem:[%s9668_s24 + $0x88] sm:$0xff] }
 0x956   : > { %6589 = vst.msk [vmem:[%s11675_s27 + $0x58] sm:$0xff] %vm4174_vm4, %v6557_v48 }
 0x959   : > { %v6701_v26 = vpop.permute.xlu2 %6700  ;;  %v6496_v33 = vpop.f32.mrf.mxu0 }
 0x95a   : > { %6767 = vst.msk [vmem:[%s11664_s3 + $0xe8] sm:$0xff] %vm1680_vm0, %v6701_v26  ;;  %v6497_v44 = vadd.f32 %v11657_v20, %v6496_v33 }
 0x95c   : > { %v6558_v61 = vadd.f32 %v8427_v38, %v6497_v44 }
 0x95e   : > { %6590 = vst.msk [vmem:[%s11675_s27 + $0x60] sm:$0xff] %vm4174_vm4, %v6558_v61  ;;  %v6129_v15 = vpop.f32.mrf.mxu1 }
 0x95f   : > { %v6130_v1 = vadd.f32 %v11452_v34, %v6129_v15 }
 0x961   : > { %v6498_v57 = vpop.f32.mrf.mxu0  ;;  %v6170_v6 = vmax.f32 %v6130_v1, 0.0 }
 0x962   : > { %v6499_v41 = vadd.f32 %v11657_v20, %v6498_v57 }
 0x964   : > { %v6559_v3 = vadd.f32 %v8428_v42, %v6499_v41  ;;  %v8433_v41 = vld [vmem:[%s9668_s24 + $0x90] sm:$0xff] }
 0x966   : > { %6591 = vst.msk [vmem:[%s11675_s27 + $0x68] sm:$0xff] %vm4174_vm4, %v6559_v3  ;;  %v6131_v40 = vpop.f32.mrf.mxu1 }
 0x967   : > { %v6132_v56 = vadd.f32 %v11452_v34, %v6131_v40  ;;  %v8434_v40 = vld [vmem:[%s9668_s24 + $0x98] sm:$0xff] }
 0x969   : > { %v6171_v11 = vmax.f32 %v6132_v56, 0.0 }
 0x96b   : > { %v6189_v50 = vpack.c.bf16 %v6171_v11, %v6170_v6 }
 0x96d   : > { %7659 = vmatmul.msk.bf16.gmra.mxu3 %vm1680_vm0, %v6189_v50 }
 0x96f   : > { %v6323_v0 = vpop.f32.mrf.mxu3 }
 0x970   : > { %v6324_v45 = vadd.f32 %v11536_v49, %v6323_v0 }
 0x972   : > { %v6373_v43 = vmax.f32 %v6324_v45, 0.0 }
 0x976   : > { %v6134_v23 = vpop.f32.mrf.mxu1 }
 0x977   : > { %v6325_v29 = vpop.f32.mrf.mxu3  ;;  %v6135_v39 = vadd.f32 %v11452_v34, %v6134_v23 }
 0x978   : > { %v6326_v14 = vadd.f32 %v11536_v49, %v6325_v29 }
 0x979   : > { %v6172_v2 = vmax.f32 %v6135_v39, 0.0  ;;  %v8436_v39 = vld [vmem:[%s9668_s24 + $0xa8] sm:$0xff] }
 0x97a   : > { %v6374_v18 = vmax.f32 %v6326_v14, 0.0  ;;  %v6501_v28 = vpop.f32.mrf.mxu0 }
 0x97b   : > { %v6502_v13 = vadd.f32 %v11657_v20, %v6501_v28 }
 0x97c   : > { %v6395_v8 = vpack.c.bf16 %v6374_v18, %v6373_v43  ;;  %v8435_v18 = vld [vmem:[%s9668_s24 + $0xa0] sm:$0xff] }
 0x97d   : > { %v6560_v27 = vadd.f32 %v8429_v59, %v6502_v13 }
 0x97e   : > { %v6136_v10 = vpop.f32.mrf.mxu1  ;;  %7672 = vmatmul.msk.bf16.gmra.mxu0 %vm1680_vm0, %v6395_v8 }
 0x97f   : > { %6592 = vst.msk [vmem:[%s11675_s27 + $0x70] sm:$0xff] %vm4174_vm4, %v6560_v27  ;;  %v6137_v60 = vadd.f32 %v11452_v34, %v6136_v10 }
 0x981   : > { %v6173_v24 = vmax.f32 %v6137_v60, 0.0 }
 0x982   : > { %v6503_v16 = vpop.f32.mrf.mxu0 }
 0x983   : > { %v6190_v5 = vpack.c.bf16 %v6173_v24, %v6172_v2  ;;  %v6504_v19 = vadd.f32 %v11657_v20, %v6503_v16 }
 0x985   : > { %v6561_v37 = vadd.f32 %v8430_v55, %v6504_v19  ;;  %7660 = vmatmul.msk.bf16.gmra.mxu3 %vm1680_vm0, %v6190_v5 }
 0x987   : > { %6593 = vst.msk [vmem:[%s11675_s27 + $0x78] sm:$0xff] %vm4174_vm4, %v6561_v37  ;;  %v6139_v4 = vpop.f32.mrf.mxu1  ;;  %v6328_v52 = vpop.f32.mrf.mxu3  ;;  %v8437_v37 = vld [vmem:[%s9668_s24 + $0xb0] sm:$0xff] }
 0x988   : > { %v6140_v7 = vadd.f32 %v11452_v34, %v6139_v4  ;;  %v6329_v54 = vadd.f32 %v11536_v49, %v6328_v52 }
 0x98a   : > { %v6174_v25 = vmax.f32 %v6140_v7, 0.0  ;;  %v6375_v21 = vmax.f32 %v6329_v54, 0.0 }
 0x98f   : > { %v6141_v22 = vpop.f32.mrf.mxu1  ;;  %v6330_v47 = vpop.f32.mrf.mxu3 }
 0x990   : > { %v6142_v31 = vadd.f32 %v11452_v34, %v6141_v22  ;;  %v6331_v35 = vadd.f32 %v11536_v49, %v6330_v47  ;;  %v8438_v22 = vld [vmem:[%s9668_s24 + $0xb8] sm:$0xff] }
 0x992   : > { %v6175_v30 = vmax.f32 %v6142_v31, 0.0  ;;  %v6376_v51 = vmax.f32 %v6331_v35, 0.0 }
 0x994   : > { %v6191_v9 = vpack.c.bf16 %v6175_v30, %v6174_v25  ;;  %v6396_v62 = vpack.c.bf16 %v6376_v51, %v6375_v21 }
 0x996   : > { %7661 = vmatmul.msk.bf16.gmra.mxu3 %vm1680_vm0, %v6191_v9  ;;  %7673 = vmatmul.msk.bf16.gmra.mxu0 %vm1680_vm0, %v6396_v62 }
 0x9aa   : > { %v6506_v32 = vpop.f32.mrf.mxu0 }
 0x9ab   : > { %v6507_v58 = vadd.f32 %v11657_v20, %v6506_v32  ;;  %v8439_v32 = vld [vmem:[%s9668_s24 + $0xc0] sm:$0xff] }
 0x9ad   : > { %v6562_v63 = vadd.f32 %v8431_v46, %v6507_v58 }
 0x9af   : > { %6594 = vst.msk [vmem:[%s11675_s27 + $0x80] sm:$0xff] %vm4174_vm4, %v6562_v63  ;;  %v6333_v34 = vpop.f32.mrf.mxu3 }
 0x9b0   : > { %v6334_v48 = vadd.f32 %v11536_v49, %v6333_v34 }
 0x9b2   : > { %v6508_v36 = vpop.f32.mrf.mxu0  ;;  %v6377_v44 = vmax.f32 %v6334_v48, 0.0 }
 0x9b3   : > { %v6509_v17 = vadd.f32 %v11657_v20, %v6508_v36 }
 0x9b5   : > { %v6563_v12 = vadd.f32 %v8432_v53, %v6509_v17  ;;  %v8441_v53 = vld [vmem:[%s9668_s24 + $0xd0] sm:$0xff] }
 0x9b7   : > { %6595 = vst.msk [vmem:[%s11675_s27 + $0x88] sm:$0xff] %vm4174_vm4, %v6563_v12  ;;  %v6335_v26 = vpop.f32.mrf.mxu3 }
 0x9b8   : > { %v6336_v33 = vadd.f32 %v11536_v49, %v6335_v26 }
 0x9ba   : > { %v6378_v38 = vmax.f32 %v6336_v33, 0.0  ;;  %v6511_v61 = vpop.f32.mrf.mxu0  ;;  %v8442_v33 = vld [vmem:[%s9668_s24 + $0xd8] sm:$0xff] }
 0x9bb   : > { %v6512_v15 = vadd.f32 %v11657_v20, %v6511_v61 }
 0x9bc   : > { %v6397_v57 = vpack.c.bf16 %v6378_v38, %v6377_v44 }
 0x9bd   : > { %v6564_v42 = vadd.f32 %v8433_v41, %v6512_v15  ;;  %v8443_v15 = vld [vmem:[%s9668_s24 + $0xe0] sm:$0xff] }
 0x9be   : > { %7674 = vmatmul.msk.bf16.gmra.mxu0 %vm1680_vm0, %v6397_v57 }
 0x9bf   : > { %6596 = vst.msk [vmem:[%s11675_s27 + $0x90] sm:$0xff] %vm4174_vm4, %v6564_v42 }
 0x9c2   : > { %v6513_v3 = vpop.f32.mrf.mxu0 }
 0x9c3   : > { %v6514_v1 = vadd.f32 %v11657_v20, %v6513_v3  ;;  %v8444_v3 = vld [vmem:[%s9668_s24 + $0xe8] sm:$0xff] }
 0x9c5   : > { %v6565_v56 = vadd.f32 %v8434_v40, %v6514_v1 }
 0x9c7   : > { %6597 = vst.msk [vmem:[%s11675_s27 + $0x98] sm:$0xff] %vm4174_vm4, %v6565_v56 }
 0x9f0   : > { %v6338_v6 = vpop.f32.mrf.mxu3 }
 0x9f1   : > { %v6339_v11 = vadd.f32 %v11536_v49, %v6338_v6  ;;  %v8445_v6 = vld [vmem:[%s9668_s24 + $0xf0] sm:$0xff] }
 0x9f3   : > { %v6379_v45 = vmax.f32 %v6339_v11, 0.0 }
 0x9f8   : > { %v6340_v50 = vpop.f32.mrf.mxu3 }
 0x9f9   : > { %v6341_v0 = vadd.f32 %v11536_v49, %v6340_v50 }
 0x9fb   : > { %v6380_v23 = vmax.f32 %v6341_v0, 0.0  ;;  %v6516_v29 = vpop.f32.mrf.mxu0 }
 0x9fc   : > { %v6517_v14 = vadd.f32 %v11657_v20, %v6516_v29 }
 0x9fd   : > { %v6398_v43 = vpack.c.bf16 %v6380_v23, %v6379_v45  ;;  %v8446_v45 = vld [vmem:[%s9668_s24 + $0xf8] sm:$0xff] }
 0x9fe   : > { %v6566_v28 = vadd.f32 %v8435_v18, %v6517_v14 }
 0x9ff   : > { %7675 = vmatmul.msk.bf16.gmra.mxu0 %vm1680_vm0, %v6398_v43 }
 0xa00   : > { %6598 = vst.msk [vmem:[%s11675_s27 + $0xa0] sm:$0xff] %vm4174_vm4, %v6566_v28 }
 0xa03   : > { %v6518_v13 = vpop.f32.mrf.mxu0 }
 0xa04   : > { %v6519_v8 = vadd.f32 %v11657_v20, %v6518_v13 }
 0xa06   : > { %v6567_v59 = vadd.f32 %v8436_v39, %v6519_v8 }
 0xa08   : > { %6599 = vst.msk [vmem:[%s11675_s27 + $0xa8] sm:$0xff] %vm4174_vm4, %v6567_v59  ;;  %v6343_v27 = vpop.f32.mrf.mxu3 }
 0xa09   : > { %v6344_v10 = vadd.f32 %v11536_v49, %v6343_v27 }
 0xa0b   : > { %v6381_v24 = vmax.f32 %v6344_v10, 0.0 }
 0xa10   : > { %v6345_v60 = vpop.f32.mrf.mxu3 }
 0xa11   : > { %v6346_v2 = vadd.f32 %v11536_v49, %v6345_v60 }
 0xa13   : > { %v6382_v16 = vmax.f32 %v6346_v2, 0.0  ;;  %v6521_v5 = vpop.f32.mrf.mxu0 }
 0xa14   : > { %v6522_v19 = vadd.f32 %v11657_v20, %v6521_v5 }
 0xa15   : > { %v6399_v55 = vpack.c.bf16 %v6382_v16, %v6381_v24 }
 0xa16   : > { %v6568_v4 = vadd.f32 %v8437_v37, %v6522_v19 }
 0xa17   : > { %7676 = vmatmul.msk.bf16.gmra.mxu0 %vm1680_vm0, %v6399_v55 }
 0xa18   : > { %6600 = vst.msk [vmem:[%s11675_s27 + $0xb0] sm:$0xff] %vm4174_vm4, %v6568_v4 }
 0xa19   : > { %v6348_v52 = vpop.f32.mrf.mxu3 }
 0xa1a   : > { %v6349_v31 = vadd.f32 %v11536_v49, %v6348_v52 }
 0xa1b   : > { %v6523_v7 = vpop.f32.mrf.mxu0 }
 0xa1c   : > { %v6524_v54 = vadd.f32 %v11657_v20, %v6523_v7  ;;  %v6383_v21 = vmax.f32 %v6349_v31, 0.0 }
 0xa1e   : > { %v6569_v47 = vadd.f32 %v8438_v22, %v6524_v54 }
 0xa20   : > { %6601 = vst.msk [vmem:[%s11675_s27 + $0xb8] sm:$0xff] %vm4174_vm4, %v6569_v47 }
 0xa21   : > { %v6350_v35 = vpop.f32.mrf.mxu3 }
 0xa22   : > { %v6351_v25 = vadd.f32 %v11536_v49, %v6350_v35  ;;  %v8440_v49 = vld [vmem:[%s9668_s24 + $0xc8] sm:$0xff] }
 0xa24   : > { %v6384_v30 = vmax.f32 %v6351_v25, 0.0 }
 0xa26   : > { %v6400_v51 = vpack.c.bf16 %v6384_v30, %v6383_v21 }
 0xa28   : > { %7677 = vmatmul.msk.bf16.gmra.mxu0 %vm1680_vm0, %v6400_v51 }
 0xa3b   : > { %v6526_v9 = vpop.f32.mrf.mxu0 }
 0xa3c   : > { %v6527_v62 = vadd.f32 %v11657_v20, %v6526_v9 }
 0xa3e   : > { %v6570_v58 = vadd.f32 %v8439_v32, %v6527_v62 }
 0xa40   : > { %6602 = vst.msk [vmem:[%s11675_s27 + $0xc0] sm:$0xff] %vm4174_vm4, %v6570_v58 }
 0xa43   : > { %v6528_v46 = vpop.f32.mrf.mxu0 }
 0xa44   : > { %v6529_v63 = vadd.f32 %v11657_v20, %v6528_v46 }
 0xa46   : > { %v6571_v34 = vadd.f32 %v8440_v49, %v6529_v63 }
 0xa48   : > { %6603 = vst.msk [vmem:[%s11675_s27 + $0xc8] sm:$0xff] %vm4174_vm4, %v6571_v34 }
 0xa7c   : > { %v6531_v36 = vpop.f32.mrf.mxu0 }
 0xa7d   : > { %v6532_v17 = vadd.f32 %v11657_v20, %v6531_v36 }
 0xa7f   : > { %v6572_v12 = vadd.f32 %v8441_v53, %v6532_v17 }
 0xa81   : > { %6604 = vst.msk [vmem:[%s11675_s27 + $0xd0] sm:$0xff] %vm4174_vm4, %v6572_v12 }
 0xa84   : > { %v6533_v48 = vpop.f32.mrf.mxu0 }
 0xa85   : > { %v6534_v26 = vadd.f32 %v11657_v20, %v6533_v48 }
 0xa87   : > { %v6573_v44 = vadd.f32 %v8442_v33, %v6534_v26 }
 0xa89   : > { %6605 = vst.msk [vmem:[%s11675_s27 + $0xd8] sm:$0xff] %vm4174_vm4, %v6573_v44 }
 0xa94   : > { %v6536_v38 = vpop.f32.mrf.mxu0 }
 0xa95   : > { %v6537_v61 = vadd.f32 %v11657_v20, %v6536_v38 }
 0xa97   : > { %v6574_v57 = vadd.f32 %v8443_v15, %v6537_v61 }
 0xa99   : > { %6606 = vst.msk [vmem:[%s11675_s27 + $0xe0] sm:$0xff] %vm4174_vm4, %v6574_v57 }
 0xa9c   : > { %v6538_v41 = vpop.f32.mrf.mxu0 }
 0xa9d   : > { %v6539_v42 = vadd.f32 %v11657_v20, %v6538_v41 }
 0xa9f   : > { %v6575_v1 = vadd.f32 %v8444_v3, %v6539_v42 }
 0xaa1   : > { %6607 = vst.msk [vmem:[%s11675_s27 + $0xe8] sm:$0xff] %vm4174_vm4, %v6575_v1 }
 0xaa5   : > { %v6541_v40 = vpop.f32.mrf.mxu0 }
 0xaa6   : > { %v6542_v56 = vadd.f32 %v11657_v20, %v6541_v40 }
 0xaa8   : > { %v6576_v11 = vadd.f32 %v8445_v6, %v6542_v56 }
 0xaaa   : > { %6608 = vst.msk [vmem:[%s11675_s27 + $0xf0] sm:$0xff] %vm4174_vm4, %v6576_v11 }
 0xaad   : > { %v6543_v50 = vpop.f32.mrf.mxu0 }
 0xaae   : > { %v6544_v0 = vadd.f32 %v11657_v20, %v6543_v50 }
 0xab0   : > { %v6577_v23 = vadd.f32 %v8446_v45, %v6544_v0 }
 0xab2   : > { %6609 = vst.msk [vmem:[%s11675_s27 + $0xf8] sm:$0xff] %vm4174_vm4, %v6577_v23 }
 0xab3 PF: > { %p28_p9 = scmp.ge.s32.totalorder %s8596_s2, 4   ;;  %s12160_s1 = smov %s8465_s22 }
 0xab4   : > { %s12161_s22 = smov %s8605_s26  ;;  %s12162_s23 = smov %s8596_s2 }
 0xab5   :  { %30 = sbr.rel (!%p28_p9) target bundleno = 8 (0x8), region = 240 }

</bundles_post_ra>
